<compile_context>
chip_gen: v6e
topology: v6e:2x2x1
jax: 0.10.0
libtpu: 0.0.40
codegen_flags: <defaults>
</compile_context>

<pallas_src>
import functools
import math

import jax
import jax.numpy as jnp
from jax.experimental import pallas as pl
from jax.experimental.pallas import tpu as pltpu


def _layernorm(x, eps=1e-6):
    # LayerNorm over channels, eps=1e-6, no affine (elementwise_affine=False).
    mu = jnp.mean(x, axis=-1, keepdims=True)
    var = jnp.mean((x - mu) ** 2, axis=-1, keepdims=True)
    return (x - mu) * jax.lax.rsqrt(var + eps)


# ---------------------------------------------------------------------------
# kernel 1: LN(x) -> fused K_x / V_x projection, one (batch, q-tile) per step
# ---------------------------------------------------------------------------
def _xkv_kernel(x_ref, wkv_ref, bkv_ref, k_ref, v_ref):
    x = jnp.transpose(x_ref[0])                                   # (C, tq) -> (tq, C), XLU
    xn = _layernorm(x).astype(jnp.bfloat16)                       # MXU operand
    kvp = jnp.dot(xn, wkv_ref[...],
                  preferred_element_type=jnp.float32) + bkv_ref[...]   # (tq, 2C) f32
    c = x.shape[-1]
    k_ref[0] = kvp[:, :c].astype(k_ref.dtype)
    v_ref[0] = kvp[:, c:].astype(v_ref.dtype)


# ---------------------------------------------------------------------------
# kernel 2: kv_mapper (SiLU + Linear) + fused K/V projection of conditioning tokens
# ---------------------------------------------------------------------------
def _kvc_kernel(kv_ref, wm_ref, bm_ref, wkv_ref, bkv_ref, k_ref, v_ref):
    kv = kv_ref[0]                                                # (S_kv_pad, c_cond) f32
    s = kv * jax.nn.sigmoid(kv)                                   # SiLU in f32 (EUP)
    mapped = jnp.dot(s.astype(jnp.bfloat16), wm_ref[...],
                     preferred_element_type=jnp.float32) + bm_ref[...]
    kvp = jnp.dot(mapped.astype(jnp.bfloat16), wkv_ref[...],
                  preferred_element_type=jnp.float32) + bkv_ref[...]   # (S_kv_pad, 2C)
    c = wm_ref.shape[1]
    k_ref[0] = kvp[:, :c].astype(k_ref.dtype)
    v_ref[0] = kvp[:, c:].astype(v_ref.dtype)


# ---------------------------------------------------------------------------
# kernel 3: LN + Q projection (recomputed in VMEM), MHA over [K_x ; K_c],
#           per-head out-projection accumulation, residual; per (batch, q-tile)
# ---------------------------------------------------------------------------
def _attn_kernel(*refs, nhead, s_kv, self_attn, exp_dtype):
    if self_attn:
        (x_ref, kx_ref, vx_ref, kc_ref, vc_ref,
         wq_ref, bq_ref, wo_ref, bo_ref, o_ref) = refs
    else:
        (x_ref, kc_ref, vc_ref, wq_ref, bq_ref, wo_ref, bo_ref, o_ref) = refs
        kx_ref = vx_ref = None

    xt = x_ref[0]                                                 # (C, tq) f32, NCHW native
    x = jnp.transpose(xt)                                         # (tq, C) f32
    xn = _layernorm(x)
    # Wq / bq already carry the 1/sqrt(dh) scale (folded in the wrapper).
    q = jnp.dot(xn.astype(jnp.bfloat16), wq_ref[...],
                preferred_element_type=jnp.float32) + bq_ref[...]
    qb = q.astype(jnp.bfloat16)                                   # (tq, C)

    kc = kc_ref[0]                                                # (S_kv_pad, C) bf16
    vc = vc_ref[0]
    s_kv_pad = kc.shape[0]
    if self_attn:
        kx = kx_ref[0]                                            # (S_q, C) bf16
        vx = vx_ref[0]

    c = q.shape[-1]
    dh = c // nhead
    # TODO(synk): merge head pairs into a single matmul when dh % 128 != 0 (non-lane-
    #             aligned head slices force relayout copies / half-filled MXU).
    y = jnp.zeros((q.shape[0], c), jnp.float32)
    for h in range(nhead):                                        # static unroll over heads
        lo = h * dh
        qh = qb[:, lo:lo + dh]                                    # (tq, dh) bf16
        # cross (conditioning) scores, pad keys masked
        sc = jax.lax.dot_general(qh, kc[:, lo:lo + dh], (((1,), (1,)), ((), ())),
                                 preferred_element_type=jnp.float32)   # (tq, S_kv_pad)
        if s_kv < s_kv_pad:
            pad_mask = jax.lax.broadcasted_iota(jnp.int32, sc.shape, 1) < s_kv
            sc = jnp.where(pad_mask, sc, -1e30)
        if self_attn:
            ss = jax.lax.dot_general(qh, kx[:, lo:lo + dh], (((1,), (1,)), ((), ())),
                                     preferred_element_type=jnp.float32)  # (tq, S_q)
            m = jnp.maximum(jnp.max(ss, axis=-1, keepdims=True),
                            jnp.max(sc, axis=-1, keepdims=True))
            ps = jnp.exp((ss - m).astype(exp_dtype))
            pc = jnp.exp((sc - m).astype(exp_dtype))
            l = (jnp.sum(ps, axis=-1, keepdims=True, dtype=jnp.float32)
                 + jnp.sum(pc, axis=-1, keepdims=True, dtype=jnp.float32))
            oh = (jnp.dot(ps.astype(jnp.bfloat16), vx[:, lo:lo + dh],
                          preferred_element_type=jnp.float32)
                  + jnp.dot(pc.astype(jnp.bfloat16), vc[:, lo:lo + dh],
                            preferred_element_type=jnp.float32))       # (tq, dh) f32
        else:
            m = jnp.max(sc, axis=-1, keepdims=True)
            pc = jnp.exp((sc - m).astype(exp_dtype))
            l = jnp.sum(pc, axis=-1, keepdims=True, dtype=jnp.float32)
            oh = jnp.dot(pc.astype(jnp.bfloat16), vc[:, lo:lo + dh],
                         preferred_element_type=jnp.float32)
        # deferred normalization: scale the (tq, dh) accumulator, not the (tq, L) probs
        oh = oh * pl.reciprocal(l, approx=True)
        # per-head out-projection accumulation (no heads concat, Wo overlaps head loop)
        y = y + jnp.dot(oh.astype(jnp.bfloat16), wo_ref[lo:lo + dh, :],
                        preferred_element_type=jnp.float32)
    y = y + bo_ref[...]
    o_ref[0] = (xt + jnp.transpose(y)).astype(o_ref.dtype)        # residual in NCHW layout


def _device_kind():
    try:
        return jax.devices()[0].device_kind.lower()
    except Exception:
        return ""


# ---------------------------------------------------------------------------
# wrapper
# ---------------------------------------------------------------------------
@functools.partial(jax.jit, static_argnames=("nhead", "self_attn"))
def attn_block(x_nchw, kv, params, *, nhead, self_attn=True):
    """x_nchw: (B, C, H, W) f32; kv: (B, S_kv, c_cond) f32.  Returns (B, C, H, W) f32."""
    (w_kvm, b_kvm, wq, wk, wv, bq, bk, bv, wo, bo) = params
    B, C, H, W = x_nchw.shape
    S_q = H * W
    S_kv, c_cond = kv.shape[1], kv.shape[2]
    assert C % nhead == 0
    dh = C // nhead
    scale = 1.0 / math.sqrt(dh)

    kind = _device_kind()
    # v5e/v6e have 128 MiB physical VMEM; v7x has 64 MiB.
    vmem_cap = (100 if ("v5" in kind or "v6" in kind) else 48) * 1024 * 1024
    # v6e/v7x MXU is 256-row: tq=256 fills it; v5e's 128x128 MXU is already full at 128.
    tq = 128 if "v5" in kind else 256
    tq = min(tq, S_q)
    while S_q % tq != 0:
        tq //= 2
    assert tq >= 8 and S_q % tq == 0, "spatial size must admit a q tile"
    n_q = S_q // tq

    # NCHW is consumed / produced natively by the kernels; this reshape is free.
    x_flat = x_nchw.reshape(B, C, S_q)

    # Weight prep: bf16 MXU operands, fused [Wk|Wv], 1/sqrt(dh) folded into Wq/bq.
    wq_b = (wq * scale).astype(jnp.bfloat16)
    bq_s = bq * scale
    wkv_b = jnp.concatenate([wk, wv], axis=1).astype(jnp.bfloat16)    # (C, 2C)
    bkv = jnp.concatenate([bk, bv], axis=1)                           # (1, 2C) f32
    wo_b = wo.astype(jnp.bfloat16)
    w_kvm_b = w_kvm.astype(jnp.bfloat16)

    # Pad conditioning tokens to a lane-dense key length; padding is masked in-kernel.
    S_kv_pad = max(128, ((S_kv + 127) // 128) * 128)
    kv_p = jnp.pad(kv, ((0, 0), (0, S_kv_pad - S_kv), (0, 0))) if S_kv_pad != S_kv else kv

    # exp on the EUP: bf16 on v6e/v7x (bf16 EUP), f32 elsewhere (no bf16 EUP on v5e).
    exp_dtype = jnp.bfloat16 if ("v6" in kind or "v7" in kind) else jnp.float32

    cparams_bi = pltpu.CompilerParams(
        dimension_semantics=("parallel", "parallel"), vmem_limit_bytes=vmem_cap)
    cparams_b = pltpu.CompilerParams(
        dimension_semantics=("parallel",), vmem_limit_bytes=vmem_cap)

    # --- kernel 1: LN(x) -> K_x, V_x (self-attention keys/values) ------------
    if self_attn:
        k_x, v_x = pl.pallas_call(
            _xkv_kernel,
            out_shape=tuple(jax.ShapeDtypeStruct((B, S_q, C), jnp.bfloat16)
                            for _ in range(2)),
            grid_spec=pltpu.PrefetchScalarGridSpec(
                num_scalar_prefetch=0,
                grid=(B, n_q),
                in_specs=[
                    pl.BlockSpec((1, C, tq), lambda b, i: (b, 0, i)),   # x (NCHW native)
                    pl.BlockSpec((C, 2 * C), lambda b, i: (0, 0)),      # [Wk | Wv]
                    pl.BlockSpec((1, 2 * C), lambda b, i: (0, 0)),      # [bk | bv]
                ],
                out_specs=tuple(pl.BlockSpec((1, tq, C), lambda b, i: (b, i, 0))
                                for _ in range(2)),
            ),
            compiler_params=cparams_bi,
        )(x_flat, wkv_b, bkv)

    # --- kernel 2: kv_mapper + fused K/V projection of conditioning ----------
    k_c, v_c = pl.pallas_call(
        _kvc_kernel,
        out_shape=tuple(jax.ShapeDtypeStruct((B, S_kv_pad, C), jnp.bfloat16)
                        for _ in range(2)),
        grid_spec=pltpu.PrefetchScalarGridSpec(
            num_scalar_prefetch=0,
            grid=(B,),
            in_specs=[
                pl.BlockSpec((1, S_kv_pad, c_cond), lambda b: (b, 0, 0)),  # kv (padded)
                pl.BlockSpec((c_cond, C), lambda b: (0, 0)),               # W_kv_mapper
                pl.BlockSpec((1, C), lambda b: (0, 0)),                    # b_kv_mapper
                pl.BlockSpec((C, 2 * C), lambda b: (0, 0)),                # [Wk | Wv]
                pl.BlockSpec((1, 2 * C), lambda b: (0, 0)),                # [bk | bv]
            ],
            out_specs=tuple(pl.BlockSpec((1, S_kv_pad, C), lambda b: (b, 0, 0))
                            for _ in range(2)),
        ),
        compiler_params=cparams_b,
    )(kv_p, w_kvm_b, b_kvm, wkv_b, bkv)

    # --- kernel 3: LN + Q (in VMEM), MHA over [K_x ; K_c], out-proj + residual
    kernel3 = functools.partial(_attn_kernel, nhead=nhead, s_kv=S_kv,
                                self_attn=self_attn, exp_dtype=exp_dtype)
    in_specs = [pl.BlockSpec((1, C, tq), lambda b, i: (b, 0, i))]          # x (residual + Q)
    args = [x_flat]
    if self_attn:
        in_specs += [pl.BlockSpec((1, S_q, C), lambda b, i: (b, 0, 0)),    # K_x (full seq)
                     pl.BlockSpec((1, S_q, C), lambda b, i: (b, 0, 0))]    # V_x
        args += [k_x, v_x]
    in_specs += [
        pl.BlockSpec((1, S_kv_pad, C), lambda b, i: (b, 0, 0)),            # K_c
        pl.BlockSpec((1, S_kv_pad, C), lambda b, i: (b, 0, 0)),            # V_c
        pl.BlockSpec((C, C), lambda b, i: (0, 0)),                         # Wq (pre-scaled)
        pl.BlockSpec((1, C), lambda b, i: (0, 0)),                         # bq (pre-scaled)
        pl.BlockSpec((C, C), lambda b, i: (0, 0)),                         # Wo
        pl.BlockSpec((1, C), lambda b, i: (0, 0)),                         # bo
    ]
    args += [k_c, v_c, wq_b, bq_s, wo_b, bo]

    out = pl.pallas_call(
        kernel3,
        out_shape=jax.ShapeDtypeStruct((B, C, S_q), x_nchw.dtype),
        grid_spec=pltpu.PrefetchScalarGridSpec(
            num_scalar_prefetch=0,
            grid=(B, n_q),
            in_specs=in_specs,
            out_specs=pl.BlockSpec((1, C, tq), lambda b, i: (b, 0, i)),    # NCHW native
        ),
        compiler_params=cparams_bi,
    )(*args)

    return out.reshape(B, C, H, W)


# ---------------------------------------------------------------------------
# synthetic parameters + pure-JAX f32 reference
# ---------------------------------------------------------------------------
def init_params(key, c, c_cond):
    """Weights stored as (in, out) matrices (transposed vs torch Linear.weight)."""
    ks = jax.random.split(key, 10)

    def lin(k, fan_in, shape):
        lim = 1.0 / math.sqrt(fan_in)
        return jax.random.uniform(k, shape, jnp.float32, -lim, lim)

    w_kvm = lin(ks[0], c_cond, (c_cond, c)); b_kvm = lin(ks[1], c_cond, (1, c))
    wq = lin(ks[2], c, (c, c)); bq = lin(ks[3], c, (1, c))
    wk = lin(ks[4], c, (c, c)); bk = lin(ks[5], c, (1, c))
    wv = lin(ks[6], c, (c, c)); bv = lin(ks[7], c, (1, c))
    wo = lin(ks[8], c, (c, c)); bo = lin(ks[9], c, (1, c))
    return (w_kvm, b_kvm, wq, wk, wv, bq, bk, bv, wo, bo)


def _reference(x_nchw, kv, params, *, nhead, self_attn=True):
    """Pure-JAX f32 reference of AttnBlock.forward_body (eval mode)."""
    (w_kvm, b_kvm, wq, wk, wv, bq, bk, bv, wo, bo) = params
    B, C, H, W = x_nchw.shape
    S = H * W
    x = jnp.transpose(x_nchw, (0, 2, 3, 1)).reshape(B, S, C)
    mu = jnp.mean(x, axis=-1, keepdims=True)
    var = jnp.mean((x - mu) ** 2, axis=-1, keepdims=True)
    xn = (x - mu) / jnp.sqrt(var + 1e-6)
    kvm = jax.nn.silu(kv) @ w_kvm + b_kvm
    seq = jnp.concatenate([xn, kvm], axis=1) if self_attn else kvm
    q = xn @ wq + bq
    k = seq @ wk + bk
    v = seq @ wv + bv
    dh = C // nhead

    def split(t):
        return t.reshape(B, -1, nhead, dh).transpose(0, 2, 1, 3)   # (B, nh, L, dh)

    qh, kh, vh = split(q), split(k), split(v)
    s = jnp.einsum("bhqd,bhkd->bhqk", qh, kh) / math.sqrt(dh)
    p = jax.nn.softmax(s, axis=-1)
    o = jnp.einsum("bhqk,bhkd->bhqd", p, vh)
    o = o.transpose(0, 2, 1, 3).reshape(B, S, C)
    y = o @ wo + bo
    out = x + y
    return jnp.transpose(out.reshape(B, H, W, C), (0, 3, 1, 2))


if __name__ == "__main__":
    # Small but TPU-friendly shapes: C multiple of 128 (lane dim), head_dim = 128.
    B, C, H, W = 2, 256, 16, 16
    c_cond, S_kv, nhead = 128, 16, 2

    key = jax.random.PRNGKey(0)
    kx, kkv, kp = jax.random.split(key, 3)
    x = jax.random.normal(kx, (B, C, H, W), jnp.float32)
    kv = jax.random.normal(kkv, (B, S_kv, c_cond), jnp.float32)
    params = init_params(kp, C, c_cond)

    out = attn_block(x, kv, params, nhead=nhead, self_attn=True)
    out = jax.block_until_ready(out)

    ref = _reference(x, kv, params, nhead=nhead, self_attn=True)
    assert out.shape == (B, C, H, W)
    err = float(jnp.max(jnp.abs(out - ref)))
    # bf16 MXU operands (and bf16 exp on v6e/v7x) with f32 accumulation -> loose tolerance
    assert jnp.allclose(out, ref, rtol=5e-2, atol=5e-2), \
        f"mismatch vs pure-JAX reference (max abs err {err})"
    print("KERNEL_OK")
</pallas_src>

<mosaic_0001>
module attributes {stable_mosaic.version = 11 : i64} {
  func.func @_kvc_kernel(%arg0: i32, %arg1: memref<1x128x128xf32, #tpu.memory_space<vmem>>, %arg2: memref<128x256xbf16, #tpu.memory_space<vmem>>, %arg3: memref<1x256xf32, #tpu.memory_space<vmem>>, %arg4: memref<256x512xbf16, #tpu.memory_space<vmem>>, %arg5: memref<1x512xf32, #tpu.memory_space<vmem>>, %arg6: memref<1x128x256xbf16, #tpu.memory_space<vmem>>, %arg7: memref<1x128x256xbf16, #tpu.memory_space<vmem>>) attributes {dimension_semantics = [#tpu.dimension_semantics<parallel>], iteration_bounds = array<i64: 2>, scalar_prefetch = 0 : i64, scratch_operands = 0 : i64, tpu.core_type = #tpu.core_type<tc>, window_params = [{transform_indices = @transform_0, window_bounds = array<i64: 1, 128, 128>}, {pipeline_mode = #tpu.pipeline_mode<synchronous>, transform_indices = @transform_1, window_bounds = array<i64: 128, 256>}, {pipeline_mode = #tpu.pipeline_mode<synchronous>, transform_indices = @transform_2, window_bounds = array<i64: 1, 256>}, {pipeline_mode = #tpu.pipeline_mode<synchronous>, transform_indices = @transform_3, window_bounds = array<i64: 256, 512>}, {pipeline_mode = #tpu.pipeline_mode<synchronous>, transform_indices = @transform_4, window_bounds = array<i64: 1, 512>}, {transform_indices = @transform_5, window_bounds = array<i64: 1, 128, 256>}, {transform_indices = @transform_6, window_bounds = array<i64: 1, 128, 256>}]} {
    %c0 = arith.constant 0 : index
    %c0_0 = arith.constant 0 : index
    %c0_1 = arith.constant 0 : index
    %0 = vector.load %arg1[%c0, %c0_0, %c0_1] : memref<1x128x128xf32, #tpu.memory_space<vmem>>, vector<1x128x128xf32>
    %1 = vector.shape_cast %0 : vector<1x128x128xf32> to vector<128x128xf32>
    %2 = arith.negf %1 : vector<128x128xf32>
    %3 = math.exp %2 : vector<128x128xf32>
    %cst = arith.constant 1.000000e+00 : f32
    %4 = vector.broadcast %cst : f32 to vector<128x128xf32>
    %5 = arith.addf %4, %3 : vector<128x128xf32>
    %6 = arith.divf %4, %5 : vector<128x128xf32>
    %7 = arith.mulf %1, %6 : vector<128x128xf32>
    %8 = arith.truncf %7 : vector<128x128xf32> to vector<128x128xbf16>
    %c0_2 = arith.constant 0 : index
    %c0_3 = arith.constant 0 : index
    %9 = vector.load %arg2[%c0_2, %c0_3] : memref<128x256xbf16, #tpu.memory_space<vmem>>, vector<128x256xbf16>
    %cst_4 = arith.constant dense<0.000000e+00> : vector<128x256xf32>
    %10 = tpu.matmul %8, %9, %cst_4 {dimension_numbers = #tpu.dot_dimension_numbers<[1], [0], [0], [1], [0, 0, 1, 1], [], []>} : vector<128x128xbf16>, vector<128x256xbf16>, vector<128x256xf32> -> vector<128x256xf32>
    %c0_5 = arith.constant 0 : index
    %c0_6 = arith.constant 0 : index
    %11 = vector.load %arg3[%c0_5, %c0_6] : memref<1x256xf32, #tpu.memory_space<vmem>>, vector<1x256xf32>
    %12 = vector.broadcast %11 : vector<1x256xf32> to vector<128x256xf32>
    %13 = arith.addf %10, %12 : vector<128x256xf32>
    %14 = arith.truncf %13 : vector<128x256xf32> to vector<128x256xbf16>
    %c0_7 = arith.constant 0 : index
    %c0_8 = arith.constant 0 : index
    %15 = vector.load %arg4[%c0_7, %c0_8] : memref<256x512xbf16, #tpu.memory_space<vmem>>, vector<256x512xbf16>
    %cst_9 = arith.constant dense<0.000000e+00> : vector<128x512xf32>
    %16 = tpu.matmul %14, %15, %cst_9 {dimension_numbers = #tpu.dot_dimension_numbers<[1], [0], [0], [1], [0, 0, 1, 1], [], []>} : vector<128x256xbf16>, vector<256x512xbf16>, vector<128x512xf32> -> vector<128x512xf32>
    %c0_10 = arith.constant 0 : index
    %c0_11 = arith.constant 0 : index
    %17 = vector.load %arg5[%c0_10, %c0_11] : memref<1x512xf32, #tpu.memory_space<vmem>>, vector<1x512xf32>
    %18 = vector.broadcast %17 : vector<1x512xf32> to vector<128x512xf32>
    %19 = arith.addf %16, %18 : vector<128x512xf32>
    %20 = vector.extract_strided_slice %19 {offsets = [0, 0], sizes = [128, 256], strides = [1, 1]} : vector<128x512xf32> to vector<128x256xf32>
    %21 = arith.truncf %20 : vector<128x256xf32> to vector<128x256xbf16>
    %c0_12 = arith.constant 0 : index
    %c0_13 = arith.constant 0 : index
    %c0_14 = arith.constant 0 : index
    %22 = vector.load %arg6[%c0_12, %c0_13, %c0_14] : memref<1x128x256xbf16, #tpu.memory_space<vmem>>, vector<1x128x256xbf16>
    %23 = vector.shape_cast %22 : vector<1x128x256xbf16> to vector<128x256xbf16>
    %24 = vector.shape_cast %21 : vector<128x256xbf16> to vector<1x128x256xbf16>
    tpu.vector_store %arg6[%c0_12, %c0_13, %c0_14], %24 {strides = array<i32>} : memref<1x128x256xbf16, #tpu.memory_space<vmem>>, vector<1x128x256xbf16>,
    %25 = vector.extract_strided_slice %19 {offsets = [0, 256], sizes = [128, 256], strides = [1, 1]} : vector<128x512xf32> to vector<128x256xf32>
    %26 = arith.truncf %25 : vector<128x256xf32> to vector<128x256xbf16>
    %c0_15 = arith.constant 0 : index
    %c0_16 = arith.constant 0 : index
    %c0_17 = arith.constant 0 : index
    %27 = vector.load %arg7[%c0_15, %c0_16, %c0_17] : memref<1x128x256xbf16, #tpu.memory_space<vmem>>, vector<1x128x256xbf16>
    %28 = vector.shape_cast %27 : vector<1x128x256xbf16> to vector<128x256xbf16>
    %29 = vector.shape_cast %26 : vector<128x256xbf16> to vector<1x128x256xbf16>
    tpu.vector_store %arg7[%c0_15, %c0_16, %c0_17], %29 {strides = array<i32>} : memref<1x128x256xbf16, #tpu.memory_space<vmem>>, vector<1x128x256xbf16>,
    return
  }
  func.func @transform_0(%arg0: i32) -> (i32, i32, i32) {
    %c0_i32 = arith.constant 0 : i32
    %c0_i32_0 = arith.constant 0 : i32
    %c0_i32_1 = arith.constant 0 : i32
    return %arg0, %c0_i32, %c0_i32_0 : i32, i32, i32
  }
  func.func @transform_1(%arg0: i32) -> (i32, i32) {
    %c0_i32 = arith.constant 0 : i32
    %c0_i32_0 = arith.constant 0 : i32
    %c0_i32_1 = arith.constant 0 : i32
    return %c0_i32, %c0_i32_0 : i32, i32
  }
  func.func @transform_2(%arg0: i32) -> (i32, i32) {
    %c0_i32 = arith.constant 0 : i32
    %c0_i32_0 = arith.constant 0 : i32
    %c0_i32_1 = arith.constant 0 : i32
    return %c0_i32, %c0_i32_0 : i32, i32
  }
  func.func @transform_3(%arg0: i32) -> (i32, i32) {
    %c0_i32 = arith.constant 0 : i32
    %c0_i32_0 = arith.constant 0 : i32
    %c0_i32_1 = arith.constant 0 : i32
    return %c0_i32, %c0_i32_0 : i32, i32
  }
  func.func @transform_4(%arg0: i32) -> (i32, i32) {
    %c0_i32 = arith.constant 0 : i32
    %c0_i32_0 = arith.constant 0 : i32
    %c0_i32_1 = arith.constant 0 : i32
    return %c0_i32, %c0_i32_0 : i32, i32
  }
  func.func @transform_5(%arg0: i32) -> (i32, i32, i32) {
    %c0_i32 = arith.constant 0 : i32
    %c0_i32_0 = arith.constant 0 : i32
    %c0_i32_1 = arith.constant 0 : i32
    return %arg0, %c0_i32, %c0_i32_0 : i32, i32, i32
  }
  func.func @transform_6(%arg0: i32) -> (i32, i32, i32) {
    %c0_i32 = arith.constant 0 : i32
    %c0_i32_0 = arith.constant 0 : i32
    %c0_i32_1 = arith.constant 0 : i32
    return %arg0, %c0_i32, %c0_i32_0 : i32, i32, i32
  }
}

module attributes {stable_mosaic.version = 11 : i64} {
  func.func @_xkv_kernel(%arg0: i32, %arg1: i32, %arg2: memref<1x256x256xf32, #tpu.memory_space<vmem>>, %arg3: memref<256x512xbf16, #tpu.memory_space<vmem>>, %arg4: memref<1x512xf32, #tpu.memory_space<vmem>>, %arg5: memref<1x256x256xbf16, #tpu.memory_space<vmem>>, %arg6: memref<1x256x256xbf16, #tpu.memory_space<vmem>>) attributes {dimension_semantics = [#tpu.dimension_semantics<parallel>, #tpu.dimension_semantics<parallel>], iteration_bounds = array<i64: 2, 1>, scalar_prefetch = 0 : i64, scratch_operands = 0 : i64, tpu.core_type = #tpu.core_type<tc>, window_params = [{transform_indices = @transform_0, window_bounds = array<i64: 1, 256, 256>}, {pipeline_mode = #tpu.pipeline_mode<synchronous>, transform_indices = @transform_1, window_bounds = array<i64: 256, 512>}, {pipeline_mode = #tpu.pipeline_mode<synchronous>, transform_indices = @transform_2, window_bounds = array<i64: 1, 512>}, {transform_indices = @transform_3, window_bounds = array<i64: 1, 256, 256>}, {transform_indices = @transform_4, window_bounds = array<i64: 1, 256, 256>}]} {
    %c0 = arith.constant 0 : index
    %c0_0 = arith.constant 0 : index
    %c0_1 = arith.constant 0 : index
    %0 = vector.load %arg2[%c0, %c0_0, %c0_1] : memref<1x256x256xf32, #tpu.memory_space<vmem>>, vector<1x256x256xf32>
    %1 = vector.shape_cast %0 : vector<1x256x256xf32> to vector<256x256xf32>
    %2 = tpu.transpose %1, [1, 0] : vector<256x256xf32> -> vector<256x256xf32>
    %cst = arith.constant dense<0.000000e+00> : vector<256xf32>
    %3 = vector.multi_reduction <add>, %2, %cst [1] : vector<256x256xf32> to vector<256xf32>
    %4 = vector.shape_cast %3 : vector<256xf32> to vector<256x1xf32>
    %cst_2 = arith.constant 2.560000e+02 : f32
    %5 = vector.broadcast %cst_2 : f32 to vector<256x1xf32>
    %6 = arith.divf %4, %5 : vector<256x1xf32>
    %7 = vector.broadcast %6 : vector<256x1xf32> to vector<256x256xf32>
    %8 = arith.subf %2, %7 : vector<256x256xf32>
    %9 = arith.mulf %8, %8 : vector<256x256xf32>
    %cst_3 = arith.constant dense<0.000000e+00> : vector<256xf32>
    %10 = vector.multi_reduction <add>, %9, %cst_3 [1] : vector<256x256xf32> to vector<256xf32>
    %11 = vector.shape_cast %10 : vector<256xf32> to vector<256x1xf32>
    %cst_4 = arith.constant 2.560000e+02 : f32
    %12 = vector.broadcast %cst_4 : f32 to vector<256x1xf32>
    %13 = arith.divf %11, %12 : vector<256x1xf32>
    %14 = vector.broadcast %6 : vector<256x1xf32> to vector<256x256xf32>
    %15 = arith.subf %2, %14 : vector<256x256xf32>
    %cst_5 = arith.constant 9.99999997E-7 : f32
    %16 = vector.broadcast %cst_5 : f32 to vector<256x1xf32>
    %17 = arith.addf %13, %16 : vector<256x1xf32>
    %18 = math.rsqrt %17 : vector<256x1xf32>
    %19 = vector.broadcast %18 : vector<256x1xf32> to vector<256x256xf32>
    %20 = arith.mulf %15, %19 : vector<256x256xf32>
    %21 = arith.truncf %20 : vector<256x256xf32> to vector<256x256xbf16>
    %c0_6 = arith.constant 0 : index
    %c0_7 = arith.constant 0 : index
    %22 = vector.load %arg3[%c0_6, %c0_7] : memref<256x512xbf16, #tpu.memory_space<vmem>>, vector<256x512xbf16>
    %cst_8 = arith.constant dense<0.000000e+00> : vector<256x512xf32>
    %23 = tpu.matmul %21, %22, %cst_8 {dimension_numbers = #tpu.dot_dimension_numbers<[1], [0], [0], [1], [0, 0, 1, 1], [], []>} : vector<256x256xbf16>, vector<256x512xbf16>, vector<256x512xf32> -> vector<256x512xf32>
    %c0_9 = arith.constant 0 : index
    %c0_10 = arith.constant 0 : index
    %24 = vector.load %arg4[%c0_9, %c0_10] : memref<1x512xf32, #tpu.memory_space<vmem>>, vector<1x512xf32>
    %25 = vector.broadcast %24 : vector<1x512xf32> to vector<256x512xf32>
    %26 = arith.addf %23, %25 : vector<256x512xf32>
    %27 = vector.extract_strided_slice %26 {offsets = [0, 0], sizes = [256, 256], strides = [1, 1]} : vector<256x512xf32> to vector<256x256xf32>
    %28 = arith.truncf %27 : vector<256x256xf32> to vector<256x256xbf16>
    %c0_11 = arith.constant 0 : index
    %c0_12 = arith.constant 0 : index
    %c0_13 = arith.constant 0 : index
    %29 = vector.load %arg5[%c0_11, %c0_12, %c0_13] : memref<1x256x256xbf16, #tpu.memory_space<vmem>>, vector<1x256x256xbf16>
    %30 = vector.shape_cast %29 : vector<1x256x256xbf16> to vector<256x256xbf16>
    %31 = vector.shape_cast %28 : vector<256x256xbf16> to vector<1x256x256xbf16>
    tpu.vector_store %arg5[%c0_11, %c0_12, %c0_13], %31 {strides = array<i32>} : memref<1x256x256xbf16, #tpu.memory_space<vmem>>, vector<1x256x256xbf16>,
    %32 = vector.extract_strided_slice %26 {offsets = [0, 256], sizes = [256, 256], strides = [1, 1]} : vector<256x512xf32> to vector<256x256xf32>
    %33 = arith.truncf %32 : vector<256x256xf32> to vector<256x256xbf16>
    %c0_14 = arith.constant 0 : index
    %c0_15 = arith.constant 0 : index
    %c0_16 = arith.constant 0 : index
    %34 = vector.load %arg6[%c0_14, %c0_15, %c0_16] : memref<1x256x256xbf16, #tpu.memory_space<vmem>>, vector<1x256x256xbf16>
    %35 = vector.shape_cast %34 : vector<1x256x256xbf16> to vector<256x256xbf16>
    %36 = vector.shape_cast %33 : vector<256x256xbf16> to vector<1x256x256xbf16>
    tpu.vector_store %arg6[%c0_14, %c0_15, %c0_16], %36 {strides = array<i32>} : memref<1x256x256xbf16, #tpu.memory_space<vmem>>, vector<1x256x256xbf16>,
    return
  }
  func.func @transform_0(%arg0: i32, %arg1: i32) -> (i32, i32, i32) {
    %c0_i32 = arith.constant 0 : i32
    %c0_i32_0 = arith.constant 0 : i32
    return %arg0, %c0_i32, %arg1 : i32, i32, i32
  }
  func.func @transform_1(%arg0: i32, %arg1: i32) -> (i32, i32) {
    %c0_i32 = arith.constant 0 : i32
    %c0_i32_0 = arith.constant 0 : i32
    %c0_i32_1 = arith.constant 0 : i32
    return %c0_i32, %c0_i32_0 : i32, i32
  }
  func.func @transform_2(%arg0: i32, %arg1: i32) -> (i32, i32) {
    %c0_i32 = arith.constant 0 : i32
    %c0_i32_0 = arith.constant 0 : i32
    %c0_i32_1 = arith.constant 0 : i32
    return %c0_i32, %c0_i32_0 : i32, i32
  }
  func.func @transform_3(%arg0: i32, %arg1: i32) -> (i32, i32, i32) {
    %c0_i32 = arith.constant 0 : i32
    %c0_i32_0 = arith.constant 0 : i32
    return %arg0, %arg1, %c0_i32 : i32, i32, i32
  }
  func.func @transform_4(%arg0: i32, %arg1: i32) -> (i32, i32, i32) {
    %c0_i32 = arith.constant 0 : i32
    %c0_i32_0 = arith.constant 0 : i32
    return %arg0, %arg1, %c0_i32 : i32, i32, i32
  }
}

module attributes {stable_mosaic.version = 11 : i64} {
  func.func @_attn_kernel(%arg0: i32, %arg1: i32, %arg2: memref<1x256x256xf32, #tpu.memory_space<vmem>>, %arg3: memref<1x256x256xbf16, #tpu.memory_space<vmem>>, %arg4: memref<1x256x256xbf16, #tpu.memory_space<vmem>>, %arg5: memref<1x128x256xbf16, #tpu.memory_space<vmem>>, %arg6: memref<1x128x256xbf16, #tpu.memory_space<vmem>>, %arg7: memref<256x256xbf16, #tpu.memory_space<vmem>>, %arg8: memref<1x256xf32, #tpu.memory_space<vmem>>, %arg9: memref<256x256xbf16, #tpu.memory_space<vmem>>, %arg10: memref<1x256xf32, #tpu.memory_space<vmem>>, %arg11: memref<1x256x256xf32, #tpu.memory_space<vmem>>) attributes {dimension_semantics = [#tpu.dimension_semantics<parallel>, #tpu.dimension_semantics<parallel>], iteration_bounds = array<i64: 2, 1>, scalar_prefetch = 0 : i64, scratch_operands = 0 : i64, tpu.core_type = #tpu.core_type<tc>, window_params = [{transform_indices = @transform_0, window_bounds = array<i64: 1, 256, 256>}, {transform_indices = @transform_1, window_bounds = array<i64: 1, 256, 256>}, {transform_indices = @transform_2, window_bounds = array<i64: 1, 256, 256>}, {transform_indices = @transform_3, window_bounds = array<i64: 1, 128, 256>}, {transform_indices = @transform_4, window_bounds = array<i64: 1, 128, 256>}, {pipeline_mode = #tpu.pipeline_mode<synchronous>, transform_indices = @transform_5, window_bounds = array<i64: 256, 256>}, {pipeline_mode = #tpu.pipeline_mode<synchronous>, transform_indices = @transform_6, window_bounds = array<i64: 1, 256>}, {pipeline_mode = #tpu.pipeline_mode<synchronous>, transform_indices = @transform_7, window_bounds = array<i64: 256, 256>}, {pipeline_mode = #tpu.pipeline_mode<synchronous>, transform_indices = @transform_8, window_bounds = array<i64: 1, 256>}, {transform_indices = @transform_9, window_bounds = array<i64: 1, 256, 256>}]} {
    %c0 = arith.constant 0 : index
    %c0_0 = arith.constant 0 : index
    %c0_1 = arith.constant 0 : index
    %0 = vector.load %arg2[%c0, %c0_0, %c0_1] : memref<1x256x256xf32, #tpu.memory_space<vmem>>, vector<1x256x256xf32>
    %1 = vector.shape_cast %0 : vector<1x256x256xf32> to vector<256x256xf32>
    %2 = tpu.transpose %1, [1, 0] : vector<256x256xf32> -> vector<256x256xf32>
    %cst = arith.constant dense<0.000000e+00> : vector<256xf32>
    %3 = vector.multi_reduction <add>, %2, %cst [1] : vector<256x256xf32> to vector<256xf32>
    %4 = vector.shape_cast %3 : vector<256xf32> to vector<256x1xf32>
    %cst_2 = arith.constant 2.560000e+02 : f32
    %5 = vector.broadcast %cst_2 : f32 to vector<256x1xf32>
    %6 = arith.divf %4, %5 : vector<256x1xf32>
    %7 = vector.broadcast %6 : vector<256x1xf32> to vector<256x256xf32>
    %8 = arith.subf %2, %7 : vector<256x256xf32>
    %9 = arith.mulf %8, %8 : vector<256x256xf32>
    %cst_3 = arith.constant dense<0.000000e+00> : vector<256xf32>
    %10 = vector.multi_reduction <add>, %9, %cst_3 [1] : vector<256x256xf32> to vector<256xf32>
    %11 = vector.shape_cast %10 : vector<256xf32> to vector<256x1xf32>
    %cst_4 = arith.constant 2.560000e+02 : f32
    %12 = vector.broadcast %cst_4 : f32 to vector<256x1xf32>
    %13 = arith.divf %11, %12 : vector<256x1xf32>
    %14 = vector.broadcast %6 : vector<256x1xf32> to vector<256x256xf32>
    %15 = arith.subf %2, %14 : vector<256x256xf32>
    %cst_5 = arith.constant 9.99999997E-7 : f32
    %16 = vector.broadcast %cst_5 : f32 to vector<256x1xf32>
    %17 = arith.addf %13, %16 : vector<256x1xf32>
    %18 = math.rsqrt %17 : vector<256x1xf32>
    %19 = vector.broadcast %18 : vector<256x1xf32> to vector<256x256xf32>
    %20 = arith.mulf %15, %19 : vector<256x256xf32>
    %21 = arith.truncf %20 : vector<256x256xf32> to vector<256x256xbf16>
    %c0_6 = arith.constant 0 : index
    %c0_7 = arith.constant 0 : index
    %22 = vector.load %arg7[%c0_6, %c0_7] : memref<256x256xbf16, #tpu.memory_space<vmem>>, vector<256x256xbf16>
    %cst_8 = arith.constant dense<0.000000e+00> : vector<256x256xf32>
    %23 = tpu.matmul %21, %22, %cst_8 {dimension_numbers = #tpu.dot_dimension_numbers<[1], [0], [0], [1], [0, 0, 1, 1], [], []>} : vector<256x256xbf16>, vector<256x256xbf16>, vector<256x256xf32> -> vector<256x256xf32>
    %c0_9 = arith.constant 0 : index
    %c0_10 = arith.constant 0 : index
    %24 = vector.load %arg8[%c0_9, %c0_10] : memref<1x256xf32, #tpu.memory_space<vmem>>, vector<1x256xf32>
    %25 = vector.broadcast %24 : vector<1x256xf32> to vector<256x256xf32>
    %26 = arith.addf %23, %25 : vector<256x256xf32>
    %27 = arith.truncf %26 : vector<256x256xf32> to vector<256x256xbf16>
    %c0_11 = arith.constant 0 : index
    %c0_12 = arith.constant 0 : index
    %c0_13 = arith.constant 0 : index
    %28 = vector.load %arg5[%c0_11, %c0_12, %c0_13] : memref<1x128x256xbf16, #tpu.memory_space<vmem>>, vector<1x128x256xbf16>
    %29 = vector.shape_cast %28 : vector<1x128x256xbf16> to vector<128x256xbf16>
    %c0_14 = arith.constant 0 : index
    %c0_15 = arith.constant 0 : index
    %c0_16 = arith.constant 0 : index
    %30 = vector.load %arg6[%c0_14, %c0_15, %c0_16] : memref<1x128x256xbf16, #tpu.memory_space<vmem>>, vector<1x128x256xbf16>
    %31 = vector.shape_cast %30 : vector<1x128x256xbf16> to vector<128x256xbf16>
    %c0_17 = arith.constant 0 : index
    %c0_18 = arith.constant 0 : index
    %c0_19 = arith.constant 0 : index
    %32 = vector.load %arg3[%c0_17, %c0_18, %c0_19] : memref<1x256x256xbf16, #tpu.memory_space<vmem>>, vector<1x256x256xbf16>
    %33 = vector.shape_cast %32 : vector<1x256x256xbf16> to vector<256x256xbf16>
    %c0_20 = arith.constant 0 : index
    %c0_21 = arith.constant 0 : index
    %c0_22 = arith.constant 0 : index
    %34 = vector.load %arg4[%c0_20, %c0_21, %c0_22] : memref<1x256x256xbf16, #tpu.memory_space<vmem>>, vector<1x256x256xbf16>
    %35 = vector.shape_cast %34 : vector<1x256x256xbf16> to vector<256x256xbf16>
    %cst_23 = arith.constant 0.000000e+00 : f32
    %36 = vector.broadcast %cst_23 : f32 to vector<256x256xf32>
    %37 = vector.extract_strided_slice %27 {offsets = [0, 0], sizes = [256, 128], strides = [1, 1]} : vector<256x256xbf16> to vector<256x128xbf16>
    %38 = vector.extract_strided_slice %29 {offsets = [0, 0], sizes = [128, 128], strides = [1, 1]} : vector<128x256xbf16> to vector<128x128xbf16>
    %cst_24 = arith.constant dense<0.000000e+00> : vector<256x128xf32>
    %39 = tpu.matmul %37, %38, %cst_24 {dimension_numbers = #tpu.dot_dimension_numbers<[1], [1], [0], [0], [0, 0, 1, 0], [], []>} : vector<256x128xbf16>, vector<128x128xbf16>, vector<256x128xf32> -> vector<256x128xf32>
    %40 = tpu.iota {dimensions = array<i32: 1>} : vector<256x128xi32>
    %c16_i32 = arith.constant 16 : i32
    %41 = vector.broadcast %c16_i32 : i32 to vector<256x128xi32>
    %42 = arith.cmpi slt, %40, %41 : vector<256x128xi32>
    %cst_25 = arith.constant -1.000000e+30 : f32
    %43 = vector.broadcast %cst_25 : f32 to vector<256x128xf32>
    %44 = arith.select %42, %39, %43 : vector<256x128xi1>, vector<256x128xf32>
    %45 = vector.extract_strided_slice %33 {offsets = [0, 0], sizes = [256, 128], strides = [1, 1]} : vector<256x256xbf16> to vector<256x128xbf16>
    %cst_26 = arith.constant dense<0.000000e+00> : vector<256x256xf32>
    %46 = tpu.matmul %37, %45, %cst_26 {dimension_numbers = #tpu.dot_dimension_numbers<[1], [1], [0], [0], [0, 0, 1, 0], [], []>} : vector<256x128xbf16>, vector<256x128xbf16>, vector<256x256xf32> -> vector<256x256xf32>
    %cst_27 = arith.constant dense<0xFF800000> : vector<256xf32>
    %47 = vector.multi_reduction <maximumf>, %46, %cst_27 [1] : vector<256x256xf32> to vector<256xf32>
    %48 = vector.shape_cast %47 : vector<256xf32> to vector<256x1xf32>
    %cst_28 = arith.constant dense<0xFF800000> : vector<256xf32>
    %49 = vector.multi_reduction <maximumf>, %44, %cst_28 [1] : vector<256x128xf32> to vector<256xf32>
    %50 = vector.shape_cast %49 : vector<256xf32> to vector<256x1xf32>
    %51 = arith.maximumf %48, %50 : vector<256x1xf32>
    %52 = vector.broadcast %51 : vector<256x1xf32> to vector<256x256xf32>
    %53 = arith.subf %46, %52 : vector<256x256xf32>
    %54 = math.exp %53 : vector<256x256xf32>
    %55 = vector.broadcast %51 : vector<256x1xf32> to vector<256x128xf32>
    %56 = arith.subf %44, %55 : vector<256x128xf32>
    %57 = math.exp %56 : vector<256x128xf32>
    %cst_29 = arith.constant dense<0.000000e+00> : vector<256xf32>
    %58 = vector.multi_reduction <add>, %54, %cst_29 [1] : vector<256x256xf32> to vector<256xf32>
    %59 = vector.shape_cast %58 : vector<256xf32> to vector<256x1xf32>
    %cst_30 = arith.constant dense<0.000000e+00> : vector<256xf32>
    %60 = vector.multi_reduction <add>, %57, %cst_30 [1] : vector<256x128xf32> to vector<256xf32>
    %61 = vector.shape_cast %60 : vector<256xf32> to vector<256x1xf32>
    %62 = arith.addf %59, %61 : vector<256x1xf32>
    %63 = arith.truncf %54 : vector<256x256xf32> to vector<256x256xbf16>
    %64 = vector.extract_strided_slice %35 {offsets = [0, 0], sizes = [256, 128], strides = [1, 1]} : vector<256x256xbf16> to vector<256x128xbf16>
    %cst_31 = arith.constant dense<0.000000e+00> : vector<256x128xf32>
    %65 = tpu.matmul %63, %64, %cst_31 {dimension_numbers = #tpu.dot_dimension_numbers<[1], [0], [0], [1], [0, 0, 1, 1], [], []>} : vector<256x256xbf16>, vector<256x128xbf16>, vector<256x128xf32> -> vector<256x128xf32>
    %66 = arith.truncf %57 : vector<256x128xf32> to vector<256x128xbf16>
    %67 = vector.extract_strided_slice %31 {offsets = [0, 0], sizes = [128, 128], strides = [1, 1]} : vector<128x256xbf16> to vector<128x128xbf16>
    %cst_32 = arith.constant dense<0.000000e+00> : vector<256x128xf32>
    %68 = tpu.matmul %66, %67, %cst_32 {dimension_numbers = #tpu.dot_dimension_numbers<[1], [0], [0], [1], [0, 0, 1, 1], [], []>} : vector<256x128xbf16>, vector<128x128xbf16>, vector<256x128xf32> -> vector<256x128xf32>
    %69 = arith.addf %65, %68 : vector<256x128xf32>
    %70 = tpu.reciprocal %62 {approx = true} : vector<256x1xf32> -> vector<256x1xf32>
    %71 = vector.broadcast %70 : vector<256x1xf32> to vector<256x128xf32>
    %72 = arith.mulf %69, %71 : vector<256x128xf32>
    %73 = arith.truncf %72 : vector<256x128xf32> to vector<256x128xbf16>
    %c0_33 = arith.constant 0 : index
    %c0_34 = arith.constant 0 : index
    %74 = vector.load %arg9[%c0_33, %c0_34] : memref<256x256xbf16, #tpu.memory_space<vmem>>, vector<128x256xbf16>
    %cst_35 = arith.constant dense<0.000000e+00> : vector<256x256xf32>
    %75 = tpu.matmul %73, %74, %cst_35 {dimension_numbers = #tpu.dot_dimension_numbers<[1], [0], [0], [1], [0, 0, 1, 1], [], []>} : vector<256x128xbf16>, vector<128x256xbf16>, vector<256x256xf32> -> vector<256x256xf32>
    %76 = arith.addf %36, %75 : vector<256x256xf32>
    %77 = vector.extract_strided_slice %27 {offsets = [0, 128], sizes = [256, 128], strides = [1, 1]} : vector<256x256xbf16> to vector<256x128xbf16>
    %78 = vector.extract_strided_slice %29 {offsets = [0, 128], sizes = [128, 128], strides = [1, 1]} : vector<128x256xbf16> to vector<128x128xbf16>
    %cst_36 = arith.constant dense<0.000000e+00> : vector<256x128xf32>
    %79 = tpu.matmul %77, %78, %cst_36 {dimension_numbers = #tpu.dot_dimension_numbers<[1], [1], [0], [0], [0, 0, 1, 0], [], []>} : vector<256x128xbf16>, vector<128x128xbf16>, vector<256x128xf32> -> vector<256x128xf32>
    %80 = tpu.iota {dimensions = array<i32: 1>} : vector<256x128xi32>
    %c16_i32_37 = arith.constant 16 : i32
    %81 = vector.broadcast %c16_i32_37 : i32 to vector<256x128xi32>
    %82 = arith.cmpi slt, %80, %81 : vector<256x128xi32>
    %cst_38 = arith.constant -1.000000e+30 : f32
    %83 = vector.broadcast %cst_38 : f32 to vector<256x128xf32>
    %84 = arith.select %82, %79, %83 : vector<256x128xi1>, vector<256x128xf32>
    %85 = vector.extract_strided_slice %33 {offsets = [0, 128], sizes = [256, 128], strides = [1, 1]} : vector<256x256xbf16> to vector<256x128xbf16>
    %cst_39 = arith.constant dense<0.000000e+00> : vector<256x256xf32>
    %86 = tpu.matmul %77, %85, %cst_39 {dimension_numbers = #tpu.dot_dimension_numbers<[1], [1], [0], [0], [0, 0, 1, 0], [], []>} : vector<256x128xbf16>, vector<256x128xbf16>, vector<256x256xf32> -> vector<256x256xf32>
    %cst_40 = arith.constant dense<0xFF800000> : vector<256xf32>
    %87 = vector.multi_reduction <maximumf>, %86, %cst_40 [1] : vector<256x256xf32> to vector<256xf32>
    %88 = vector.shape_cast %87 : vector<256xf32> to vector<256x1xf32>
    %cst_41 = arith.constant dense<0xFF800000> : vector<256xf32>
    %89 = vector.multi_reduction <maximumf>, %84, %cst_41 [1] : vector<256x128xf32> to vector<256xf32>
    %90 = vector.shape_cast %89 : vector<256xf32> to vector<256x1xf32>
    %91 = arith.maximumf %88, %90 : vector<256x1xf32>
    %92 = vector.broadcast %91 : vector<256x1xf32> to vector<256x256xf32>
    %93 = arith.subf %86, %92 : vector<256x256xf32>
    %94 = math.exp %93 : vector<256x256xf32>
    %95 = vector.broadcast %91 : vector<256x1xf32> to vector<256x128xf32>
    %96 = arith.subf %84, %95 : vector<256x128xf32>
    %97 = math.exp %96 : vector<256x128xf32>
    %cst_42 = arith.constant dense<0.000000e+00> : vector<256xf32>
    %98 = vector.multi_reduction <add>, %94, %cst_42 [1] : vector<256x256xf32> to vector<256xf32>
    %99 = vector.shape_cast %98 : vector<256xf32> to vector<256x1xf32>
    %cst_43 = arith.constant dense<0.000000e+00> : vector<256xf32>
    %100 = vector.multi_reduction <add>, %97, %cst_43 [1] : vector<256x128xf32> to vector<256xf32>
    %101 = vector.shape_cast %100 : vector<256xf32> to vector<256x1xf32>
    %102 = arith.addf %99, %101 : vector<256x1xf32>
    %103 = arith.truncf %94 : vector<256x256xf32> to vector<256x256xbf16>
    %104 = vector.extract_strided_slice %35 {offsets = [0, 128], sizes = [256, 128], strides = [1, 1]} : vector<256x256xbf16> to vector<256x128xbf16>
    %cst_44 = arith.constant dense<0.000000e+00> : vector<256x128xf32>
    %105 = tpu.matmul %103, %104, %cst_44 {dimension_numbers = #tpu.dot_dimension_numbers<[1], [0], [0], [1], [0, 0, 1, 1], [], []>} : vector<256x256xbf16>, vector<256x128xbf16>, vector<256x128xf32> -> vector<256x128xf32>
    %106 = arith.truncf %97 : vector<256x128xf32> to vector<256x128xbf16>
    %107 = vector.extract_strided_slice %31 {offsets = [0, 128], sizes = [128, 128], strides = [1, 1]} : vector<128x256xbf16> to vector<128x128xbf16>
    %cst_45 = arith.constant dense<0.000000e+00> : vector<256x128xf32>
    %108 = tpu.matmul %106, %107, %cst_45 {dimension_numbers = #tpu.dot_dimension_numbers<[1], [0], [0], [1], [0, 0, 1, 1], [], []>} : vector<256x128xbf16>, vector<128x128xbf16>, vector<256x128xf32> -> vector<256x128xf32>
    %109 = arith.addf %105, %108 : vector<256x128xf32>
    %110 = tpu.reciprocal %102 {approx = true} : vector<256x1xf32> -> vector<256x1xf32>
    %111 = vector.broadcast %110 : vector<256x1xf32> to vector<256x128xf32>
    %112 = arith.mulf %109, %111 : vector<256x128xf32>
    %113 = arith.truncf %112 : vector<256x128xf32> to vector<256x128xbf16>
    %c128 = arith.constant 128 : index
    %c0_46 = arith.constant 0 : index
    %114 = vector.load %arg9[%c128, %c0_46] : memref<256x256xbf16, #tpu.memory_space<vmem>>, vector<128x256xbf16>
    %cst_47 = arith.constant dense<0.000000e+00> : vector<256x256xf32>
    %115 = tpu.matmul %113, %114, %cst_47 {dimension_numbers = #tpu.dot_dimension_numbers<[1], [0], [0], [1], [0, 0, 1, 1], [], []>} : vector<256x128xbf16>, vector<128x256xbf16>, vector<256x256xf32> -> vector<256x256xf32>
    %116 = arith.addf %76, %115 : vector<256x256xf32>
    %c0_48 = arith.constant 0 : index
    %c0_49 = arith.constant 0 : index
    %117 = vector.load %arg10[%c0_48, %c0_49] : memref<1x256xf32, #tpu.memory_space<vmem>>, vector<1x256xf32>
    %118 = vector.broadcast %117 : vector<1x256xf32> to vector<256x256xf32>
    %119 = arith.addf %116, %118 : vector<256x256xf32>
    %120 = tpu.transpose %119, [1, 0] : vector<256x256xf32> -> vector<256x256xf32>
    %121 = arith.addf %1, %120 : vector<256x256xf32>
    %c0_50 = arith.constant 0 : index
    %c0_51 = arith.constant 0 : index
    %c0_52 = arith.constant 0 : index
    %122 = vector.load %arg11[%c0_50, %c0_51, %c0_52] : memref<1x256x256xf32, #tpu.memory_space<vmem>>, vector<1x256x256xf32>
    %123 = vector.shape_cast %122 : vector<1x256x256xf32> to vector<256x256xf32>
    %124 = vector.shape_cast %121 : vector<256x256xf32> to vector<1x256x256xf32>
    tpu.vector_store %arg11[%c0_50, %c0_51, %c0_52], %124 {strides = array<i32>} : memref<1x256x256xf32, #tpu.memory_space<vmem>>, vector<1x256x256xf32>,
    return
  }
  func.func @transform_0(%arg0: i32, %arg1: i32) -> (i32, i32, i32) {
    %c0_i32 = arith.constant 0 : i32
    %c0_i32_0 = arith.constant 0 : i32
    return %arg0, %c0_i32, %arg1 : i32, i32, i32
  }
  func.func @transform_1(%arg0: i32, %arg1: i32) -> (i32, i32, i32) {
    %c0_i32 = arith.constant 0 : i32
    %c0_i32_0 = arith.constant 0 : i32
    %c0_i32_1 = arith.constant 0 : i32
    return %arg0, %c0_i32, %c0_i32_0 : i32, i32, i32
  }
  func.func @transform_2(%arg0: i32, %arg1: i32) -> (i32, i32, i32) {
    %c0_i32 = arith.constant 0 : i32
    %c0_i32_0 = arith.constant 0 : i32
    %c0_i32_1 = arith.constant 0 : i32
    return %arg0, %c0_i32, %c0_i32_0 : i32, i32, i32
  }
  func.func @transform_3(%arg0: i32, %arg1: i32) -> (i32, i32, i32) {
    %c0_i32 = arith.constant 0 : i32
    %c0_i32_0 = arith.constant 0 : i32
    %c0_i32_1 = arith.constant 0 : i32
    return %arg0, %c0_i32, %c0_i32_0 : i32, i32, i32
  }
  func.func @transform_4(%arg0: i32, %arg1: i32) -> (i32, i32, i32) {
    %c0_i32 = arith.constant 0 : i32
    %c0_i32_0 = arith.constant 0 : i32
    %c0_i32_1 = arith.constant 0 : i32
    return %arg0, %c0_i32, %c0_i32_0 : i32, i32, i32
  }
  func.func @transform_5(%arg0: i32, %arg1: i32) -> (i32, i32) {
    %c0_i32 = arith.constant 0 : i32
    %c0_i32_0 = arith.constant 0 : i32
    %c0_i32_1 = arith.constant 0 : i32
    return %c0_i32, %c0_i32_0 : i32, i32
  }
  func.func @transform_6(%arg0: i32, %arg1: i32) -> (i32, i32) {
    %c0_i32 = arith.constant 0 : i32
    %c0_i32_0 = arith.constant 0 : i32
    %c0_i32_1 = arith.constant 0 : i32
    return %c0_i32, %c0_i32_0 : i32, i32
  }
  func.func @transform_7(%arg0: i32, %arg1: i32) -> (i32, i32) {
    %c0_i32 = arith.constant 0 : i32
    %c0_i32_0 = arith.constant 0 : i32
    %c0_i32_1 = arith.constant 0 : i32
    return %c0_i32, %c0_i32_0 : i32, i32
  }
  func.func @transform_8(%arg0: i32, %arg1: i32) -> (i32, i32) {
    %c0_i32 = arith.constant 0 : i32
    %c0_i32_0 = arith.constant 0 : i32
    %c0_i32_1 = arith.constant 0 : i32
    return %c0_i32, %c0_i32_0 : i32, i32
  }
  func.func @transform_9(%arg0: i32, %arg1: i32) -> (i32, i32, i32) {
    %c0_i32 = arith.constant 0 : i32
    %c0_i32_0 = arith.constant 0 : i32
    return %arg0, %c0_i32, %arg1 : i32, i32, i32
  }
}

</mosaic_0001>

<bundles_post_ra>
// kernel: attn_block.4
= control target key start
LH: loop header
LB: loop body
LE: loop exit
PB: predicated region body
PF: predicated region fallthrough
CT: control target
= control target key end

     0   :  { %s2028_s21 = smov 0   ;;  %s2675_s0 = inlined_call_operand.vmem [shape: f32[2,128,128], index: 0, kind: input, shape index: {}]   ;;  %s2676_s1 = inlined_call_operand.vmem [shape: bf16[128,256], index: 1, kind: input, shape index: {}]   ;;  %s2677_s2 = inlined_call_operand.vmem [shape: f32[1,256], index: 2, kind: input, shape index: {}]   ;;  %s2678_s3 = inlined_call_operand.vmem [shape: bf16[256,512], index: 3, kind: input, shape index: {}]   ;;  %s2679_s4 = inlined_call_operand.vmem [shape: f32[1,512], index: 4, kind: input, shape index: {}]   ;;  %s2680_s5 = inlined_call_operand.vmem [shape: bf16[2,128,256], index: 5, kind: output, shape index: {0}]   ;;  %s2681_s6 = inlined_call_operand.vmem [shape: bf16[2,128,256], index: 6, kind: output, shape index: {1}]  }
   0x1 LB: > { %s1583_s22 = sadd.s32 4294967295, %s1990_s21   ;;  %p1587_p0 = scmp.ge.s32.totalorder %s1990_s21, 1  ;;  %s1990_s21 = sphi %s2028_s21, %s17_s21  }
   0x2   : > { %p215_p1 = scmp.lt.s32.totalorder %s1990_s21, 3 }
   0x4   : > { %p216_p2 = pnand %p1587_p0, %p215_p1 }
   0x5   : > { %p250_p3 = scmp.lt.s32.totalorder (!%p216_p2), %s1583_s22, 1 }
   0x6   : > { %219 = sbr.rel (%p216_p2) target bundleno = 533 (0x215), region = 40 }
   0xb   : > { %v1800_v0 = vld [vmem:[%s2676_s1 + $0x74] ss:$8 sps:$4 sm:$0xff]   ;;  %v1802_v1 = vld [vmem:[%s2676_s1 + $0x70] ss:$8 sps:$4 sm:$0xff]   ;;  %v1992_v2 = vmov 0   ;;  %s2683_s22 = smov (!%p250_p3, %s1583_s22), 1 }
   0xc   : > { %542 = vmatprep.mubr.bf16.mxu0 %v1992_v2  ;;  %510 = vmatprep.subr.bf16.mxu0 %v1800_v0  ;;  %v1803_v3 = vld [vmem:[%s2676_s1 + $0x64] ss:$8 sps:$4 sm:$0xff]   ;;  %v1805_v4 = vld [vmem:[%s2676_s1 + $0x60] ss:$8 sps:$4 sm:$0xff]   ;;  %v1806_v5 = vld [vmem:[%s2676_s1 + $0x54] ss:$8 sps:$4 sm:$0xff]  }
   0xd   : > { %511 = vmatpush1.bf16.msra.mxu0 %v1802_v1  ;;  %s2052_s9 = sshll.u32 %s2683_s22, 7  ;;  %v1808_v6 = vld [vmem:[%s2676_s1 + $0x50] ss:$8 sps:$4 sm:$0xff]   ;;  %v1809_v7 = vld [vmem:[%s2676_s1 + $0x44] ss:$8 sps:$4 sm:$0xff]  }
   0xe   : > { %512 = vmatprep.subr.bf16.mxu0 %v1803_v3  ;;  %s2061_s14 = scalar_lea.vmem %s2675_s0, %s2052_s9  ;;  %v1811_v8 = vld [vmem:[%s2676_s1 + $0x40] ss:$8 sps:$4 sm:$0xff]   ;;  %v1812_v9 = vld [vmem:[%s2676_s1 + $0x34] ss:$8 sps:$4 sm:$0xff]   ;;  %v1814_v20 = vld [vmem:[%s2676_s1 + $0x30] ss:$8 sps:$4 sm:$0xff]   ;;  %s2572_s18 = scalar_lea.vmem %s2680_s5, %s2052_s9 }
   0xf   : > { %v2073_v10 = vld [vmem:[%s2061_s14] sm:$0xff]  ;;  %v2076_v11 = vld [vmem:[%s2061_s14 + $0x8] sm:$0xff]  ;;  %v2080_v13 = vld [vmem:[%s2061_s14 + $0x10] sm:$0xff] }
  0x10   : > { %v1594_v12 = vmul.f32 -1.442695, %v2073_v10  ;;  %v2083_v14 = vld [vmem:[%s2061_s14 + $0x18] sm:$0xff]  ;;  %v1595_v15 = vmul.f32 -1.442695, %v2076_v11  ;;  %v2089_v18 = vld [vmem:[%s2061_s14 + $0x20] sm:$0xff] }
  0x11   : > { %513 = vmatpush1.bf16.msra.mxu0 %v1805_v4  ;;  %v1596_v16 = vmul.f32 -1.442695, %v2080_v13  ;;  %v1597_v17 = vmul.f32 -1.442695, %v2083_v14  ;;  %v2092_v19 = vld [vmem:[%s2061_s14 + $0x28] sm:$0xff]  ;;  %v2109_v26 = vld [vmem:[%s2061_s14 + $0x30] sm:$0xff] }
  0x12   : > { %514 = vmatprep.subr.bf16.mxu0 %v1806_v5  ;;  %1920 = vpow2.f32 %v1594_v12  ;;  %v1598_v21 = vmul.f32 -1.442695, %v2089_v18  ;;  %v1815_v22 = vld [vmem:[%s2676_s1 + $0x24] ss:$8 sps:$4 sm:$0xff]   ;;  %v1599_v23 = vmul.f32 -1.442695, %v2092_v19 }
  0x13   : > { %1922 = vpow2.f32 %v1595_v15  ;;  %v1817_v24 = vld [vmem:[%s2676_s1 + $0x20] ss:$8 sps:$4 sm:$0xff]   ;;  %v1818_v25 = vld [vmem:[%s2676_s1 + $0x14] ss:$8 sps:$4 sm:$0xff]   ;;  %v1820_v30 = vld [vmem:[%s2676_s1 + $0x10] ss:$8 sps:$4 sm:$0xff]  }
  0x14   : > { %1924 = vpow2.f32 %v1596_v16  ;;  %v1824_v27 = vld [vmem:[%s2678_s3 + $0xe4] ss:$16 sps:$4 sm:$0xff]   ;;  %v1826_v28 = vld [vmem:[%s2678_s3 + $0xe0] ss:$16 sps:$4 sm:$0xff]   ;;  %v2118_v29 = vld [vmem:[%s2061_s14 + $0x38] sm:$0xff] }
  0x15   : > { %515 = vmatpush1.bf16.msra.mxu0 %v1808_v6  ;;  %1926 = vpow2.f32 %v1597_v17  ;;  %1045 = vmatprep.subr.bf16.mxu1 %v1824_v27  ;;  %v1830_v31 = vld [vmem:[%s2678_s3 + $0xc4] ss:$16 sps:$4 sm:$0xff]   ;;  %v1600_v32 = vmul.f32 -1.442695, %v2109_v26  ;;  %v1832_v33 = vld [vmem:[%s2678_s3 + $0xc0] ss:$16 sps:$4 sm:$0xff]  }
  0x16   : > { %516 = vmatprep.subr.bf16.mxu0 %v1809_v7  ;;  %1928 = vpow2.f32 %v1598_v21  ;;  %1046 = vmatpush1.bf16.msra.mxu1 %v1826_v28  ;;  %v1821_v34 = vld [vmem:[%s2676_s1 + $0x4] ss:$8 sps:$4 sm:$0xff]   ;;  %v1601_v35 = vmul.f32 -1.442695, %v2118_v29  ;;  %v1823_v36 = vld [vmem:[%s2676_s1] ss:$8 sps:$4 sm:$0xff]  }
  0x17   : > { %1930 = vpow2.f32 %v1599_v23  ;;  %1047 = vmatprep.subr.bf16.mxu1 %v1830_v31  ;;  %v1836_v37 = vld [vmem:[%s2678_s3 + $0xa4] ss:$16 sps:$4 sm:$0xff]   ;;  %v2146_v40 = vld [vmem:[%s2678_s3 + $0xec] ss:$16 sps:$4 sm:$0xff]   ;;  %v1838_v43 = vld [vmem:[%s2678_s3 + $0xa0] ss:$16 sps:$4 sm:$0xff]  }
  0x18   : > { %v2141_v39 = vld [vmem:[%s2061_s14 + $0x40] sm:$0xff]  ;;  %1932 = vpow2.f32 %v1600_v32  ;;  %v2155_v49 = vld [vmem:[%s2061_s14 + $0x48] sm:$0xff]  ;;  %v2167_v57 = vld [vmem:[%s2061_s14 + $0x50] sm:$0xff] }
  0x19   : > { %517 = vmatpush1.bf16.msra.mxu0 %v1811_v8  ;;  %1934 = vpow2.f32 %v1601_v35  ;;  %v1842_v46 = vld [vmem:[%s2678_s3 + $0x84] ss:$16 sps:$4 sm:$0xff]   ;;  %v1602_v51 = vmul.f32 -1.442695, %v2141_v39  ;;  %v1844_v52 = vld [vmem:[%s2678_s3 + $0x80] ss:$16 sps:$4 sm:$0xff]  }
  0x1a   : > { %518 = vmatprep.subr.bf16.mxu0 %v1812_v9  ;;  %1048 = vmatpush1.bf16.msra.mxu1 %v1832_v33  ;;  %v1603_v54 = vmul.f32 -1.442695, %v2155_v49  ;;  %v1848_v55 = vld [vmem:[%s2678_s3 + $0x64] ss:$16 sps:$4 sm:$0xff]   ;;  %v1850_v59 = vld [vmem:[%s2678_s3 + $0x60] ss:$16 sps:$4 sm:$0xff]  }
  0x1b   : > { %1049 = vmatprep.subr.bf16.mxu1 %v1836_v37  ;;  %v1854_v61 = vld [vmem:[%s2678_s3 + $0x44] ss:$16 sps:$4 sm:$0xff]   ;;  %v2176_v62 = vld [vmem:[%s2061_s14 + $0x58] sm:$0xff]  ;;  %v1604_v63 = vmul.f32 -1.442695, %v2167_v57  ;;  %v2198_v23 = vld [vmem:[%s2061_s14 + $0x68] sm:$0xff] }
  0x1c   : > { %v1856_v0 = vld [vmem:[%s2678_s3 + $0x40] ss:$16 sps:$4 sm:$0xff]   ;;  %v1605_v3 = vmul.f32 -1.442695, %v2176_v62  ;;  %v1860_v4 = vld [vmem:[%s2678_s3 + $0x24] ss:$16 sps:$4 sm:$0xff]  }
  0x1d   : > { %519 = vmatpush1.bf16.msra.mxu0 %v1814_v20  ;;  %v2187_v7 = vld [vmem:[%s2061_s14 + $0x60] sm:$0xff]  ;;  %v1607_v32 = vmul.f32 -1.442695, %v2198_v23  ;;  %v2225_v35 = vld [vmem:[%s2678_s3 + $0xc8] ss:$16 sps:$4 sm:$0xff]  }
  0x1e   : > { %520 = vmatprep.subr.bf16.mxu0 %v1815_v22  ;;  %1050 = vmatpush1.bf16.msra.mxu1 %v1838_v43  ;;  %v1862_v15 = vld [vmem:[%s2678_s3 + $0x20] ss:$16 sps:$4 sm:$0xff]   ;;  %v1866_v21 = vld [vmem:[%s2678_s3 + $0x4] ss:$16 sps:$4 sm:$0xff]   ;;  %v2237_v37 = vld [vmem:[%s2061_s14 + $0x78] sm:$0xff] }
  0x1f   : > { %v1921_v38 = vpop.eup %1920  ;;  %1051 = vmatprep.subr.bf16.mxu1 %v1842_v46  ;;  %v1868_v27 = vld [vmem:[%s2678_s3] ss:$16 sps:$4 sm:$0xff]   ;;  %v1872_v33 = vld [vmem:[%s2678_s3 + $0x1e4] ss:$16 sps:$4 sm:$0xff]   ;;  %v2249_v46 = vld [vmem:[%s2678_s3 + $0xa8] ss:$16 sps:$4 sm:$0xff]  }
  0x20   : > { %v1923_v41 = vpop.eup %1922  ;;  %v330_v42 = vadd.f32 1.0, %v1921_v38  ;;  %v1874_v38 = vld [vmem:[%s2678_s3 + $0x1e0] ss:$16 sps:$4 sm:$0xff]  }
  0x21   : > { %521 = vmatpush1.bf16.msra.mxu0 %v1817_v24  ;;  %v1925_v44 = vpop.eup %1924  ;;  %v331_v45 = vadd.f32 1.0, %v1923_v41 }
  0x22   : > { %522 = vmatprep.subr.bf16.mxu0 %v1818_v25  ;;  %v1927_v47 = vpop.eup %1926  ;;  %1936 = vrcp.f32 %v330_v42  ;;  %v332_v48 = vadd.f32 1.0, %v1925_v44  ;;  %1052 = vmatpush1.bf16.msra.mxu1 %v1844_v52  ;;  %v1606_v25 = vmul.f32 -1.442695, %v2187_v7  ;;  %v1878_v44 = vld [vmem:[%s2678_s3 + $0x1c4] ss:$16 sps:$4 sm:$0xff]  }
  0x23   : > { %1938 = vrcp.f32 %v331_v45  ;;  %v333_v50 = vadd.f32 1.0, %v1927_v47  ;;  %v1929_v53 = vpop.eup %1928  ;;  %1053 = vmatprep.subr.bf16.mxu1 %v1848_v55  ;;  %v2254_v47 = vld [vmem:[%s2678_s3 + $0x8c] ss:$16 sps:$4 sm:$0xff]   ;;  %v2267_v52 = vld [vmem:[%s2678_s3 + $0x88] ss:$16 sps:$4 sm:$0xff]  }
  0x24   : > { %1940 = vrcp.f32 %v332_v48  ;;  %v1931_v56 = vpop.eup %1930  ;;  %v334_v58 = vadd.f32 1.0, %v1929_v53  ;;  %v1880_v48 = vld [vmem:[%s2678_s3 + $0x1c0] ss:$16 sps:$4 sm:$0xff]  }
  0x25   : > { %523 = vmatpush1.bf16.msra.mxu0 %v1820_v30  ;;  %1942 = vrcp.f32 %v333_v50  ;;  %v335_v60 = vadd.f32 1.0, %v1931_v56  ;;  %v1933_v1 = vpop.eup %1932  ;;  %v1884_v50 = vld [vmem:[%s2678_s3 + $0x1a4] ss:$16 sps:$4 sm:$0xff]   ;;  %v1609_v56 = vmul.f32 -1.442695, %v2237_v37 }
  0x26   : > { %524 = vmatprep.subr.bf16.mxu0 %v1821_v34  ;;  %1944 = vpow2.f32 %v1602_v51  ;;  %1054 = vmatpush1.bf16.msra.mxu1 %v1850_v59  ;;  %v1935_v5 = vpop.eup %1934  ;;  %v336_v12 = vadd.f32 1.0, %v1933_v1  ;;  %v2278_v59 = vld [vmem:[%s2678_s3 + $0x6c] ss:$16 sps:$4 sm:$0xff]  }
  0x27   : > { %1946 = vpow2.f32 %v1603_v54  ;;  %1055 = vmatprep.subr.bf16.mxu1 %v1854_v61  ;;  %v337_v20 = vadd.f32 1.0, %v1935_v5  ;;  %v1892_v5 = vld [vmem:[%s2678_s3 + $0x180] ss:$16 sps:$4 sm:$0xff]  }
  0x28   : > { %1948 = vrcp.f32 %v334_v58 }
  0x29   : > { %525 = vmatpush1.bf16.msra.mxu0 %v1823_v36  ;;  %1950 = vrcp.f32 %v335_v60 }
  0x2a   : > { %1158 = vmatprep.subr.bf16.mxu0 %v2146_v40  ;;  %1952 = vpow2.f32 %v1604_v63  ;;  %1056 = vmatpush1.bf16.msra.mxu1 %v1856_v0  ;;  %v1890_v0 = vld [vmem:[%s2678_s3 + $0x184] ss:$16 sps:$4 sm:$0xff]  }
  0x2b   : > { %1954 = vpow2.f32 %v1605_v3  ;;  %1057 = vmatprep.subr.bf16.mxu1 %v1860_v4  ;;  %v2290_v3 = vld [vmem:[%s2678_s3 + $0x68] ss:$16 sps:$4 sm:$0xff]   ;;  %v2296_v4 = vld [vmem:[%s2678_s3 + $0x4c] ss:$16 sps:$4 sm:$0xff]  }
  0x2c   : > { %1956 = vrcp.f32 %v336_v12  ;;  %v1896_v12 = vld [vmem:[%s2678_s3 + $0x164] ss:$16 sps:$4 sm:$0xff]  }
  0x2d   : > { %1958 = vrcp.f32 %v337_v20 }
  0x2e   : > { %1058 = vmatpush1.bf16.msra.mxu1 %v1862_v15  ;;  %1960 = vpow2.f32 %v1606_v25 }
  0x2f   : > { %v1937_v6 = vpop.eup %1936  ;;  %1059 = vmatprep.subr.bf16.mxu1 %v1866_v21  ;;  %1962 = vpow2.f32 %v1607_v32 }
  0x30   : > { %v1939_v8 = vpop.eup %1938  ;;  %v378_v9 = vmul.f32 %v1937_v6, %v2073_v10  ;;  %v2203_v10 = vld [vmem:[%s2678_s3 + $0xe8] ss:$16 sps:$4 sm:$0xff]  }
  0x31   : > { %v1941_v16 = vpop.eup %1940  ;;  %v379_v17 = vmul.f32 %v1939_v8, %v2076_v11  ;;  %v2208_v11 = vld [vmem:[%s2678_s3 + $0xcc] ss:$16 sps:$4 sm:$0xff]  }
  0x32   : > { %v1943_v22 = vpop.eup %1942  ;;  %v380_v30 = vmul.f32 %v1941_v16, %v2080_v13  ;;  %v2228_v13 = vld [vmem:[%s2061_s14 + $0x70] sm:$0xff]  ;;  %1060 = vmatpush1.bf16.msra.mxu1 %v1868_v27  ;;  %v2311_v16 = vld [vmem:[%s2678_s3 + $0x48] ss:$16 sps:$4 sm:$0xff]   ;;  %s2578_s14 = scalar_lea.vmem %s2681_s6, %s2052_s9 }
  0x33   : > { %v394_v24 = vpack.c.bf16 %v379_v17, %v378_v9  ;;  %v1945_v28 = vpop.eup %1944  ;;  %v381_v31 = vmul.f32 %v1943_v22, %v2083_v14  ;;  %v2234_v14 = vld [vmem:[%s2678_s3 + $0xac] ss:$16 sps:$4 sm:$0xff]   ;;  %1061 = vmatprep.subr.bf16.mxu1 %v1872_v33  ;;  %v1608_v51 = vmul.f32 -1.442695, %v2228_v13  ;;  %v1898_v17 = vld [vmem:[%s2678_s3 + $0x160] ss:$16 sps:$4 sm:$0xff]  }
  0x34   : > { %v1947_v34 = vpop.eup %1946  ;;  %v338_v36 = vadd.f32 1.0, %v1945_v28  ;;  %v2329_v27 = vld [vmem:[%s2678_s3 + $0x28] ss:$16 sps:$4 sm:$0xff]   ;;  %v2335_v28 = vld [vmem:[%s2678_s3 + $0xc] ss:$16 sps:$4 sm:$0xff]  }
  0x35   : > { %543 = vmatmul.mubr.bf16.vlgmr.msra.gmra.mxu0 %v394_v24  ;;  %v1949_v41 = vpop.eup %1948  ;;  %v395_v42 = vpack.c.bf16 %v381_v31, %v380_v30  ;;  %v339_v43 = vadd.f32 1.0, %v1947_v34  ;;  %v1902_v24 = vld [vmem:[%s2678_s3 + $0x144] ss:$16 sps:$4 sm:$0xff]   ;;  %v2344_v34 = vld [vmem:[%s2678_s3 + $0x8] ss:$16 sps:$4 sm:$0xff]  }
  0x36   : > { %552 = vmatprep.mubr.bf16.mxu0 %v1992_v2  ;;  %1159 = vmatpush1.bf16.msra.mxu0 %v2203_v10  ;;  %v1951_v45 = vpop.eup %1950  ;;  %1964 = vrcp.f32 %v338_v36  ;;  %v382_v54 = vmul.f32 %v1949_v41, %v2089_v18  ;;  %v1886_v18 = vld [vmem:[%s2678_s3 + $0x1a0] ss:$16 sps:$4 sm:$0xff]  }
  0x37   : > { %1160 = vmatprep.subr.bf16.mxu0 %v2208_v11  ;;  %1062 = vmatpush2.bf16.msra.mxu1 %v1874_v38  ;;  %v1953_v53 = vpop.eup %1952  ;;  %v383_v55 = vmul.f32 %v1951_v45, %v2092_v19  ;;  %1966 = vrcp.f32 %v339_v43  ;;  %v2356_v43 = vld [vmem:[%s2678_s3 + $0x1e8] ss:$16 sps:$4 sm:$0xff]  }
  0x38   : > { %1063 = vmatprep.subr.bf16.mxu1 %v1878_v44  ;;  %v1955_v58 = vpop.eup %1954  ;;  %v340_v60 = vadd.f32 1.0, %v1953_v53  ;;  %1968 = vpow2.f32 %v1608_v51  ;;  %v2362_v44 = vld [vmem:[%s2678_s3 + $0x1cc] ss:$16 sps:$4 sm:$0xff]  }
  0x39   : > { %v1957_v19 = vpop.eup %1956  ;;  %v396_v61 = vpack.c.bf16 %v383_v55, %v382_v54  ;;  %v341_v63 = vadd.f32 1.0, %v1955_v58  ;;  %1970 = vpow2.f32 %v1609_v56  ;;  %v2377_v51 = vld [vmem:[%s2678_s3 + $0x1ac] ss:$16 sps:$4 sm:$0xff]   ;;  %v2383_v54 = vld [vmem:[%s2678_s3 + $0x1a8] ss:$16 sps:$4 sm:$0xff]  }
  0x3a   : > { %1161 = vmatpush1.bf16.msra.mxu0 %v2225_v35  ;;  %v1959_v1 = vpop.eup %1958  ;;  %1972 = vrcp.f32 %v340_v60  ;;  %v384_v8 = vmul.f32 %v1957_v19, %v2109_v26  ;;  %v2317_v26 = vld [vmem:[%s2678_s3 + $0x2c] ss:$16 sps:$4 sm:$0xff]   ;;  %v2398_v60 = vld [vmem:[%s2678_s3 + $0x188] ss:$16 sps:$4 sm:$0xff]  }
  0x3b   : > { %1162 = vmatprep.subr.bf16.mxu0 %v2234_v14  ;;  %1064 = vmatpush2.bf16.msra.mxu1 %v1880_v48  ;;  %v1961_v6 = vpop.eup %1960  ;;  %v385_v9 = vmul.f32 %v1959_v1, %v2118_v29  ;;  %1974 = vrcp.f32 %v341_v63  ;;  %v2389_v55 = vld [vmem:[%s2678_s3 + $0x18c] ss:$16 sps:$4 sm:$0xff]  }
  0x3c   : > { %1065 = vmatprep.subr.bf16.mxu1 %v1884_v50  ;;  %v1963_v15 = vpop.eup %1962  ;;  %v342_v29 = vadd.f32 1.0, %v1961_v6  ;;  %v2371_v50 = vld [vmem:[%s2678_s3 + $0x1c8] ss:$16 sps:$4 sm:$0xff]   ;;  %v1904_v6 = vld [vmem:[%s2678_s3 + $0x140] ss:$16 sps:$4 sm:$0xff]  }
  0x3d   : > { %553 = vmatmul.mubr.bf16.gmra.mxu0 %v395_v42  ;;  %v397_v21 = vpack.c.bf16 %v385_v9, %v384_v8  ;;  %v343_v22 = vadd.f32 1.0, %v1963_v15  ;;  %v1910_v8 = vld [vmem:[%s2678_s3 + $0x120] ss:$16 sps:$4 sm:$0xff]   ;;  %v2446_v9 = vld [vmem:[%s2678_s3 + $0x128] ss:$16 sps:$4 sm:$0xff]  }
  0x3e   : > { %562 = vmatprep.mubr.bf16.mxu0 %v1992_v2  ;;  %1163 = vmatpush1.bf16.msra.mxu0 %v2249_v46  ;;  %1976 = vrcp.f32 %v342_v29  ;;  %v2456_v15 = vld [vmem:[%s2678_s3 + $0x10c] ss:$16 sps:$4 sm:$0xff]   ;;  %v1916_v29 = vld [vmem:[%s2678_s3 + $0x100] ss:$16 sps:$4 sm:$0xff]  }
  0x3f   : > { %1164 = vmatprep.subr.bf16.mxu0 %v2254_v47  ;;  %1066 = vmatpush2.bf16.msra.mxu1 %v1886_v18  ;;  %1978 = vrcp.f32 %v343_v22  ;;  %v2404_v18 = vld [vmem:[%s2678_s3 + $0x16c] ss:$16 sps:$4 sm:$0xff]  }
  0x40   : > { %1067 = vmatprep.subr.bf16.mxu1 %v1890_v0 }
  0x42   : > { %1165 = vmatpush1.bf16.msra.mxu0 %v2267_v52 }
  0x43   : > { %1166 = vmatprep.subr.bf16.mxu0 %v2278_v59  ;;  %1068 = vmatpush2.bf16.msra.mxu1 %v1892_v5  ;;  %v1965_v20 = vpop.eup %1964  ;;  %v2420_v5 = vld [vmem:[%s2678_s3 + $0x14c] ss:$16 sps:$4 sm:$0xff]  }
  0x44   : > { %1069 = vmatprep.subr.bf16.mxu1 %v1896_v12  ;;  %v1967_v25 = vpop.eup %1966  ;;  %v386_v31 = vmul.f32 %v1965_v20, %v2141_v39  ;;  %v2350_v39 = vld [vmem:[%s2678_s3 + $0x1ec] ss:$16 sps:$4 sm:$0xff]   ;;  %v1914_v12 = vld [vmem:[%s2678_s3 + $0x104] ss:$16 sps:$4 sm:$0xff]   ;;  %v420_v20 = vlaneseq }
  0x45   : > { %563 = vmatmul.mubr.bf16.gmra.mxu0 %v396_v61  ;;  %v1969_v30 = vpop.eup %1968  ;;  %v387_v32 = vmul.f32 %v1967_v25, %v2155_v49 }
  0x46   : > { %572 = vmatprep.mubr.bf16.mxu0 %v1992_v2  ;;  %1167 = vmatpush1.bf16.msra.mxu0 %v2290_v3  ;;  %v1971_v33 = vpop.eup %1970  ;;  %v344_v49 = vadd.f32 1.0, %v1969_v30  ;;  %v418_v30 = vld [vmem:[%s2677_s2] sm:$0x3] }
  0x47   : > { %1168 = vmatprep.subr.bf16.mxu0 %v2296_v4  ;;  %1070 = vmatpush2.bf16.msra.mxu1 %v1898_v17  ;;  %v1973_v36 = vpop.eup %1972  ;;  %v398_v38 = vpack.c.bf16 %v387_v32, %v386_v31  ;;  %v345_v41 = vadd.f32 1.0, %v1971_v33  ;;  %v2464_v17 = vld [vmem:[%s2678_s3 + $0x108] ss:$16 sps:$4 sm:$0xff]  }
  0x48   : > { %1071 = vmatprep.subr.bf16.mxu1 %v1902_v24  ;;  %v1975_v42 = vpop.eup %1974  ;;  %1980 = vrcp.f32 %v344_v49  ;;  %v388_v45 = vmul.f32 %v1973_v36, %v2167_v57 }
  0x49   : > { %v389_v48 = vmul.f32 %v1975_v42, %v2176_v62  ;;  %1982 = vrcp.f32 %v345_v41 }
  0x4a   : > { %1169 = vmatpush1.bf16.msra.mxu0 %v2311_v16 }
  0x4b   : > { %1170 = vmatprep.subr.bf16.mxu0 %v2317_v26  ;;  %v1977_v57 = vpop.eup %1976  ;;  %v399_v53 = vpack.c.bf16 %v389_v48, %v388_v45  ;;  %1072 = vmatpush2.bf16.msra.mxu1 %v1904_v6 }
  0x4c   : > { %v1979_v62 = vpop.eup %1978  ;;  %v390_v56 = vmul.f32 %v1977_v57, %v2187_v7 }
  0x4d   : > { %573 = vmatmul.mubr.bf16.gmra.mxu0 %v397_v21  ;;  %v391_v58 = vmul.f32 %v1979_v62, %v2198_v23  ;;  %v2410_v23 = vld [vmem:[%s2678_s3 + $0x168] ss:$16 sps:$4 sm:$0xff]   ;;  %v2469_v21 = vshrl.u32 %v420_v20, 7 }
  0x4e   : > { %582 = vmatprep.mubr.bf16.mxu0 %v1992_v2  ;;  %1171 = vmatpush1.bf16.msra.mxu0 %v2329_v27 }
  0x4f   : > { %1172 = vmatprep.subr.bf16.mxu0 %v2335_v28  ;;  %v400_v7 = vpack.c.bf16 %v391_v58, %v390_v56  ;;  %v426_v22 = vsub.s32 1, %v2469_v21  ;;  %v422_v24 = vsub.s32 0, %v2469_v21 }
  0x51   : > { %v2478_v32 = vrot.slane %v418_v30, %v426_v22 }
  0x52   : > { %1173 = vmatpush1.bf16.msra.mxu0 %v2344_v34 }
  0x53   : > { %1174 = vmatprep.subr.bf16.mxu0 %v2350_v39 }
  0x55   : > { %583 = vmatmul.mubr.bf16.gmra.mxu0 %v398_v38  ;;  %v1981_v19 = vpop.eup %1980 }
  0x56   : > { %592 = vmatprep.mubr.bf16.mxu0 %v1992_v2  ;;  %1175 = vmatpush2.bf16.msra.mxu0 %v2356_v43  ;;  %v1983_v61 = vpop.eup %1982  ;;  %v392_v63 = vmul.f32 %v1981_v19, %v2228_v13  ;;  %v2428_v13 = vld [vmem:[%s2678_s3 + $0x148] ss:$16 sps:$4 sm:$0xff]  }
  0x57   : > { %1176 = vmatprep.subr.bf16.mxu0 %v2362_v44  ;;  %v393_v0 = vmul.f32 %v1983_v61, %v2237_v37  ;;  %v2438_v37 = vld [vmem:[%s2678_s3 + $0x12c] ss:$16 sps:$4 sm:$0xff]  }
  0x59   : > { %v401_v1 = vpack.c.bf16 %v393_v0, %v392_v63 }
  0x5a   : > { %1177 = vmatpush2.bf16.msra.mxu0 %v2371_v50 }
  0x5b   : > { %1178 = vmatprep.subr.bf16.mxu0 %v2377_v51 }
  0x5d   : > { %593 = vmatmul.mubr.bf16.gmra.mxu0 %v399_v53 }
  0x5e   : > { %602 = vmatprep.mubr.bf16.mxu0 %v1992_v2  ;;  %1179 = vmatpush2.bf16.msra.mxu0 %v2383_v54 }
  0x5f   : > { %1180 = vmatprep.subr.bf16.mxu0 %v2389_v55 }
  0x62   : > { %1181 = vmatpush2.bf16.msra.mxu0 %v2398_v60 }
  0x63   : > { %1182 = vmatprep.subr.bf16.mxu0 %v2404_v18 }
  0x65   : > { %603 = vmatmul.mubr.bf16.gmra.mxu0 %v400_v7 }
  0x66   : > { %612 = vmatprep.mubr.bf16.mxu0 %v1992_v2  ;;  %1183 = vmatpush2.bf16.msra.mxu0 %v2410_v23  ;;  %v1908_v2 = vld [vmem:[%s2678_s3 + $0x124] ss:$16 sps:$4 sm:$0xff]  }
  0x67   : > { %1184 = vmatprep.subr.bf16.mxu0 %v2420_v5  ;;  %1073 = vmatprep.subr.bf16.mxu1 %v1908_v2 }
  0x68   : > { %1074 = vmatpush2.bf16.msra.mxu1 %v1910_v8 }
  0x69   : > { %1075 = vmatprep.subr.bf16.mxu1 %v1914_v12 }
  0x6a   : > { %1185 = vmatpush2.bf16.msra.mxu0 %v2428_v13 }
  0x6b   : > { %1186 = vmatprep.subr.bf16.mxu0 %v2438_v37 }
  0x6c   : > { %1076 = vmatpush2.bf16.msra.mxu1 %v1916_v29 }
  0x6d   : > { %613 = vmatmul.mubr.bf16.gmra.mxu0 %v401_v1  ;;  %1759 = vmatprep.subr.bf16.mxu1 %v2146_v40  ;;  %v2482_v40 = vrot.slane %v418_v30, %v422_v24 }
  0x6e   : > { %1187 = vmatpush2.bf16.msra.mxu0 %v2446_v9 }
  0x6f   : > { %1188 = vmatprep.subr.bf16.mxu0 %v2456_v15 }
  0x72   : > { %1189 = vmatpush2.bf16.msra.mxu0 %v2464_v17 }
  0xf5   : > { %v544_v25 = vpop.f32.mrf.mxu0 }
  0xf6   : > { %v545_v42 = vadd.f32 %v544_v25, %v2482_v40 }
  0xf7   : > { %v546_v31 = vpop.f32.mrf.mxu0 }
  0xf8   : > { %v547_v38 = vadd.f32 %v546_v31, %v2478_v32 }
  0xf9   : > { %v548_v33 = vpop.f32.mrf.mxu0 }
  0xfa   : > { %v549_v49 = vadd.f32 %v548_v33, %v2482_v40 }
  0xfb   : > { %v550_v36 = vpop.f32.mrf.mxu0 }
  0xfc   : > { %v551_v41 = vadd.f32 %v550_v36, %v2478_v32  ;;  %v623_v57 = vpack.c.bf16 %v549_v49, %v545_v42 }
  0xfd   : > { %v554_v45 = vpop.f32.mrf.mxu0 }
  0xfe   : > { %v624_v48 = vpack.c.bf16 %v551_v41, %v547_v38  ;;  %v555_v61 = vadd.f32 %v554_v45, %v2482_v40 }
  0xff   : > { %v556_v53 = vpop.f32.mrf.mxu0 }
 0x100   : > { %1077 = vmatprep.mubr.bf16.mxu1 %v624_v48  ;;  %1190 = vmatprep.mubr.bf16.mxu0 %v624_v48  ;;  %v557_v19 = vadd.f32 %v556_v53, %v2478_v32 }
 0x101   : > { %v558_v62 = vpop.f32.mrf.mxu0  ;;  %1078 = vmatmul.mubr.bf16.vlgmr.msra.gmra.mxu1 %v623_v57  ;;  %1191 = vmatmul.mubr.bf16.vlgmr.msra.gmra.mxu0 %v623_v57 }
 0x102   : > { %1775 = vmatpush1.bf16.msra.mxu1 %v2203_v10  ;;  %v559_v56 = vadd.f32 %v558_v62, %v2482_v40 }
 0x103   : > { %v560_v58 = vpop.f32.mrf.mxu0  ;;  %1760 = vmatprep.subr.bf16.mxu1 %v2208_v11 }
 0x104   : > { %v561_v7 = vadd.f32 %v560_v58, %v2478_v32  ;;  %v625_v1 = vpack.c.bf16 %v559_v56, %v555_v61 }
 0x105   : > { %v564_v63 = vpop.f32.mrf.mxu0 }
 0x106   : > { %v626_v0 = vpack.c.bf16 %v561_v7, %v557_v19  ;;  %1776 = vmatpush1.bf16.msra.mxu1 %v2225_v35  ;;  %v565_v12 = vadd.f32 %v564_v63, %v2482_v40 }
 0x107   : > { %v566_v6 = vpop.f32.mrf.mxu0  ;;  %1761 = vmatprep.subr.bf16.mxu1 %v2234_v14 }
 0x108   : > { %1087 = vmatprep.mubr.bf16.mxu1 %v626_v0  ;;  %1200 = vmatprep.mubr.bf16.mxu0 %v626_v0  ;;  %v567_v8 = vadd.f32 %v566_v6, %v2478_v32 }
 0x109   : > { %v568_v10 = vpop.f32.mrf.mxu0  ;;  %1088 = vmatmul.mubr.bf16.gmra.mxu1 %v625_v1  ;;  %1201 = vmatmul.mubr.bf16.gmra.mxu0 %v625_v1 }
 0x10a   : > { %1777 = vmatpush1.bf16.msra.mxu1 %v2249_v46  ;;  %v569_v11 = vadd.f32 %v568_v10, %v2482_v40 }
 0x10b   : > { %v570_v2 = vpop.f32.mrf.mxu0  ;;  %1762 = vmatprep.subr.bf16.mxu1 %v2254_v47 }
 0x10c   : > { %v571_v35 = vadd.f32 %v570_v2, %v2478_v32  ;;  %v627_v20 = vpack.c.bf16 %v569_v11, %v565_v12 }
 0x10d   : > { %v574_v29 = vpop.f32.mrf.mxu0 }
 0x10e   : > { %v628_v14 = vpack.c.bf16 %v571_v35, %v567_v8  ;;  %1778 = vmatpush1.bf16.msra.mxu1 %v2267_v52  ;;  %v575_v33 = vadd.f32 %v574_v29, %v2482_v40 }
 0x10f   : > { %v576_v25 = vpop.f32.mrf.mxu0  ;;  %1763 = vmatprep.subr.bf16.mxu1 %v2278_v59 }
 0x110   : > { %1097 = vmatprep.mubr.bf16.mxu1 %v628_v14  ;;  %1210 = vmatprep.mubr.bf16.mxu0 %v628_v14  ;;  %v577_v31 = vadd.f32 %v576_v25, %v2478_v32 }
 0x111   : > { %v578_v46 = vpop.f32.mrf.mxu0  ;;  %1098 = vmatmul.mubr.bf16.gmra.mxu1 %v627_v20  ;;  %1211 = vmatmul.mubr.bf16.gmra.mxu0 %v627_v20 }
 0x112   : > { %1779 = vmatpush1.bf16.msra.mxu1 %v2290_v3  ;;  %v579_v47 = vadd.f32 %v578_v46, %v2482_v40 }
 0x113   : > { %v580_v30 = vpop.f32.mrf.mxu0  ;;  %1764 = vmatprep.subr.bf16.mxu1 %v2296_v4 }
 0x114   : > { %v581_v52 = vadd.f32 %v580_v30, %v2478_v32  ;;  %v629_v36 = vpack.c.bf16 %v579_v47, %v575_v33 }
 0x115   : > { %v584_v49 = vpop.f32.mrf.mxu0 }
 0x116   : > { %v630_v59 = vpack.c.bf16 %v581_v52, %v577_v31  ;;  %1780 = vmatpush1.bf16.msra.mxu1 %v2311_v16  ;;  %v585_v45 = vadd.f32 %v584_v49, %v2482_v40 }
 0x117   : > { %v586_v38 = vpop.f32.mrf.mxu0  ;;  %1765 = vmatprep.subr.bf16.mxu1 %v2317_v26 }
 0x118   : > { %1107 = vmatprep.mubr.bf16.mxu1 %v630_v59  ;;  %1220 = vmatprep.mubr.bf16.mxu0 %v630_v59  ;;  %v587_v42 = vadd.f32 %v586_v38, %v2478_v32 }
 0x119   : > { %v588_v3 = vpop.f32.mrf.mxu0  ;;  %1108 = vmatmul.mubr.bf16.gmra.mxu1 %v629_v36  ;;  %1221 = vmatmul.mubr.bf16.gmra.mxu0 %v629_v36 }
 0x11a   : > { %1781 = vmatpush1.bf16.msra.mxu1 %v2329_v27  ;;  %v589_v4 = vadd.f32 %v588_v3, %v2482_v40 }
 0x11b   : > { %v590_v41 = vpop.f32.mrf.mxu0  ;;  %1766 = vmatprep.subr.bf16.mxu1 %v2335_v28 }
 0x11c   : > { %v591_v16 = vadd.f32 %v590_v41, %v2478_v32  ;;  %v631_v57 = vpack.c.bf16 %v589_v4, %v585_v45 }
 0x11d   : > { %v594_v48 = vpop.f32.mrf.mxu0 }
 0x11e   : > { %v632_v26 = vpack.c.bf16 %v591_v16, %v587_v42  ;;  %1782 = vmatpush1.bf16.msra.mxu1 %v2344_v34  ;;  %v595_v58 = vadd.f32 %v594_v48, %v2482_v40 }
 0x11f   : > { %v596_v53 = vpop.f32.mrf.mxu0  ;;  %1767 = vmatprep.subr.bf16.mxu1 %v2350_v39 }
 0x120   : > { %1117 = vmatprep.mubr.bf16.mxu1 %v632_v26  ;;  %1230 = vmatprep.mubr.bf16.mxu0 %v632_v26  ;;  %v597_v56 = vadd.f32 %v596_v53, %v2478_v32 }
 0x121   : > { %v598_v27 = vpop.f32.mrf.mxu0  ;;  %1118 = vmatmul.mubr.bf16.gmra.mxu1 %v631_v57  ;;  %1231 = vmatmul.mubr.bf16.gmra.mxu0 %v631_v57 }
 0x122   : > { %1783 = vmatpush2.bf16.msra.mxu1 %v2356_v43  ;;  %v599_v28 = vadd.f32 %v598_v27, %v2482_v40 }
 0x123   : > { %v600_v62 = vpop.f32.mrf.mxu0  ;;  %1768 = vmatprep.subr.bf16.mxu1 %v2362_v44 }
 0x124   : > { %v601_v34 = vadd.f32 %v600_v62, %v2478_v32  ;;  %v633_v7 = vpack.c.bf16 %v599_v28, %v595_v58 }
 0x125   : > { %v604_v19 = vpop.f32.mrf.mxu0 }
 0x126   : > { %v634_v39 = vpack.c.bf16 %v601_v34, %v597_v56  ;;  %1784 = vmatpush2.bf16.msra.mxu1 %v2371_v50  ;;  %v605_v1 = vadd.f32 %v604_v19, %v2482_v40 }
 0x127   : > { %v606_v61 = vpop.f32.mrf.mxu0  ;;  %1769 = vmatprep.subr.bf16.mxu1 %v2377_v51 }
 0x128   : > { %1127 = vmatprep.mubr.bf16.mxu1 %v634_v39  ;;  %1240 = vmatprep.mubr.bf16.mxu0 %v634_v39  ;;  %v607_v0 = vadd.f32 %v606_v61, %v2478_v32 }
 0x129   : > { %v608_v43 = vpop.f32.mrf.mxu0  ;;  %1128 = vmatmul.mubr.bf16.gmra.mxu1 %v633_v7  ;;  %1241 = vmatmul.mubr.bf16.gmra.mxu0 %v633_v7 }
 0x12a   : > { %1785 = vmatpush2.bf16.msra.mxu1 %v2383_v54  ;;  %v609_v44 = vadd.f32 %v608_v43, %v2482_v40 }
 0x12b   : > { %v610_v63 = vpop.f32.mrf.mxu0  ;;  %1770 = vmatprep.subr.bf16.mxu1 %v2389_v55 }
 0x12c   : > { %v611_v50 = vadd.f32 %v610_v63, %v2478_v32  ;;  %v635_v10 = vpack.c.bf16 %v609_v44, %v605_v1 }
 0x12d   : > { %v614_v6 = vpop.f32.mrf.mxu0 }
 0x12e   : > { %v636_v51 = vpack.c.bf16 %v611_v50, %v607_v0  ;;  %1786 = vmatpush2.bf16.msra.mxu1 %v2398_v60  ;;  %v615_v60 = vadd.f32 %v614_v6, %v2482_v40 }
 0x12f   : > { %v616_v11 = vpop.f32.mrf.mxu0  ;;  %1771 = vmatprep.subr.bf16.mxu1 %v2404_v18 }
 0x130   : > { %1137 = vmatprep.mubr.bf16.mxu1 %v636_v51  ;;  %v617_v8 = vadd.f32 %v616_v11, %v2478_v32 }
 0x131   : > { %v618_v54 = vpop.f32.mrf.mxu0  ;;  %1138 = vmatmul.mubr.bf16.gmra.mxu1 %v635_v10 }
 0x132   : > { %1787 = vmatpush2.bf16.msra.mxu1 %v2410_v23  ;;  %v619_v55 = vadd.f32 %v618_v54, %v2482_v40  ;;  %v715_v23 = vsub.s32 2, %v2469_v21 }
 0x133   : > { %v620_v2 = vpop.f32.mrf.mxu0  ;;  %1772 = vmatprep.subr.bf16.mxu1 %v2420_v5  ;;  %v719_v5 = vsub.s32 3, %v2469_v21 }
 0x134   : > { %v621_v35 = vadd.f32 %v620_v2, %v2478_v32  ;;  %v637_v18 = vpack.c.bf16 %v619_v55, %v615_v60 }
 0x136   : > { %v638_v12 = vpack.c.bf16 %v621_v35, %v617_v8  ;;  %1788 = vmatpush2.bf16.msra.mxu1 %v2428_v13  ;;  %v703_v13 = vld [vmem:[%s2679_s4] sm:$0xf] }
 0x137   : > { %1773 = vmatprep.subr.bf16.mxu1 %v2438_v37  ;;  %v2554_v37 = vrot.slane %v703_v13, %v422_v24 }
 0x138   : > { %1147 = vmatprep.mubr.bf16.mxu1 %v638_v12 }
 0x139   : > { %1148 = vmatmul.mubr.bf16.gmra.mxu1 %v637_v18 }
 0x13a   : > { %1789 = vmatpush2.bf16.msra.mxu1 %v2446_v9  ;;  %1250 = vmatprep.mubr.bf16.mxu1 %v636_v51  ;;  %v2556_v9 = vrot.slane %v703_v13, %v715_v23 }
 0x13b   : > { %1774 = vmatprep.subr.bf16.mxu1 %v2456_v15  ;;  %v2560_v15 = vrot.slane %v703_v13, %v426_v22 }
 0x13e   : > { %1790 = vmatpush2.bf16.msra.mxu1 %v2464_v17  ;;  %v2562_v17 = vrot.slane %v703_v13, %v719_v5 }
 0x141   : > { %1251 = vmatmul.mubr.bf16.vlgmr.msra.gmra.mxu1 %v635_v10 }
 0x142   : > { %1260 = vmatprep.mubr.bf16.mxu1 %v638_v12 }
 0x149   : > { %1261 = vmatmul.mubr.bf16.gmra.mxu1 %v637_v18 }
 0x1c1   : > { %v1079_v32 = vpop.f32.mrf.mxu1  ;;  %v1192_v40 = vpop.f32.mrf.mxu0 }
 0x1c2   : > { %v1080_v20 = vadd.f32 %v1079_v32, %v2554_v37  ;;  %v1193_v25 = vadd.f32 %v1192_v40, %v2556_v9 }
 0x1c3   : > { %v1081_v29 = vpop.f32.mrf.mxu1  ;;  %v1194_v14 = vpop.f32.mrf.mxu0 }
 0x1c4   : > { %v1082_v46 = vadd.f32 %v1081_v29, %v2560_v15  ;;  %v1195_v24 = vadd.f32 %v1194_v14, %v2562_v17 }
 0x1c5   : > { %v1083_v21 = vpop.f32.mrf.mxu1  ;;  %v1196_v22 = vpop.f32.mrf.mxu0 }
 0x1c6   : > { %v1727_v47 = vpack.c.bf16 %v1082_v46, %v1080_v20  ;;  %v1743_v30 = vpack.c.bf16 %v1195_v24, %v1193_v25  ;;  %v1084_v33 = vadd.f32 %v1083_v21, %v2554_v37  ;;  %v1197_v49 = vadd.f32 %v1196_v22, %v2556_v9 }
 0x1c7   : > { %v1085_v31 = vpop.f32.mrf.mxu1  ;;  %v1198_v52 = vpop.f32.mrf.mxu0 }
 0x1c8   : > { %1367 = vst [vmem:[%s2572_s18] sm:$0xff] %v1727_v47  ;;  %1479 = vst [vmem:[%s2578_s14] sm:$0xff] %v1743_v30  ;;  %v1086_v59 = vadd.f32 %v1085_v31, %v2560_v15  ;;  %v1199_v36 = vadd.f32 %v1198_v52, %v2562_v17 }
 0x1c9   : > { %v1089_v38 = vpop.f32.mrf.mxu1  ;;  %v1202_v3 = vpop.f32.mrf.mxu0 }
 0x1ca   : > { %v1728_v4 = vpack.c.bf16 %v1086_v59, %v1084_v33  ;;  %v1744_v41 = vpack.c.bf16 %v1199_v36, %v1197_v49  ;;  %v1090_v45 = vadd.f32 %v1089_v38, %v2554_v37  ;;  %v1203_v48 = vadd.f32 %v1202_v3, %v2556_v9 }
 0x1cb   : > { %v1091_v42 = vpop.f32.mrf.mxu1  ;;  %v1204_v16 = vpop.f32.mrf.mxu0 }
 0x1cc   : > { %1368 = vst [vmem:[%s2572_s18 + $0x8] sm:$0xff] %v1728_v4  ;;  %1480 = vst [vmem:[%s2578_s14 + $0x8] sm:$0xff] %v1744_v41  ;;  %v1092_v26 = vadd.f32 %v1091_v42, %v2560_v15  ;;  %v1205_v57 = vadd.f32 %v1204_v16, %v2562_v17 }
 0x1cd   : > { %v1093_v53 = vpop.f32.mrf.mxu1  ;;  %v1206_v27 = vpop.f32.mrf.mxu0 }
 0x1ce   : > { %v1729_v28 = vpack.c.bf16 %v1092_v26, %v1090_v45  ;;  %v1745_v62 = vpack.c.bf16 %v1205_v57, %v1203_v48  ;;  %v1094_v58 = vadd.f32 %v1093_v53, %v2554_v37  ;;  %v1207_v19 = vadd.f32 %v1206_v27, %v2556_v9 }
 0x1cf   : > { %v1095_v56 = vpop.f32.mrf.mxu1  ;;  %v1208_v34 = vpop.f32.mrf.mxu0 }
 0x1d0   : > { %1369 = vst [vmem:[%s2572_s18 + $0x10] sm:$0xff] %v1729_v28  ;;  %1481 = vst [vmem:[%s2578_s14 + $0x10] sm:$0xff] %v1745_v62  ;;  %v1096_v39 = vadd.f32 %v1095_v56, %v2560_v15  ;;  %v1209_v7 = vadd.f32 %v1208_v34, %v2562_v17 }
 0x1d1   : > { %v1099_v61 = vpop.f32.mrf.mxu1  ;;  %v1212_v43 = vpop.f32.mrf.mxu0 }
 0x1d2   : > { %v1730_v44 = vpack.c.bf16 %v1096_v39, %v1094_v58  ;;  %v1746_v63 = vpack.c.bf16 %v1209_v7, %v1207_v19  ;;  %v1100_v1 = vadd.f32 %v1099_v61, %v2554_v37  ;;  %v1213_v6 = vadd.f32 %v1212_v43, %v2556_v9 }
 0x1d3   : > { %v1101_v0 = vpop.f32.mrf.mxu1  ;;  %v1214_v50 = vpop.f32.mrf.mxu0 }
 0x1d4   : > { %1370 = vst [vmem:[%s2572_s18 + $0x18] sm:$0xff] %v1730_v44  ;;  %1482 = vst [vmem:[%s2578_s14 + $0x18] sm:$0xff] %v1746_v63  ;;  %v1102_v51 = vadd.f32 %v1101_v0, %v2560_v15  ;;  %v1215_v10 = vadd.f32 %v1214_v50, %v2562_v17 }
 0x1d5   : > { %v1103_v11 = vpop.f32.mrf.mxu1  ;;  %v1216_v54 = vpop.f32.mrf.mxu0 }
 0x1d6   : > { %v1731_v55 = vpack.c.bf16 %v1102_v51, %v1100_v1  ;;  %v1747_v2 = vpack.c.bf16 %v1215_v10, %v1213_v6  ;;  %v1104_v60 = vadd.f32 %v1103_v11, %v2554_v37  ;;  %v1217_v12 = vadd.f32 %v1216_v54, %v2556_v9 }
 0x1d7   : > { %v1105_v8 = vpop.f32.mrf.mxu1  ;;  %v1218_v35 = vpop.f32.mrf.mxu0 }
 0x1d8   : > { %1371 = vst [vmem:[%s2572_s18 + $0x20] sm:$0xff] %v1731_v55  ;;  %1483 = vst [vmem:[%s2578_s14 + $0x20] sm:$0xff] %v1747_v2  ;;  %v1106_v18 = vadd.f32 %v1105_v8, %v2560_v15  ;;  %v1219_v23 = vadd.f32 %v1218_v35, %v2562_v17 }
 0x1d9   : > { %v1109_v5 = vpop.f32.mrf.mxu1  ;;  %v1222_v13 = vpop.f32.mrf.mxu0 }
 0x1da   : > { %v1732_v32 = vpack.c.bf16 %v1106_v18, %v1104_v60  ;;  %v1748_v40 = vpack.c.bf16 %v1219_v23, %v1217_v12  ;;  %v1110_v20 = vadd.f32 %v1109_v5, %v2554_v37  ;;  %v1223_v25 = vadd.f32 %v1222_v13, %v2556_v9 }
 0x1db   : > { %v1111_v29 = vpop.f32.mrf.mxu1  ;;  %v1224_v14 = vpop.f32.mrf.mxu0 }
 0x1dc   : > { %1372 = vst [vmem:[%s2572_s18 + $0x28] sm:$0xff] %v1732_v32  ;;  %1484 = vst [vmem:[%s2578_s14 + $0x28] sm:$0xff] %v1748_v40  ;;  %v1112_v46 = vadd.f32 %v1111_v29, %v2560_v15  ;;  %v1225_v24 = vadd.f32 %v1224_v14, %v2562_v17 }
 0x1dd   : > { %v1113_v21 = vpop.f32.mrf.mxu1  ;;  %v1226_v22 = vpop.f32.mrf.mxu0 }
 0x1de   : > { %v1733_v47 = vpack.c.bf16 %v1112_v46, %v1110_v20  ;;  %v1749_v30 = vpack.c.bf16 %v1225_v24, %v1223_v25  ;;  %v1114_v33 = vadd.f32 %v1113_v21, %v2554_v37  ;;  %v1227_v49 = vadd.f32 %v1226_v22, %v2556_v9 }
 0x1df   : > { %v1115_v31 = vpop.f32.mrf.mxu1  ;;  %v1228_v52 = vpop.f32.mrf.mxu0 }
 0x1e0   : > { %1373 = vst [vmem:[%s2572_s18 + $0x30] sm:$0xff] %v1733_v47  ;;  %1485 = vst [vmem:[%s2578_s14 + $0x30] sm:$0xff] %v1749_v30  ;;  %v1116_v59 = vadd.f32 %v1115_v31, %v2560_v15  ;;  %v1229_v36 = vadd.f32 %v1228_v52, %v2562_v17 }
 0x1e1   : > { %v1119_v38 = vpop.f32.mrf.mxu1  ;;  %v1232_v3 = vpop.f32.mrf.mxu0 }
 0x1e2   : > { %v1734_v4 = vpack.c.bf16 %v1116_v59, %v1114_v33  ;;  %v1750_v41 = vpack.c.bf16 %v1229_v36, %v1227_v49  ;;  %v1120_v45 = vadd.f32 %v1119_v38, %v2554_v37  ;;  %v1233_v48 = vadd.f32 %v1232_v3, %v2556_v9 }
 0x1e3   : > { %v1121_v42 = vpop.f32.mrf.mxu1  ;;  %v1234_v16 = vpop.f32.mrf.mxu0 }
 0x1e4   : > { %1374 = vst [vmem:[%s2572_s18 + $0x38] sm:$0xff] %v1734_v4  ;;  %1486 = vst [vmem:[%s2578_s14 + $0x38] sm:$0xff] %v1750_v41  ;;  %v1122_v26 = vadd.f32 %v1121_v42, %v2560_v15  ;;  %v1235_v57 = vadd.f32 %v1234_v16, %v2562_v17 }
 0x1e5   : > { %v1123_v53 = vpop.f32.mrf.mxu1  ;;  %v1236_v27 = vpop.f32.mrf.mxu0 }
 0x1e6   : > { %v1735_v28 = vpack.c.bf16 %v1122_v26, %v1120_v45  ;;  %v1751_v62 = vpack.c.bf16 %v1235_v57, %v1233_v48  ;;  %v1124_v58 = vadd.f32 %v1123_v53, %v2554_v37  ;;  %v1237_v19 = vadd.f32 %v1236_v27, %v2556_v9 }
 0x1e7   : > { %v1125_v56 = vpop.f32.mrf.mxu1  ;;  %v1238_v34 = vpop.f32.mrf.mxu0 }
 0x1e8   : > { %1375 = vst [vmem:[%s2572_s18 + $0x40] sm:$0xff] %v1735_v28  ;;  %1487 = vst [vmem:[%s2578_s14 + $0x40] sm:$0xff] %v1751_v62  ;;  %v1126_v39 = vadd.f32 %v1125_v56, %v2560_v15  ;;  %v1239_v7 = vadd.f32 %v1238_v34, %v2562_v17 }
 0x1e9   : > { %v1129_v61 = vpop.f32.mrf.mxu1  ;;  %v1242_v43 = vpop.f32.mrf.mxu0 }
 0x1ea   : > { %v1736_v44 = vpack.c.bf16 %v1126_v39, %v1124_v58  ;;  %v1752_v63 = vpack.c.bf16 %v1239_v7, %v1237_v19  ;;  %v1130_v1 = vadd.f32 %v1129_v61, %v2554_v37  ;;  %v1243_v6 = vadd.f32 %v1242_v43, %v2556_v9 }
 0x1eb   : > { %v1131_v0 = vpop.f32.mrf.mxu1  ;;  %v1244_v50 = vpop.f32.mrf.mxu0 }
 0x1ec   : > { %1376 = vst [vmem:[%s2572_s18 + $0x48] sm:$0xff] %v1736_v44  ;;  %1488 = vst [vmem:[%s2578_s14 + $0x48] sm:$0xff] %v1752_v63  ;;  %v1132_v51 = vadd.f32 %v1131_v0, %v2560_v15  ;;  %v1245_v10 = vadd.f32 %v1244_v50, %v2562_v17 }
 0x1ed   : > { %v1133_v11 = vpop.f32.mrf.mxu1  ;;  %v1246_v54 = vpop.f32.mrf.mxu0 }
 0x1ee   : > { %v1737_v55 = vpack.c.bf16 %v1132_v51, %v1130_v1  ;;  %v1753_v2 = vpack.c.bf16 %v1245_v10, %v1243_v6  ;;  %v1134_v60 = vadd.f32 %v1133_v11, %v2554_v37  ;;  %v1247_v12 = vadd.f32 %v1246_v54, %v2556_v9 }
 0x1ef   : > { %v1135_v8 = vpop.f32.mrf.mxu1  ;;  %v1248_v35 = vpop.f32.mrf.mxu0 }
 0x1f0   : > { %1377 = vst [vmem:[%s2572_s18 + $0x50] sm:$0xff] %v1737_v55  ;;  %1489 = vst [vmem:[%s2578_s14 + $0x50] sm:$0xff] %v1753_v2  ;;  %v1136_v18 = vadd.f32 %v1135_v8, %v2560_v15  ;;  %v1249_v23 = vadd.f32 %v1248_v35, %v2562_v17 }
 0x1f1   : > { %v1139_v5 = vpop.f32.mrf.mxu1 }
 0x1f2   : > { %v1738_v13 = vpack.c.bf16 %v1136_v18, %v1134_v60  ;;  %v1754_v32 = vpack.c.bf16 %v1249_v23, %v1247_v12  ;;  %v1140_v29 = vadd.f32 %v1139_v5, %v2554_v37 }
 0x1f3   : > { %v1141_v40 = vpop.f32.mrf.mxu1 }
 0x1f4   : > { %1378 = vst [vmem:[%s2572_s18 + $0x58] sm:$0xff] %v1738_v13  ;;  %1490 = vst [vmem:[%s2578_s14 + $0x58] sm:$0xff] %v1754_v32  ;;  %v1142_v14 = vadd.f32 %v1141_v40, %v2560_v15 }
 0x1f5   : > { %v1143_v20 = vpop.f32.mrf.mxu1 }
 0x1f6   : > { %v1739_v25 = vpack.c.bf16 %v1142_v14, %v1140_v29  ;;  %v1144_v24 = vadd.f32 %v1143_v20, %v2554_v37 }
 0x1f7   : > { %v1145_v46 = vpop.f32.mrf.mxu1 }
 0x1f8   : > { %1379 = vst [vmem:[%s2572_s18 + $0x60] sm:$0xff] %v1739_v25  ;;  %v1146_v21 = vadd.f32 %v1145_v46, %v2560_v15 }
 0x1f9   : > { %v1149_v22 = vpop.f32.mrf.mxu1 }
 0x1fa   : > { %v1740_v47 = vpack.c.bf16 %v1146_v21, %v1144_v24  ;;  %v1150_v31 = vadd.f32 %v1149_v22, %v2554_v37 }
 0x1fb   : > { %v1151_v30 = vpop.f32.mrf.mxu1 }
 0x1fc   : > { %1380 = vst [vmem:[%s2572_s18 + $0x68] sm:$0xff] %v1740_v47  ;;  %v1152_v52 = vadd.f32 %v1151_v30, %v2560_v15 }
 0x1fd   : > { %v1153_v33 = vpop.f32.mrf.mxu1 }
 0x1fe   : > { %v1741_v49 = vpack.c.bf16 %v1152_v52, %v1150_v31  ;;  %v1154_v36 = vadd.f32 %v1153_v33, %v2554_v37 }
 0x1ff   : > { %v1155_v59 = vpop.f32.mrf.mxu1 }
 0x200   : > { %1381 = vst [vmem:[%s2572_s18 + $0x70] sm:$0xff] %v1741_v49  ;;  %v1156_v38 = vadd.f32 %v1155_v59, %v2560_v15 }
 0x201   : > { %v1252_v3 = vpop.f32.mrf.mxu1 }
 0x202   : > { %v1742_v4 = vpack.c.bf16 %v1156_v38, %v1154_v36  ;;  %v1253_v42 = vadd.f32 %v1252_v3, %v2556_v9 }
 0x203   : > { %v1254_v41 = vpop.f32.mrf.mxu1 }
 0x204   : > { %1382 = vst [vmem:[%s2572_s18 + $0x78] sm:$0xff] %v1742_v4  ;;  %v1255_v16 = vadd.f32 %v1254_v41, %v2562_v17 }
 0x205   : > { %v1256_v45 = vpop.f32.mrf.mxu1 }
 0x206   : > { %v1755_v48 = vpack.c.bf16 %v1255_v16, %v1253_v42  ;;  %v1257_v57 = vadd.f32 %v1256_v45, %v2556_v9 }
 0x207   : > { %v1258_v26 = vpop.f32.mrf.mxu1 }
 0x208   : > { %1491 = vst [vmem:[%s2578_s14 + $0x60] sm:$0xff] %v1755_v48  ;;  %v1259_v37 = vadd.f32 %v1258_v26, %v2562_v17 }
 0x209   : > { %v1262_v15 = vpop.f32.mrf.mxu1 }
 0x20a   : > { %v1756_v53 = vpack.c.bf16 %v1259_v37, %v1257_v57  ;;  %v1263_v28 = vadd.f32 %v1262_v15, %v2556_v9 }
 0x20b   : > { %v1264_v27 = vpop.f32.mrf.mxu1 }
 0x20c   : > { %1492 = vst [vmem:[%s2578_s14 + $0x68] sm:$0xff] %v1756_v53  ;;  %v1265_v62 = vadd.f32 %v1264_v27, %v2562_v17 }
 0x20d   : > { %v1266_v56 = vpop.f32.mrf.mxu1 }
 0x20e   : > { %v1757_v34 = vpack.c.bf16 %v1265_v62, %v1263_v28  ;;  %v1267_v19 = vadd.f32 %v1266_v56, %v2556_v9 }
 0x20f   : > { %v1268_v58 = vpop.f32.mrf.mxu1 }
 0x210   : > { %1493 = vst [vmem:[%s2578_s14 + $0x70] sm:$0xff] %v1757_v34  ;;  %v1269_v39 = vadd.f32 %v1268_v58, %v2562_v17 }
 0x212   : > { %v1758_v7 = vpack.c.bf16 %v1269_v39, %v1267_v19 }
 0x214   : > { %1494 = vst [vmem:[%s2578_s14 + $0x78] sm:$0xff] %v1758_v7 }
 0x215 PF: > { %s17_s21 = sadd.s32 1, %s1990_s21  }
 0x216   : > { %p14_p4 = scmp.ge.s32.totalorder %s17_s21, 4  }
 0x218   :  { %16 = sbr.rel (!%p14_p4) target bundleno = 1 (0x1), region = 82 }

// kernel: attn_block.3
= control target key start
LH: loop header
LB: loop body
LE: loop exit
PB: predicated region body
PF: predicated region fallthrough
CT: control target
= control target key end

     0   :  { %s2832_s15 = smov 0   ;;  %s2834_s16 = smov 0   ;;  %s3934_s0 = inlined_call_operand.vmem [shape: f32[2,256,256], index: 0, kind: input, shape index: {}]   ;;  %s3935_s1 = inlined_call_operand.vmem [shape: bf16[256,512], index: 1, kind: input, shape index: {}]   ;;  %s3936_s2 = inlined_call_operand.vmem [shape: f32[1,512], index: 2, kind: input, shape index: {}]   ;;  %s3937_s3 = inlined_call_operand.vmem [shape: bf16[2,256,256], index: 3, kind: output, shape index: {0}]   ;;  %s3938_s4 = inlined_call_operand.vmem [shape: bf16[2,256,256], index: 4, kind: output, shape index: {1}]  }
   0x1   :  { %s2836_s17 = smov 0  }
   0x2 LB: > { %s27_s18 = sadd.s32 1, %s2801_s16  ;;  %p2395_p0 = scmp.ge.s32.totalorder %s2805_s17, 1  ;;  %s2805_s17 = sphi %s2836_s17, %s15_s17   ;;  %s2801_s16 = sphi %s2834_s16, %s3994_s16   ;;  %s2797_s15 = sphi %s2832_s15, %s3993_s15  }
   0x3   : > { %p29_p1 = scmp.ge.s32.totalorder %s27_s18, 2  ;;  %p188_p2 = scmp.lt.s32.totalorder %s2805_s17, 3 }
   0x5   : > { %s3996_s18 = smov (%p29_p1, %s27_s18), 0  ;;  %p189_p3 = pnand %p2395_p0, %p188_p2 }
   0x7   : > { %192 = sbr.rel (%p189_p3) target bundleno = 993 (0x3e1), region = 32 }
   0xc   : > { %p234_p4 = scmp.lt.s32.totalorder %s2797_s15, 1 }
   0xe   : > { %s3998_s15 = smov (!%p234_p4, %s2797_s15), 1 }
   0xf   : > { %s2532_s19 = sshll.u32 %s3998_s15, 9  ;;  %s2533_s21 = sshll.u32 %s3998_s15, 8 }
  0x10   : > { %s2856_s22 = scalar_lea.vmem %s3934_s0, %s2532_s19  ;;  %s3722_s24 = scalar_lea.vmem %s3937_s3, %s2533_s21 }
  0x11   : > { %v297_v0 = vld [vmem:[%s2856_s22 + $0x100] sm:$0xff]  ;;  %v299_v2 = vld [vmem:[%s2856_s22 + $0x110] sm:$0xff]  ;;  %v266_v56 = vld [vmem:[%s2856_s22 + $0x8] sm:$0xff]  ;;  %s3727_s15 = scalar_lea.vmem %s3938_s4, %s2533_s21 }
  0x12   : > { %v265_v1 = vld [vmem:[%s2856_s22] sm:$0xff]  ;;  %393 = vxpose.xlu1.b32.start [1/16] %v297_v0, 128  ;;  %v267_v3 = vld [vmem:[%s2856_s22 + $0x10] sm:$0xff]  ;;  %v268_v57 = vld [vmem:[%s2856_s22 + $0x18] sm:$0xff] }
  0x13   : > { %329 = vxpose.xlu0.b32.start [1/16] %v265_v1, 128  ;;  %v301_v4 = vld [vmem:[%s2856_s22 + $0x120] sm:$0xff]  ;;  %v303_v6 = vld [vmem:[%s2856_s22 + $0x130] sm:$0xff]  ;;  %v270_v58 = vld [vmem:[%s2856_s22 + $0x28] sm:$0xff] }
  0x14   : > { %v269_v5 = vld [vmem:[%s2856_s22 + $0x20] sm:$0xff]  ;;  %v271_v7 = vld [vmem:[%s2856_s22 + $0x30] sm:$0xff]  ;;  %v298_v59 = vld [vmem:[%s2856_s22 + $0x108] sm:$0xff] }
  0x15   : > { %v305_v8 = vld [vmem:[%s2856_s22 + $0x140] sm:$0xff]  ;;  %v307_v10 = vld [vmem:[%s2856_s22 + $0x150] sm:$0xff]  ;;  %v272_v60 = vld [vmem:[%s2856_s22 + $0x38] sm:$0xff] }
  0x16   : > { %394 = vxpose.xlu1.b32.cont [2/16] %v299_v2, 128  ;;  %v273_v9 = vld [vmem:[%s2856_s22 + $0x40] sm:$0xff]  ;;  %v275_v11 = vld [vmem:[%s2856_s22 + $0x50] sm:$0xff]  ;;  %v300_v61 = vld [vmem:[%s2856_s22 + $0x118] sm:$0xff] }
  0x17   : > { %330 = vxpose.xlu0.b32.cont [2/16] %v267_v3, 128  ;;  %v309_v12 = vld [vmem:[%s2856_s22 + $0x160] sm:$0xff]  ;;  %v311_v14 = vld [vmem:[%s2856_s22 + $0x170] sm:$0xff]  ;;  %v274_v62 = vld [vmem:[%s2856_s22 + $0x48] sm:$0xff] }
  0x18   : > { %v277_v13 = vld [vmem:[%s2856_s22 + $0x60] sm:$0xff]  ;;  %v279_v15 = vld [vmem:[%s2856_s22 + $0x70] sm:$0xff]  ;;  %v302_v63 = vld [vmem:[%s2856_s22 + $0x128] sm:$0xff] }
  0x19   : > { %v313_v16 = vld [vmem:[%s2856_s22 + $0x180] sm:$0xff]  ;;  %v315_v18 = vld [vmem:[%s2856_s22 + $0x190] sm:$0xff]  ;;  %v276_v0 = vld [vmem:[%s2856_s22 + $0x58] sm:$0xff] }
  0x1a   : > { %395 = vxpose.xlu1.b32.cont [3/16] %v301_v4, 128  ;;  %v281_v17 = vld [vmem:[%s2856_s22 + $0x80] sm:$0xff]  ;;  %v283_v19 = vld [vmem:[%s2856_s22 + $0x90] sm:$0xff]  ;;  %v304_v1 = vld [vmem:[%s2856_s22 + $0x138] sm:$0xff] }
  0x1b   : > { %331 = vxpose.xlu0.b32.cont [3/16] %v269_v5, 128  ;;  %v317_v20 = vld [vmem:[%s2856_s22 + $0x1a0] sm:$0xff]  ;;  %v319_v22 = vld [vmem:[%s2856_s22 + $0x1b0] sm:$0xff]  ;;  %v278_v2 = vld [vmem:[%s2856_s22 + $0x68] sm:$0xff] }
  0x1c   : > { %v285_v21 = vld [vmem:[%s2856_s22 + $0xa0] sm:$0xff]  ;;  %v287_v23 = vld [vmem:[%s2856_s22 + $0xb0] sm:$0xff]  ;;  %v306_v3 = vld [vmem:[%s2856_s22 + $0x148] sm:$0xff] }
  0x1d   : > { %v321_v24 = vld [vmem:[%s2856_s22 + $0x1c0] sm:$0xff]  ;;  %v323_v26 = vld [vmem:[%s2856_s22 + $0x1d0] sm:$0xff]  ;;  %v280_v4 = vld [vmem:[%s2856_s22 + $0x78] sm:$0xff] }
  0x1e   : > { %396 = vxpose.xlu1.b32.cont [4/16] %v303_v6, 128  ;;  %v289_v25 = vld [vmem:[%s2856_s22 + $0xc0] sm:$0xff]  ;;  %v291_v27 = vld [vmem:[%s2856_s22 + $0xd0] sm:$0xff]  ;;  %v308_v5 = vld [vmem:[%s2856_s22 + $0x158] sm:$0xff] }
  0x1f   : > { %332 = vxpose.xlu0.b32.cont [4/16] %v271_v7, 128  ;;  %v325_v28 = vld [vmem:[%s2856_s22 + $0x1e0] sm:$0xff]  ;;  %v327_v30 = vld [vmem:[%s2856_s22 + $0x1f0] sm:$0xff]  ;;  %v282_v6 = vld [vmem:[%s2856_s22 + $0x88] sm:$0xff] }
  0x20   : > { %v293_v29 = vld [vmem:[%s2856_s22 + $0xe0] sm:$0xff]  ;;  %v295_v31 = vld [vmem:[%s2856_s22 + $0xf0] sm:$0xff]  ;;  %v310_v7 = vld [vmem:[%s2856_s22 + $0x168] sm:$0xff] }
  0x22   : > { %397 = vxpose.xlu1.b32.cont [5/16] %v305_v8, 128  ;;  %v284_v8 = vld [vmem:[%s2856_s22 + $0x98] sm:$0xff] }
  0x23   : > { %333 = vxpose.xlu0.b32.cont [5/16] %v273_v9, 128  ;;  %v312_v9 = vld [vmem:[%s2856_s22 + $0x178] sm:$0xff] }
  0x26   : > { %398 = vxpose.xlu1.b32.cont [6/16] %v307_v10, 128  ;;  %v286_v10 = vld [vmem:[%s2856_s22 + $0xa8] sm:$0xff] }
  0x27   : > { %334 = vxpose.xlu0.b32.cont [6/16] %v275_v11, 128  ;;  %v314_v11 = vld [vmem:[%s2856_s22 + $0x188] sm:$0xff] }
  0x2a   : > { %399 = vxpose.xlu1.b32.cont [7/16] %v309_v12, 128  ;;  %v288_v12 = vld [vmem:[%s2856_s22 + $0xb8] sm:$0xff] }
  0x2b   : > { %335 = vxpose.xlu0.b32.cont [7/16] %v277_v13, 128  ;;  %v316_v13 = vld [vmem:[%s2856_s22 + $0x198] sm:$0xff] }
  0x2e   : > { %400 = vxpose.xlu1.b32.cont [8/16] %v311_v14, 128  ;;  %v290_v14 = vld [vmem:[%s2856_s22 + $0xc8] sm:$0xff] }
  0x2f   : > { %336 = vxpose.xlu0.b32.cont [8/16] %v279_v15, 128  ;;  %v318_v15 = vld [vmem:[%s2856_s22 + $0x1a8] sm:$0xff] }
  0x32   : > { %401 = vxpose.xlu1.b32.cont [9/16] %v313_v16, 128  ;;  %v292_v16 = vld [vmem:[%s2856_s22 + $0xd8] sm:$0xff] }
  0x33   : > { %337 = vxpose.xlu0.b32.cont [9/16] %v281_v17, 128  ;;  %v320_v17 = vld [vmem:[%s2856_s22 + $0x1b8] sm:$0xff] }
  0x36   : > { %402 = vxpose.xlu1.b32.cont [10/16] %v315_v18, 128  ;;  %v294_v18 = vld [vmem:[%s2856_s22 + $0xe8] sm:$0xff] }
  0x37   : > { %338 = vxpose.xlu0.b32.cont [10/16] %v283_v19, 128  ;;  %v322_v19 = vld [vmem:[%s2856_s22 + $0x1c8] sm:$0xff] }
  0x3a   : > { %403 = vxpose.xlu1.b32.cont [11/16] %v317_v20, 128  ;;  %v296_v20 = vld [vmem:[%s2856_s22 + $0xf8] sm:$0xff] }
  0x3b   : > { %339 = vxpose.xlu0.b32.cont [11/16] %v285_v21, 128  ;;  %v324_v21 = vld [vmem:[%s2856_s22 + $0x1d8] sm:$0xff] }
  0x3e   : > { %404 = vxpose.xlu1.b32.cont [12/16] %v319_v22, 128 }
  0x3f   : > { %340 = vxpose.xlu0.b32.cont [12/16] %v287_v23, 128  ;;  %v326_v23 = vld [vmem:[%s2856_s22 + $0x1e8] sm:$0xff] }
  0x42   : > { %405 = vxpose.xlu1.b32.cont [13/16] %v321_v24, 128 }
  0x43   : > { %341 = vxpose.xlu0.b32.cont [13/16] %v289_v25, 128  ;;  %v328_v25 = vld [vmem:[%s2856_s22 + $0x1f8] sm:$0xff] }
  0x46   : > { %406 = vxpose.xlu1.b32.cont [14/16] %v323_v26, 128 }
  0x47   : > { %342 = vxpose.xlu0.b32.cont [14/16] %v291_v27, 128 }
  0x4a   : > { %407 = vxpose.xlu1.b32.cont [15/16] %v325_v28, 128 }
  0x4b   : > { %343 = vxpose.xlu0.b32.cont [15/16] %v293_v29, 128 }
  0x4e   : > { %408 = vxpose.xlu1.b32.end [16/16] %v327_v30, 128 }
  0x4f   : > { %344 = vxpose.xlu0.b32.end [16/16] %v295_v31, 128 }
  0x8e   : > { %v2890_v32 = vpop.trf.xlu1 }
  0x8f   : > { %v2892_v33 = vpop.trf.xlu0 }
  0x90   : > { %v457_v34 = vadd.f32 %v2890_v32, %v2892_v33 }
  0x92   : > { %458 = vadd.xlane.f32.xlu0 %v457_v34  ;;  %v2896_v35 = vpop.trf.xlu1 }
  0x93   : > { %v2898_v36 = vpop.trf.xlu0 }
  0x94   : > { %v460_v37 = vadd.f32 %v2896_v35, %v2898_v36 }
  0x96   : > { %461 = vadd.xlane.f32.xlu1 %v460_v37  ;;  %v2902_v38 = vpop.trf.xlu1 }
  0x97   : > { %v2904_v39 = vpop.trf.xlu0 }
  0x98   : > { %v463_v40 = vadd.f32 %v2902_v38, %v2904_v39 }
  0x9a   : > { %464 = vadd.xlane.f32.xlu1 %v463_v40  ;;  %v2908_v41 = vpop.trf.xlu1 }
  0x9b   : > { %v2910_v42 = vpop.trf.xlu0 }
  0x9c   : > { %v466_v43 = vadd.f32 %v2908_v41, %v2910_v42 }
  0x9e   : > { %467 = vadd.xlane.f32.xlu1 %v466_v43  ;;  %v2914_v44 = vpop.trf.xlu1 }
  0x9f   : > { %v2916_v45 = vpop.trf.xlu0 }
  0xa0   : > { %v469_v46 = vadd.f32 %v2914_v44, %v2916_v45 }
  0xa2   : > { %470 = vadd.xlane.f32.xlu0 %v469_v46  ;;  %v2920_v47 = vpop.trf.xlu1 }
  0xa3   : > { %v2922_v48 = vpop.trf.xlu0 }
  0xa4   : > { %v472_v49 = vadd.f32 %v2920_v47, %v2922_v48 }
  0xa6   : > { %473 = vadd.xlane.f32.xlu1 %v472_v49  ;;  %v2926_v50 = vpop.trf.xlu1 }
  0xa7   : > { %v2928_v51 = vpop.trf.xlu0 }
  0xa8   : > { %v475_v52 = vadd.f32 %v2926_v50, %v2928_v51 }
  0xaa   : > { %476 = vadd.xlane.f32.xlu0 %v475_v52  ;;  %v2932_v53 = vpop.trf.xlu1 }
  0xab   : > { %v2934_v54 = vpop.trf.xlu0 }
  0xac   : > { %v478_v55 = vadd.f32 %v2932_v53, %v2934_v54 }
  0xae   : > { %479 = vadd.xlane.f32.xlu1 %v478_v55  ;;  %v2968_v22 = vpop.trf.xlu1 }
  0xaf   : > { %v2971_v24 = vpop.trf.xlu0 }
  0xb0   : > { %v481_v52 = vadd.f32 %v2968_v22, %v2971_v24 }
  0xb2   : > { %v2974_v26 = vpop.trf.xlu1 }
  0xb3   : > { %v2976_v27 = vpop.trf.xlu0 }
  0xb6   : > { %v2978_v28 = vpop.trf.xlu1 }
  0xb7   : > { %v2980_v29 = vpop.trf.xlu0 }
  0xba   : > { %v2982_v30 = vpop.trf.xlu1 }
  0xbb   : > { %v2984_v31 = vpop.trf.xlu0 }
  0xbe   : > { %v2986_v34 = vpop.trf.xlu1 }
  0xbf   : > { %v2988_v37 = vpop.trf.xlu0 }
  0xc2   : > { %v2990_v40 = vpop.trf.xlu1 }
  0xc3   : > { %v2992_v43 = vpop.trf.xlu0 }
  0xc6   : > { %v2994_v46 = vpop.trf.xlu1 }
  0xc7   : > { %v2996_v49 = vpop.trf.xlu0 }
  0xca   : > { %v3000_v55 = vpop.trf.xlu1 }
  0xd7   : > { %361 = vxpose.xlu0.b32.start [1/16] %v266_v56, 128  ;;  %v484_v56 = vadd.f32 %v2974_v26, %v2976_v27 }
  0xdb   : > { %362 = vxpose.xlu0.b32.cont [2/16] %v268_v57, 128  ;;  %v487_v57 = vadd.f32 %v2978_v28, %v2980_v29 }
  0xdf   : > { %363 = vxpose.xlu0.b32.cont [3/16] %v270_v58, 128  ;;  %v3006_v58 = vpop.trf.xlu0 }
  0xe1   : > { %425 = vxpose.xlu1.b32.start [1/16] %v298_v59, 128  ;;  %v490_v59 = vadd.f32 %v2982_v30, %v2984_v31 }
  0xe3   : > { %364 = vxpose.xlu0.b32.cont [4/16] %v272_v60, 128  ;;  %v493_v60 = vadd.f32 %v2986_v34, %v2988_v37 }
  0xe5   : > { %426 = vxpose.xlu1.b32.cont [2/16] %v300_v61, 128 }
  0xe7   : > { %365 = vxpose.xlu0.b32.cont [5/16] %v274_v62, 128 }
  0xe9   : > { %427 = vxpose.xlu1.b32.cont [3/16] %v302_v63, 128  ;;  %v496_v63 = vadd.f32 %v2990_v40, %v2992_v43 }
  0xeb   : > { %366 = vxpose.xlu0.b32.cont [6/16] %v276_v0, 128  ;;  %v499_v0 = vadd.f32 %v2994_v46, %v2996_v49 }
  0xed   : > { %428 = vxpose.xlu1.b32.cont [4/16] %v304_v1, 128 }
  0xef   : > { %367 = vxpose.xlu0.b32.cont [7/16] %v278_v2, 128 }
  0xf1   : > { %429 = vxpose.xlu1.b32.cont [5/16] %v306_v3, 128  ;;  %v502_v3 = vadd.f32 %v3000_v55, %v3006_v58 }
  0xf3   : > { %368 = vxpose.xlu0.b32.cont [8/16] %v280_v4, 128 }
  0xf5   : > { %430 = vxpose.xlu1.b32.cont [6/16] %v308_v5, 128  ;;  %v2623_v5 = vld [vmem:[%s3935_s1 + $0xe4] ss:$16 sps:$4 sm:$0xff]  }
  0xf6   : > { %1408 = vmatprep.subr.bf16.mxu0 %v2623_v5  ;;  %v2651_v5 = vld [vmem:[%s3935_s1 + $0x60] ss:$16 sps:$4 sm:$0xff]  }
  0xf7   : > { %369 = vxpose.xlu0.b32.cont [9/16] %v282_v6, 128  ;;  %v2625_v6 = vld [vmem:[%s3935_s1 + $0xec] ss:$16 sps:$4 sm:$0xff]  }
  0xf8   : > { %1601 = vmatprep.subr.bf16.mxu1 %v2625_v6  ;;  %v2652_v6 = vld [vmem:[%s3935_s1 + $0x68] ss:$16 sps:$4 sm:$0xff]  }
  0xf9   : > { %431 = vxpose.xlu1.b32.cont [7/16] %v310_v7, 128 }
  0xfb   : > { %370 = vxpose.xlu0.b32.cont [10/16] %v284_v8, 128  ;;  %v2627_v8 = vld [vmem:[%s3935_s1 + $0xe0] ss:$16 sps:$4 sm:$0xff]  }
  0xfc   : > { %1409 = vmatpush1.bf16.msra.mxu0 %v2627_v8 }
  0xfd   : > { %432 = vxpose.xlu1.b32.cont [8/16] %v312_v9, 128  ;;  %v2628_v9 = vld [vmem:[%s3935_s1 + $0xe8] ss:$16 sps:$4 sm:$0xff]  }
  0xfe   : > { %1602 = vmatpush1.bf16.msra.mxu1 %v2628_v9 }
  0xff   : > { %371 = vxpose.xlu0.b32.cont [11/16] %v286_v10, 128 }
 0x101   : > { %433 = vxpose.xlu1.b32.cont [9/16] %v314_v11, 128  ;;  %v2629_v11 = vld [vmem:[%s3935_s1 + $0xc4] ss:$16 sps:$4 sm:$0xff]  }
 0x102   : > { %1410 = vmatprep.subr.bf16.mxu0 %v2629_v11 }
 0x103   : > { %372 = vxpose.xlu0.b32.cont [12/16] %v288_v12, 128  ;;  %v2631_v12 = vld [vmem:[%s3935_s1 + $0xcc] ss:$16 sps:$4 sm:$0xff]  }
 0x104   : > { %1603 = vmatprep.subr.bf16.mxu1 %v2631_v12 }
 0x105   : > { %434 = vxpose.xlu1.b32.cont [10/16] %v316_v13, 128 }
 0x107   : > { %373 = vxpose.xlu0.b32.cont [13/16] %v290_v14, 128  ;;  %v2633_v14 = vld [vmem:[%s3935_s1 + $0xc0] ss:$16 sps:$4 sm:$0xff]  }
 0x108   : > { %1411 = vmatpush1.bf16.msra.mxu0 %v2633_v14 }
 0x109   : > { %435 = vxpose.xlu1.b32.cont [11/16] %v318_v15, 128  ;;  %v2634_v15 = vld [vmem:[%s3935_s1 + $0xc8] ss:$16 sps:$4 sm:$0xff]  }
 0x10a   : > { %1604 = vmatpush1.bf16.msra.mxu1 %v2634_v15 }
 0x10b   : > { %374 = vxpose.xlu0.b32.cont [14/16] %v292_v16, 128 }
 0x10d   : > { %436 = vxpose.xlu1.b32.cont [12/16] %v320_v17, 128  ;;  %v2635_v17 = vld [vmem:[%s3935_s1 + $0xa4] ss:$16 sps:$4 sm:$0xff]  }
 0x10e   : > { %1412 = vmatprep.subr.bf16.mxu0 %v2635_v17  ;;  %v2655_v17 = vld [vmem:[%s3935_s1 + $0x4c] ss:$16 sps:$4 sm:$0xff]  }
 0x10f   : > { %375 = vxpose.xlu0.b32.cont [15/16] %v294_v18, 128  ;;  %v2637_v18 = vld [vmem:[%s3935_s1 + $0xac] ss:$16 sps:$4 sm:$0xff]  }
 0x110   : > { %1605 = vmatprep.subr.bf16.mxu1 %v2637_v18 }
 0x111   : > { %437 = vxpose.xlu1.b32.cont [13/16] %v322_v19, 128 }
 0x113   : > { %376 = vxpose.xlu0.b32.end [16/16] %v296_v20, 128  ;;  %v2639_v20 = vld [vmem:[%s3935_s1 + $0xa0] ss:$16 sps:$4 sm:$0xff]  }
 0x114   : > { %1413 = vmatpush1.bf16.msra.mxu0 %v2639_v20 }
 0x115   : > { %438 = vxpose.xlu1.b32.cont [14/16] %v324_v21, 128  ;;  %v2640_v21 = vld [vmem:[%s3935_s1 + $0xa8] ss:$16 sps:$4 sm:$0xff]  }
 0x116   : > { %1606 = vmatpush1.bf16.msra.mxu1 %v2640_v21 }
 0x119   : > { %439 = vxpose.xlu1.b32.cont [15/16] %v326_v23, 128 }
 0x11b   : > { %v459_v62 = vpop.xlane.xlu0 %458 }
 0x11d   : > { %440 = vxpose.xlu1.b32.end [16/16] %v328_v25, 128  ;;  %v2641_v25 = vld [vmem:[%s3935_s1 + $0x84] ss:$16 sps:$4 sm:$0xff]  }
 0x11e   : > { %1414 = vmatprep.subr.bf16.mxu0 %v2641_v25 }
 0x11f   : > { %v3012_v61 = vpop.xlane.xlu1 %461 }
 0x120   : > { %v555_v12 = vmul.f32 0.00390625, %v3012_v61  ;;  %v2658_v61 = vld [vmem:[%s3935_s1 + $0x48] ss:$16 sps:$4 sm:$0xff]  }
 0x122   : > { %v3135_v25 = vsub.f32 %v2898_v36, %v555_v12  ;;  %v2661_v36 = vld [vmem:[%s3935_s1 + $0x2c] ss:$16 sps:$4 sm:$0xff]  }
 0x123   : > { %v3018_v1 = vpop.xlane.xlu1 %464 }
 0x124   : > { %v556_v18 = vmul.f32 0.00390625, %v3018_v1 }
 0x127   : > { %v3032_v7 = vpop.xlane.xlu1 %467 }
 0x12b   : > { %v3020_v2 = vpop.xlane.xlu0 %470 }
 0x12f   : > { %v3048_v13 = vpop.xlane.xlu1 %473 }
 0x133   : > { %v3024_v4 = vpop.xlane.xlu0 %476 }
 0x137   : > { %v3064_v19 = vpop.xlane.xlu1 %479 }
 0x140   : > { %482 = vadd.xlane.f32.xlu0 %v481_v52  ;;  %v2643_v52 = vld [vmem:[%s3935_s1 + $0x8c] ss:$16 sps:$4 sm:$0xff]  }
 0x141   : > { %1607 = vmatprep.subr.bf16.mxu1 %v2643_v52  ;;  %v3138_v52 = vsub.f32 %v2896_v35, %v555_v12  ;;  %v3153_v35 = vsub.f32 %v2904_v39, %v556_v18 }
 0x144   : > { %485 = vadd.xlane.f32.xlu1 %v484_v56  ;;  %488 = vadd.xlane.f32.xlu0 %v487_v57  ;;  %v554_v56 = vmul.f32 0.00390625, %v459_v62  ;;  %v2647_v62 = vld [vmem:[%s3935_s1 + $0x64] ss:$16 sps:$4 sm:$0xff]  }
 0x146   : > { %v3105_v8 = vsub.f32 %v2892_v33, %v554_v56  ;;  %v3110_v11 = vsub.f32 %v2890_v32, %v554_v56  ;;  %v2653_v33 = vld [vmem:[%s3935_s1 + $0x44] ss:$16 sps:$4 sm:$0xff]   ;;  %v2657_v32 = vld [vmem:[%s3935_s1 + $0x40] ss:$16 sps:$4 sm:$0xff]  }
 0x148   : > { %491 = vadd.xlane.f32.xlu1 %v490_v59  ;;  %494 = vadd.xlane.f32.xlu0 %v493_v60  ;;  %v2645_v59 = vld [vmem:[%s3935_s1 + $0x80] ss:$16 sps:$4 sm:$0xff]   ;;  %v2646_v60 = vld [vmem:[%s3935_s1 + $0x88] ss:$16 sps:$4 sm:$0xff]   ;;  %v650_v21 = vmul.f32 %v3105_v8, %v3105_v8 }
 0x149   : > { %1415 = vmatpush1.bf16.msra.mxu0 %v2645_v59  ;;  %1608 = vmatpush1.bf16.msra.mxu1 %v2646_v60  ;;  %v651_v59 = vmul.f32 %v3110_v11, %v3110_v11  ;;  %v2659_v60 = vld [vmem:[%s3935_s1 + $0x24] ss:$16 sps:$4 sm:$0xff]  }
 0x14a   : > { %1416 = vmatprep.subr.bf16.mxu0 %v2647_v62  ;;  %v557_v62 = vmul.f32 0.00390625, %v3032_v7  ;;  %v653_v7 = vmul.f32 %v3138_v52, %v3138_v52 }
 0x14b   : > { %v714_v12 = vadd.f32 %v651_v59, %v650_v21  ;;  %v654_v21 = vmul.f32 %v3153_v35, %v3153_v35  ;;  %v2669_v59 = vld [vmem:[%s3935_s1] ss:$16 sps:$4 sm:$0xff]  }
 0x14c   : > { %497 = vadd.xlane.f32.xlu1 %v496_v63  ;;  %500 = vadd.xlane.f32.xlu0 %v499_v0 }
 0x14d   : > { %1417 = vmatpush1.bf16.msra.mxu0 %v2651_v5  ;;  %v2663_v5 = vld [vmem:[%s3935_s1 + $0x20] ss:$16 sps:$4 sm:$0xff]  }
 0x14e   : > { %1418 = vmatprep.subr.bf16.mxu0 %v2653_v33  ;;  %v2665_v33 = vld [vmem:[%s3935_s1 + $0x4] ss:$16 sps:$4 sm:$0xff]  }
 0x150   : > { %503 = vadd.xlane.f32.xlu1 %v502_v3  ;;  %v2649_v3 = vld [vmem:[%s3935_s1 + $0x6c] ss:$16 sps:$4 sm:$0xff]  }
 0x151   : > { %1609 = vmatprep.subr.bf16.mxu1 %v2649_v3  ;;  %1419 = vmatpush1.bf16.msra.mxu0 %v2657_v32  ;;  %v3182_v32 = vsub.f32 %v2910_v42, %v557_v62  ;;  %v2670_v42 = vld [vmem:[%s3935_s1 + $0x8] ss:$16 sps:$4 sm:$0xff]  }
 0x152   : > { %1610 = vmatpush1.bf16.msra.mxu1 %v2652_v6  ;;  %1420 = vmatprep.subr.bf16.mxu0 %v2659_v60  ;;  %v2664_v6 = vld [vmem:[%s3935_s1 + $0x28] ss:$16 sps:$4 sm:$0xff]   ;;  %v558_v60 = vmul.f32 0.00390625, %v3020_v2  ;;  %v2673_v2 = vld [vmem:[%s3935_s1 + $0x1ec] ss:$16 sps:$4 sm:$0xff]  }
 0x153   : > { %v3040_v10 = vpop.trf.xlu0  ;;  %1611 = vmatprep.subr.bf16.mxu1 %v2655_v17  ;;  %v2667_v17 = vld [vmem:[%s3935_s1 + $0xc] ss:$16 sps:$4 sm:$0xff]  }
 0x155   : > { %1421 = vmatpush1.bf16.msra.mxu0 %v2663_v5  ;;  %v2671_v5 = vld [vmem:[%s3935_s1 + $0x1e4] ss:$16 sps:$4 sm:$0xff]  }
 0x156   : > { %1612 = vmatpush1.bf16.msra.mxu1 %v2658_v61  ;;  %v3185_v61 = vsub.f32 %v2908_v41, %v557_v62  ;;  %1422 = vmatprep.subr.bf16.mxu0 %v2665_v33  ;;  %v2675_v33 = vld [vmem:[%s3935_s1 + $0x1e0] ss:$16 sps:$4 sm:$0xff]  }
 0x157   : > { %v3056_v16 = vpop.trf.xlu0  ;;  %1613 = vmatprep.subr.bf16.mxu1 %v2661_v36 }
 0x159   : > { %1423 = vmatpush1.bf16.msra.mxu0 %v2669_v59  ;;  %v3224_v59 = vsub.f32 %v2916_v45, %v558_v60  ;;  %v2679_v45 = vld [vmem:[%s3935_s1 + $0x1cc] ss:$16 sps:$4 sm:$0xff]  }
 0x15a   : > { %1614 = vmatpush1.bf16.msra.mxu1 %v2664_v6  ;;  %v559_v6 = vmul.f32 0.00390625, %v3048_v13  ;;  %v3227_v13 = vsub.f32 %v2914_v44, %v558_v60  ;;  %1424 = vmatprep.subr.bf16.mxu0 %v2671_v5  ;;  %v560_v60 = vmul.f32 0.00390625, %v3024_v4 }
 0x15b   : > { %v3072_v23 = vpop.trf.xlu0  ;;  %1615 = vmatprep.subr.bf16.mxu1 %v2667_v17  ;;  %v2676_v17 = vld [vmem:[%s3935_s1 + $0x1e8] ss:$16 sps:$4 sm:$0xff]   ;;  %3957 = vst [vmem:[#allocation2_spill] sm:$0xff] %v3224_v59 }
 0x15c   : > { %3958 = vst [vmem:[#allocation3_spill] sm:$0xff] %v3227_v13  ;;  %v3238_v44 = vsub.f32 %v2922_v48, %v559_v6  ;;  %v659_v4 = vmul.f32 %v3227_v13, %v3227_v13 }
 0x15d   : > { %v3080_v57 = vpop.trf.xlu1  ;;  %1425 = vmatpush2.bf16.msra.mxu0 %v2675_v33  ;;  %v3270_v33 = vsub.f32 %v2926_v50, %v560_v60 }
 0x15e   : > { %v505_v63 = vadd.f32 %v3080_v57, %v3040_v10  ;;  %1616 = vmatpush1.bf16.msra.mxu1 %v2670_v42  ;;  %3959 = vst [vmem:[#allocation4_spill] sm:$0xff] %v3238_v44  ;;  %v3241_v42 = vsub.f32 %v2920_v47, %v559_v6  ;;  %v658_v47 = vmul.f32 %v3224_v59, %v3224_v59  ;;  %v2683_v6 = vld [vmem:[%s3935_s1 + $0x1a4] ss:$16 sps:$4 sm:$0xff]  }
 0x15f   : > { %v3090_v0 = vpop.trf.xlu0  ;;  %1617 = vmatprep.subr.bf16.mxu1 %v2673_v2  ;;  %v2681_v2 = vld [vmem:[%s3935_s1 + $0x1c0] ss:$16 sps:$4 sm:$0xff]   ;;  %3962 = vst [vmem:[#allocation7_spill] sm:$0xff] %v3270_v33 }
 0x160   : > { %506 = vadd.xlane.f32.xlu0 %v505_v63  ;;  %v3156_v63 = vsub.f32 %v2902_v38, %v556_v18  ;;  %v652_v38 = vmul.f32 %v3135_v25, %v3135_v25  ;;  %3960 = vst [vmem:[#allocation5_spill] sm:$0xff] %v3241_v42  ;;  %v726_v50 = vadd.f32 %v659_v4, %v658_v47 }
 0x161   : > { %v3107_v9 = vpop.trf.xlu1 }
 0x162   : > { %v508_v14 = vadd.f32 %v3107_v9, %v3056_v16  ;;  %v717_v41 = vadd.f32 %v653_v7, %v652_v38  ;;  %v656_v38 = vmul.f32 %v3182_v32, %v3182_v32  ;;  %v657_v7 = vmul.f32 %v3185_v61, %v3185_v61  ;;  %1618 = vmatpush2.bf16.msra.mxu1 %v2676_v17 }
 0x163   : > { %v3115_v15 = vpop.trf.xlu0  ;;  %1619 = vmatprep.subr.bf16.mxu1 %v2679_v45  ;;  %v2687_v45 = vld [vmem:[%s3935_s1 + $0x1a0] ss:$16 sps:$4 sm:$0xff]  }
 0x164   : > { %509 = vadd.xlane.f32.xlu1 %v508_v14 }
 0x165   : > { %v3130_v20 = vpop.trf.xlu1 }
 0x166   : > { %v511_v56 = vadd.f32 %v3130_v20, %v3072_v23 }
 0x167   : > { %v3144_v1 = vpop.trf.xlu0 }
 0x168   : > { %512 = vadd.xlane.f32.xlu0 %v511_v56  ;;  %v655_v56 = vmul.f32 %v3156_v63, %v3156_v63 }
 0x169   : > { %v3159_v3 = vpop.trf.xlu1 }
 0x16a   : > { %v514_v39 = vadd.f32 %v3159_v3, %v3090_v0 }
 0x16b   : > { %v3173_v14 = vpop.trf.xlu0 }
 0x16c   : > { %715 = vadd.xlane.f32.xlu0 %v714_v12  ;;  %515 = vadd.xlane.f32.xlu1 %v514_v39  ;;  %v720_v39 = vadd.f32 %v655_v56, %v654_v21  ;;  %v2677_v56 = vld [vmem:[%s3935_s1 + $0x1c4] ss:$16 sps:$4 sm:$0xff]  }
 0x16d   : > { %v3187_v18 = vpop.trf.xlu1  ;;  %1426 = vmatprep.subr.bf16.mxu0 %v2677_v56  ;;  %v661_v56 = vmul.f32 %v3241_v42, %v3241_v42 }
 0x16e   : > { %v517_v36 = vadd.f32 %v3187_v18, %v3115_v15  ;;  %1427 = vmatpush2.bf16.msra.mxu0 %v2681_v2 }
 0x16f   : > { %v3202_v62 = vpop.trf.xlu0  ;;  %1428 = vmatprep.subr.bf16.mxu0 %v2683_v6  ;;  %v663_v6 = vmul.f32 %v3270_v33, %v3270_v33 }
 0x170   : > { %718 = vadd.xlane.f32.xlu1 %v717_v41  ;;  %518 = vadd.xlane.f32.xlu0 %v517_v36  ;;  %v723_v36 = vadd.f32 %v657_v7, %v656_v38  ;;  %v2685_v38 = vld [vmem:[%s3935_s1 + $0x1ac] ss:$16 sps:$4 sm:$0xff]   ;;  %v3267_v7 = vsub.f32 %v2928_v51, %v560_v60  ;;  %v2688_v51 = vld [vmem:[%s3935_s1 + $0x1a8] ss:$16 sps:$4 sm:$0xff]  }
 0x171   : > { %v3211_v12 = vpop.trf.xlu1 }
 0x172   : > { %v520_v21 = vadd.f32 %v3211_v12, %v3144_v1  ;;  %3961 = vst [vmem:[#allocation6_spill] sm:$0xff] %v3267_v7  ;;  %1429 = vmatpush2.bf16.msra.mxu0 %v2687_v45  ;;  %v662_v4 = vmul.f32 %v3267_v7, %v3267_v7  ;;  %v2694_v45 = vld [vmem:[%s3935_s1 + $0x188] ss:$16 sps:$4 sm:$0xff]  }
 0x173   : > { %v3246_v5 = vpop.trf.xlu0 }
 0x174   : > { %721 = vadd.xlane.f32.xlu0 %v720_v39  ;;  %521 = vadd.xlane.f32.xlu1 %v520_v21  ;;  %v2682_v39 = vld [vmem:[%s3935_s1 + $0x1c8] ss:$16 sps:$4 sm:$0xff]   ;;  %v660_v21 = vmul.f32 %v3238_v44, %v3238_v44 }
 0x175   : > { %v3244_v41 = vpop.trf.xlu1  ;;  %1620 = vmatpush2.bf16.msra.mxu1 %v2682_v39  ;;  %v2689_v39 = vld [vmem:[%s3935_s1 + $0x184] ss:$16 sps:$4 sm:$0xff]  }
 0x176   : > { %v523_v48 = vadd.f32 %v3244_v41, %v3173_v14  ;;  %1621 = vmatprep.subr.bf16.mxu1 %v2685_v38  ;;  %v729_v47 = vadd.f32 %v661_v56, %v660_v21  ;;  %v2693_v38 = vld [vmem:[%s3935_s1 + $0x180] ss:$16 sps:$4 sm:$0xff]   ;;  %1430 = vmatprep.subr.bf16.mxu0 %v2689_v39  ;;  %v2695_v56 = vld [vmem:[%s3935_s1 + $0x164] ss:$16 sps:$4 sm:$0xff]  }
 0x177   : > { %v3287_v2 = vpop.trf.xlu0  ;;  %1431 = vmatpush2.bf16.msra.mxu0 %v2693_v38  ;;  %v2699_v39 = vld [vmem:[%s3935_s1 + $0x160] ss:$16 sps:$4 sm:$0xff]  }
 0x178   : > { %724 = vadd.xlane.f32.xlu1 %v723_v36  ;;  %524 = vadd.xlane.f32.xlu0 %v523_v48  ;;  %v561_v36 = vmul.f32 0.00390625, %v3064_v19  ;;  %v2691_v19 = vld [vmem:[%s3935_s1 + $0x18c] ss:$16 sps:$4 sm:$0xff]  }
 0x179   : > { %v3272_v17 = vpop.trf.xlu1  ;;  %1622 = vmatpush2.bf16.msra.mxu1 %v2688_v51  ;;  %1432 = vmatprep.subr.bf16.mxu0 %v2695_v56  ;;  %v2706_v56 = vld [vmem:[%s3935_s1 + $0x148] ss:$16 sps:$4 sm:$0xff]  }
 0x17a   : > { %v526_v60 = vadd.f32 %v3272_v17, %v3202_v62  ;;  %v3308_v51 = vsub.f32 %v2934_v54, %v561_v36  ;;  %1623 = vmatprep.subr.bf16.mxu1 %v2691_v19  ;;  %v2697_v54 = vld [vmem:[%s3935_s1 + $0x16c] ss:$16 sps:$4 sm:$0xff]   ;;  %v2700_v19 = vld [vmem:[%s3935_s1 + $0x168] ss:$16 sps:$4 sm:$0xff]  }
 0x17b   : > { %1433 = vmatpush2.bf16.msra.mxu0 %v2699_v39 }
 0x17c   : > { %727 = vadd.xlane.f32.xlu0 %v726_v50  ;;  %527 = vadd.xlane.f32.xlu1 %v526_v60  ;;  %3963 = vst [vmem:[#allocation8_spill] sm:$0xff] %v3308_v51  ;;  %v3311_v50 = vsub.f32 %v2932_v53, %v561_v36  ;;  %v732_v53 = vadd.f32 %v663_v6, %v662_v4  ;;  %v3323_v36 = vpop.trf.xlu0  ;;  %v2701_v4 = vld [vmem:[%s3935_s1 + $0x144] ss:$16 sps:$4 sm:$0xff]   ;;  %v2703_v6 = vld [vmem:[%s3935_s1 + $0x14c] ss:$16 sps:$4 sm:$0xff]  }
 0x17d   : > { %v3295_v48 = vpop.trf.xlu1  ;;  %1624 = vmatpush2.bf16.msra.mxu1 %v2694_v45  ;;  %3965 = vst [vmem:[#allocation10_spill] sm:$0xff] %v3323_v36  ;;  %1434 = vmatprep.subr.bf16.mxu0 %v2701_v4 }
 0x17e   : > { %3964 = vst [vmem:[#allocation9_spill] sm:$0xff] %v3311_v50  ;;  %v529_v21 = vadd.f32 %v3295_v48, %v3246_v5  ;;  %v665_v38 = vmul.f32 %v3311_v50, %v3311_v50  ;;  %1625 = vmatprep.subr.bf16.mxu1 %v2697_v54 }
 0x180   : > { %730 = vadd.xlane.f32.xlu1 %v729_v47  ;;  %530 = vadd.xlane.f32.xlu0 %v529_v21  ;;  %v664_v47 = vmul.f32 %v3308_v51, %v3308_v51  ;;  %v2705_v51 = vld [vmem:[%s3935_s1 + $0x140] ss:$16 sps:$4 sm:$0xff]   ;;  %v3353_v39 = vpop.trf.xlu0 }
 0x181   : > { %v3321_v60 = vpop.trf.xlu1  ;;  %1626 = vmatpush2.bf16.msra.mxu1 %v2700_v19  ;;  %3967 = vst [vmem:[#allocation12_spill] sm:$0xff] %v3353_v39  ;;  %1435 = vmatpush2.bf16.msra.mxu0 %v2705_v51  ;;  %v2707_v19 = vld [vmem:[%s3935_s1 + $0x124] ss:$16 sps:$4 sm:$0xff]   ;;  %v2712_v51 = vld [vmem:[%s3935_s1 + $0x128] ss:$16 sps:$4 sm:$0xff]  }
 0x182   : > { %v532_v45 = vadd.f32 %v3321_v60, %v3287_v2  ;;  %v735_v54 = vadd.f32 %v665_v38, %v664_v47  ;;  %1627 = vmatprep.subr.bf16.mxu1 %v2703_v6  ;;  %v2711_v38 = vld [vmem:[%s3935_s1 + $0x120] ss:$16 sps:$4 sm:$0xff]   ;;  %1436 = vmatprep.subr.bf16.mxu0 %v2707_v19  ;;  %v2713_v6 = vld [vmem:[%s3935_s1 + $0x104] ss:$16 sps:$4 sm:$0xff]  }
 0x184   : > { %733 = vadd.xlane.f32.xlu0 %v732_v53  ;;  %533 = vadd.xlane.f32.xlu1 %v532_v45  ;;  %v2709_v45 = vld [vmem:[%s3935_s1 + $0x12c] ss:$16 sps:$4 sm:$0xff]   ;;  %v3383_v19 = vpop.trf.xlu0 }
 0x185   : > { %v3343_v21 = vpop.trf.xlu1  ;;  %1628 = vmatpush2.bf16.msra.mxu1 %v2706_v56  ;;  %1437 = vmatpush2.bf16.msra.mxu0 %v2711_v38  ;;  %v2715_v56 = vld [vmem:[%s3935_s1 + $0x10c] ss:$16 sps:$4 sm:$0xff]  }
 0x186   : > { %3966 = vst [vmem:[#allocation11_spill] sm:$0xff] %v3343_v21  ;;  %v535_v53 = vadd.f32 %v3343_v21, %v3323_v36  ;;  %1629 = vmatprep.subr.bf16.mxu1 %v2709_v45  ;;  %1438 = vmatprep.subr.bf16.mxu0 %v2713_v6 }
 0x188   : > { %736 = vadd.xlane.f32.xlu1 %v735_v54  ;;  %536 = vadd.xlane.f32.xlu0 %v535_v53  ;;  %v2717_v54 = vld [vmem:[%s3935_s1 + $0x100] ss:$16 sps:$4 sm:$0xff]   ;;  %v2718_v53 = vld [vmem:[%s3935_s1 + $0x108] ss:$16 sps:$4 sm:$0xff]   ;;  %v3387_v38 = vpop.trf.xlu0 }
 0x189   : > { %v3361_v47 = vpop.trf.xlu1  ;;  %1630 = vmatpush2.bf16.msra.mxu1 %v2712_v51  ;;  %1439 = vmatpush2.bf16.msra.mxu0 %v2717_v54 }
 0x18a   : > { %3968 = vst [vmem:[#allocation13_spill] sm:$0xff] %v3361_v47  ;;  %v538_v4 = vadd.f32 %v3361_v47, %v3353_v39  ;;  %1631 = vmatprep.subr.bf16.mxu1 %v2715_v56 }
 0x18c   : > { %539 = vadd.xlane.f32.xlu1 %v538_v4  ;;  %v3391_v4 = vpop.trf.xlu0 }
 0x18d   : > { %1632 = vmatpush2.bf16.msra.mxu1 %v2718_v53  ;;  %v3385_v45 = vpop.trf.xlu1 }
 0x190   : > { %v3395_v50 = vpop.trf.xlu0 }
 0x191   : > { %v3389_v51 = vpop.trf.xlu1 }
 0x195   : > { %v3393_v7 = vpop.trf.xlu1 }
 0x199   : > { %v3397_v33 = vpop.trf.xlu1 }
 0x1c9   : > { %v483_v6 = vpop.xlane.xlu0 %482 }
 0x1ca   : > { %v562_v56 = vmul.f32 0.00390625, %v483_v6 }
 0x1cc   : > { %v3400_v54 = vsub.f32 %v2971_v24, %v562_v56  ;;  %v3403_v53 = vsub.f32 %v2968_v22, %v562_v56 }
 0x1cd   : > { %v486_v44 = vpop.xlane.xlu1 %485  ;;  %v489_v59 = vpop.xlane.xlu0 %488 }
 0x1ce   : > { %3969 = vst [vmem:[#allocation14_spill] sm:$0xff] %v3400_v54  ;;  %3970 = vst [vmem:[#allocation15_spill] sm:$0xff] %v3403_v53  ;;  %v666_v42 = vmul.f32 %v3400_v54, %v3400_v54  ;;  %v667_v13 = vmul.f32 %v3403_v53, %v3403_v53  ;;  %v563_v47 = vmul.f32 0.00390625, %v486_v44  ;;  %v564_v39 = vmul.f32 0.00390625, %v489_v59 }
 0x1d0   : > { %v3410_v21 = vsub.f32 %v2976_v27, %v563_v47  ;;  %v3413_v6 = vsub.f32 %v2974_v26, %v563_v47  ;;  %v3416_v24 = vsub.f32 %v2980_v29, %v564_v39  ;;  %v3419_v22 = vsub.f32 %v2978_v28, %v564_v39 }
 0x1d1   : > { %v492_v56 = vpop.xlane.xlu1 %491  ;;  %v495_v36 = vpop.xlane.xlu0 %494  ;;  %v738_v54 = vadd.f32 %v667_v13, %v666_v42  ;;  %v541_v26 = vadd.f32 %v3385_v45, %v3383_v19 }
 0x1d2   : > { %3971 = vst [vmem:[#allocation16_spill] sm:$0xff] %v3416_v24  ;;  %v668_v53 = vmul.f32 %v3410_v21, %v3410_v21  ;;  %v669_v59 = vmul.f32 %v3413_v6, %v3413_v6  ;;  %v565_v27 = vmul.f32 0.00390625, %v492_v56  ;;  %v670_v29 = vmul.f32 %v3416_v24, %v3416_v24 }
 0x1d3   : > { %739 = vadd.xlane.f32.xlu0 %v738_v54  ;;  %v671_v28 = vmul.f32 %v3419_v22, %v3419_v22  ;;  %v566_v39 = vmul.f32 0.00390625, %v495_v36  ;;  %v544_v54 = vadd.f32 %v3389_v51, %v3387_v38 }
 0x1d4   : > { %v741_v44 = vadd.f32 %v669_v59, %v668_v53  ;;  %v3432_v13 = vsub.f32 %v2984_v31, %v565_v27  ;;  %v3435_v42 = vsub.f32 %v2982_v30, %v565_v27 }
 0x1d5   : > { %v498_v47 = vpop.xlane.xlu1 %497  ;;  %v501_v56 = vpop.xlane.xlu0 %500  ;;  %v3444_v31 = vsub.f32 %v2988_v37, %v566_v39  ;;  %v3447_v30 = vsub.f32 %v2986_v34, %v566_v39 }
 0x1d6   : > { %3972 = vst [vmem:[#allocation17_spill] sm:$0xff] %v3432_v13  ;;  %3973 = vst [vmem:[#allocation18_spill] sm:$0xff] %v3435_v42  ;;  %742 = vadd.xlane.f32.xlu1 %v741_v44  ;;  %v672_v53 = vmul.f32 %v3432_v13, %v3432_v13  ;;  %v673_v59 = vmul.f32 %v3435_v42, %v3435_v42  ;;  %v567_v24 = vmul.f32 0.00390625, %v498_v47  ;;  %v568_v36 = vmul.f32 0.00390625, %v501_v56 }
 0x1d7   : > { %542 = vadd.xlane.f32.xlu0 %v541_v26  ;;  %v744_v44 = vadd.f32 %v671_v28, %v670_v29  ;;  %v547_v26 = vadd.f32 %v3393_v7, %v3391_v4  ;;  %v674_v34 = vmul.f32 %v3444_v31, %v3444_v31  ;;  %v675_v39 = vmul.f32 %v3447_v30, %v3447_v30 }
 0x1d8   : > { %v3452_v13 = vsub.f32 %v2992_v43, %v567_v24  ;;  %v3455_v42 = vsub.f32 %v2990_v40, %v567_v24  ;;  %v747_v37 = vadd.f32 %v673_v59, %v672_v53  ;;  %v3462_v29 = vsub.f32 %v2996_v49, %v568_v36 }
 0x1d9   : > { %v504_v27 = vpop.xlane.xlu1 %503  ;;  %v3465_v28 = vsub.f32 %v2994_v46, %v568_v36  ;;  %v550_v43 = vadd.f32 %v3397_v33, %v3395_v50  ;;  %v750_v53 = vadd.f32 %v675_v39, %v674_v34 }
 0x1da   : > { %545 = vadd.xlane.f32.xlu1 %v544_v54  ;;  %v569_v47 = vmul.f32 0.00390625, %v504_v27  ;;  %v676_v40 = vmul.f32 %v3452_v13, %v3452_v13  ;;  %v677_v24 = vmul.f32 %v3455_v42, %v3455_v42  ;;  %v678_v46 = vmul.f32 %v3462_v29, %v3462_v29 }
 0x1db   : > { %745 = vadd.xlane.f32.xlu0 %v744_v44  ;;  %v679_v54 = vmul.f32 %v3465_v28, %v3465_v28 }
 0x1dc   : > { %v3474_v56 = vsub.f32 %v3006_v58, %v569_v47  ;;  %v3477_v49 = vsub.f32 %v3000_v55, %v569_v47  ;;  %v753_v58 = vadd.f32 %v677_v24, %v676_v40 }
 0x1dd   : > { %v756_v27 = vadd.f32 %v679_v54, %v678_v46 }
 0x1de   : > { %748 = vadd.xlane.f32.xlu1 %v747_v37  ;;  %v680_v59 = vmul.f32 %v3474_v56, %v3474_v56  ;;  %v681_v36 = vmul.f32 %v3477_v49, %v3477_v49 }
 0x1df   : > { %548 = vadd.xlane.f32.xlu0 %v547_v26 }
 0x1e0   : > { %v759_v55 = vadd.f32 %v681_v36, %v680_v59 }
 0x1e2   : > { %551 = vadd.xlane.f32.xlu1 %v550_v43 }
 0x1e3   : > { %751 = vadd.xlane.f32.xlu0 %v750_v53 }
 0x1e6   : > { %754 = vadd.xlane.f32.xlu1 %v753_v58 }
 0x1e7   : > { %757 = vadd.xlane.f32.xlu0 %v756_v27 }
 0x1e9   : > { %v507_v44 = vpop.xlane.xlu0 %506 }
 0x1ea   : > { %v570_v26 = vmul.f32 0.00390625, %v507_v44  ;;  %760 = vadd.xlane.f32.xlu1 %v759_v55 }
 0x1ec   : > { %v3488_v47 = vsub.f32 %v3040_v10, %v570_v26  ;;  %v3491_v37 = vsub.f32 %v3080_v57, %v570_v26 }
 0x1ed   : > { %v510_v34 = vpop.xlane.xlu1 %509 }
 0x1ee   : > { %v682_v39 = vmul.f32 %v3488_v47, %v3488_v47  ;;  %v683_v43 = vmul.f32 %v3491_v37, %v3491_v37  ;;  %v571_v40 = vmul.f32 0.00390625, %v510_v34 }
 0x1f0   : > { %v3498_v24 = vsub.f32 %v3056_v16, %v571_v40  ;;  %v3501_v46 = vsub.f32 %v3107_v9, %v571_v40  ;;  %v762_v54 = vadd.f32 %v683_v43, %v682_v39 }
 0x1f1   : > { %v513_v10 = vpop.xlane.xlu0 %512 }
 0x1f2   : > { %v684_v57 = vmul.f32 %v3498_v24, %v3498_v24  ;;  %v685_v53 = vmul.f32 %v3501_v46, %v3501_v46  ;;  %v572_v59 = vmul.f32 0.00390625, %v513_v10  ;;  %763 = vadd.xlane.f32.xlu0 %v762_v54 }
 0x1f4   : > { %v3508_v36 = vsub.f32 %v3072_v23, %v572_v59  ;;  %v3511_v58 = vsub.f32 %v3130_v20, %v572_v59  ;;  %v765_v16 = vadd.f32 %v685_v53, %v684_v57 }
 0x1f5   : > { %v516_v27 = vpop.xlane.xlu1 %515  ;;  %v716_v9 = vpop.xlane.xlu0 %715 }
 0x1f6   : > { %v686_v55 = vmul.f32 %v3508_v36, %v3508_v36  ;;  %v687_v44 = vmul.f32 %v3511_v58, %v3511_v58  ;;  %v573_v26 = vmul.f32 0.00390625, %v516_v27  ;;  %v810_v34 = vmul.f32 0.00390625, %v716_v9  ;;  %766 = vadd.xlane.f32.xlu1 %v765_v16 }
 0x1f8   : > { %v3518_v39 = vsub.f32 %v3090_v0, %v573_v26  ;;  %v3521_v23 = vsub.f32 %v3159_v3, %v573_v26  ;;  %v842_v20 = vadd.f32 1e-06, %v810_v34  ;;  %v768_v43 = vadd.f32 %v687_v44, %v686_v55 }
 0x1f9   : > { %v719_v40 = vpop.xlane.xlu1 %718  ;;  %v519_v54 = vpop.xlane.xlu0 %518 }
 0x1fa   : > { %v688_v10 = vmul.f32 %v3518_v39, %v3518_v39  ;;  %v689_v57 = vmul.f32 %v3521_v23, %v3521_v23  ;;  %v811_v53 = vmul.f32 0.00390625, %v719_v40  ;;  %769 = vadd.xlane.f32.xlu0 %v768_v43  ;;  %2719 = vrsqrt.f32 %v842_v20 }
 0x1fb   : > { %v574_v59 = vmul.f32 0.00390625, %v519_v54 }
 0x1fc   : > { %v843_v16 = vadd.f32 1e-06, %v811_v53  ;;  %v771_v0 = vadd.f32 %v689_v57, %v688_v10 }
 0x1fd   : > { %v3528_v27 = vsub.f32 %v3115_v15, %v574_v59  ;;  %v3531_v3 = vsub.f32 %v3187_v18, %v574_v59  ;;  %v522_v9 = vpop.xlane.xlu1 %521  ;;  %v722_v55 = vpop.xlane.xlu0 %721 }
 0x1fe   : > { %2721 = vrsqrt.f32 %v843_v16  ;;  %v575_v44 = vmul.f32 0.00390625, %v522_v9  ;;  %v812_v26 = vmul.f32 0.00390625, %v722_v55  ;;  %772 = vadd.xlane.f32.xlu1 %v771_v0 }
 0x1ff   : > { %v690_v34 = vmul.f32 %v3528_v27, %v3528_v27  ;;  %v691_v20 = vmul.f32 %v3531_v3, %v3531_v3 }
 0x200   : > { %v3538_v43 = vsub.f32 %v3144_v1, %v575_v44  ;;  %v3541_v15 = vsub.f32 %v3211_v12, %v575_v44  ;;  %v844_v18 = vadd.f32 1e-06, %v812_v26 }
 0x201   : > { %v725_v40 = vpop.xlane.xlu1 %724  ;;  %v525_v54 = vpop.xlane.xlu0 %524  ;;  %v774_v10 = vadd.f32 %v691_v20, %v690_v34 }
 0x202   : > { %v692_v57 = vmul.f32 %v3538_v43, %v3538_v43  ;;  %v693_v53 = vmul.f32 %v3541_v15, %v3541_v15  ;;  %v813_v59 = vmul.f32 0.00390625, %v725_v40  ;;  %2723 = vrsqrt.f32 %v844_v18 }
 0x203   : > { %v576_v16 = vmul.f32 0.00390625, %v525_v54  ;;  %775 = vadd.xlane.f32.xlu0 %v774_v10 }
 0x204   : > { %v845_v0 = vadd.f32 1e-06, %v813_v59  ;;  %v777_v1 = vadd.f32 %v693_v53, %v692_v57 }
 0x205   : > { %v3548_v9 = vsub.f32 %v3173_v14, %v576_v16  ;;  %v3551_v12 = vsub.f32 %v3244_v41, %v576_v16  ;;  %v528_v55 = vpop.xlane.xlu1 %527  ;;  %v728_v44 = vpop.xlane.xlu0 %727 }
 0x206   : > { %2725 = vrsqrt.f32 %v845_v0  ;;  %v577_v26 = vmul.f32 0.00390625, %v528_v55  ;;  %v814_v34 = vmul.f32 0.00390625, %v728_v44  ;;  %778 = vadd.xlane.f32.xlu1 %v777_v1 }
 0x207   : > { %v694_v20 = vmul.f32 %v3548_v9, %v3548_v9  ;;  %v695_v18 = vmul.f32 %v3551_v12, %v3551_v12  ;;  %v2720_v40 = vpop.eup %2719 }
 0x208   : > { %v3558_v54 = vsub.f32 %v3202_v62, %v577_v26  ;;  %v3561_v14 = vsub.f32 %v3272_v17, %v577_v26  ;;  %v846_v41 = vadd.f32 1e-06, %v814_v34  ;;  %v907_v62 = vmul.f32 %v2720_v40, %v3110_v11 }
 0x209   : > { %v731_v10 = vpop.xlane.xlu1 %730  ;;  %v531_v57 = vpop.xlane.xlu0 %530  ;;  %v780_v53 = vadd.f32 %v695_v18, %v694_v20 }
 0x20a   : > { %3974 = vst [vmem:[#allocation19_spill] sm:$0xff] %v3558_v54  ;;  %v696_v59 = vmul.f32 %v3558_v54, %v3558_v54  ;;  %v697_v16 = vmul.f32 %v3561_v14, %v3561_v14  ;;  %v815_v0 = vmul.f32 0.00390625, %v731_v10  ;;  %2727 = vrsqrt.f32 %v846_v41 }
 0x20b   : > { %v2722_v1 = vpop.eup %2721  ;;  %v578_v55 = vmul.f32 0.00390625, %v531_v57  ;;  %781 = vadd.xlane.f32.xlu0 %v780_v53  ;;  %v906_v41 = vmul.f32 %v2720_v40, %v3105_v8 }
 0x20c   : > { %v847_v44 = vadd.f32 1e-06, %v815_v0  ;;  %v783_v17 = vadd.f32 %v697_v16, %v696_v59  ;;  %v909_v26 = vmul.f32 %v2722_v1, %v3138_v52  ;;  %v908_v34 = vmul.f32 %v2722_v1, %v3135_v25 }
 0x20d   : > { %v3571_v20 = vsub.f32 %v3246_v5, %v578_v55  ;;  %v3574_v18 = vsub.f32 %v3295_v48, %v578_v55  ;;  %v534_v54 = vpop.xlane.xlu1 %533  ;;  %v734_v10 = vpop.xlane.xlu0 %733 }
 0x20e   : > { %2729 = vrsqrt.f32 %v847_v44  ;;  %v579_v57 = vmul.f32 0.00390625, %v534_v54  ;;  %v816_v53 = vmul.f32 0.00390625, %v734_v10  ;;  %784 = vadd.xlane.f32.xlu1 %v783_v17  ;;  %v971_v11 = vpack.c.bf16 %v909_v26, %v907_v62 }
 0x20f   : > { %v698_v52 = vmul.f32 %v3571_v20, %v3571_v20  ;;  %v699_v25 = vmul.f32 %v3574_v18, %v3574_v18  ;;  %v970_v5 = vpack.c.bf16 %v908_v34, %v906_v41  ;;  %v2724_v59 = vpop.eup %2723 }
 0x210   : > { %v3582_v48 = vsub.f32 %v3287_v2, %v579_v57  ;;  %v3585_v16 = vsub.f32 %v3321_v60, %v579_v57  ;;  %v848_v8 = vadd.f32 1e-06, %v816_v53  ;;  %1440 = vmatprep.mubr.bf16.mxu0 %v971_v11  ;;  %1633 = vmatprep.mubr.bf16.mxu1 %v971_v11  ;;  %v911_v60 = vmul.f32 %v2724_v59, %v3156_v63  ;;  %v3975_v57 = vld [vmem:[#allocation10_spill] sm:$0xff]  ;;  %v3976_v11 = vld [vmem:[#allocation11_spill] sm:$0xff] }
 0x211   : > { %v737_v40 = vpop.xlane.xlu1 %736  ;;  %1441 = vmatmul.mubr.bf16.vlgmr.msra.gmra.mxu0 %v970_v5  ;;  %1634 = vmatmul.mubr.bf16.vlgmr.msra.gmra.mxu1 %v970_v5  ;;  %v537_v54 = vpop.xlane.xlu0 %536  ;;  %v786_v0 = vadd.f32 %v699_v25, %v698_v52  ;;  %v910_v17 = vmul.f32 %v2724_v59, %v3153_v35 }
 0x212   : > { %v700_v1 = vmul.f32 %v3582_v48, %v3582_v48  ;;  %v701_v55 = vmul.f32 %v3585_v16, %v3585_v16  ;;  %v817_v62 = vmul.f32 0.00390625, %v737_v40  ;;  %2731 = vrsqrt.f32 %v848_v8 }
 0x213   : > { %v2726_v2 = vpop.eup %2725  ;;  %v580_v44 = vmul.f32 0.00390625, %v537_v54  ;;  %787 = vadd.xlane.f32.xlu0 %v786_v0  ;;  %v3978_v54 = vld [vmem:[#allocation13_spill] sm:$0xff] }
 0x214   : > { %v849_v26 = vadd.f32 1e-06, %v817_v62  ;;  %v789_v34 = vadd.f32 %v701_v55, %v700_v1  ;;  %v913_v10 = vmul.f32 %v2726_v2, %v3185_v61  ;;  %v912_v41 = vmul.f32 %v2726_v2, %v3182_v32  ;;  %v3977_v32 = vld [vmem:[#allocation12_spill] sm:$0xff] }
 0x215   : > { %v3596_v53 = vsub.f32 %v3975_v57, %v580_v44  ;;  %v3599_v52 = vsub.f32 %v3976_v11, %v580_v44  ;;  %v540_v25 = vpop.xlane.xlu1 %539  ;;  %v3979_v44 = vld [vmem:[#allocation3_spill] sm:$0xff]  ;;  %v3982_v57 = vld [vmem:[#allocation4_spill] sm:$0xff] }
 0x216   : > { %2733 = vrsqrt.f32 %v849_v26  ;;  %v581_v5 = vmul.f32 0.00390625, %v540_v25  ;;  %790 = vadd.xlane.f32.xlu1 %v789_v34  ;;  %v973_v8 = vpack.c.bf16 %v913_v10, %v911_v60  ;;  %v972_v63 = vpack.c.bf16 %v912_v41, %v910_v17  ;;  %v3980_v26 = vld [vmem:[#allocation5_spill] sm:$0xff]  ;;  %v3981_v10 = vld [vmem:[#allocation2_spill] sm:$0xff] }
 0x217   : > { %v702_v35 = vmul.f32 %v3596_v53, %v3596_v53  ;;  %v703_v61 = vmul.f32 %v3599_v52, %v3599_v52  ;;  %v2728_v59 = vpop.eup %2727 }
 0x218   : > { %v3606_v40 = vsub.f32 %v3977_v32, %v581_v5  ;;  %v3609_v0 = vsub.f32 %v3978_v54, %v581_v5  ;;  %1450 = vmatprep.mubr.bf16.mxu0 %v973_v8  ;;  %1643 = vmatprep.mubr.bf16.mxu1 %v973_v8  ;;  %v915_v60 = vmul.f32 %v2728_v59, %v3979_v44  ;;  %v3984_v32 = vld [vmem:[#allocation9_spill] sm:$0xff] }
 0x219   : > { %1451 = vmatmul.mubr.bf16.gmra.mxu0 %v972_v63  ;;  %1644 = vmatmul.mubr.bf16.gmra.mxu1 %v972_v63  ;;  %v792_v1 = vadd.f32 %v703_v61, %v702_v35  ;;  %v914_v41 = vmul.f32 %v2728_v59, %v3981_v10  ;;  %v3983_v35 = vld [vmem:[#allocation7_spill] sm:$0xff] }
 0x21a   : > { %v704_v55 = vmul.f32 %v3606_v40, %v3606_v40  ;;  %v705_v62 = vmul.f32 %v3609_v0, %v3609_v0 }
 0x21b   : > { %v2730_v2 = vpop.eup %2729  ;;  %793 = vadd.xlane.f32.xlu0 %v792_v1  ;;  %v3985_v1 = vld [vmem:[#allocation6_spill] sm:$0xff] }
 0x21c   : > { %v795_v17 = vadd.f32 %v705_v62, %v704_v55  ;;  %v917_v34 = vmul.f32 %v2730_v2, %v3980_v26  ;;  %v916_v11 = vmul.f32 %v2730_v2, %v3982_v57  ;;  %v3986_v62 = vld [vmem:[#allocation8_spill] sm:$0xff] }
 0x21e   : > { %796 = vadd.xlane.f32.xlu1 %v795_v17  ;;  %v975_v25 = vpack.c.bf16 %v917_v34, %v915_v60  ;;  %v974_v5 = vpack.c.bf16 %v916_v11, %v914_v41 }
 0x21f   : > { %v2732_v8 = vpop.eup %2731 }
 0x220   : > { %1460 = vmatprep.mubr.bf16.mxu0 %v975_v25  ;;  %1653 = vmatprep.mubr.bf16.mxu1 %v975_v25  ;;  %v919_v61 = vmul.f32 %v2732_v8, %v3983_v35  ;;  %v918_v55 = vmul.f32 %v2732_v8, %v3985_v1 }
 0x221   : > { %1461 = vmatmul.mubr.bf16.gmra.mxu0 %v974_v5  ;;  %1654 = vmatmul.mubr.bf16.gmra.mxu1 %v974_v5 }
 0x223   : > { %v2734_v63 = vpop.eup %2733 }
 0x224   : > { %v921_v54 = vmul.f32 %v2734_v63, %v3984_v32  ;;  %v920_v44 = vmul.f32 %v2734_v63, %v3986_v62 }
 0x226   : > { %v977_v59 = vpack.c.bf16 %v921_v54, %v919_v61  ;;  %v976_v26 = vpack.c.bf16 %v920_v44, %v918_v55 }
 0x228   : > { %1470 = vmatprep.mubr.bf16.mxu0 %v977_v59  ;;  %1663 = vmatprep.mubr.bf16.mxu1 %v977_v59 }
 0x229   : > { %1471 = vmatmul.mubr.bf16.gmra.mxu0 %v976_v26  ;;  %1664 = vmatmul.mubr.bf16.gmra.mxu1 %v976_v26 }
 0x25c   : > { %v740_v2 = vpop.xlane.xlu0 %739 }
 0x25d   : > { %v818_v60 = vmul.f32 0.00390625, %v740_v2 }
 0x25f   : > { %v850_v17 = vadd.f32 1e-06, %v818_v60  ;;  %v743_v34 = vpop.xlane.xlu1 %742 }
 0x260   : > { %v819_v10 = vmul.f32 0.00390625, %v743_v34  ;;  %v543_v41 = vpop.xlane.xlu0 %542 }
 0x261   : > { %2735 = vrsqrt.f32 %v850_v17  ;;  %v582_v57 = vmul.f32 0.00390625, %v543_v41 }
 0x262   : > { %v851_v11 = vadd.f32 1e-06, %v819_v10 }
 0x263   : > { %v3624_v25 = vsub.f32 %v3383_v19, %v582_v57  ;;  %v3627_v5 = vsub.f32 %v3385_v45, %v582_v57  ;;  %v546_v8 = vpop.xlane.xlu1 %545 }
 0x264   : > { %2737 = vrsqrt.f32 %v851_v11  ;;  %v583_v63 = vmul.f32 0.00390625, %v546_v8  ;;  %v746_v35 = vpop.xlane.xlu0 %745 }
 0x265   : > { %v706_v61 = vmul.f32 %v3624_v25, %v3624_v25  ;;  %v707_v32 = vmul.f32 %v3627_v5, %v3627_v5  ;;  %v820_v54 = vmul.f32 0.00390625, %v746_v35 }
 0x266   : > { %v3634_v1 = vsub.f32 %v3387_v38, %v583_v63  ;;  %v3637_v19 = vsub.f32 %v3389_v51, %v583_v63 }
 0x267   : > { %v852_v55 = vadd.f32 1e-06, %v820_v54  ;;  %v749_v45 = vpop.xlane.xlu1 %748  ;;  %v798_v62 = vadd.f32 %v707_v32, %v706_v61 }
 0x268   : > { %v708_v44 = vmul.f32 %v3634_v1, %v3634_v1  ;;  %v709_v59 = vmul.f32 %v3637_v19, %v3637_v19  ;;  %v821_v26 = vmul.f32 0.00390625, %v749_v45  ;;  %v549_v2 = vpop.xlane.xlu0 %548 }
 0x269   : > { %v584_v60 = vmul.f32 0.00390625, %v549_v2  ;;  %799 = vadd.xlane.f32.xlu0 %v798_v62  ;;  %2739 = vrsqrt.f32 %v852_v55 }
 0x26a   : > { %v853_v17 = vadd.f32 1e-06, %v821_v26  ;;  %v801_v38 = vadd.f32 %v709_v59, %v708_v44 }
 0x26b   : > { %v3644_v34 = vsub.f32 %v3391_v4, %v584_v60  ;;  %v3647_v51 = vsub.f32 %v3393_v7, %v584_v60  ;;  %v552_v10 = vpop.xlane.xlu1 %551  ;;  %v3988_v60 = vld [vmem:[#allocation14_spill] sm:$0xff] }
 0x26c   : > { %2741 = vrsqrt.f32 %v853_v17  ;;  %v585_v41 = vmul.f32 0.00390625, %v552_v10  ;;  %v752_v57 = vpop.xlane.xlu0 %751  ;;  %802 = vadd.xlane.f32.xlu1 %v801_v38 }
 0x26d   : > { %v710_v11 = vmul.f32 %v3644_v34, %v3644_v34  ;;  %v711_v8 = vmul.f32 %v3647_v51, %v3647_v51  ;;  %v822_v63 = vmul.f32 0.00390625, %v752_v57 }
 0x26e   : > { %v2736_v35 = vpop.eup %2735  ;;  %v3654_v61 = vsub.f32 %v3395_v50, %v585_v41  ;;  %v3657_v4 = vsub.f32 %v3397_v33, %v585_v41  ;;  %v3987_v50 = vld [vmem:[#allocation15_spill] sm:$0xff] }
 0x26f   : > { %v854_v7 = vadd.f32 1e-06, %v822_v63  ;;  %v755_v32 = vpop.xlane.xlu1 %754  ;;  %v804_v54 = vadd.f32 %v711_v8, %v710_v11  ;;  %v923_v2 = vmul.f32 %v2736_v35, %v3987_v50  ;;  %v922_v33 = vmul.f32 %v2736_v35, %v3988_v60 }
 0x270   : > { %v712_v55 = vmul.f32 %v3654_v61, %v3654_v61  ;;  %v713_v45 = vmul.f32 %v3657_v4, %v3657_v4  ;;  %v823_v62 = vmul.f32 0.00390625, %v755_v32  ;;  %v758_v44 = vpop.xlane.xlu0 %757 }
 0x271   : > { %v2738_v59 = vpop.eup %2737  ;;  %2743 = vrsqrt.f32 %v854_v7  ;;  %v824_v26 = vmul.f32 0.00390625, %v758_v44  ;;  %805 = vadd.xlane.f32.xlu0 %v804_v54  ;;  %v3991_v44 = vld [vmem:[#allocation17_spill] sm:$0xff] }
 0x272   : > { %v855_v17 = vadd.f32 1e-06, %v823_v62  ;;  %v807_v38 = vadd.f32 %v713_v45, %v712_v55  ;;  %v925_v10 = vmul.f32 %v2738_v59, %v3413_v6  ;;  %v924_v41 = vmul.f32 %v2738_v59, %v3410_v21  ;;  %v3989_v55 = vld [vmem:[#allocation18_spill] sm:$0xff]  ;;  %v3990_v45 = vld [vmem:[#allocation16_spill] sm:$0xff] }
 0x273   : > { %v856_v57 = vadd.f32 1e-06, %v824_v26  ;;  %v761_v11 = vpop.xlane.xlu1 %760 }
 0x274   : > { %2745 = vrsqrt.f32 %v855_v17  ;;  %v825_v8 = vmul.f32 0.00390625, %v761_v11  ;;  %808 = vadd.xlane.f32.xlu1 %v807_v38  ;;  %v979_v63 = vpack.c.bf16 %v925_v10, %v923_v2  ;;  %v978_v32 = vpack.c.bf16 %v924_v41, %v922_v33 }
 0x275   : > { %2747 = vrsqrt.f32 %v856_v57 }
 0x276   : > { %v857_v7 = vadd.f32 1e-06, %v825_v8  ;;  %1480 = vmatprep.mubr.bf16.mxu0 %v979_v63  ;;  %1673 = vmatprep.mubr.bf16.mxu1 %v979_v63  ;;  %v2740_v54 = vpop.eup %2739 }
 0x277   : > { %1481 = vmatmul.mubr.bf16.gmra.mxu0 %v978_v32  ;;  %1674 = vmatmul.mubr.bf16.gmra.mxu1 %v978_v32  ;;  %v927_v6 = vmul.f32 %v2740_v54, %v3419_v22  ;;  %v926_v62 = vmul.f32 %v2740_v54, %v3990_v45 }
 0x278   : > { %2749 = vrsqrt.f32 %v857_v7 }
 0x279   : > { %v2742_v35 = vpop.eup %2741 }
 0x27a   : > { %v929_v21 = vmul.f32 %v2742_v35, %v3989_v55  ;;  %v928_v59 = vmul.f32 %v2742_v35, %v3991_v44 }
 0x27b   : > { %v764_v26 = vpop.xlane.xlu0 %763 }
 0x27c   : > { %v826_v50 = vmul.f32 0.00390625, %v764_v26  ;;  %v981_v2 = vpack.c.bf16 %v929_v21, %v927_v6  ;;  %v980_v60 = vpack.c.bf16 %v928_v59, %v926_v62 }
 0x27e   : > { %v2744_v33 = vpop.eup %2743  ;;  %v858_v17 = vadd.f32 1e-06, %v826_v50  ;;  %1490 = vmatprep.mubr.bf16.mxu0 %v981_v2  ;;  %1683 = vmatprep.mubr.bf16.mxu1 %v981_v2 }
 0x27f   : > { %v767_v38 = vpop.xlane.xlu1 %766  ;;  %1491 = vmatmul.mubr.bf16.gmra.mxu0 %v980_v60  ;;  %1684 = vmatmul.mubr.bf16.gmra.mxu1 %v980_v60  ;;  %v931_v22 = vmul.f32 %v2744_v33, %v3447_v30  ;;  %v930_v8 = vmul.f32 %v2744_v33, %v3444_v31 }
 0x280   : > { %v827_v10 = vmul.f32 0.00390625, %v767_v38  ;;  %2751 = vrsqrt.f32 %v858_v17 }
 0x281   : > { %v2746_v41 = vpop.eup %2745 }
 0x282   : > { %v859_v57 = vadd.f32 1e-06, %v827_v10  ;;  %v933_v11 = vmul.f32 %v2746_v41, %v3455_v42  ;;  %v932_v63 = vmul.f32 %v2746_v41, %v3452_v13  ;;  %v2748_v32 = vpop.eup %2747 }
 0x283   : > { %v770_v7 = vpop.xlane.xlu0 %769  ;;  %v935_v45 = vmul.f32 %v2748_v32, %v3465_v28  ;;  %v934_v59 = vmul.f32 %v2748_v32, %v3462_v29 }
 0x284   : > { %2753 = vrsqrt.f32 %v859_v57  ;;  %v828_v54 = vmul.f32 0.00390625, %v770_v7  ;;  %v983_v35 = vpack.c.bf16 %v933_v11, %v931_v22  ;;  %v982_v6 = vpack.c.bf16 %v932_v63, %v930_v8 }
 0x285   : > { %v2750_v55 = vpop.eup %2749 }
 0x286   : > { %v860_v21 = vadd.f32 1e-06, %v828_v54  ;;  %1500 = vmatprep.mubr.bf16.mxu0 %v983_v35  ;;  %1693 = vmatprep.mubr.bf16.mxu1 %v983_v35  ;;  %v937_v30 = vmul.f32 %v2750_v55, %v3477_v49  ;;  %v936_v13 = vmul.f32 %v2750_v55, %v3474_v56 }
 0x287   : > { %v773_v62 = vpop.xlane.xlu1 %772  ;;  %1501 = vmatmul.mubr.bf16.gmra.mxu0 %v982_v6  ;;  %1694 = vmatmul.mubr.bf16.gmra.mxu1 %v982_v6 }
 0x288   : > { %v829_v42 = vmul.f32 0.00390625, %v773_v62  ;;  %v985_v31 = vpack.c.bf16 %v937_v30, %v935_v45  ;;  %2755 = vrsqrt.f32 %v860_v21  ;;  %v984_v2 = vpack.c.bf16 %v936_v13, %v934_v59 }
 0x28a   : > { %v861_v44 = vadd.f32 1e-06, %v829_v42  ;;  %1510 = vmatprep.mubr.bf16.mxu0 %v985_v31  ;;  %1703 = vmatprep.mubr.bf16.mxu1 %v985_v31 }
 0x28c   : > { %2757 = vrsqrt.f32 %v861_v44  ;;  %v776_v26 = vpop.xlane.xlu0 %775 }
 0x28d   : > { %v830_v50 = vmul.f32 0.00390625, %v776_v26  ;;  %v2752_v28 = vpop.eup %2751 }
 0x28e   : > { %v939_v38 = vmul.f32 %v2752_v28, %v3491_v37  ;;  %v938_v41 = vmul.f32 %v2752_v28, %v3488_v47 }
 0x28f   : > { %v862_v60 = vadd.f32 1e-06, %v830_v50  ;;  %v779_v49 = vpop.xlane.xlu1 %778  ;;  %1511 = vmatmul.mubr.bf16.gmra.mxu0 %v984_v2  ;;  %1704 = vmatmul.mubr.bf16.gmra.mxu1 %v984_v2 }
 0x290   : > { %v831_v33 = vmul.f32 0.00390625, %v779_v49 }
 0x291   : > { %v2754_v17 = vpop.eup %2753  ;;  %2759 = vrsqrt.f32 %v862_v60 }
 0x292   : > { %v863_v56 = vadd.f32 1e-06, %v831_v33  ;;  %v941_v10 = vmul.f32 %v2754_v17, %v3501_v46  ;;  %v940_v29 = vmul.f32 %v2754_v17, %v3498_v24 }
 0x294   : > { %2761 = vrsqrt.f32 %v863_v56  ;;  %v782_v22 = vpop.xlane.xlu0 %781  ;;  %v987_v57 = vpack.c.bf16 %v941_v10, %v939_v38  ;;  %v986_v11 = vpack.c.bf16 %v940_v29, %v938_v41  ;;  %v3992_v56 = vld [vmem:[#allocation19_spill] sm:$0xff] }
 0x295   : > { %v832_v8 = vmul.f32 0.00390625, %v782_v22  ;;  %v2756_v63 = vpop.eup %2755 }
 0x296   : > { %1520 = vmatprep.mubr.bf16.mxu0 %v987_v57  ;;  %1713 = vmatprep.mubr.bf16.mxu1 %v987_v57  ;;  %v943_v46 = vmul.f32 %v2756_v63, %v3511_v58  ;;  %v942_v35 = vmul.f32 %v2756_v63, %v3508_v36 }
 0x297   : > { %v864_v32 = vadd.f32 1e-06, %v832_v8  ;;  %v785_v7 = vpop.xlane.xlu1 %784  ;;  %1521 = vmatmul.mubr.bf16.gmra.mxu0 %v986_v11  ;;  %1714 = vmatmul.mubr.bf16.gmra.mxu1 %v986_v11 }
 0x298   : > { %v833_v37 = vmul.f32 0.00390625, %v785_v7 }
 0x299   : > { %v2758_v54 = vpop.eup %2757  ;;  %2763 = vrsqrt.f32 %v864_v32 }
 0x29a   : > { %v865_v47 = vadd.f32 1e-06, %v833_v37  ;;  %v945_v24 = vmul.f32 %v2758_v54, %v3521_v23  ;;  %v944_v6 = vmul.f32 %v2758_v54, %v3518_v39 }
 0x29c   : > { %2765 = vrsqrt.f32 %v865_v47  ;;  %v788_v55 = vpop.xlane.xlu0 %787  ;;  %v989_v21 = vpack.c.bf16 %v945_v24, %v943_v46  ;;  %v988_v45 = vpack.c.bf16 %v944_v6, %v942_v35 }
 0x29d   : > { %v834_v30 = vmul.f32 0.00390625, %v788_v55 }
 0x29e   : > { %v2760_v62 = vpop.eup %2759  ;;  %1530 = vmatprep.mubr.bf16.mxu0 %v989_v21  ;;  %1723 = vmatprep.mubr.bf16.mxu1 %v989_v21 }
 0x29f   : > { %v866_v42 = vadd.f32 1e-06, %v834_v30  ;;  %v791_v31 = vpop.xlane.xlu1 %790  ;;  %1531 = vmatmul.mubr.bf16.gmra.mxu0 %v988_v45  ;;  %1724 = vmatmul.mubr.bf16.gmra.mxu1 %v988_v45  ;;  %v947_v23 = vmul.f32 %v2760_v62, %v3531_v3  ;;  %v946_v36 = vmul.f32 %v2760_v62, %v3528_v27 }
 0x2a0   : > { %v835_v58 = vmul.f32 0.00390625, %v791_v31 }
 0x2a1   : > { %v2762_v13 = vpop.eup %2761  ;;  %2767 = vrsqrt.f32 %v866_v42 }
 0x2a2   : > { %v867_v39 = vadd.f32 1e-06, %v835_v58  ;;  %v949_v44 = vmul.f32 %v2762_v13, %v3541_v15  ;;  %v948_v59 = vmul.f32 %v2762_v13, %v3538_v43 }
 0x2a4   : > { %2769 = vrsqrt.f32 %v867_v39  ;;  %v794_v26 = vpop.xlane.xlu0 %793  ;;  %v991_v50 = vpack.c.bf16 %v949_v44, %v947_v23  ;;  %v990_v2 = vpack.c.bf16 %v948_v59, %v946_v36 }
 0x2a5   : > { %v836_v28 = vmul.f32 0.00390625, %v794_v26 }
 0x2a6   : > { %v2764_v60 = vpop.eup %2763  ;;  %1540 = vmatprep.mubr.bf16.mxu0 %v991_v50  ;;  %1733 = vmatprep.mubr.bf16.mxu1 %v991_v50 }
 0x2a7   : > { %v868_v49 = vadd.f32 1e-06, %v836_v28  ;;  %v797_v33 = vpop.xlane.xlu1 %796  ;;  %1541 = vmatmul.mubr.bf16.gmra.mxu0 %v990_v2  ;;  %1734 = vmatmul.mubr.bf16.gmra.mxu1 %v990_v2  ;;  %v951_v17 = vmul.f32 %v2764_v60, %v3551_v12  ;;  %v950_v15 = vmul.f32 %v2764_v60, %v3548_v9 }
 0x2a8   : > { %v837_v3 = vmul.f32 0.00390625, %v797_v33 }
 0x2a9   : > { %v2766_v27 = vpop.eup %2765  ;;  %2771 = vrsqrt.f32 %v868_v49 }
 0x2aa   : > { %v869_v43 = vadd.f32 1e-06, %v837_v3  ;;  %v953_v38 = vmul.f32 %v2766_v27, %v3561_v14  ;;  %v952_v10 = vmul.f32 %v2766_v27, %v3992_v56 }
 0x2ac   : > { %2773 = vrsqrt.f32 %v869_v43  ;;  %v993_v41 = vpack.c.bf16 %v953_v38, %v951_v17  ;;  %v992_v29 = vpack.c.bf16 %v952_v10, %v950_v15 }
 0x2ae   : > { %1550 = vmatprep.mubr.bf16.mxu0 %v993_v41  ;;  %1743 = vmatprep.mubr.bf16.mxu1 %v993_v41  ;;  %v2768_v22 = vpop.eup %2767 }
 0x2af   : > { %1551 = vmatmul.mubr.bf16.gmra.mxu0 %v992_v29  ;;  %1744 = vmatmul.mubr.bf16.gmra.mxu1 %v992_v29  ;;  %v955_v11 = vmul.f32 %v2768_v22, %v3574_v18  ;;  %v954_v9 = vmul.f32 %v2768_v22, %v3571_v20 }
 0x2b1   : > { %v2770_v57 = vpop.eup %2769 }
 0x2b2   : > { %v957_v12 = vmul.f32 %v2770_v57, %v3585_v16  ;;  %v956_v8 = vmul.f32 %v2770_v57, %v3582_v48  ;;  %v1068_v48 = vlaneseq }
 0x2b4   : > { %v995_v14 = vpack.c.bf16 %v957_v12, %v955_v11  ;;  %v994_v63 = vpack.c.bf16 %v956_v8, %v954_v9  ;;  %v1069_v47 = vshrl.u32 %v1068_v48, 7 }
 0x2b6   : > { %1560 = vmatprep.mubr.bf16.mxu0 %v995_v14  ;;  %1753 = vmatprep.mubr.bf16.mxu1 %v995_v14  ;;  %v2772_v32 = vpop.eup %2771  ;;  %v1070_v24 = vsub.s32 0, %v1069_v47  ;;  %v1078_v35 = vsub.s32 2, %v1069_v47  ;;  %v1074_v6 = vsub.s32 1, %v1069_v47  ;;  %v1082_v55 = vsub.s32 3, %v1069_v47 }
 0x2b7   : > { %1561 = vmatmul.mubr.bf16.gmra.mxu0 %v994_v63  ;;  %1754 = vmatmul.mubr.bf16.gmra.mxu1 %v994_v63  ;;  %v959_v37 = vmul.f32 %v2772_v32, %v3599_v52  ;;  %v958_v18 = vmul.f32 %v2772_v32, %v3596_v53  ;;  %v1066_v52 = vld [vmem:[%s3936_s2] sm:$0xf] }
 0x2b8   : > { %v3706_v53 = vrot.slane %v1066_v52, %v1070_v24  ;;  %v3712_v21 = vrot.slane %v1066_v52, %v1082_v55 }
 0x2b9   : > { %v2774_v7 = vpop.eup %2773 }
 0x2ba   : > { %v961_v54 = vmul.f32 %v2774_v7, %v3609_v0  ;;  %v960_v16 = vmul.f32 %v2774_v7, %v3606_v40  ;;  %v3708_v40 = vrot.slane %v1066_v52, %v1078_v35  ;;  %v3710_v0 = vrot.slane %v1066_v52, %v1074_v6 }
 0x2bc   : > { %v997_v46 = vpack.c.bf16 %v961_v54, %v959_v37  ;;  %v996_v20 = vpack.c.bf16 %v960_v16, %v958_v18 }
 0x2be   : > { %1570 = vmatprep.mubr.bf16.mxu0 %v997_v46  ;;  %1763 = vmatprep.mubr.bf16.mxu1 %v997_v46 }
 0x2bf   : > { %1571 = vmatmul.mubr.bf16.gmra.mxu0 %v996_v20  ;;  %1764 = vmatmul.mubr.bf16.gmra.mxu1 %v996_v20 }
 0x2d1   : > { %v1442_v45 = vpop.f32.mrf.mxu0  ;;  %v1635_v30 = vpop.f32.mrf.mxu1 }
 0x2d2   : > { %v1443_v31 = vadd.f32 %v1442_v45, %v3706_v53  ;;  %v1636_v58 = vadd.f32 %v1635_v30, %v3708_v40 }
 0x2d3   : > { %v1444_v62 = vpop.f32.mrf.mxu0  ;;  %v1637_v42 = vpop.f32.mrf.mxu1 }
 0x2d4   : > { %v1445_v13 = vadd.f32 %v1444_v62, %v3710_v0  ;;  %v1638_v23 = vadd.f32 %v1637_v42, %v3712_v21 }
 0x2d5   : > { %v1446_v36 = vpop.f32.mrf.mxu0  ;;  %v1639_v39 = vpop.f32.mrf.mxu1 }
 0x2d6   : > { %v2535_v44 = vpack.c.bf16 %v1445_v13, %v1443_v31  ;;  %v2567_v59 = vpack.c.bf16 %v1638_v23, %v1636_v58  ;;  %v1447_v2 = vadd.f32 %v1446_v36, %v3706_v53  ;;  %v1640_v28 = vadd.f32 %v1639_v39, %v3708_v40 }
 0x2d7   : > { %v1448_v26 = vpop.f32.mrf.mxu0  ;;  %v1641_v50 = vpop.f32.mrf.mxu1 }
 0x2d8   : > { %1986 = vst [vmem:[%s3722_s24] sm:$0xff] %v2535_v44  ;;  %2210 = vst [vmem:[%s3727_s15] sm:$0xff] %v2567_v59  ;;  %v1449_v60 = vadd.f32 %v1448_v26, %v3710_v0  ;;  %v1642_v49 = vadd.f32 %v1641_v50, %v3712_v21 }
 0x2d9   : > { %v1452_v33 = vpop.f32.mrf.mxu0  ;;  %v1645_v3 = vpop.f32.mrf.mxu1 }
 0x2da   : > { %v2536_v27 = vpack.c.bf16 %v1449_v60, %v1447_v2  ;;  %v2568_v17 = vpack.c.bf16 %v1642_v49, %v1640_v28  ;;  %v1453_v38 = vadd.f32 %v1452_v33, %v3706_v53  ;;  %v1646_v56 = vadd.f32 %v1645_v3, %v3708_v40 }
 0x2db   : > { %v1454_v15 = vpop.f32.mrf.mxu0  ;;  %v1647_v43 = vpop.f32.mrf.mxu1 }
 0x2dc   : > { %1987 = vst [vmem:[%s3722_s24 + $0x8] sm:$0xff] %v2536_v27  ;;  %2211 = vst [vmem:[%s3727_s15 + $0x8] sm:$0xff] %v2568_v17  ;;  %v1455_v10 = vadd.f32 %v1454_v15, %v3710_v0  ;;  %v1648_v41 = vadd.f32 %v1647_v43, %v3712_v21 }
 0x2dd   : > { %v1456_v29 = vpop.f32.mrf.mxu0  ;;  %v1649_v22 = vpop.f32.mrf.mxu1 }
 0x2de   : > { %v2537_v57 = vpack.c.bf16 %v1455_v10, %v1453_v38  ;;  %v2569_v11 = vpack.c.bf16 %v1648_v41, %v1646_v56  ;;  %v1457_v8 = vadd.f32 %v1456_v29, %v3706_v53  ;;  %v1650_v14 = vadd.f32 %v1649_v22, %v3708_v40 }
 0x2df   : > { %v1458_v12 = vpop.f32.mrf.mxu0  ;;  %v1651_v9 = vpop.f32.mrf.mxu1 }
 0x2e0   : > { %1988 = vst [vmem:[%s3722_s24 + $0x10] sm:$0xff] %v2537_v57  ;;  %2212 = vst [vmem:[%s3727_s15 + $0x10] sm:$0xff] %v2569_v11  ;;  %v1459_v63 = vadd.f32 %v1458_v12, %v3710_v0  ;;  %v1652_v32 = vadd.f32 %v1651_v9, %v3712_v21 }
 0x2e1   : > { %v1462_v7 = vpop.f32.mrf.mxu0  ;;  %v1655_v37 = vpop.f32.mrf.mxu1 }
 0x2e2   : > { %v2538_v54 = vpack.c.bf16 %v1459_v63, %v1457_v8  ;;  %v2570_v18 = vpack.c.bf16 %v1652_v32, %v1650_v14  ;;  %v1463_v20 = vadd.f32 %v1462_v7, %v3706_v53  ;;  %v1656_v48 = vadd.f32 %v1655_v37, %v3708_v40 }
 0x2e3   : > { %v1464_v16 = vpop.f32.mrf.mxu0  ;;  %v1657_v46 = vpop.f32.mrf.mxu1 }
 0x2e4   : > { %1989 = vst [vmem:[%s3722_s24 + $0x18] sm:$0xff] %v2538_v54  ;;  %2213 = vst [vmem:[%s3727_s15 + $0x18] sm:$0xff] %v2570_v18  ;;  %v1465_v47 = vadd.f32 %v1464_v16, %v3710_v0  ;;  %v1658_v24 = vadd.f32 %v1657_v46, %v3712_v21 }
 0x2e5   : > { %v1466_v35 = vpop.f32.mrf.mxu0  ;;  %v1659_v6 = vpop.f32.mrf.mxu1 }
 0x2e6   : > { %v2539_v55 = vpack.c.bf16 %v1465_v47, %v1463_v20  ;;  %v2571_v52 = vpack.c.bf16 %v1658_v24, %v1656_v48  ;;  %v1467_v62 = vadd.f32 %v1466_v35, %v3706_v53  ;;  %v1660_v42 = vadd.f32 %v1659_v6, %v3708_v40 }
 0x2e7   : > { %v1468_v45 = vpop.f32.mrf.mxu0  ;;  %v1661_v30 = vpop.f32.mrf.mxu1 }
 0x2e8   : > { %1990 = vst [vmem:[%s3722_s24 + $0x20] sm:$0xff] %v2539_v55  ;;  %2214 = vst [vmem:[%s3727_s15 + $0x20] sm:$0xff] %v2571_v52  ;;  %v1469_v31 = vadd.f32 %v1468_v45, %v3710_v0  ;;  %v1662_v58 = vadd.f32 %v1661_v30, %v3712_v21 }
 0x2e9   : > { %v1472_v13 = vpop.f32.mrf.mxu0  ;;  %v1665_v23 = vpop.f32.mrf.mxu1 }
 0x2ea   : > { %v2540_v36 = vpack.c.bf16 %v1469_v31, %v1467_v62  ;;  %v2572_v39 = vpack.c.bf16 %v1662_v58, %v1660_v42  ;;  %v1473_v26 = vadd.f32 %v1472_v13, %v3706_v53  ;;  %v1666_v50 = vadd.f32 %v1665_v23, %v3708_v40 }
 0x2eb   : > { %v1474_v44 = vpop.f32.mrf.mxu0  ;;  %v1667_v59 = vpop.f32.mrf.mxu1 }
 0x2ec   : > { %1991 = vst [vmem:[%s3722_s24 + $0x28] sm:$0xff] %v2540_v36  ;;  %2215 = vst [vmem:[%s3727_s15 + $0x28] sm:$0xff] %v2572_v39  ;;  %v1475_v2 = vadd.f32 %v1474_v44, %v3710_v0  ;;  %v1668_v28 = vadd.f32 %v1667_v59, %v3712_v21 }
 0x2ed   : > { %v1476_v60 = vpop.f32.mrf.mxu0  ;;  %v1669_v49 = vpop.f32.mrf.mxu1 }
 0x2ee   : > { %v2541_v33 = vpack.c.bf16 %v1475_v2, %v1473_v26  ;;  %v2573_v3 = vpack.c.bf16 %v1668_v28, %v1666_v50  ;;  %v1477_v15 = vadd.f32 %v1476_v60, %v3706_v53  ;;  %v1670_v43 = vadd.f32 %v1669_v49, %v3708_v40 }
 0x2ef   : > { %v1478_v27 = vpop.f32.mrf.mxu0  ;;  %v1671_v17 = vpop.f32.mrf.mxu1 }
 0x2f0   : > { %1992 = vst [vmem:[%s3722_s24 + $0x30] sm:$0xff] %v2541_v33  ;;  %2216 = vst [vmem:[%s3727_s15 + $0x30] sm:$0xff] %v2573_v3  ;;  %v1479_v38 = vadd.f32 %v1478_v27, %v3710_v0  ;;  %v1672_v56 = vadd.f32 %v1671_v17, %v3712_v21 }
 0x2f2   : > { %v2542_v10 = vpack.c.bf16 %v1479_v38, %v1477_v15  ;;  %v2574_v41 = vpack.c.bf16 %v1672_v56, %v1670_v43  ;;  %v800_v29 = vpop.xlane.xlu0 %799 }
 0x2f3   : > { %v838_v22 = vmul.f32 0.00390625, %v800_v29 }
 0x2f4   : > { %1993 = vst [vmem:[%s3722_s24 + $0x38] sm:$0xff] %v2542_v10  ;;  %2217 = vst [vmem:[%s3727_s15 + $0x38] sm:$0xff] %v2574_v41 }
 0x2f5   : > { %v870_v57 = vadd.f32 1e-06, %v838_v22  ;;  %v803_v11 = vpop.xlane.xlu1 %802 }
 0x2f6   : > { %v839_v12 = vmul.f32 0.00390625, %v803_v11 }
 0x2f7   : > { %2775 = vrsqrt.f32 %v870_v57 }
 0x2f8   : > { %v871_v9 = vadd.f32 1e-06, %v839_v12 }
 0x2fa   : > { %2777 = vrsqrt.f32 %v871_v9  ;;  %v806_v8 = vpop.xlane.xlu0 %805 }
 0x2fb   : > { %v840_v14 = vmul.f32 0.00390625, %v806_v8 }
 0x2fd   : > { %v872_v63 = vadd.f32 1e-06, %v840_v14  ;;  %v809_v32 = vpop.xlane.xlu1 %808 }
 0x2fe   : > { %v841_v7 = vmul.f32 0.00390625, %v809_v32 }
 0x2ff   : > { %2779 = vrsqrt.f32 %v872_v63 }
 0x300   : > { %v873_v37 = vadd.f32 1e-06, %v841_v7 }
 0x302   : > { %2781 = vrsqrt.f32 %v873_v37 }
 0x304   : > { %v2776_v54 = vpop.eup %2775 }
 0x305   : > { %v963_v16 = vmul.f32 %v2776_v54, %v3627_v5  ;;  %v962_v20 = vmul.f32 %v2776_v54, %v3624_v25 }
 0x307   : > { %v2778_v18 = vpop.eup %2777 }
 0x308   : > { %v965_v46 = vmul.f32 %v2778_v18, %v3637_v19  ;;  %v964_v48 = vmul.f32 %v2778_v18, %v3634_v1 }
 0x30a   : > { %v999_v47 = vpack.c.bf16 %v965_v46, %v963_v16  ;;  %v998_v24 = vpack.c.bf16 %v964_v48, %v962_v20 }
 0x30c   : > { %1580 = vmatprep.mubr.bf16.mxu0 %v999_v47  ;;  %1773 = vmatprep.mubr.bf16.mxu1 %v999_v47  ;;  %v2780_v35 = vpop.eup %2779 }
 0x30d   : > { %1581 = vmatmul.mubr.bf16.gmra.mxu0 %v998_v24  ;;  %1774 = vmatmul.mubr.bf16.gmra.mxu1 %v998_v24  ;;  %v967_v55 = vmul.f32 %v2780_v35, %v3647_v51  ;;  %v966_v5 = vmul.f32 %v2780_v35, %v3644_v34 }
 0x30f   : > { %v2782_v6 = vpop.eup %2781 }
 0x310   : > { %v969_v52 = vmul.f32 %v2782_v6, %v3657_v4  ;;  %v968_v19 = vmul.f32 %v2782_v6, %v3654_v61 }
 0x312   : > { %v1001_v45 = vpack.c.bf16 %v969_v52, %v967_v55  ;;  %v1000_v25 = vpack.c.bf16 %v968_v19, %v966_v5 }
 0x314   : > { %1590 = vmatprep.mubr.bf16.mxu0 %v1001_v45  ;;  %1783 = vmatprep.mubr.bf16.mxu1 %v1001_v45 }
 0x315   : > { %1591 = vmatmul.mubr.bf16.gmra.mxu0 %v1000_v25  ;;  %1784 = vmatmul.mubr.bf16.gmra.mxu1 %v1000_v25 }
 0x337   : > { %v1482_v1 = vpop.f32.mrf.mxu0  ;;  %v1675_v30 = vpop.f32.mrf.mxu1 }
 0x338   : > { %v1483_v51 = vadd.f32 %v1482_v1, %v3706_v53  ;;  %v1676_v4 = vadd.f32 %v1675_v30, %v3708_v40 }
 0x339   : > { %v1484_v62 = vpop.f32.mrf.mxu0  ;;  %v1677_v42 = vpop.f32.mrf.mxu1 }
 0x33a   : > { %v1485_v34 = vadd.f32 %v1484_v62, %v3710_v0  ;;  %v1678_v61 = vadd.f32 %v1677_v42, %v3712_v21 }
 0x33b   : > { %v1486_v31 = vpop.f32.mrf.mxu0  ;;  %v1679_v58 = vpop.f32.mrf.mxu1 }
 0x33c   : > { %v2543_v13 = vpack.c.bf16 %v1485_v34, %v1483_v51  ;;  %v2575_v23 = vpack.c.bf16 %v1678_v61, %v1676_v4  ;;  %v1487_v44 = vadd.f32 %v1486_v31, %v3706_v53  ;;  %v1680_v59 = vadd.f32 %v1679_v58, %v3708_v40 }
 0x33d   : > { %v1488_v36 = vpop.f32.mrf.mxu0  ;;  %v1681_v39 = vpop.f32.mrf.mxu1 }
 0x33e   : > { %1994 = vst [vmem:[%s3722_s24 + $0x40] sm:$0xff] %v2543_v13  ;;  %2218 = vst [vmem:[%s3727_s15 + $0x40] sm:$0xff] %v2575_v23  ;;  %v1489_v26 = vadd.f32 %v1488_v36, %v3710_v0  ;;  %v1682_v50 = vadd.f32 %v1681_v39, %v3712_v21 }
 0x33f   : > { %v1492_v2 = vpop.f32.mrf.mxu0  ;;  %v1685_v28 = vpop.f32.mrf.mxu1 }
 0x340   : > { %v2544_v60 = vpack.c.bf16 %v1489_v26, %v1487_v44  ;;  %v2576_v49 = vpack.c.bf16 %v1682_v50, %v1680_v59  ;;  %v1493_v27 = vadd.f32 %v1492_v2, %v3706_v53  ;;  %v1686_v17 = vadd.f32 %v1685_v28, %v3708_v40 }
 0x341   : > { %v1494_v33 = vpop.f32.mrf.mxu0  ;;  %v1687_v3 = vpop.f32.mrf.mxu1 }
 0x342   : > { %1995 = vst [vmem:[%s3722_s24 + $0x48] sm:$0xff] %v2544_v60  ;;  %2219 = vst [vmem:[%s3727_s15 + $0x48] sm:$0xff] %v2576_v49  ;;  %v1495_v15 = vadd.f32 %v1494_v33, %v3710_v0  ;;  %v1688_v43 = vadd.f32 %v1687_v3, %v3712_v21 }
 0x343   : > { %v1496_v38 = vpop.f32.mrf.mxu0  ;;  %v1689_v56 = vpop.f32.mrf.mxu1 }
 0x344   : > { %v2545_v10 = vpack.c.bf16 %v1495_v15, %v1493_v27  ;;  %v2577_v41 = vpack.c.bf16 %v1688_v43, %v1686_v17  ;;  %v1497_v57 = vadd.f32 %v1496_v38, %v3706_v53  ;;  %v1690_v11 = vadd.f32 %v1689_v56, %v3708_v40 }
 0x345   : > { %v1498_v29 = vpop.f32.mrf.mxu0  ;;  %v1691_v22 = vpop.f32.mrf.mxu1 }
 0x346   : > { %1996 = vst [vmem:[%s3722_s24 + $0x50] sm:$0xff] %v2545_v10  ;;  %2220 = vst [vmem:[%s3727_s15 + $0x50] sm:$0xff] %v2577_v41  ;;  %v1499_v12 = vadd.f32 %v1498_v29, %v3710_v0  ;;  %v1692_v9 = vadd.f32 %v1691_v22, %v3712_v21 }
 0x347   : > { %v1502_v8 = vpop.f32.mrf.mxu0  ;;  %v1695_v14 = vpop.f32.mrf.mxu1 }
 0x348   : > { %v2546_v63 = vpack.c.bf16 %v1499_v12, %v1497_v57  ;;  %v2578_v32 = vpack.c.bf16 %v1692_v9, %v1690_v11  ;;  %v1503_v54 = vadd.f32 %v1502_v8, %v3706_v53  ;;  %v1696_v18 = vadd.f32 %v1695_v14, %v3708_v40 }
 0x349   : > { %v1504_v7 = vpop.f32.mrf.mxu0  ;;  %v1697_v37 = vpop.f32.mrf.mxu1 }
 0x34a   : > { %1997 = vst [vmem:[%s3722_s24 + $0x58] sm:$0xff] %v2546_v63  ;;  %2221 = vst [vmem:[%s3727_s15 + $0x58] sm:$0xff] %v2578_v32  ;;  %v1505_v16 = vadd.f32 %v1504_v7, %v3710_v0  ;;  %v1698_v46 = vadd.f32 %v1697_v37, %v3712_v21 }
 0x34b   : > { %v1506_v20 = vpop.f32.mrf.mxu0  ;;  %v1699_v48 = vpop.f32.mrf.mxu1 }
 0x34c   : > { %v2547_v47 = vpack.c.bf16 %v1505_v16, %v1503_v54  ;;  %v2579_v24 = vpack.c.bf16 %v1698_v46, %v1696_v18  ;;  %v1507_v55 = vadd.f32 %v1506_v20, %v3706_v53  ;;  %v1700_v52 = vadd.f32 %v1699_v48, %v3708_v40 }
 0x34d   : > { %v1508_v35 = vpop.f32.mrf.mxu0  ;;  %v1701_v6 = vpop.f32.mrf.mxu1 }
 0x34e   : > { %1998 = vst [vmem:[%s3722_s24 + $0x60] sm:$0xff] %v2547_v47  ;;  %2222 = vst [vmem:[%s3727_s15 + $0x60] sm:$0xff] %v2579_v24  ;;  %v1509_v5 = vadd.f32 %v1508_v35, %v3710_v0  ;;  %v1702_v19 = vadd.f32 %v1701_v6, %v3712_v21 }
 0x34f   : > { %v1512_v45 = vpop.f32.mrf.mxu0  ;;  %v1705_v25 = vpop.f32.mrf.mxu1 }
 0x350   : > { %v2548_v1 = vpack.c.bf16 %v1509_v5, %v1507_v55  ;;  %v2580_v30 = vpack.c.bf16 %v1702_v19, %v1700_v52  ;;  %v1513_v51 = vadd.f32 %v1512_v45, %v3706_v53  ;;  %v1706_v4 = vadd.f32 %v1705_v25, %v3708_v40 }
 0x351   : > { %v1514_v62 = vpop.f32.mrf.mxu0  ;;  %v1707_v42 = vpop.f32.mrf.mxu1 }
 0x352   : > { %1999 = vst [vmem:[%s3722_s24 + $0x68] sm:$0xff] %v2548_v1  ;;  %2223 = vst [vmem:[%s3727_s15 + $0x68] sm:$0xff] %v2580_v30  ;;  %v1515_v34 = vadd.f32 %v1514_v62, %v3710_v0  ;;  %v1708_v61 = vadd.f32 %v1707_v42, %v3712_v21 }
 0x353   : > { %v1516_v31 = vpop.f32.mrf.mxu0  ;;  %v1709_v58 = vpop.f32.mrf.mxu1 }
 0x354   : > { %v2549_v13 = vpack.c.bf16 %v1515_v34, %v1513_v51  ;;  %v2581_v23 = vpack.c.bf16 %v1708_v61, %v1706_v4  ;;  %v1517_v44 = vadd.f32 %v1516_v31, %v3706_v53  ;;  %v1710_v59 = vadd.f32 %v1709_v58, %v3708_v40 }
 0x355   : > { %v1518_v36 = vpop.f32.mrf.mxu0  ;;  %v1711_v39 = vpop.f32.mrf.mxu1 }
 0x356   : > { %2000 = vst [vmem:[%s3722_s24 + $0x70] sm:$0xff] %v2549_v13  ;;  %2224 = vst [vmem:[%s3727_s15 + $0x70] sm:$0xff] %v2581_v23  ;;  %v1519_v26 = vadd.f32 %v1518_v36, %v3710_v0  ;;  %v1712_v50 = vadd.f32 %v1711_v39, %v3712_v21 }
 0x357   : > { %v1522_v2 = vpop.f32.mrf.mxu0  ;;  %v1715_v28 = vpop.f32.mrf.mxu1 }
 0x358   : > { %v2550_v60 = vpack.c.bf16 %v1519_v26, %v1517_v44  ;;  %v2582_v49 = vpack.c.bf16 %v1712_v50, %v1710_v59  ;;  %v1523_v27 = vadd.f32 %v1522_v2, %v3706_v53  ;;  %v1716_v17 = vadd.f32 %v1715_v28, %v3708_v40 }
 0x359   : > { %v1524_v33 = vpop.f32.mrf.mxu0  ;;  %v1717_v3 = vpop.f32.mrf.mxu1 }
 0x35a   : > { %2001 = vst [vmem:[%s3722_s24 + $0x78] sm:$0xff] %v2550_v60  ;;  %2225 = vst [vmem:[%s3727_s15 + $0x78] sm:$0xff] %v2582_v49  ;;  %v1525_v15 = vadd.f32 %v1524_v33, %v3710_v0  ;;  %v1718_v43 = vadd.f32 %v1717_v3, %v3712_v21 }
 0x35b   : > { %v1526_v38 = vpop.f32.mrf.mxu0  ;;  %v1719_v56 = vpop.f32.mrf.mxu1 }
 0x35c   : > { %v2551_v10 = vpack.c.bf16 %v1525_v15, %v1523_v27  ;;  %v2583_v41 = vpack.c.bf16 %v1718_v43, %v1716_v17  ;;  %v1527_v57 = vadd.f32 %v1526_v38, %v3706_v53  ;;  %v1720_v11 = vadd.f32 %v1719_v56, %v3708_v40 }
 0x35d   : > { %v1528_v29 = vpop.f32.mrf.mxu0  ;;  %v1721_v22 = vpop.f32.mrf.mxu1 }
 0x35e   : > { %2002 = vst [vmem:[%s3722_s24 + $0x80] sm:$0xff] %v2551_v10  ;;  %2226 = vst [vmem:[%s3727_s15 + $0x80] sm:$0xff] %v2583_v41  ;;  %v1529_v12 = vadd.f32 %v1528_v29, %v3710_v0  ;;  %v1722_v9 = vadd.f32 %v1721_v22, %v3712_v21 }
 0x35f   : > { %v1532_v8 = vpop.f32.mrf.mxu0  ;;  %v1725_v14 = vpop.f32.mrf.mxu1 }
 0x360   : > { %v2552_v63 = vpack.c.bf16 %v1529_v12, %v1527_v57  ;;  %v2584_v32 = vpack.c.bf16 %v1722_v9, %v1720_v11  ;;  %v1533_v54 = vadd.f32 %v1532_v8, %v3706_v53  ;;  %v1726_v18 = vadd.f32 %v1725_v14, %v3708_v40 }
 0x361   : > { %v1534_v7 = vpop.f32.mrf.mxu0  ;;  %v1727_v37 = vpop.f32.mrf.mxu1 }
 0x362   : > { %2003 = vst [vmem:[%s3722_s24 + $0x88] sm:$0xff] %v2552_v63  ;;  %2227 = vst [vmem:[%s3727_s15 + $0x88] sm:$0xff] %v2584_v32  ;;  %v1535_v16 = vadd.f32 %v1534_v7, %v3710_v0  ;;  %v1728_v46 = vadd.f32 %v1727_v37, %v3712_v21 }
 0x363   : > { %v1536_v20 = vpop.f32.mrf.mxu0  ;;  %v1729_v48 = vpop.f32.mrf.mxu1 }
 0x364   : > { %v2553_v47 = vpack.c.bf16 %v1535_v16, %v1533_v54  ;;  %v2585_v24 = vpack.c.bf16 %v1728_v46, %v1726_v18  ;;  %v1537_v55 = vadd.f32 %v1536_v20, %v3706_v53  ;;  %v1730_v52 = vadd.f32 %v1729_v48, %v3708_v40 }
 0x365   : > { %v1538_v35 = vpop.f32.mrf.mxu0  ;;  %v1731_v6 = vpop.f32.mrf.mxu1 }
 0x366   : > { %2004 = vst [vmem:[%s3722_s24 + $0x90] sm:$0xff] %v2553_v47  ;;  %2228 = vst [vmem:[%s3727_s15 + $0x90] sm:$0xff] %v2585_v24  ;;  %v1539_v5 = vadd.f32 %v1538_v35, %v3710_v0  ;;  %v1732_v19 = vadd.f32 %v1731_v6, %v3712_v21 }
 0x367   : > { %v1542_v45 = vpop.f32.mrf.mxu0  ;;  %v1735_v25 = vpop.f32.mrf.mxu1 }
 0x368   : > { %v2554_v1 = vpack.c.bf16 %v1539_v5, %v1537_v55  ;;  %v2586_v30 = vpack.c.bf16 %v1732_v19, %v1730_v52  ;;  %v1543_v51 = vadd.f32 %v1542_v45, %v3706_v53  ;;  %v1736_v4 = vadd.f32 %v1735_v25, %v3708_v40 }
 0x369   : > { %v1544_v62 = vpop.f32.mrf.mxu0  ;;  %v1737_v42 = vpop.f32.mrf.mxu1 }
 0x36a   : > { %2005 = vst [vmem:[%s3722_s24 + $0x98] sm:$0xff] %v2554_v1  ;;  %2229 = vst [vmem:[%s3727_s15 + $0x98] sm:$0xff] %v2586_v30  ;;  %v1545_v34 = vadd.f32 %v1544_v62, %v3710_v0  ;;  %v1738_v61 = vadd.f32 %v1737_v42, %v3712_v21 }
 0x36b   : > { %v1546_v31 = vpop.f32.mrf.mxu0  ;;  %v1739_v58 = vpop.f32.mrf.mxu1 }
 0x36c   : > { %v2555_v13 = vpack.c.bf16 %v1545_v34, %v1543_v51  ;;  %v2587_v23 = vpack.c.bf16 %v1738_v61, %v1736_v4  ;;  %v1547_v44 = vadd.f32 %v1546_v31, %v3706_v53  ;;  %v1740_v59 = vadd.f32 %v1739_v58, %v3708_v40 }
 0x36d   : > { %v1548_v36 = vpop.f32.mrf.mxu0  ;;  %v1741_v39 = vpop.f32.mrf.mxu1 }
 0x36e   : > { %2006 = vst [vmem:[%s3722_s24 + $0xa0] sm:$0xff] %v2555_v13  ;;  %2230 = vst [vmem:[%s3727_s15 + $0xa0] sm:$0xff] %v2587_v23  ;;  %v1549_v26 = vadd.f32 %v1548_v36, %v3710_v0  ;;  %v1742_v50 = vadd.f32 %v1741_v39, %v3712_v21 }
 0x36f   : > { %v1552_v2 = vpop.f32.mrf.mxu0  ;;  %v1745_v28 = vpop.f32.mrf.mxu1 }
 0x370   : > { %v2556_v60 = vpack.c.bf16 %v1549_v26, %v1547_v44  ;;  %v2588_v49 = vpack.c.bf16 %v1742_v50, %v1740_v59  ;;  %v1553_v27 = vadd.f32 %v1552_v2, %v3706_v53  ;;  %v1746_v17 = vadd.f32 %v1745_v28, %v3708_v40 }
 0x371   : > { %v1554_v33 = vpop.f32.mrf.mxu0  ;;  %v1747_v3 = vpop.f32.mrf.mxu1 }
 0x372   : > { %2007 = vst [vmem:[%s3722_s24 + $0xa8] sm:$0xff] %v2556_v60  ;;  %2231 = vst [vmem:[%s3727_s15 + $0xa8] sm:$0xff] %v2588_v49  ;;  %v1555_v15 = vadd.f32 %v1554_v33, %v3710_v0  ;;  %v1748_v43 = vadd.f32 %v1747_v3, %v3712_v21 }
 0x373   : > { %v1556_v38 = vpop.f32.mrf.mxu0  ;;  %v1749_v56 = vpop.f32.mrf.mxu1 }
 0x374   : > { %v2557_v10 = vpack.c.bf16 %v1555_v15, %v1553_v27  ;;  %v2589_v41 = vpack.c.bf16 %v1748_v43, %v1746_v17  ;;  %v1557_v57 = vadd.f32 %v1556_v38, %v3706_v53  ;;  %v1750_v11 = vadd.f32 %v1749_v56, %v3708_v40 }
 0x375   : > { %v1558_v29 = vpop.f32.mrf.mxu0  ;;  %v1751_v22 = vpop.f32.mrf.mxu1 }
 0x376   : > { %2008 = vst [vmem:[%s3722_s24 + $0xb0] sm:$0xff] %v2557_v10  ;;  %2232 = vst [vmem:[%s3727_s15 + $0xb0] sm:$0xff] %v2589_v41  ;;  %v1559_v12 = vadd.f32 %v1558_v29, %v3710_v0  ;;  %v1752_v9 = vadd.f32 %v1751_v22, %v3712_v21 }
 0x377   : > { %v1562_v8 = vpop.f32.mrf.mxu0  ;;  %v1755_v14 = vpop.f32.mrf.mxu1 }
 0x378   : > { %v2558_v63 = vpack.c.bf16 %v1559_v12, %v1557_v57  ;;  %v2590_v32 = vpack.c.bf16 %v1752_v9, %v1750_v11  ;;  %v1563_v54 = vadd.f32 %v1562_v8, %v3706_v53  ;;  %v1756_v18 = vadd.f32 %v1755_v14, %v3708_v40 }
 0x379   : > { %v1564_v7 = vpop.f32.mrf.mxu0  ;;  %v1757_v37 = vpop.f32.mrf.mxu1 }
 0x37a   : > { %2009 = vst [vmem:[%s3722_s24 + $0xb8] sm:$0xff] %v2558_v63  ;;  %2233 = vst [vmem:[%s3727_s15 + $0xb8] sm:$0xff] %v2590_v32  ;;  %v1565_v16 = vadd.f32 %v1564_v7, %v3710_v0  ;;  %v1758_v46 = vadd.f32 %v1757_v37, %v3712_v21 }
 0x37b   : > { %v1566_v20 = vpop.f32.mrf.mxu0  ;;  %v1759_v48 = vpop.f32.mrf.mxu1 }
 0x37c   : > { %v2559_v47 = vpack.c.bf16 %v1565_v16, %v1563_v54  ;;  %v2591_v24 = vpack.c.bf16 %v1758_v46, %v1756_v18  ;;  %v1567_v55 = vadd.f32 %v1566_v20, %v3706_v53  ;;  %v1760_v52 = vadd.f32 %v1759_v48, %v3708_v40 }
 0x37d   : > { %v1568_v35 = vpop.f32.mrf.mxu0  ;;  %v1761_v6 = vpop.f32.mrf.mxu1 }
 0x37e   : > { %2010 = vst [vmem:[%s3722_s24 + $0xc0] sm:$0xff] %v2559_v47  ;;  %2234 = vst [vmem:[%s3727_s15 + $0xc0] sm:$0xff] %v2591_v24  ;;  %v1569_v5 = vadd.f32 %v1568_v35, %v3710_v0  ;;  %v1762_v19 = vadd.f32 %v1761_v6, %v3712_v21 }
 0x37f   : > { %v1572_v45 = vpop.f32.mrf.mxu0  ;;  %v1765_v25 = vpop.f32.mrf.mxu1 }
 0x380   : > { %v2560_v1 = vpack.c.bf16 %v1569_v5, %v1567_v55  ;;  %v2592_v30 = vpack.c.bf16 %v1762_v19, %v1760_v52  ;;  %v1573_v51 = vadd.f32 %v1572_v45, %v3706_v53  ;;  %v1766_v4 = vadd.f32 %v1765_v25, %v3708_v40 }
 0x381   : > { %v1574_v62 = vpop.f32.mrf.mxu0  ;;  %v1767_v42 = vpop.f32.mrf.mxu1 }
 0x382   : > { %2011 = vst [vmem:[%s3722_s24 + $0xc8] sm:$0xff] %v2560_v1  ;;  %2235 = vst [vmem:[%s3727_s15 + $0xc8] sm:$0xff] %v2592_v30  ;;  %v1575_v34 = vadd.f32 %v1574_v62, %v3710_v0  ;;  %v1768_v61 = vadd.f32 %v1767_v42, %v3712_v21 }
 0x383   : > { %v1576_v31 = vpop.f32.mrf.mxu0  ;;  %v1769_v58 = vpop.f32.mrf.mxu1 }
 0x384   : > { %v2561_v13 = vpack.c.bf16 %v1575_v34, %v1573_v51  ;;  %v2593_v23 = vpack.c.bf16 %v1768_v61, %v1766_v4  ;;  %v1577_v44 = vadd.f32 %v1576_v31, %v3706_v53  ;;  %v1770_v59 = vadd.f32 %v1769_v58, %v3708_v40 }
 0x385   : > { %v1578_v36 = vpop.f32.mrf.mxu0  ;;  %v1771_v39 = vpop.f32.mrf.mxu1 }
 0x386   : > { %2012 = vst [vmem:[%s3722_s24 + $0xd0] sm:$0xff] %v2561_v13  ;;  %2236 = vst [vmem:[%s3727_s15 + $0xd0] sm:$0xff] %v2593_v23  ;;  %v1579_v26 = vadd.f32 %v1578_v36, %v3710_v0  ;;  %v1772_v50 = vadd.f32 %v1771_v39, %v3712_v21 }
 0x388   : > { %v2562_v2 = vpack.c.bf16 %v1579_v26, %v1577_v44  ;;  %v2594_v28 = vpack.c.bf16 %v1772_v50, %v1770_v59 }
 0x38a   : > { %2013 = vst [vmem:[%s3722_s24 + $0xd8] sm:$0xff] %v2562_v2  ;;  %2237 = vst [vmem:[%s3727_s15 + $0xd8] sm:$0xff] %v2594_v28 }
 0x3cd   : > { %v1582_v60 = vpop.f32.mrf.mxu0  ;;  %v1775_v49 = vpop.f32.mrf.mxu1 }
 0x3ce   : > { %v1583_v27 = vadd.f32 %v1582_v60, %v3706_v53  ;;  %v1776_v17 = vadd.f32 %v1775_v49, %v3708_v40 }
 0x3cf   : > { %v1584_v33 = vpop.f32.mrf.mxu0  ;;  %v1777_v3 = vpop.f32.mrf.mxu1 }
 0x3d0   : > { %v1585_v15 = vadd.f32 %v1584_v33, %v3710_v0  ;;  %v1778_v43 = vadd.f32 %v1777_v3, %v3712_v21 }
 0x3d1   : > { %v1586_v38 = vpop.f32.mrf.mxu0  ;;  %v1779_v56 = vpop.f32.mrf.mxu1 }
 0x3d2   : > { %v2563_v10 = vpack.c.bf16 %v1585_v15, %v1583_v27  ;;  %v2595_v41 = vpack.c.bf16 %v1778_v43, %v1776_v17  ;;  %v1587_v57 = vadd.f32 %v1586_v38, %v3706_v53  ;;  %v1780_v11 = vadd.f32 %v1779_v56, %v3708_v40 }
 0x3d3   : > { %v1588_v29 = vpop.f32.mrf.mxu0  ;;  %v1781_v22 = vpop.f32.mrf.mxu1 }
 0x3d4   : > { %2014 = vst [vmem:[%s3722_s24 + $0xe0] sm:$0xff] %v2563_v10  ;;  %2238 = vst [vmem:[%s3727_s15 + $0xe0] sm:$0xff] %v2595_v41  ;;  %v1589_v12 = vadd.f32 %v1588_v29, %v3710_v0  ;;  %v1782_v9 = vadd.f32 %v1781_v22, %v3712_v21 }
 0x3d5   : > { %v1592_v8 = vpop.f32.mrf.mxu0  ;;  %v1785_v14 = vpop.f32.mrf.mxu1 }
 0x3d6   : > { %v2564_v63 = vpack.c.bf16 %v1589_v12, %v1587_v57  ;;  %v2596_v32 = vpack.c.bf16 %v1782_v9, %v1780_v11  ;;  %v1593_v54 = vadd.f32 %v1592_v8, %v3706_v53  ;;  %v1786_v18 = vadd.f32 %v1785_v14, %v3708_v40 }
 0x3d7   : > { %v1594_v7 = vpop.f32.mrf.mxu0  ;;  %v1787_v37 = vpop.f32.mrf.mxu1 }
 0x3d8   : > { %2015 = vst [vmem:[%s3722_s24 + $0xe8] sm:$0xff] %v2564_v63  ;;  %2239 = vst [vmem:[%s3727_s15 + $0xe8] sm:$0xff] %v2596_v32  ;;  %v1595_v16 = vadd.f32 %v1594_v7, %v3710_v0  ;;  %v1788_v46 = vadd.f32 %v1787_v37, %v3712_v21 }
 0x3d9   : > { %v1596_v20 = vpop.f32.mrf.mxu0  ;;  %v1789_v48 = vpop.f32.mrf.mxu1 }
 0x3da   : > { %v2565_v47 = vpack.c.bf16 %v1595_v16, %v1593_v54  ;;  %v2597_v24 = vpack.c.bf16 %v1788_v46, %v1786_v18  ;;  %v1597_v55 = vadd.f32 %v1596_v20, %v3706_v53  ;;  %v1790_v52 = vadd.f32 %v1789_v48, %v3708_v40 }
 0x3db   : > { %v1598_v35 = vpop.f32.mrf.mxu0  ;;  %v1791_v6 = vpop.f32.mrf.mxu1 }
 0x3dc   : > { %2016 = vst [vmem:[%s3722_s24 + $0xf0] sm:$0xff] %v2565_v47  ;;  %2240 = vst [vmem:[%s3727_s15 + $0xf0] sm:$0xff] %v2597_v24  ;;  %v1599_v5 = vadd.f32 %v1598_v35, %v3710_v0  ;;  %v1792_v19 = vadd.f32 %v1791_v6, %v3712_v21 }
 0x3de   : > { %v2566_v45 = vpack.c.bf16 %v1599_v5, %v1597_v55  ;;  %v2598_v25 = vpack.c.bf16 %v1792_v19, %v1790_v52 }
 0x3e0   : > { %2017 = vst [vmem:[%s3722_s24 + $0xf8] sm:$0xff] %v2566_v45  ;;  %2241 = vst [vmem:[%s3727_s15 + $0xf8] sm:$0xff] %v2598_v25 }
 0x3e1 PF: > { %s15_s17 = sadd.s32 1, %s2805_s17   ;;  %s3993_s15 = smov %s2801_s16 }
 0x3e2   : > { %p12_p5 = scmp.ge.s32.totalorder %s15_s17, 4   ;;  %s3994_s16 = smov %s3996_s18 }
 0x3e4   :  { %14 = sbr.rel (!%p12_p5) target bundleno = 2 (0x2), region = 74 }

// kernel: attn_block.5
= control target key start
LH: loop header
LB: loop body
LE: loop exit
PB: predicated region body
PF: predicated region fallthrough
CT: control target
= control target key end

     0   :  { %s8064_s30 = smov 0   ;;  %s8066_s10 = smov 0   ;;  %s12404_s0 = inlined_call_operand.vmem [shape: f32[2,256,256], index: 0, kind: input, shape index: {}]   ;;  %s12405_s1 = inlined_call_operand.vmem [shape: bf16[2,256,256], index: 1, kind: input, shape index: {}]   ;;  %s12406_s2 = inlined_call_operand.vmem [shape: bf16[2,256,256], index: 2, kind: input, shape index: {}]   ;;  %s12407_s3 = inlined_call_operand.vmem [shape: bf16[2,128,256], index: 3, kind: input, shape index: {}]   ;;  %s12408_s4 = inlined_call_operand.vmem [shape: bf16[2,128,256], index: 4, kind: input, shape index: {}]   ;;  %s12409_s5 = inlined_call_operand.vmem [shape: bf16[256,256], index: 5, kind: input, shape index: {}]   ;;  %s12410_s6 = inlined_call_operand.vmem [shape: f32[1,256], index: 6, kind: input, shape index: {}]   ;;  %s12411_s7 = inlined_call_operand.vmem [shape: bf16[256,256], index: 7, kind: input, shape index: {}]   ;;  %s12412_s8 = inlined_call_operand.vmem [shape: f32[1,256], index: 8, kind: input, shape index: {}]   ;;  %s12413_s9 = inlined_call_operand.vmem [shape: f32[2,256,256], index: 9, kind: output, shape index: {}]  }
   0x1   :  { %s8068_s11 = smov 0  }
   0x2 LB: > { %s31_s12 = sadd.s32 1, %s8007_s10  ;;  %p6263_p0 = scmp.ge.s32.totalorder %s8011_s11, 1  ;;  %s8011_s11 = sphi %s8068_s11, %s19_s11   ;;  %s8007_s10 = sphi %s8066_s10, %s13579_s10   ;;  %s8003_s30 = sphi %s8064_s30, %s13578_s30  }
   0x3   : > { %p33_p1 = scmp.ge.s32.totalorder %s31_s12, 2  ;;  %p348_p2 = scmp.lt.s32.totalorder %s8011_s11, 3 }
   0x5   : > { %s13581_s12 = smov (%p33_p1, %s31_s12), 0  ;;  %p349_p3 = pnand %p6263_p0, %p348_p2 }
   0x7   : > { %352 = sbr.rel (%p349_p3) target bundleno = 2212 (0x8a4), region = 56 }
   0xc   : > { %p413_p4 = scmp.lt.s32.totalorder %s8003_s30, 1 }
   0xe   : > { %s13583_s30 = smov (!%p413_p4, %s8003_s30), 1 }
   0xf   : > { %s6438_s13 = sshll.u32 %s13583_s30, 9  ;;  %s6441_s21 = sshll.u32 %s13583_s30, 7 }
  0x10   : > { %s8090_s16 = scalar_lea.vmem %s12404_s0, %s6438_s13  ;;  %s8782_s24 = scalar_lea.vmem %s12407_s3, %s6441_s21 }
  0x11   : > { %v485_v0 = vld [vmem:[%s8090_s16 + $0x100] sm:$0xff]  ;;  %v487_v2 = vld [vmem:[%s8090_s16 + $0x110] sm:$0xff]  ;;  %v486_v32 = vld [vmem:[%s8090_s16 + $0x108] sm:$0xff]  ;;  %s6439_s25 = sshll.u32 %s13583_s30, 8  ;;  %s9309_s18 = scalar_lea.vmem %s12408_s4, %s6441_s21 }
  0x12   : > { %v453_v1 = vld [vmem:[%s8090_s16] sm:$0xff]  ;;  %581 = vxpose.xlu1.b32.start [1/16] %v485_v0, 128  ;;  %v455_v3 = vld [vmem:[%s8090_s16 + $0x10] sm:$0xff]  ;;  %v454_v33 = vld [vmem:[%s8090_s16 + $0x8] sm:$0xff]  ;;  %s8850_s28 = scalar_lea.vmem %s12405_s1, %s6439_s25  ;;  %s9540_s21 = scalar_lea.vmem %s12406_s2, %s6439_s25 }
  0x13   : > { %517 = vxpose.xlu0.b32.start [1/16] %v453_v1, 128  ;;  %v489_v4 = vld [vmem:[%s8090_s16 + $0x120] sm:$0xff]  ;;  %v491_v6 = vld [vmem:[%s8090_s16 + $0x130] sm:$0xff]  ;;  %v488_v34 = vld [vmem:[%s8090_s16 + $0x118] sm:$0xff]  ;;  %s12265_s14 = scalar_lea.vmem %s12413_s9, %s6438_s13 }
  0x14   : > { %v457_v5 = vld [vmem:[%s8090_s16 + $0x20] sm:$0xff]  ;;  %v459_v7 = vld [vmem:[%s8090_s16 + $0x30] sm:$0xff]  ;;  %v456_v35 = vld [vmem:[%s8090_s16 + $0x18] sm:$0xff] }
  0x15   : > { %v493_v8 = vld [vmem:[%s8090_s16 + $0x140] sm:$0xff]  ;;  %v495_v10 = vld [vmem:[%s8090_s16 + $0x150] sm:$0xff]  ;;  %v490_v36 = vld [vmem:[%s8090_s16 + $0x128] sm:$0xff] }
  0x16   : > { %582 = vxpose.xlu1.b32.cont [2/16] %v487_v2, 128  ;;  %v461_v9 = vld [vmem:[%s8090_s16 + $0x40] sm:$0xff]  ;;  %v463_v11 = vld [vmem:[%s8090_s16 + $0x50] sm:$0xff]  ;;  %v458_v37 = vld [vmem:[%s8090_s16 + $0x28] sm:$0xff] }
  0x17   : > { %518 = vxpose.xlu0.b32.cont [2/16] %v455_v3, 128  ;;  %v497_v12 = vld [vmem:[%s8090_s16 + $0x160] sm:$0xff]  ;;  %v499_v14 = vld [vmem:[%s8090_s16 + $0x170] sm:$0xff]  ;;  %v492_v38 = vld [vmem:[%s8090_s16 + $0x138] sm:$0xff] }
  0x18   : > { %v465_v13 = vld [vmem:[%s8090_s16 + $0x60] sm:$0xff]  ;;  %v467_v15 = vld [vmem:[%s8090_s16 + $0x70] sm:$0xff]  ;;  %v460_v39 = vld [vmem:[%s8090_s16 + $0x38] sm:$0xff] }
  0x19   : > { %v501_v16 = vld [vmem:[%s8090_s16 + $0x180] sm:$0xff]  ;;  %v503_v18 = vld [vmem:[%s8090_s16 + $0x190] sm:$0xff]  ;;  %v494_v40 = vld [vmem:[%s8090_s16 + $0x148] sm:$0xff] }
  0x1a   : > { %583 = vxpose.xlu1.b32.cont [3/16] %v489_v4, 128  ;;  %v469_v17 = vld [vmem:[%s8090_s16 + $0x80] sm:$0xff]  ;;  %v471_v19 = vld [vmem:[%s8090_s16 + $0x90] sm:$0xff]  ;;  %v462_v41 = vld [vmem:[%s8090_s16 + $0x48] sm:$0xff] }
  0x1b   : > { %519 = vxpose.xlu0.b32.cont [3/16] %v457_v5, 128  ;;  %v505_v20 = vld [vmem:[%s8090_s16 + $0x1a0] sm:$0xff]  ;;  %v507_v22 = vld [vmem:[%s8090_s16 + $0x1b0] sm:$0xff]  ;;  %v496_v42 = vld [vmem:[%s8090_s16 + $0x158] sm:$0xff] }
  0x1c   : > { %v473_v21 = vld [vmem:[%s8090_s16 + $0xa0] sm:$0xff]  ;;  %v475_v23 = vld [vmem:[%s8090_s16 + $0xb0] sm:$0xff]  ;;  %v464_v43 = vld [vmem:[%s8090_s16 + $0x58] sm:$0xff] }
  0x1d   : > { %v509_v24 = vld [vmem:[%s8090_s16 + $0x1c0] sm:$0xff]  ;;  %v511_v26 = vld [vmem:[%s8090_s16 + $0x1d0] sm:$0xff]  ;;  %v498_v44 = vld [vmem:[%s8090_s16 + $0x168] sm:$0xff] }
  0x1e   : > { %584 = vxpose.xlu1.b32.cont [4/16] %v491_v6, 128  ;;  %v477_v25 = vld [vmem:[%s8090_s16 + $0xc0] sm:$0xff]  ;;  %v479_v27 = vld [vmem:[%s8090_s16 + $0xd0] sm:$0xff]  ;;  %v466_v45 = vld [vmem:[%s8090_s16 + $0x68] sm:$0xff] }
  0x1f   : > { %520 = vxpose.xlu0.b32.cont [4/16] %v459_v7, 128  ;;  %v513_v28 = vld [vmem:[%s8090_s16 + $0x1e0] sm:$0xff]  ;;  %v515_v30 = vld [vmem:[%s8090_s16 + $0x1f0] sm:$0xff]  ;;  %v500_v46 = vld [vmem:[%s8090_s16 + $0x178] sm:$0xff] }
  0x20   : > { %v481_v29 = vld [vmem:[%s8090_s16 + $0xe0] sm:$0xff]  ;;  %v483_v31 = vld [vmem:[%s8090_s16 + $0xf0] sm:$0xff]  ;;  %v468_v47 = vld [vmem:[%s8090_s16 + $0x78] sm:$0xff] }
  0x21   : > { %v502_v48 = vld [vmem:[%s8090_s16 + $0x188] sm:$0xff]  ;;  %v504_v50 = vld [vmem:[%s8090_s16 + $0x198] sm:$0xff] }
  0x22   : > { %585 = vxpose.xlu1.b32.cont [5/16] %v493_v8, 128  ;;  %v470_v49 = vld [vmem:[%s8090_s16 + $0x88] sm:$0xff]  ;;  %v472_v51 = vld [vmem:[%s8090_s16 + $0x98] sm:$0xff] }
  0x23   : > { %521 = vxpose.xlu0.b32.cont [5/16] %v461_v9, 128  ;;  %v506_v52 = vld [vmem:[%s8090_s16 + $0x1a8] sm:$0xff]  ;;  %v508_v54 = vld [vmem:[%s8090_s16 + $0x1b8] sm:$0xff] }
  0x24   : > { %v474_v53 = vld [vmem:[%s8090_s16 + $0xa8] sm:$0xff]  ;;  %v476_v55 = vld [vmem:[%s8090_s16 + $0xb8] sm:$0xff] }
  0x25   : > { %v510_v56 = vld [vmem:[%s8090_s16 + $0x1c8] sm:$0xff]  ;;  %v512_v58 = vld [vmem:[%s8090_s16 + $0x1d8] sm:$0xff] }
  0x26   : > { %586 = vxpose.xlu1.b32.cont [6/16] %v495_v10, 128  ;;  %v478_v57 = vld [vmem:[%s8090_s16 + $0xc8] sm:$0xff]  ;;  %v480_v59 = vld [vmem:[%s8090_s16 + $0xd8] sm:$0xff] }
  0x27   : > { %522 = vxpose.xlu0.b32.cont [6/16] %v463_v11, 128  ;;  %v514_v60 = vld [vmem:[%s8090_s16 + $0x1e8] sm:$0xff]  ;;  %v516_v62 = vld [vmem:[%s8090_s16 + $0x1f8] sm:$0xff] }
  0x28   : > { %v482_v61 = vld [vmem:[%s8090_s16 + $0xe8] sm:$0xff]  ;;  %v484_v63 = vld [vmem:[%s8090_s16 + $0xf8] sm:$0xff] }
  0x2a   : > { %587 = vxpose.xlu1.b32.cont [7/16] %v497_v12, 128 }
  0x2b   : > { %523 = vxpose.xlu0.b32.cont [7/16] %v465_v13, 128 }
  0x2e   : > { %588 = vxpose.xlu1.b32.cont [8/16] %v499_v14, 128 }
  0x2f   : > { %524 = vxpose.xlu0.b32.cont [8/16] %v467_v15, 128 }
  0x32   : > { %589 = vxpose.xlu1.b32.cont [9/16] %v501_v16, 128 }
  0x33   : > { %525 = vxpose.xlu0.b32.cont [9/16] %v469_v17, 128 }
  0x36   : > { %590 = vxpose.xlu1.b32.cont [10/16] %v503_v18, 128 }
  0x37   : > { %526 = vxpose.xlu0.b32.cont [10/16] %v471_v19, 128 }
  0x3a   : > { %591 = vxpose.xlu1.b32.cont [11/16] %v505_v20, 128 }
  0x3b   : > { %527 = vxpose.xlu0.b32.cont [11/16] %v473_v21, 128 }
  0x3e   : > { %592 = vxpose.xlu1.b32.cont [12/16] %v507_v22, 128 }
  0x3f   : > { %528 = vxpose.xlu0.b32.cont [12/16] %v475_v23, 128 }
  0x42   : > { %593 = vxpose.xlu1.b32.cont [13/16] %v509_v24, 128 }
  0x43   : > { %529 = vxpose.xlu0.b32.cont [13/16] %v477_v25, 128 }
  0x46   : > { %594 = vxpose.xlu1.b32.cont [14/16] %v511_v26, 128 }
  0x47   : > { %530 = vxpose.xlu0.b32.cont [14/16] %v479_v27, 128 }
  0x4a   : > { %595 = vxpose.xlu1.b32.cont [15/16] %v513_v28, 128 }
  0x4b   : > { %531 = vxpose.xlu0.b32.cont [15/16] %v481_v29, 128 }
  0x4e   : > { %596 = vxpose.xlu1.b32.end [16/16] %v515_v30, 128 }
  0x4f   : > { %532 = vxpose.xlu0.b32.end [16/16] %v483_v31, 128 }
  0x52   : > { %613 = vxpose.xlu1.b32.start [1/16] %v486_v32, 128 }
  0x53   : > { %549 = vxpose.xlu0.b32.start [1/16] %v454_v33, 128 }
  0x56   : > { %614 = vxpose.xlu1.b32.cont [2/16] %v488_v34, 128 }
  0x57   : > { %550 = vxpose.xlu0.b32.cont [2/16] %v456_v35, 128 }
  0x5a   : > { %615 = vxpose.xlu1.b32.cont [3/16] %v490_v36, 128 }
  0x5b   : > { %551 = vxpose.xlu0.b32.cont [3/16] %v458_v37, 128 }
  0x5e   : > { %616 = vxpose.xlu1.b32.cont [4/16] %v492_v38, 128 }
  0x5f   : > { %552 = vxpose.xlu0.b32.cont [4/16] %v460_v39, 128 }
  0x62   : > { %617 = vxpose.xlu1.b32.cont [5/16] %v494_v40, 128 }
  0x63   : > { %553 = vxpose.xlu0.b32.cont [5/16] %v462_v41, 128 }
  0x66   : > { %618 = vxpose.xlu1.b32.cont [6/16] %v496_v42, 128 }
  0x67   : > { %554 = vxpose.xlu0.b32.cont [6/16] %v464_v43, 128 }
  0x6a   : > { %619 = vxpose.xlu1.b32.cont [7/16] %v498_v44, 128 }
  0x6b   : > { %555 = vxpose.xlu0.b32.cont [7/16] %v466_v45, 128 }
  0x6e   : > { %620 = vxpose.xlu1.b32.cont [8/16] %v500_v46, 128 }
  0x6f   : > { %556 = vxpose.xlu0.b32.cont [8/16] %v468_v47, 128 }
  0x72   : > { %621 = vxpose.xlu1.b32.cont [9/16] %v502_v48, 128 }
  0x73   : > { %557 = vxpose.xlu0.b32.cont [9/16] %v470_v49, 128 }
  0x76   : > { %622 = vxpose.xlu1.b32.cont [10/16] %v504_v50, 128 }
  0x77   : > { %558 = vxpose.xlu0.b32.cont [10/16] %v472_v51, 128 }
  0x7a   : > { %623 = vxpose.xlu1.b32.cont [11/16] %v506_v52, 128 }
  0x7b   : > { %559 = vxpose.xlu0.b32.cont [11/16] %v474_v53, 128 }
  0x7e   : > { %624 = vxpose.xlu1.b32.cont [12/16] %v508_v54, 128 }
  0x7f   : > { %560 = vxpose.xlu0.b32.cont [12/16] %v476_v55, 128 }
  0x82   : > { %625 = vxpose.xlu1.b32.cont [13/16] %v510_v56, 128 }
  0x83   : > { %561 = vxpose.xlu0.b32.cont [13/16] %v478_v57, 128 }
  0x86   : > { %626 = vxpose.xlu1.b32.cont [14/16] %v512_v58, 128 }
  0x87   : > { %562 = vxpose.xlu0.b32.cont [14/16] %v480_v59, 128 }
  0x8a   : > { %627 = vxpose.xlu1.b32.cont [15/16] %v514_v60, 128 }
  0x8b   : > { %563 = vxpose.xlu0.b32.cont [15/16] %v482_v61, 128 }
  0x8e   : > { %628 = vxpose.xlu1.b32.end [16/16] %v516_v62, 128  ;;  %v8156_v0 = vpop.trf.xlu1 }
  0x8f   : > { %564 = vxpose.xlu0.b32.end [16/16] %v484_v63, 128  ;;  %v8158_v1 = vpop.trf.xlu0 }
  0x90   : > { %v645_v24 = vadd.f32 %v8156_v0, %v8158_v1 }
  0x92   : > { %v8160_v2 = vpop.trf.xlu1 }
  0x93   : > { %v8162_v3 = vpop.trf.xlu0 }
  0x94   : > { %v648_v18 = vadd.f32 %v8160_v2, %v8162_v3 }
  0x96   : > { %v8164_v4 = vpop.trf.xlu1 }
  0x97   : > { %v8166_v5 = vpop.trf.xlu0 }
  0x98   : > { %v651_v21 = vadd.f32 %v8164_v4, %v8166_v5 }
  0x9a   : > { %v8168_v6 = vpop.trf.xlu1 }
  0x9b   : > { %v8170_v7 = vpop.trf.xlu0 }
  0x9c   : > { %v654_v25 = vadd.f32 %v8168_v6, %v8170_v7 }
  0x9e   : > { %v8172_v8 = vpop.trf.xlu1 }
  0x9f   : > { %v8174_v9 = vpop.trf.xlu0 }
  0xa0   : > { %v657_v28 = vadd.f32 %v8172_v8, %v8174_v9 }
  0xa2   : > { %v8176_v10 = vpop.trf.xlu1 }
  0xa3   : > { %v8178_v11 = vpop.trf.xlu0 }
  0xa4   : > { %v660_v29 = vadd.f32 %v8176_v10, %v8178_v11 }
  0xa6   : > { %v8180_v12 = vpop.trf.xlu1 }
  0xa7   : > { %v8182_v13 = vpop.trf.xlu0 }
  0xa8   : > { %v663_v32 = vadd.f32 %v8180_v12, %v8182_v13 }
  0xaa   : > { %v8184_v14 = vpop.trf.xlu1 }
  0xab   : > { %v8186_v15 = vpop.trf.xlu0 }
  0xac   : > { %v666_v33 = vadd.f32 %v8184_v14, %v8186_v15 }
  0xae   : > { %v8188_v16 = vpop.trf.xlu1 }
  0xaf   : > { %v8190_v17 = vpop.trf.xlu0 }
  0xb0   : > { %v669_v36 = vadd.f32 %v8188_v16, %v8190_v17 }
  0xb2   : > { %v8194_v19 = vpop.trf.xlu1 }
  0xb3   : > { %v8196_v20 = vpop.trf.xlu0 }
  0xb4   : > { %v672_v37 = vadd.f32 %v8194_v19, %v8196_v20 }
  0xb5   : > { %649 = vadd.xlane.f32.xlu1 %v648_v18 }
  0xb6   : > { %v8200_v22 = vpop.trf.xlu1 }
  0xb7   : > { %v8202_v23 = vpop.trf.xlu0 }
  0xb8   : > { %v675_v45 = vadd.f32 %v8200_v22, %v8202_v23 }
  0xb9   : > { %652 = vadd.xlane.f32.xlu1 %v651_v21 }
  0xba   : > { %v8208_v26 = vpop.trf.xlu1 }
  0xbb   : > { %v8210_v27 = vpop.trf.xlu0 }
  0xbc   : > { %646 = vadd.xlane.f32.xlu0 %v645_v24  ;;  %v678_v49 = vadd.f32 %v8208_v26, %v8210_v27 }
  0xbd   : > { %655 = vadd.xlane.f32.xlu1 %v654_v25 }
  0xbe   : > { %v8216_v30 = vpop.trf.xlu1 }
  0xbf   : > { %v8218_v31 = vpop.trf.xlu0 }
  0xc0   : > { %658 = vadd.xlane.f32.xlu0 %v657_v28  ;;  %v681_v53 = vadd.f32 %v8216_v30, %v8218_v31 }
  0xc1   : > { %661 = vadd.xlane.f32.xlu1 %v660_v29 }
  0xc2   : > { %v8224_v34 = vpop.trf.xlu1 }
  0xc3   : > { %v8226_v35 = vpop.trf.xlu0 }
  0xc4   : > { %664 = vadd.xlane.f32.xlu0 %v663_v32  ;;  %v684_v57 = vadd.f32 %v8224_v34, %v8226_v35 }
  0xc5   : > { %667 = vadd.xlane.f32.xlu1 %v666_v33 }
  0xc6   : > { %v8232_v38 = vpop.trf.xlu1 }
  0xc7   : > { %v8234_v39 = vpop.trf.xlu0 }
  0xc8   : > { %670 = vadd.xlane.f32.xlu0 %v669_v36  ;;  %v687_v61 = vadd.f32 %v8232_v38, %v8234_v39 }
  0xc9   : > { %673 = vadd.xlane.f32.xlu1 %v672_v37 }
  0xca   : > { %v8236_v40 = vpop.trf.xlu1 }
  0xcb   : > { %v8238_v41 = vpop.trf.xlu0 }
  0xcc   : > { %v690_v21 = vadd.f32 %v8236_v40, %v8238_v41 }
  0xce   : > { %v8240_v42 = vpop.trf.xlu1 }
  0xcf   : > { %v8242_v43 = vpop.trf.xlu0 }
  0xd0   : > { %v693_v44 = vadd.f32 %v8240_v42, %v8242_v43 }
  0xd2   : > { %694 = vadd.xlane.f32.xlu0 %v693_v44  ;;  %v8248_v46 = vpop.trf.xlu1 }
  0xd3   : > { %v8250_v47 = vpop.trf.xlu0 }
  0xd4   : > { %v696_v48 = vadd.f32 %v8248_v46, %v8250_v47 }
  0xd6   : > { %676 = vadd.xlane.f32.xlu0 %v675_v45  ;;  %697 = vadd.xlane.f32.xlu1 %v696_v48  ;;  %v8256_v50 = vpop.trf.xlu1 }
  0xd7   : > { %v8258_v51 = vpop.trf.xlu0 }
  0xd8   : > { %v699_v52 = vadd.f32 %v8256_v50, %v8258_v51 }
  0xda   : > { %679 = vadd.xlane.f32.xlu1 %v678_v49  ;;  %700 = vadd.xlane.f32.xlu0 %v699_v52  ;;  %v8264_v54 = vpop.trf.xlu1 }
  0xdb   : > { %v8266_v55 = vpop.trf.xlu0 }
  0xdc   : > { %v702_v56 = vadd.f32 %v8264_v54, %v8266_v55 }
  0xde   : > { %682 = vadd.xlane.f32.xlu0 %v681_v53  ;;  %703 = vadd.xlane.f32.xlu1 %v702_v56  ;;  %v8272_v58 = vpop.trf.xlu1 }
  0xdf   : > { %v8274_v59 = vpop.trf.xlu0 }
  0xe0   : > { %v705_v60 = vadd.f32 %v8272_v58, %v8274_v59 }
  0xe2   : > { %685 = vadd.xlane.f32.xlu1 %v684_v57  ;;  %706 = vadd.xlane.f32.xlu0 %v705_v60  ;;  %v8280_v62 = vpop.trf.xlu1 }
  0xe3   : > { %v8282_v63 = vpop.trf.xlu0 }
  0xe4   : > { %v708_v18 = vadd.f32 %v8280_v62, %v8282_v63 }
  0xe6   : > { %688 = vadd.xlane.f32.xlu0 %v687_v61  ;;  %709 = vadd.xlane.f32.xlu1 %v708_v18  ;;  %v8288_v24 = vpop.trf.xlu1  ;;  %v7109_v18 = vld [vmem:[%s12409_s5 + $0x74] ss:$8 sps:$4 sm:$0xff]  }
  0xe7   : > { %12778 = vst [vmem:[#allocation2_spill] sm:$0xff] %v8288_v24  ;;  %v8290_v25 = vpop.trf.xlu0  ;;  %1394 = vmatprep.subr.bf16.mxu0 %v7109_v18  ;;  %7052 = vmatprep.subr.bf16.mxu1 %v7109_v18  ;;  %v7121_v18 = vld [vmem:[%s12409_s5 + $0x34] ss:$8 sps:$4 sm:$0xff]  }
  0xe8   : > { %12779 = vst [vmem:[#allocation3_spill] sm:$0xff] %v8290_v25  ;;  %v711_v28 = vadd.f32 %v8288_v24, %v8290_v25 }
  0xea   : > { %691 = vadd.xlane.f32.xlu1 %v690_v21  ;;  %712 = vadd.xlane.f32.xlu0 %v711_v28  ;;  %v8294_v29 = vpop.trf.xlu1  ;;  %v7111_v21 = vld [vmem:[%s12409_s5 + $0x70] ss:$8 sps:$4 sm:$0xff]   ;;  %v7112_v28 = vld [vmem:[%s12409_s5 + $0x64] ss:$8 sps:$4 sm:$0xff]  }
  0xeb   : > { %12780 = vst [vmem:[#allocation4_spill] sm:$0xff] %v8294_v29  ;;  %v8296_v32 = vpop.trf.xlu0  ;;  %1395 = vmatpush1.bf16.msra.mxu0 %v7111_v21  ;;  %7068 = vmatpush1.bf16.msra.mxu1 %v7111_v21  ;;  %v7123_v21 = vld [vmem:[%s12409_s5 + $0x30] ss:$8 sps:$4 sm:$0xff]  }
  0xec   : > { %12781 = vst [vmem:[#allocation5_spill] sm:$0xff] %v8296_v32  ;;  %v714_v33 = vadd.f32 %v8294_v29, %v8296_v32  ;;  %1396 = vmatprep.subr.bf16.mxu0 %v7112_v28  ;;  %7053 = vmatprep.subr.bf16.mxu1 %v7112_v28  ;;  %v7124_v28 = vld [vmem:[%s12409_s5 + $0x24] ss:$8 sps:$4 sm:$0xff]  }
  0xee   : > { %715 = vadd.xlane.f32.xlu1 %v714_v33  ;;  %v8300_v36 = vpop.trf.xlu1  ;;  %v7114_v33 = vld [vmem:[%s12409_s5 + $0x60] ss:$8 sps:$4 sm:$0xff]  }
  0xef   : > { %12782 = vst [vmem:[#allocation6_spill] sm:$0xff] %v8300_v36  ;;  %v8302_v37 = vpop.trf.xlu0  ;;  %1397 = vmatpush1.bf16.msra.mxu0 %v7114_v33  ;;  %7069 = vmatpush1.bf16.msra.mxu1 %v7114_v33  ;;  %v7126_v33 = vld [vmem:[%s12409_s5 + $0x20] ss:$8 sps:$4 sm:$0xff]  }
  0xf0   : > { %12783 = vst [vmem:[#allocation7_spill] sm:$0xff] %v8302_v37  ;;  %v717_v44 = vadd.f32 %v8300_v36, %v8302_v37 }
  0xf2   : > { %718 = vadd.xlane.f32.xlu0 %v717_v44  ;;  %v8306_v45 = vpop.trf.xlu1  ;;  %v7115_v44 = vld [vmem:[%s12409_s5 + $0x54] ss:$8 sps:$4 sm:$0xff]  }
  0xf3   : > { %12784 = vst [vmem:[#allocation8_spill] sm:$0xff] %v8306_v45  ;;  %v8308_v48 = vpop.trf.xlu0  ;;  %1398 = vmatprep.subr.bf16.mxu0 %v7115_v44  ;;  %7054 = vmatprep.subr.bf16.mxu1 %v7115_v44  ;;  %v7127_v44 = vld [vmem:[%s12409_s5 + $0x14] ss:$8 sps:$4 sm:$0xff]  }
  0xf4   : > { %12785 = vst [vmem:[#allocation9_spill] sm:$0xff] %v8308_v48  ;;  %v720_v49 = vadd.f32 %v8306_v45, %v8308_v48 }
  0xf6   : > { %721 = vadd.xlane.f32.xlu1 %v720_v49  ;;  %v8312_v52 = vpop.trf.xlu1  ;;  %v7117_v49 = vld [vmem:[%s12409_s5 + $0x50] ss:$8 sps:$4 sm:$0xff]  }
  0xf7   : > { %12786 = vst [vmem:[#allocation10_spill] sm:$0xff] %v8312_v52  ;;  %v8314_v53 = vpop.trf.xlu0  ;;  %1399 = vmatpush1.bf16.msra.mxu0 %v7117_v49  ;;  %7070 = vmatpush1.bf16.msra.mxu1 %v7117_v49 }
  0xf8   : > { %12787 = vst [vmem:[#allocation11_spill] sm:$0xff] %v8314_v53  ;;  %v723_v56 = vadd.f32 %v8312_v52, %v8314_v53 }
  0xfa   : > { %724 = vadd.xlane.f32.xlu0 %v723_v56  ;;  %v8318_v57 = vpop.trf.xlu1  ;;  %v7118_v56 = vld [vmem:[%s12409_s5 + $0x44] ss:$8 sps:$4 sm:$0xff]  }
  0xfb   : > { %12788 = vst [vmem:[#allocation12_spill] sm:$0xff] %v8318_v57  ;;  %v8320_v60 = vpop.trf.xlu0  ;;  %1400 = vmatprep.subr.bf16.mxu0 %v7118_v56  ;;  %7055 = vmatprep.subr.bf16.mxu1 %v7118_v56  ;;  %v7129_v56 = vld [vmem:[%s12409_s5 + $0x10] ss:$8 sps:$4 sm:$0xff]  }
  0xfc   : > { %12789 = vst [vmem:[#allocation13_spill] sm:$0xff] %v8320_v60  ;;  %v726_v61 = vadd.f32 %v8318_v57, %v8320_v60 }
  0xfe   : > { %727 = vadd.xlane.f32.xlu1 %v726_v61  ;;  %v7120_v61 = vld [vmem:[%s12409_s5 + $0x40] ss:$8 sps:$4 sm:$0xff]   ;;  %v8363_v49 = vpop.trf.xlu1 }
  0xff   : > { %1401 = vmatpush1.bf16.msra.mxu0 %v7120_v61  ;;  %7071 = vmatpush1.bf16.msra.mxu1 %v7120_v61  ;;  %v7130_v61 = vld [vmem:[%s12409_s5 + $0x4] ss:$8 sps:$4 sm:$0xff]  }
 0x100   : > { %1402 = vmatprep.subr.bf16.mxu0 %v7121_v18  ;;  %7056 = vmatprep.subr.bf16.mxu1 %v7121_v18  ;;  %v7132_v18 = vld [vmem:[%s12409_s5] ss:$8 sps:$4 sm:$0xff]  }
 0x103   : > { %1403 = vmatpush1.bf16.msra.mxu0 %v7123_v21  ;;  %7072 = vmatpush1.bf16.msra.mxu1 %v7123_v21  ;;  %v7133_v21 = vld [vmem:[%s12409_s5 + $0xf4] ss:$8 sps:$4 sm:$0xff]  }
 0x104   : > { %1404 = vmatprep.subr.bf16.mxu0 %v7124_v28  ;;  %7057 = vmatprep.subr.bf16.mxu1 %v7124_v28  ;;  %v8377_v28 = vpop.trf.xlu1 }
 0x107   : > { %1405 = vmatpush1.bf16.msra.mxu0 %v7126_v33  ;;  %7073 = vmatpush1.bf16.msra.mxu1 %v7126_v33  ;;  %v8379_v33 = vpop.trf.xlu0 }
 0x108   : > { %1406 = vmatprep.subr.bf16.mxu0 %v7127_v44  ;;  %7058 = vmatprep.subr.bf16.mxu1 %v7127_v44  ;;  %v7135_v44 = vld [vmem:[%s12409_s5 + $0xf0] ss:$8 sps:$4 sm:$0xff]   ;;  %v8384_v57 = vpop.trf.xlu1 }
 0x10b   : > { %1407 = vmatpush1.bf16.msra.mxu0 %v7129_v56  ;;  %7074 = vmatpush1.bf16.msra.mxu1 %v7129_v56  ;;  %v8386_v56 = vpop.trf.xlu0 }
 0x10c   : > { %1408 = vmatprep.subr.bf16.mxu0 %v7130_v61  ;;  %7059 = vmatprep.subr.bf16.mxu1 %v7130_v61  ;;  %v8388_v60 = vpop.trf.xlu1 }
 0x10f   : > { %1409 = vmatpush1.bf16.msra.mxu0 %v7132_v18  ;;  %7075 = vmatpush1.bf16.msra.mxu1 %v7132_v18  ;;  %v8390_v61 = vpop.trf.xlu0 }
 0x110   : > { %1410 = vmatprep.subr.bf16.mxu0 %v7133_v21  ;;  %7060 = vmatprep.subr.bf16.mxu1 %v7133_v21 }
 0x113   : > { %1411 = vmatpush2.bf16.msra.mxu0 %v7135_v44  ;;  %7076 = vmatpush2.bf16.msra.mxu1 %v7135_v44  ;;  %v8392_v53 = vpop.trf.xlu0 }
 0x13e   : > { %v650_v52 = vpop.xlane.xlu1 %649 }
 0x13f   : > { %v743_v45 = vmul.f32 0.00390625, %v650_v52 }
 0x141   : > { %v8395_v48 = vsub.f32 %v8162_v3, %v743_v45  ;;  %v8398_v18 = vsub.f32 %v8160_v2, %v743_v45 }
 0x142   : > { %v653_v21 = vpop.xlane.xlu1 %652 }
 0x143   : > { %12790 = vst [vmem:[#allocation14_spill] sm:$0xff] %v8395_v48  ;;  %12791 = vst [vmem:[#allocation15_spill] sm:$0xff] %v8398_v18  ;;  %v840_v36 = vmul.f32 %v8395_v48, %v8395_v48  ;;  %v841_v44 = vmul.f32 %v8398_v18, %v8398_v18  ;;  %v744_v2 = vmul.f32 0.00390625, %v653_v21 }
 0x145   : > { %v647_v37 = vpop.xlane.xlu0 %646  ;;  %v905_v32 = vadd.f32 %v841_v44, %v840_v36 }
 0x146   : > { %v742_v29 = vmul.f32 0.00390625, %v647_v37  ;;  %v656_v24 = vpop.xlane.xlu1 %655  ;;  %v732_v37 = vadd.f32 %v8377_v28, %v8386_v56 }
 0x147   : > { %v745_v52 = vmul.f32 0.00390625, %v656_v24  ;;  %906 = vadd.xlane.f32.xlu1 %v905_v32 }
 0x148   : > { %v8405_v25 = vsub.f32 %v8158_v1, %v742_v29  ;;  %v8408_v3 = vsub.f32 %v8156_v0, %v742_v29  ;;  %v8430_v29 = vsub.f32 %v8164_v4, %v744_v2  ;;  %v729_v4 = vadd.f32 %v8363_v49, %v8379_v33 }
 0x149   : > { %v8411_v45 = vsub.f32 %v8170_v7, %v745_v52  ;;  %v8414_v48 = vsub.f32 %v8168_v6, %v745_v52  ;;  %v659_v1 = vpop.xlane.xlu0 %658  ;;  %v8427_v6 = vsub.f32 %v8166_v5, %v744_v2  ;;  %v738_v5 = vadd.f32 %v8388_v60, %v8392_v53 }
 0x14a   : > { %12792 = vst [vmem:[#allocation16_spill] sm:$0xff] %v8405_v25  ;;  %12793 = vst [vmem:[#allocation17_spill] sm:$0xff] %v8408_v3  ;;  %v838_v36 = vmul.f32 %v8405_v25, %v8405_v25  ;;  %v662_v44 = vpop.xlane.xlu1 %661  ;;  %v839_v0 = vmul.f32 %v8408_v3, %v8408_v3  ;;  %v746_v18 = vmul.f32 0.00390625, %v659_v1 }
 0x14b   : > { %12794 = vst [vmem:[#allocation18_spill] sm:$0xff] %v8411_v45  ;;  %12795 = vst [vmem:[#allocation19_spill] sm:$0xff] %v8414_v48  ;;  %v844_v24 = vmul.f32 %v8411_v45, %v8411_v45  ;;  %v845_v7 = vmul.f32 %v8414_v48, %v8414_v48  ;;  %733 = vadd.xlane.f32.xlu1 %v732_v37  ;;  %v747_v32 = vmul.f32 0.00390625, %v662_v44  ;;  %v7136_v44 = vld [vmem:[%s12409_s5 + $0xe4] ss:$8 sps:$4 sm:$0xff]  }
 0x14c   : > { %v902_v21 = vadd.f32 %v839_v0, %v838_v36  ;;  %v842_v2 = vmul.f32 %v8427_v6, %v8427_v6  ;;  %v7138_v0 = vld [vmem:[%s12409_s5 + $0xe0] ss:$8 sps:$4 sm:$0xff]   ;;  %1412 = vmatprep.subr.bf16.mxu0 %v7136_v44  ;;  %7061 = vmatprep.subr.bf16.mxu1 %v7136_v44 }
 0x14d   : > { %v911_v52 = vadd.f32 %v845_v7, %v844_v24  ;;  %v8433_v25 = vsub.f32 %v8178_v11, %v747_v32  ;;  %v8436_v3 = vsub.f32 %v8176_v10, %v747_v32  ;;  %v665_v37 = vpop.xlane.xlu0 %664  ;;  %v843_v11 = vmul.f32 %v8430_v29, %v8430_v29  ;;  %1413 = vmatpush2.bf16.msra.mxu0 %v7138_v0 }
 0x14e   : > { %903 = vadd.xlane.f32.xlu0 %v902_v21  ;;  %v668_v45 = vpop.xlane.xlu1 %667  ;;  %v8463_v24 = vsub.f32 %v8174_v9, %v746_v18  ;;  %v748_v7 = vmul.f32 0.00390625, %v665_v37  ;;  %v7139_v9 = vld [vmem:[%s12409_s5 + $0xd4] ss:$8 sps:$4 sm:$0xff]   ;;  %7077 = vmatpush2.bf16.msra.mxu1 %v7138_v0 }
 0x14f   : > { %v749_v48 = vmul.f32 0.00390625, %v668_v45  ;;  %912 = vadd.xlane.f32.xlu1 %v911_v52  ;;  %v848_v10 = vmul.f32 %v8433_v25, %v8433_v25  ;;  %v849_v45 = vmul.f32 %v8436_v3, %v8436_v3  ;;  %1414 = vmatprep.subr.bf16.mxu0 %v7139_v9 }
 0x150   : > { %7062 = vmatprep.subr.bf16.mxu1 %v7139_v9 }
 0x151   : > { %v8451_v36 = vsub.f32 %v8186_v15, %v749_v48  ;;  %v8454_v1 = vsub.f32 %v8184_v14, %v749_v48  ;;  %v8466_v15 = vsub.f32 %v8172_v8, %v746_v18  ;;  %v908_v14 = vadd.f32 %v843_v11, %v842_v2  ;;  %v671_v52 = vpop.xlane.xlu0 %670  ;;  %v7141_v8 = vld [vmem:[%s12409_s5 + $0xd0] ss:$8 sps:$4 sm:$0xff]  }
 0x152   : > { %730 = vadd.xlane.f32.xlu0 %v729_v4  ;;  %v917_v21 = vadd.f32 %v849_v45, %v848_v10  ;;  %v846_v18 = vmul.f32 %v8463_v24, %v8463_v24  ;;  %v8485_v4 = vsub.f32 %v8182_v13, %v748_v7  ;;  %v8488_v2 = vsub.f32 %v8180_v12, %v748_v7  ;;  %v7142_v10 = vld [vmem:[%s12409_s5 + $0xc4] ss:$8 sps:$4 sm:$0xff]   ;;  %v674_v44 = vpop.xlane.xlu1 %673  ;;  %v7144_v13 = vld [vmem:[%s12409_s5 + $0xc0] ss:$8 sps:$4 sm:$0xff]  }
 0x153   : > { %739 = vadd.xlane.f32.xlu1 %v738_v5  ;;  %v852_v48 = vmul.f32 %v8451_v36, %v8451_v36  ;;  %v853_v32 = vmul.f32 %v8454_v1, %v8454_v1  ;;  %v735_v5 = vadd.f32 %v8384_v57, %v8390_v61  ;;  %v847_v37 = vmul.f32 %v8466_v15, %v8466_v15 }
 0x154   : > { %1415 = vmatpush2.bf16.msra.mxu0 %v7141_v8  ;;  %7078 = vmatpush2.bf16.msra.mxu1 %v7141_v8  ;;  %v750_v45 = vmul.f32 0.00390625, %v671_v52  ;;  %v850_v12 = vmul.f32 %v8485_v4, %v8485_v4  ;;  %v851_v7 = vmul.f32 %v8488_v2, %v8488_v2  ;;  %v7145_v52 = vld [vmem:[%s12409_s5 + $0xb4] ss:$8 sps:$4 sm:$0xff]  }
 0x155   : > { %v923_v11 = vadd.f32 %v853_v32, %v852_v48  ;;  %1416 = vmatprep.subr.bf16.mxu0 %v7142_v10  ;;  %v914_v48 = vadd.f32 %v847_v37, %v846_v18  ;;  %7063 = vmatprep.subr.bf16.mxu1 %v7142_v10  ;;  %v751_v32 = vmul.f32 0.00390625, %v674_v44  ;;  %v7147_v37 = vld [vmem:[%s12409_s5 + $0xb0] ss:$8 sps:$4 sm:$0xff]  }
 0x156   : > { %909 = vadd.xlane.f32.xlu0 %v908_v14  ;;  %v8510_v8 = vsub.f32 %v8190_v17, %v750_v45  ;;  %v920_v10 = vadd.f32 %v851_v7, %v850_v12 }
 0x157   : > { %918 = vadd.xlane.f32.xlu1 %v917_v21  ;;  %v8523_v44 = vsub.f32 %v8196_v20, %v751_v32 }
 0x158   : > { %1417 = vmatpush2.bf16.msra.mxu0 %v7144_v13  ;;  %7079 = vmatpush2.bf16.msra.mxu1 %v7144_v13  ;;  %12796 = vst [vmem:[#allocation20_spill] sm:$0xff] %v8510_v8  ;;  %v7148_v13 = vld [vmem:[%s12409_s5 + $0xa4] ss:$8 sps:$4 sm:$0xff]  }
 0x159   : > { %1418 = vmatprep.subr.bf16.mxu0 %v7145_v52  ;;  %7064 = vmatprep.subr.bf16.mxu1 %v7145_v52 }
 0x15a   : > { %736 = vadd.xlane.f32.xlu0 %v735_v5 }
 0x15b   : > { %v695_v0 = vpop.xlane.xlu0 %694  ;;  %924 = vadd.xlane.f32.xlu1 %v923_v11 }
 0x15c   : > { %v758_v14 = vmul.f32 0.00390625, %v695_v0  ;;  %1419 = vmatpush2.bf16.msra.mxu0 %v7147_v37  ;;  %v8526_v0 = vsub.f32 %v8194_v19, %v751_v32  ;;  %7080 = vmatpush2.bf16.msra.mxu1 %v7147_v37  ;;  %v7150_v19 = vld [vmem:[%s12409_s5 + $0xa0] ss:$8 sps:$4 sm:$0xff]   ;;  %v856_v37 = vmul.f32 %v8523_v44, %v8523_v44 }
 0x15d   : > { %1420 = vmatprep.subr.bf16.mxu0 %v7148_v13  ;;  %7065 = vmatprep.subr.bf16.mxu1 %v7148_v13  ;;  %v7153_v13 = vld [vmem:[%s12409_s5 + $0x90] ss:$8 sps:$4 sm:$0xff]  }
 0x15e   : > { %v8501_v21 = vsub.f32 %v8242_v43, %v758_v14  ;;  %v8504_v9 = vsub.f32 %v8240_v42, %v758_v14  ;;  %915 = vadd.xlane.f32.xlu0 %v914_v48  ;;  %v8516_v43 = vsub.f32 %v8188_v16, %v750_v45  ;;  %v854_v14 = vmul.f32 %v8510_v8, %v8510_v8  ;;  %v7151_v8 = vld [vmem:[%s12409_s5 + $0x94] ss:$8 sps:$4 sm:$0xff]  }
 0x15f   : > { %v698_v5 = vpop.xlane.xlu1 %697  ;;  %v677_v18 = vpop.xlane.xlu0 %676 }
 0x160   : > { %v759_v42 = vmul.f32 0.00390625, %v698_v5  ;;  %v870_v11 = vmul.f32 %v8501_v21, %v8501_v21  ;;  %v871_v17 = vmul.f32 %v8504_v9, %v8504_v9  ;;  %v752_v48 = vmul.f32 0.00390625, %v677_v18  ;;  %1421 = vmatpush2.bf16.msra.mxu0 %v7150_v19  ;;  %7081 = vmatpush2.bf16.msra.mxu1 %v7150_v19 }
 0x161   : > { %1422 = vmatprep.subr.bf16.mxu0 %v7151_v8  ;;  %7066 = vmatprep.subr.bf16.mxu1 %v7151_v8 }
 0x162   : > { %v8529_v16 = vsub.f32 %v8250_v47, %v759_v42  ;;  %v8532_v45 = vsub.f32 %v8248_v46, %v759_v42  ;;  %921 = vadd.xlane.f32.xlu0 %v920_v10  ;;  %v855_v47 = vmul.f32 %v8516_v43, %v8516_v43  ;;  %v950_v5 = vadd.f32 %v871_v17, %v870_v11 }
 0x163   : > { %v680_v20 = vpop.xlane.xlu1 %679  ;;  %v701_v12 = vpop.xlane.xlu0 %700  ;;  %v857_v42 = vmul.f32 %v8526_v0, %v8526_v0 }
 0x164   : > { %v872_v46 = vmul.f32 %v8529_v16, %v8529_v16  ;;  %v873_v7 = vmul.f32 %v8532_v45, %v8532_v45  ;;  %v753_v32 = vmul.f32 0.00390625, %v680_v20  ;;  %v760_v52 = vmul.f32 0.00390625, %v701_v12  ;;  %1423 = vmatpush2.bf16.msra.mxu0 %v7153_v13  ;;  %7082 = vmatpush2.bf16.msra.mxu1 %v7153_v13 }
 0x165   : > { %v8565_v12 = vsub.f32 %v8202_v23, %v752_v48 }
 0x166   : > { %v953_v10 = vadd.f32 %v873_v7, %v872_v46  ;;  %v8556_v18 = vsub.f32 %v8258_v51, %v760_v52  ;;  %v8559_v20 = vsub.f32 %v8256_v50, %v760_v52  ;;  %951 = vadd.xlane.f32.xlu0 %v950_v5  ;;  %v8568_v46 = vsub.f32 %v8200_v22, %v752_v48  ;;  %v7156_v5 = vld [vmem:[%s12409_s5 + $0x80] ss:$8 sps:$4 sm:$0xff]  }
 0x167   : > { %v704_v11 = vpop.xlane.xlu1 %703  ;;  %v683_v17 = vpop.xlane.xlu0 %682  ;;  %12797 = vst [vmem:[#allocation21_spill] sm:$0xff] %v8565_v12  ;;  %v926_v51 = vadd.f32 %v855_v47, %v854_v14  ;;  %v8571_v50 = vsub.f32 %v8210_v27, %v753_v32  ;;  %v8574_v7 = vsub.f32 %v8208_v26, %v753_v32  ;;  %v929_v14 = vadd.f32 %v857_v42, %v856_v37  ;;  %v7154_v27 = vld [vmem:[%s12409_s5 + $0x84] ss:$8 sps:$4 sm:$0xff]  }
 0x168   : > { %v761_v19 = vmul.f32 0.00390625, %v704_v11  ;;  %954 = vadd.xlane.f32.xlu1 %v953_v10  ;;  %v874_v52 = vmul.f32 %v8556_v18, %v8556_v18  ;;  %v875_v23 = vmul.f32 %v8559_v20, %v8559_v20  ;;  %v754_v26 = vmul.f32 0.00390625, %v683_v17  ;;  %1424 = vmatprep.subr.bf16.mxu0 %v7154_v27 }
 0x169   : > { %12798 = vst [vmem:[#allocation22_spill] sm:$0xff] %v8571_v50  ;;  %v860_v42 = vmul.f32 %v8571_v50, %v8571_v50  ;;  %v861_v10 = vmul.f32 %v8574_v7, %v8574_v7  ;;  %7067 = vmatprep.subr.bf16.mxu1 %v7154_v27  ;;  %1425 = vmatpush2.bf16.msra.mxu0 %v7156_v5 }
 0x16a   : > { %v8581_v22 = vsub.f32 %v8266_v55, %v761_v19  ;;  %v8584_v48 = vsub.f32 %v8264_v54, %v761_v19  ;;  %927 = vadd.xlane.f32.xlu0 %v926_v51  ;;  %v858_v55 = vmul.f32 %v8565_v12, %v8565_v12  ;;  %v859_v54 = vmul.f32 %v8568_v46, %v8568_v46 }
 0x16b   : > { %v686_v47 = vpop.xlane.xlu1 %685  ;;  %v707_v32 = vpop.xlane.xlu0 %706  ;;  %v956_v17 = vadd.f32 %v875_v23, %v874_v52  ;;  %v8605_v51 = vsub.f32 %v8218_v31, %v754_v26  ;;  %v8608_v12 = vsub.f32 %v8216_v30, %v754_v26  ;;  %7083 = vmatpush2.bf16.msra.mxu1 %v7156_v5 }
 0x16c   : > { %v876_v37 = vmul.f32 %v8581_v22, %v8581_v22  ;;  %v877_v8 = vmul.f32 %v8584_v48, %v8584_v48  ;;  %930 = vadd.xlane.f32.xlu1 %v929_v14  ;;  %v762_v11 = vmul.f32 0.00390625, %v707_v32  ;;  %v755_v13 = vmul.f32 0.00390625, %v686_v47 }
 0x16d   : > { %v932_v26 = vadd.f32 %v859_v54, %v858_v55  ;;  %v935_v47 = vadd.f32 %v861_v10, %v860_v42  ;;  %v862_v5 = vmul.f32 %v8605_v51, %v8605_v51 }
 0x16e   : > { %v959_v19 = vadd.f32 %v877_v8, %v876_v37  ;;  %v8611_v14 = vsub.f32 %v8274_v59, %v762_v11  ;;  %v8614_v50 = vsub.f32 %v8272_v58, %v762_v11  ;;  %957 = vadd.xlane.f32.xlu0 %v956_v17  ;;  %v8621_v59 = vsub.f32 %v8226_v35, %v755_v13 }
 0x16f   : > { %v710_v32 = vpop.xlane.xlu1 %709  ;;  %v689_v52 = vpop.xlane.xlu0 %688  ;;  %v8624_v58 = vsub.f32 %v8224_v34, %v755_v13  ;;  %v863_v11 = vmul.f32 %v8608_v12, %v8608_v12 }
 0x170   : > { %v763_v23 = vmul.f32 0.00390625, %v710_v32  ;;  %v756_v27 = vmul.f32 0.00390625, %v689_v52  ;;  %960 = vadd.xlane.f32.xlu1 %v959_v19  ;;  %v878_v31 = vmul.f32 %v8611_v14, %v8611_v14  ;;  %v879_v30 = vmul.f32 %v8614_v50, %v8614_v50 }
 0x171   : > { %v864_v13 = vmul.f32 %v8621_v59, %v8621_v59  ;;  %v865_v19 = vmul.f32 %v8624_v58, %v8624_v58 }
 0x172   : > { %v8627_v37 = vsub.f32 %v8282_v63, %v763_v23  ;;  %v8630_v8 = vsub.f32 %v8280_v62, %v763_v23  ;;  %933 = vadd.xlane.f32.xlu0 %v932_v26  ;;  %v8641_v63 = vsub.f32 %v8234_v39, %v756_v27  ;;  %v8644_v62 = vsub.f32 %v8232_v38, %v756_v27 }
 0x173   : > { %v692_v55 = vpop.xlane.xlu1 %691  ;;  %v713_v54 = vpop.xlane.xlu0 %712  ;;  %v962_v17 = vadd.f32 %v879_v30, %v878_v31  ;;  %v938_v30 = vadd.f32 %v863_v11, %v862_v5 }
 0x174   : > { %v880_v35 = vmul.f32 %v8627_v37, %v8627_v37  ;;  %v881_v34 = vmul.f32 %v8630_v8, %v8630_v8  ;;  %12799 = vst [vmem:[#allocation23_spill] sm:$0xff] %v8641_v63  ;;  %936 = vadd.xlane.f32.xlu1 %v935_v47  ;;  %v757_v42 = vmul.f32 0.00390625, %v692_v55  ;;  %v764_v10 = vmul.f32 0.00390625, %v713_v54  ;;  %v12801_v47 = vld [vmem:[#allocation3_spill] sm:$0xff]  ;;  %v12802_v55 = vld [vmem:[#allocation2_spill] sm:$0xff] }
 0x175   : > { %v866_v23 = vmul.f32 %v8641_v63, %v8641_v63  ;;  %v867_v27 = vmul.f32 %v8644_v62, %v8644_v62 }
 0x176   : > { %v965_v32 = vadd.f32 %v881_v34, %v880_v35  ;;  %v8651_v52 = vsub.f32 %v8238_v41, %v757_v42  ;;  %v8654_v39 = vsub.f32 %v8236_v40, %v757_v42  ;;  %963 = vadd.xlane.f32.xlu0 %v962_v17  ;;  %v8665_v40 = vsub.f32 %v12801_v47, %v764_v10  ;;  %v12803_v35 = vld [vmem:[#allocation5_spill] sm:$0xff]  ;;  %v12805_v42 = vld [vmem:[#allocation4_spill] sm:$0xff] }
 0x177   : > { %v716_v38 = vpop.xlane.xlu1 %715  ;;  %v8668_v54 = vsub.f32 %v12802_v55, %v764_v10  ;;  %v944_v63 = vadd.f32 %v867_v27, %v866_v23 }
 0x178   : > { %12800 = vst [vmem:[#allocation24_spill] sm:$0xff] %v8651_v52  ;;  %v765_v31 = vmul.f32 0.00390625, %v716_v38  ;;  %966 = vadd.xlane.f32.xlu1 %v965_v32  ;;  %v868_v26 = vmul.f32 %v8651_v52, %v8651_v52  ;;  %v869_v41 = vmul.f32 %v8654_v39, %v8654_v39  ;;  %v941_v32 = vadd.f32 %v865_v19, %v864_v13  ;;  %v12808_v19 = vld [vmem:[#allocation6_spill] sm:$0xff]  ;;  %v12810_v52 = vld [vmem:[#allocation8_spill] sm:$0xff] }
 0x179   : > { %v882_v38 = vmul.f32 %v8665_v40, %v8665_v40  ;;  %v883_v47 = vmul.f32 %v8668_v54, %v8668_v54 }
 0x17a   : > { %v8671_v34 = vsub.f32 %v12803_v35, %v765_v31  ;;  %v8674_v17 = vsub.f32 %v12805_v42, %v765_v31  ;;  %939 = vadd.xlane.f32.xlu0 %v938_v30  ;;  %v947_v10 = vadd.f32 %v869_v41, %v868_v26  ;;  %v12806_v35 = vld [vmem:[#allocation7_spill] sm:$0xff]  ;;  %v12809_v41 = vld [vmem:[#allocation9_spill] sm:$0xff] }
 0x17b   : > { %v719_v5 = vpop.xlane.xlu0 %718  ;;  %v968_v26 = vadd.f32 %v883_v47, %v882_v38  ;;  %v12813_v47 = vld [vmem:[#allocation10_spill] sm:$0xff] }
 0x17c   : > { %12804 = vst [vmem:[#allocation3_spill] sm:$0xff] %v8671_v34  ;;  %v766_v11 = vmul.f32 0.00390625, %v719_v5  ;;  %942 = vadd.xlane.f32.xlu1 %v941_v32  ;;  %v884_v55 = vmul.f32 %v8671_v34, %v8671_v34  ;;  %v885_v31 = vmul.f32 %v8674_v17, %v8674_v17 }
 0x17e   : > { %v8685_v13 = vsub.f32 %v12806_v35, %v766_v11  ;;  %v8688_v30 = vsub.f32 %v12808_v19, %v766_v11  ;;  %945 = vadd.xlane.f32.xlu0 %v944_v63  ;;  %v971_v34 = vadd.f32 %v885_v31, %v884_v55 }
 0x17f   : > { %v722_v42 = vpop.xlane.xlu1 %721 }
 0x180   : > { %12807 = vst [vmem:[#allocation2_spill] sm:$0xff] %v8685_v13  ;;  %v767_v32 = vmul.f32 0.00390625, %v722_v42  ;;  %948 = vadd.xlane.f32.xlu1 %v947_v10  ;;  %v886_v23 = vmul.f32 %v8685_v13, %v8685_v13  ;;  %v887_v27 = vmul.f32 %v8688_v30, %v8688_v30  ;;  %v12811_v13 = vld [vmem:[#allocation11_spill] sm:$0xff] }
 0x182   : > { %v8695_v5 = vsub.f32 %v12809_v41, %v767_v32  ;;  %v8698_v35 = vsub.f32 %v12810_v52, %v767_v32  ;;  %969 = vadd.xlane.f32.xlu0 %v968_v26  ;;  %v974_v42 = vadd.f32 %v887_v27, %v886_v23  ;;  %v12816_v23 = vld [vmem:[#allocation12_spill] sm:$0xff] }
 0x183   : > { %v725_v11 = vpop.xlane.xlu0 %724 }
 0x184   : > { %v888_v63 = vmul.f32 %v8695_v5, %v8695_v5  ;;  %v889_v10 = vmul.f32 %v8698_v35, %v8698_v35  ;;  %v768_v19 = vmul.f32 0.00390625, %v725_v11  ;;  %972 = vadd.xlane.f32.xlu1 %v971_v34  ;;  %v12814_v11 = vld [vmem:[#allocation13_spill] sm:$0xff] }
 0x186   : > { %v8705_v38 = vsub.f32 %v12811_v13, %v768_v19  ;;  %v8708_v41 = vsub.f32 %v12813_v47, %v768_v19  ;;  %v977_v52 = vadd.f32 %v889_v10, %v888_v63  ;;  %975 = vadd.xlane.f32.xlu0 %v974_v42 }
 0x187   : > { %v728_v55 = vpop.xlane.xlu1 %727 }
 0x188   : > { %12812 = vst [vmem:[#allocation5_spill] sm:$0xff] %v8705_v38  ;;  %v890_v31 = vmul.f32 %v8705_v38, %v8705_v38  ;;  %v891_v32 = vmul.f32 %v8708_v41, %v8708_v41  ;;  %v769_v26 = vmul.f32 0.00390625, %v728_v55  ;;  %978 = vadd.xlane.f32.xlu1 %v977_v52 }
 0x18a   : > { %v8715_v34 = vsub.f32 %v12814_v11, %v769_v26  ;;  %v8718_v13 = vsub.f32 %v12816_v23, %v769_v26  ;;  %v980_v27 = vadd.f32 %v891_v32, %v890_v31 }
 0x18c   : > { %12815 = vst [vmem:[#allocation4_spill] sm:$0xff] %v8715_v34  ;;  %v892_v63 = vmul.f32 %v8715_v34, %v8715_v34  ;;  %v893_v10 = vmul.f32 %v8718_v13, %v8718_v13  ;;  %981 = vadd.xlane.f32.xlu0 %v980_v27 }
 0x18e   : > { %v983_v19 = vadd.f32 %v893_v10, %v892_v63 }
 0x190   : > { %984 = vadd.xlane.f32.xlu1 %v983_v19 }
 0x1d0   : > { %v907_v42 = vpop.xlane.xlu1 %906 }
 0x1d1   : > { %v999_v47 = vmul.f32 0.00390625, %v907_v42 }
 0x1d3   : > { %v1031_v52 = vadd.f32 1e-06, %v999_v47 }
 0x1d4   : > { %v734_v55 = vpop.xlane.xlu1 %733 }
 0x1d5   : > { %v771_v38 = vmul.f32 0.00390625, %v734_v55  ;;  %7349 = vrsqrt.f32 %v1031_v52 }
 0x1d7   : > { %v8725_v11 = vsub.f32 %v8386_v56, %v771_v38  ;;  %v8728_v26 = vsub.f32 %v8377_v28, %v771_v38  ;;  %v904_v31 = vpop.xlane.xlu0 %903 }
 0x1d8   : > { %v998_v32 = vmul.f32 0.00390625, %v904_v31  ;;  %v913_v23 = vpop.xlane.xlu1 %912 }
 0x1d9   : > { %12817 = vst [vmem:[#allocation7_spill] sm:$0xff] %v8725_v11  ;;  %12818 = vst [vmem:[#allocation6_spill] sm:$0xff] %v8728_v26  ;;  %v896_v27 = vmul.f32 %v8725_v11, %v8725_v11  ;;  %v897_v63 = vmul.f32 %v8728_v26, %v8728_v26  ;;  %v1001_v10 = vmul.f32 0.00390625, %v913_v23 }
 0x1da   : > { %v1030_v19 = vadd.f32 1e-06, %v998_v32 }
 0x1db   : > { %v731_v42 = vpop.xlane.xlu0 %730  ;;  %v989_v47 = vadd.f32 %v897_v63, %v896_v27  ;;  %v1033_v34 = vadd.f32 1e-06, %v1001_v10 }
 0x1dc   : > { %7351 = vrsqrt.f32 %v1030_v19  ;;  %v770_v56 = vmul.f32 0.00390625, %v731_v42  ;;  %v740_v55 = vpop.xlane.xlu1 %739 }
 0x1dd   : > { %v773_v28 = vmul.f32 0.00390625, %v740_v55  ;;  %990 = vadd.xlane.f32.xlu1 %v989_v47  ;;  %7353 = vrsqrt.f32 %v1033_v34 }
 0x1de   : > { %v8735_v38 = vsub.f32 %v8379_v33, %v770_v56  ;;  %v8738_v52 = vsub.f32 %v8363_v49, %v770_v56 }
 0x1df   : > { %v8741_v31 = vsub.f32 %v8392_v53, %v773_v28  ;;  %v8744_v23 = vsub.f32 %v8388_v60, %v773_v28  ;;  %v910_v32 = vpop.xlane.xlu0 %909 }
 0x1e0   : > { %12819 = vst [vmem:[#allocation9_spill] sm:$0xff] %v8735_v38  ;;  %12820 = vst [vmem:[#allocation8_spill] sm:$0xff] %v8738_v52  ;;  %v894_v27 = vmul.f32 %v8735_v38, %v8735_v38  ;;  %v895_v63 = vmul.f32 %v8738_v52, %v8738_v52  ;;  %v1000_v10 = vmul.f32 0.00390625, %v910_v32  ;;  %v919_v19 = vpop.xlane.xlu1 %918 }
 0x1e1   : > { %12821 = vst [vmem:[#allocation11_spill] sm:$0xff] %v8741_v31  ;;  %12822 = vst [vmem:[#allocation10_spill] sm:$0xff] %v8744_v23  ;;  %v900_v49 = vmul.f32 %v8741_v31, %v8741_v31  ;;  %v901_v53 = vmul.f32 %v8744_v23, %v8744_v23  ;;  %v1003_v33 = vmul.f32 0.00390625, %v919_v19 }
 0x1e2   : > { %v1032_v42 = vadd.f32 1e-06, %v1000_v10  ;;  %v986_v60 = vadd.f32 %v895_v63, %v894_v27  ;;  %v7350_v32 = vpop.eup %7349 }
 0x1e3   : > { %v737_v47 = vpop.xlane.xlu0 %736  ;;  %v995_v56 = vadd.f32 %v901_v53, %v900_v49  ;;  %v1035_v11 = vadd.f32 1e-06, %v1003_v33  ;;  %v12825_v53 = vld [vmem:[#allocation15_spill] sm:$0xff] }
 0x1e4   : > { %7355 = vrsqrt.f32 %v1032_v42  ;;  %v772_v55 = vmul.f32 0.00390625, %v737_v47  ;;  %987 = vadd.xlane.f32.xlu0 %v986_v60  ;;  %v925_v28 = vpop.xlane.xlu1 %924  ;;  %v1097_v33 = vmul.f32 %v7350_v32, %v12825_v53  ;;  %v12826_v42 = vld [vmem:[#allocation14_spill] sm:$0xff]  ;;  %v12829_v53 = vld [vmem:[#allocation19_spill] sm:$0xff] }
 0x1e5   : > { %v1005_v38 = vmul.f32 0.00390625, %v925_v28  ;;  %996 = vadd.xlane.f32.xlu1 %v995_v56  ;;  %7357 = vrsqrt.f32 %v1035_v11  ;;  %v1096_v60 = vmul.f32 %v7350_v32, %v12826_v42  ;;  %v12827_v56 = vld [vmem:[#allocation17_spill] sm:$0xff] }
 0x1e6   : > { %v8755_v34 = vsub.f32 %v8390_v61, %v772_v55  ;;  %v8758_v31 = vsub.f32 %v8384_v57, %v772_v55  ;;  %v12828_v55 = vld [vmem:[#allocation16_spill] sm:$0xff] }
 0x1e7   : > { %v916_v23 = vpop.xlane.xlu0 %915  ;;  %v1037_v49 = vadd.f32 1e-06, %v1005_v38 }
 0x1e8   : > { %12823 = vst [vmem:[#allocation13_spill] sm:$0xff] %v8755_v34  ;;  %12824 = vst [vmem:[#allocation12_spill] sm:$0xff] %v8758_v31  ;;  %v898_v27 = vmul.f32 %v8755_v34, %v8755_v34  ;;  %v899_v63 = vmul.f32 %v8758_v31, %v8758_v31  ;;  %v1002_v10 = vmul.f32 0.00390625, %v916_v23 }
 0x1e9   : > { %v7352_v19 = vpop.eup %7351 }
 0x1ea   : > { %v1034_v61 = vadd.f32 1e-06, %v1002_v10  ;;  %v992_v47 = vadd.f32 %v899_v63, %v898_v27  ;;  %v1095_v57 = vmul.f32 %v7352_v19, %v12827_v56  ;;  %v1094_v28 = vmul.f32 %v7352_v19, %v12828_v55  ;;  %v7354_v23 = vpop.eup %7353 }
 0x1eb   : > { %v922_v26 = vpop.xlane.xlu0 %921  ;;  %v1101_v42 = vmul.f32 %v7354_v23, %v12829_v53 }
 0x1ec   : > { %7359 = vrsqrt.f32 %v1034_v61  ;;  %v1004_v34 = vmul.f32 0.00390625, %v922_v26  ;;  %993 = vadd.xlane.f32.xlu0 %v992_v47  ;;  %v1159_v52 = vpack.c.bf16 %v1097_v33, %v1095_v57  ;;  %v1158_v31 = vpack.c.bf16 %v1096_v60, %v1094_v28  ;;  %v12830_v33 = vld [vmem:[#allocation18_spill] sm:$0xff] }
 0x1ed   : > { %7361 = vrsqrt.f32 %v1037_v49  ;;  %v1100_v60 = vmul.f32 %v7354_v23, %v12830_v33 }
 0x1ee   : > { %v1036_v11 = vadd.f32 1e-06, %v1004_v34  ;;  %1426 = vmatprep.mubr.bf16.mxu0 %v1159_v52 }
 0x1ef   : > { %1427 = vmatmul.mubr.bf16.vlgmr.msra.gmra.mxu0 %v1158_v31  ;;  %v952_v38 = vpop.xlane.xlu0 %951 }
 0x1f0   : > { %7363 = vrsqrt.f32 %v1036_v11  ;;  %v1014_v32 = vmul.f32 0.00390625, %v952_v38 }
 0x1f1   : > { %v955_v10 = vpop.xlane.xlu1 %954  ;;  %v7356_v27 = vpop.eup %7355 }
 0x1f2   : > { %v1015_v63 = vmul.f32 0.00390625, %v955_v10  ;;  %v1046_v19 = vadd.f32 1e-06, %v1014_v32  ;;  %v1099_v61 = vmul.f32 %v7356_v27, %v8430_v29  ;;  %v1098_v26 = vmul.f32 %v7356_v27, %v8427_v6  ;;  %v7358_v55 = vpop.eup %7357 }
 0x1f3   : > { %v928_v49 = vpop.xlane.xlu0 %927  ;;  %v1105_v10 = vmul.f32 %v7358_v55, %v8436_v3 }
 0x1f4   : > { %v1047_v47 = vadd.f32 1e-06, %v1015_v63  ;;  %7365 = vrsqrt.f32 %v1046_v19  ;;  %v1006_v52 = vmul.f32 0.00390625, %v928_v49  ;;  %v1161_v34 = vpack.c.bf16 %v1101_v42, %v1099_v61 }
 0x1f5   : > { %v931_v31 = vpop.xlane.xlu1 %930  ;;  %v1160_v56 = vpack.c.bf16 %v1100_v60, %v1098_v26  ;;  %v1104_v42 = vmul.f32 %v7358_v55, %v8433_v25 }
 0x1f6   : > { %7367 = vrsqrt.f32 %v1047_v47  ;;  %v1007_v57 = vmul.f32 0.00390625, %v931_v31  ;;  %v1038_v28 = vadd.f32 1e-06, %v1006_v52  ;;  %1436 = vmatprep.mubr.bf16.mxu0 %v1161_v34  ;;  %v7157_v47 = vld [vmem:[%s8782_s24 + $0x70] ss:$8 sps:$4 sm:$0xff]  }
 0x1f7   : > { %1437 = vmatmul.mubr.bf16.gmra.mxu0 %v1160_v56  ;;  %v958_v29 = vpop.xlane.xlu0 %957  ;;  %6860 = vmatprep.subr.bf16.mxu1 %v7157_v47 }
 0x1f8   : > { %v1039_v11 = vadd.f32 1e-06, %v1007_v57  ;;  %7369 = vrsqrt.f32 %v1038_v28  ;;  %v1016_v6 = vmul.f32 0.00390625, %v958_v29 }
 0x1f9   : > { %v961_v23 = vpop.xlane.xlu1 %960  ;;  %v7360_v38 = vpop.eup %7359 }
 0x1fa   : > { %7371 = vrsqrt.f32 %v1039_v11  ;;  %v1017_v32 = vmul.f32 0.00390625, %v961_v23  ;;  %v1048_v27 = vadd.f32 1e-06, %v1016_v6  ;;  %v1103_v63 = vmul.f32 %v7360_v38, %v8466_v15  ;;  %v7362_v19 = vpop.eup %7361 }
 0x1fb   : > { %v1102_v53 = vmul.f32 %v7360_v38, %v8463_v24  ;;  %v934_v26 = vpop.xlane.xlu0 %933  ;;  %v1109_v31 = vmul.f32 %v7362_v19, %v8454_v1 }
 0x1fc   : > { %v1049_v61 = vadd.f32 1e-06, %v1017_v32  ;;  %7373 = vrsqrt.f32 %v1048_v27  ;;  %v1008_v3 = vmul.f32 0.00390625, %v934_v26  ;;  %v1163_v60 = vpack.c.bf16 %v1105_v10, %v1103_v63 }
 0x1fd   : > { %v937_v33 = vpop.xlane.xlu1 %936  ;;  %v1162_v15 = vpack.c.bf16 %v1104_v42, %v1102_v53  ;;  %v7364_v24 = vpop.eup %7363 }
 0x1fe   : > { %7375 = vrsqrt.f32 %v1049_v61  ;;  %v1009_v25 = vmul.f32 0.00390625, %v937_v33  ;;  %v1040_v49 = vadd.f32 1e-06, %v1008_v3  ;;  %1446 = vmatprep.mubr.bf16.mxu0 %v1163_v60  ;;  %v1107_v52 = vmul.f32 %v7364_v24, %v8488_v2  ;;  %v7159_v60 = vld [vmem:[%s8782_s24 + $0x60] ss:$8 sps:$4 sm:$0xff]  }
 0x1ff   : > { %1447 = vmatmul.mubr.bf16.gmra.mxu0 %v1162_v15  ;;  %v964_v56 = vpop.xlane.xlu0 %963  ;;  %v1106_v11 = vmul.f32 %v7364_v24, %v8485_v4  ;;  %v1108_v2 = vmul.f32 %v7362_v19, %v8451_v36 }
 0x200   : > { %v1041_v34 = vadd.f32 1e-06, %v1009_v25  ;;  %7377 = vrsqrt.f32 %v1040_v49  ;;  %v1018_v57 = vmul.f32 0.00390625, %v964_v56  ;;  %v1165_v28 = vpack.c.bf16 %v1109_v31, %v1107_v52 }
 0x201   : > { %v967_v55 = vpop.xlane.xlu1 %966  ;;  %v7366_v29 = vpop.eup %7365  ;;  %v1164_v61 = vpack.c.bf16 %v1108_v2, %v1106_v11 }
 0x202   : > { %7379 = vrsqrt.f32 %v1041_v34  ;;  %v1019_v6 = vmul.f32 0.00390625, %v967_v55  ;;  %v1050_v38 = vadd.f32 1e-06, %v1018_v57  ;;  %1456 = vmatprep.mubr.bf16.mxu0 %v1165_v28  ;;  %v1127_v1 = vmul.f32 %v7366_v29, %v8504_v9  ;;  %v12831_v55 = vld [vmem:[#allocation20_spill] sm:$0xff] }
 0x203   : > { %v7368_v23 = vpop.eup %7367  ;;  %v940_v10 = vpop.xlane.xlu0 %939  ;;  %v1126_v63 = vmul.f32 %v7366_v29, %v8501_v21 }
 0x204   : > { %v1051_v32 = vadd.f32 1e-06, %v1019_v6  ;;  %v1129_v27 = vmul.f32 %v7368_v23, %v8532_v45  ;;  %v1128_v53 = vmul.f32 %v7368_v23, %v8529_v16  ;;  %7381 = vrsqrt.f32 %v1050_v38 }
 0x205   : > { %v1010_v4 = vmul.f32 0.00390625, %v940_v10  ;;  %v943_v42 = vpop.xlane.xlu1 %942  ;;  %v7370_v26 = vpop.eup %7369 }
 0x206   : > { %7383 = vrsqrt.f32 %v1051_v32  ;;  %v1011_v3 = vmul.f32 0.00390625, %v943_v42  ;;  %v1175_v33 = vpack.c.bf16 %v1129_v27, %v1127_v1  ;;  %v1174_v36 = vpack.c.bf16 %v1128_v53, %v1126_v63  ;;  %v7161_v63 = vld [vmem:[%s8782_s24 + $0x50] ss:$8 sps:$4 sm:$0xff]  }
 0x207   : > { %v7372_v19 = vpop.eup %7371  ;;  %v1042_v9 = vadd.f32 1e-06, %v1010_v4  ;;  %1457 = vmatmul.mubr.bf16.gmra.mxu0 %v1164_v61  ;;  %v946_v24 = vpop.xlane.xlu0 %945  ;;  %v1111_v21 = vmul.f32 %v7370_v26, %v8516_v43  ;;  %v1110_v28 = vmul.f32 %v7370_v26, %v12831_v55  ;;  %v12832_v61 = vld [vmem:[#allocation22_spill] sm:$0xff] }
 0x208   : > { %v1043_v15 = vadd.f32 1e-06, %v1011_v3  ;;  %1506 = vmatprep.mubr.bf16.mxu1 %v1175_v33  ;;  %v1113_v16 = vmul.f32 %v7372_v19, %v8526_v0  ;;  %v1012_v45 = vmul.f32 0.00390625, %v946_v24  ;;  %v1112_v49 = vmul.f32 %v7372_v19, %v8523_v44 }
 0x209   : > { %7385 = vrsqrt.f32 %v1042_v9  ;;  %v949_v25 = vpop.xlane.xlu1 %948  ;;  %1507 = vmatmul.mubr.bf16.vlgmr.msra.gmra.mxu1 %v1174_v36  ;;  %v7374_v52 = vpop.eup %7373 }
 0x20a   : > { %7387 = vrsqrt.f32 %v1043_v15  ;;  %v1013_v31 = vmul.f32 0.00390625, %v949_v25  ;;  %v1167_v34 = vpack.c.bf16 %v1113_v16, %v1111_v21  ;;  %6861 = vmatpush3.bf16.xpose.msra.mxu1 %v7157_v47  ;;  %v1044_v57 = vadd.f32 1e-06, %v1012_v45  ;;  %v12833_v15 = vld [vmem:[#allocation21_spill] sm:$0xff] }
 0x20b   : > { %v7376_v56 = vpop.eup %7375  ;;  %v1131_v11 = vmul.f32 %v7374_v52, %v8559_v20  ;;  %6862 = vmatprep.subr.bf16.mxu1 %v7159_v60  ;;  %v970_v0 = vpop.xlane.xlu0 %969  ;;  %v1130_v44 = vmul.f32 %v7374_v52, %v8556_v18  ;;  %v1166_v38 = vpack.c.bf16 %v1112_v49, %v1110_v28 }
 0x20c   : > { %v1045_v43 = vadd.f32 1e-06, %v1013_v31  ;;  %1466 = vmatprep.mubr.bf16.mxu0 %v1167_v34  ;;  %v1133_v29 = vmul.f32 %v7376_v56, %v8584_v48  ;;  %v1132_v6 = vmul.f32 %v7376_v56, %v8581_v22  ;;  %7389 = vrsqrt.f32 %v1044_v57 }
 0x20d   : > { %v1020_v23 = vmul.f32 0.00390625, %v970_v0  ;;  %v973_v47 = vpop.xlane.xlu1 %972  ;;  %v7378_v2 = vpop.eup %7377 }
 0x20e   : > { %7391 = vrsqrt.f32 %v1045_v43  ;;  %v1021_v1 = vmul.f32 0.00390625, %v973_v47  ;;  %v1177_v32 = vpack.c.bf16 %v1133_v29, %v1131_v11  ;;  %v1176_v20 = vpack.c.bf16 %v1132_v6, %v1130_v44 }
 0x20f   : > { %v7380_v10 = vpop.eup %7379  ;;  %v1052_v27 = vadd.f32 1e-06, %v1020_v23  ;;  %1467 = vmatmul.mubr.bf16.gmra.mxu0 %v1166_v38  ;;  %v976_v4 = vpop.xlane.xlu0 %975  ;;  %v1115_v18 = vmul.f32 %v7378_v2, %v8568_v46  ;;  %v1114_v24 = vmul.f32 %v7378_v2, %v12833_v15  ;;  %v7165_v2 = vld [vmem:[%s8782_s24 + $0x30] ss:$8 sps:$4 sm:$0xff]  }
 0x210   : > { %v1053_v53 = vadd.f32 1e-06, %v1021_v1  ;;  %1516 = vmatprep.mubr.bf16.mxu1 %v1177_v32  ;;  %v1117_v22 = vmul.f32 %v7380_v10, %v8574_v7  ;;  %v1022_v48 = vmul.f32 0.00390625, %v976_v4  ;;  %v1116_v26 = vmul.f32 %v7380_v10, %v12832_v61  ;;  %v12834_v32 = vld [vmem:[#allocation3_spill] sm:$0xff] }
 0x211   : > { %7393 = vrsqrt.f32 %v1052_v27  ;;  %v979_v42 = vpop.xlane.xlu1 %978  ;;  %1517 = vmatmul.mubr.bf16.gmra.mxu1 %v1176_v20  ;;  %v7382_v3 = vpop.eup %7381  ;;  %v12835_v27 = vld [vmem:[#allocation24_spill] sm:$0xff]  ;;  %v12836_v4 = vld [vmem:[#allocation23_spill] sm:$0xff] }
 0x212   : > { %7395 = vrsqrt.f32 %v1053_v53  ;;  %v1023_v33 = vmul.f32 0.00390625, %v979_v42  ;;  %v1169_v36 = vpack.c.bf16 %v1117_v22, %v1115_v18  ;;  %6863 = vmatpush3.bf16.xpose.msra.mxu1 %v7159_v60  ;;  %v1054_v9 = vadd.f32 1e-06, %v1022_v48  ;;  %v7167_v42 = vld [vmem:[%s8782_s24 + $0x20] ss:$8 sps:$4 sm:$0xff]  }
 0x213   : > { %v7384_v19 = vpop.eup %7383  ;;  %v1135_v21 = vmul.f32 %v7382_v3, %v8614_v50  ;;  %6864 = vmatprep.subr.bf16.mxu1 %v7161_v63  ;;  %v1134_v16 = vmul.f32 %v7382_v3, %v8611_v14  ;;  %v1168_v49 = vpack.c.bf16 %v1116_v26, %v1114_v24  ;;  %v7163_v50 = vld [vmem:[%s8782_s24 + $0x40] ss:$8 sps:$4 sm:$0xff]   ;;  %v12839_v24 = vld [vmem:[#allocation5_spill] sm:$0xff] }
 0x214   : > { %v1055_v46 = vadd.f32 1e-06, %v1023_v33  ;;  %1476 = vmatprep.mubr.bf16.mxu0 %v1169_v36  ;;  %v1137_v7 = vmul.f32 %v7384_v19, %v8630_v8  ;;  %v1136_v45 = vmul.f32 %v7384_v19, %v8627_v37  ;;  %7397 = vrsqrt.f32 %v1054_v9  ;;  %v12837_v26 = vld [vmem:[#allocation2_spill] sm:$0xff]  ;;  %v12838_v9 = vld [vmem:[#allocation4_spill] sm:$0xff] }
 0x215   : > { %v982_v25 = vpop.xlane.xlu0 %981 }
 0x216   : > { %v7386_v60 = vpop.eup %7385  ;;  %7399 = vrsqrt.f32 %v1055_v46  ;;  %v1024_v52 = vmul.f32 0.00390625, %v982_v25  ;;  %v1179_v31 = vpack.c.bf16 %v1137_v7, %v1135_v21  ;;  %v1178_v34 = vpack.c.bf16 %v1136_v45, %v1134_v16  ;;  %v7171_v7 = vld [vmem:[%s8782_s24] ss:$8 sps:$4 sm:$0xff]  }
 0x217   : > { %v7388_v56 = vpop.eup %7387  ;;  %1477 = vmatmul.mubr.bf16.gmra.mxu0 %v1168_v49  ;;  %v1119_v55 = vmul.f32 %v7386_v60, %v8608_v12  ;;  %v1118_v29 = vmul.f32 %v7386_v60, %v8605_v51 }
 0x218   : > { %v1056_v57 = vadd.f32 1e-06, %v1024_v52  ;;  %1526 = vmatprep.mubr.bf16.mxu1 %v1179_v31  ;;  %v1121_v8 = vmul.f32 %v7388_v56, %v8624_v58  ;;  %v1120_v43 = vmul.f32 %v7388_v56, %v8621_v59 }
 0x219   : > { %v985_v14 = vpop.xlane.xlu1 %984  ;;  %1527 = vmatmul.mubr.bf16.gmra.mxu1 %v1178_v34  ;;  %v7390_v37 = vpop.eup %7389 }
 0x21a   : > { %v1025_v28 = vmul.f32 0.00390625, %v985_v14  ;;  %v1171_v11 = vpack.c.bf16 %v1121_v8, %v1119_v55  ;;  %6865 = vmatpush3.bf16.xpose.msra.mxu1 %v7161_v63  ;;  %7401 = vrsqrt.f32 %v1056_v57  ;;  %v1123_v12 = vmul.f32 %v7390_v37, %v8644_v62  ;;  %v12840_v8 = vld [vmem:[#allocation8_spill] sm:$0xff] }
 0x21b   : > { %v7392_v0 = vpop.eup %7391  ;;  %6866 = vmatprep.subr.bf16.mxu1 %v7163_v50  ;;  %v1170_v23 = vpack.c.bf16 %v1120_v43, %v1118_v29  ;;  %v1122_v18 = vmul.f32 %v7390_v37, %v12836_v4  ;;  %v12841_v37 = vld [vmem:[#allocation6_spill] sm:$0xff] }
 0x21c   : > { %v1057_v44 = vadd.f32 1e-06, %v1025_v28  ;;  %1486 = vmatprep.mubr.bf16.mxu0 %v1171_v11  ;;  %v1125_v58 = vmul.f32 %v7392_v0, %v8654_v39  ;;  %v1124_v63 = vmul.f32 %v7392_v0, %v12835_v27  ;;  %v12842_v11 = vld [vmem:[#allocation9_spill] sm:$0xff]  ;;  %v12843_v0 = vld [vmem:[#allocation7_spill] sm:$0xff]  ;;  %v1222_v4 = vld [vmem:[%s12410_s6] sm:$0x3] }
 0x21e   : > { %v7394_v6 = vpop.eup %7393  ;;  %7403 = vrsqrt.f32 %v1057_v44  ;;  %v1173_v47 = vpack.c.bf16 %v1125_v58, %v1123_v12 }
 0x21f   : > { %v7396_v38 = vpop.eup %7395  ;;  %1487 = vmatmul.mubr.bf16.gmra.mxu0 %v1170_v23  ;;  %v1139_v59 = vmul.f32 %v7394_v6, %v8668_v54  ;;  %v1138_v51 = vmul.f32 %v7394_v6, %v8665_v40  ;;  %v1172_v40 = vpack.c.bf16 %v1124_v63, %v1122_v18  ;;  %v12844_v23 = vld [vmem:[#allocation12_spill] sm:$0xff] }
 0x220   : > { %v1141_v1 = vmul.f32 %v7396_v38, %v8674_v17  ;;  %v1140_v20 = vmul.f32 %v7396_v38, %v12834_v32  ;;  %1496 = vmatprep.mubr.bf16.mxu0 %v1173_v47  ;;  %v12845_v38 = vld [vmem:[#allocation10_spill] sm:$0xff] }
 0x221   : > { %v7398_v62 = vpop.eup %7397 }
 0x222   : > { %v1181_v10 = vpack.c.bf16 %v1141_v1, %v1139_v59  ;;  %v1180_v39 = vpack.c.bf16 %v1140_v20, %v1138_v51  ;;  %6867 = vmatpush3.bf16.xpose.msra.mxu1 %v7163_v50  ;;  %v1143_v54 = vmul.f32 %v7398_v62, %v8688_v30  ;;  %v1142_v3 = vmul.f32 %v7398_v62, %v12837_v26  ;;  %v12846_v59 = vld [vmem:[#allocation13_spill] sm:$0xff]  ;;  %v12847_v51 = vld [vmem:[#allocation11_spill] sm:$0xff] }
 0x223   : > { %v7400_v53 = vpop.eup %7399  ;;  %6868 = vmatprep.subr.bf16.mxu1 %v7165_v2 }
 0x224   : > { %1536 = vmatprep.mubr.bf16.mxu1 %v1181_v10  ;;  %v1145_v17 = vmul.f32 %v7400_v53, %v8698_v35  ;;  %v1144_v48 = vmul.f32 %v7400_v53, %v8695_v5  ;;  %v7169_v5 = vld [vmem:[%s8782_s24 + $0x10] ss:$8 sps:$4 sm:$0xff]  }
 0x225   : > { %1537 = vmatmul.mubr.bf16.gmra.mxu1 %v1180_v39  ;;  %v7173_v10 = vld [vmem:[%s8850_s28 + $0xf0] ss:$8 sps:$4 sm:$0xff]   ;;  %v1224_v39 = vlaneseq }
 0x226   : > { %v1183_v22 = vpack.c.bf16 %v1145_v17, %v1143_v54  ;;  %v1182_v36 = vpack.c.bf16 %v1144_v48, %v1142_v3 }
 0x227   : > { %1497 = vmatmul.mubr.bf16.gmra.mxu0 %v1172_v40  ;;  %v7402_v61 = vpop.eup %7401  ;;  %v8854_v27 = vshrl.u32 %v1224_v39, 7 }
 0x228   : > { %1546 = vmatprep.mubr.bf16.mxu1 %v1183_v22  ;;  %v1147_v30 = vmul.f32 %v7402_v61, %v8708_v41  ;;  %v1146_v21 = vmul.f32 %v7402_v61, %v12839_v24 }
 0x229   : > { %12848 = vst [vmem:[#allocation15_spill] sm:$0xff] %v8854_v27  ;;  %v12449_v63 = vsub.s32 1, %v8854_v27  ;;  %v12450_v53 = vsub.s32 0, %v8854_v27 }
 0x22a   : > { %6869 = vmatpush3.bf16.xpose.msra.mxu1 %v7165_v2 }
 0x22b   : > { %v7404_v33 = vpop.eup %7403  ;;  %6870 = vmatprep.subr.bf16.mxu1 %v7167_v42  ;;  %v8863_v18 = vrot.slane %v1222_v4, %v12449_v63  ;;  %v8867_v17 = vrot.slane %v1222_v4, %v12450_v53  ;;  %v7231_v63 = vld [vmem:[%s9309_s18 + $0x60] ss:$8 sps:$4 sm:$0xff]  }
 0x22c   : > { %v1149_v35 = vmul.f32 %v7404_v33, %v8718_v13  ;;  %v1148_v15 = vmul.f32 %v7404_v33, %v12838_v9 }
 0x22d   : > { %1547 = vmatmul.mubr.bf16.gmra.mxu1 %v1182_v36 }
 0x22e   : > { %v1185_v19 = vpack.c.bf16 %v1149_v35, %v1147_v30  ;;  %v1184_v46 = vpack.c.bf16 %v1148_v15, %v1146_v21  ;;  %v7175_v21 = vld [vmem:[%s8850_s28 + $0x70] ss:$8 sps:$4 sm:$0xff]  }
 0x230   : > { %1556 = vmatprep.mubr.bf16.mxu1 %v1185_v19 }
 0x232   : > { %6871 = vmatpush3.bf16.xpose.msra.mxu1 %v7167_v42 }
 0x233   : > { %6872 = vmatprep.subr.bf16.mxu1 %v7169_v5 }
 0x235   : > { %1557 = vmatmul.mubr.bf16.gmra.mxu1 %v1184_v46 }
 0x23a   : > { %6873 = vmatpush3.bf16.xpose.msra.mxu1 %v7169_v5 }
 0x23b   : > { %6874 = vmatprep.subr.bf16.mxu1 %v7171_v7 }
 0x242   : > { %6875 = vmatpush3.bf16.xpose.msra.mxu1 %v7171_v7 }
 0x243   : > { %6468 = vmatprep.subr.bf16.mxu1 %v7173_v10 }
 0x266   : > { %v991_v16 = vpop.xlane.xlu1 %990 }
 0x267   : > { %v1027_v41 = vmul.f32 0.00390625, %v991_v16  ;;  %v7177_v16 = vld [vmem:[%s8850_s28 + $0xe0] ss:$8 sps:$4 sm:$0xff]  }
 0x269   : > { %v1059_v45 = vadd.f32 1e-06, %v1027_v41 }
 0x26b   : > { %7405 = vrsqrt.f32 %v1059_v45 }
 0x26d   : > { %v988_v13 = vpop.xlane.xlu0 %987 }
 0x26e   : > { %v1026_v25 = vmul.f32 0.00390625, %v988_v13  ;;  %v997_v49 = vpop.xlane.xlu1 %996 }
 0x26f   : > { %v1029_v52 = vmul.f32 0.00390625, %v997_v49 }
 0x270   : > { %v1058_v60 = vadd.f32 1e-06, %v1026_v25 }
 0x271   : > { %v1061_v31 = vadd.f32 1e-06, %v1029_v52 }
 0x272   : > { %7407 = vrsqrt.f32 %v1058_v60 }
 0x273   : > { %7409 = vrsqrt.f32 %v1061_v31 }
 0x275   : > { %v994_v34 = vpop.xlane.xlu0 %993 }
 0x276   : > { %v1028_v56 = vmul.f32 0.00390625, %v994_v34  ;;  %v7179_v34 = vld [vmem:[%s8850_s28 + $0x60] ss:$8 sps:$4 sm:$0xff]  }
 0x278   : > { %v1060_v50 = vadd.f32 1e-06, %v1028_v56  ;;  %v7406_v57 = vpop.eup %7405 }
 0x279   : > { %v1153_v28 = vmul.f32 %v7406_v57, %v12841_v37  ;;  %v1152_v29 = vmul.f32 %v7406_v57, %v12843_v0  ;;  %v7181_v57 = vld [vmem:[%s8850_s28 + $0xd0] ss:$8 sps:$4 sm:$0xff]  }
 0x27a   : > { %7411 = vrsqrt.f32 %v1060_v50 }
 0x27f   : > { %v7408_v55 = vpop.eup %7407 }
 0x280   : > { %v1151_v14 = vmul.f32 %v7408_v55, %v12840_v8  ;;  %v1150_v43 = vmul.f32 %v7408_v55, %v12842_v11  ;;  %v7410_v58 = vpop.eup %7409 }
 0x281   : > { %v1157_v2 = vmul.f32 %v7410_v58, %v12845_v38  ;;  %v1156_v32 = vmul.f32 %v7410_v58, %v12847_v51 }
 0x282   : > { %v1187_v44 = vpack.c.bf16 %v1153_v28, %v1151_v14  ;;  %v1186_v12 = vpack.c.bf16 %v1152_v29, %v1150_v43 }
 0x284   : > { %1566 = vmatprep.mubr.bf16.mxu1 %v1187_v44 }
 0x285   : > { %1567 = vmatmul.mubr.bf16.gmra.mxu1 %v1186_v12 }
 0x287   : > { %v7412_v6 = vpop.eup %7411 }
 0x288   : > { %v1155_v47 = vmul.f32 %v7412_v6, %v12844_v23  ;;  %v1154_v1 = vmul.f32 %v7412_v6, %v12846_v59  ;;  %v7183_v6 = vld [vmem:[%s8850_s28 + $0x50] ss:$8 sps:$4 sm:$0xff]  }
 0x28a   : > { %v1189_v20 = vpack.c.bf16 %v1157_v2, %v1155_v47  ;;  %v1188_v62 = vpack.c.bf16 %v1156_v32, %v1154_v1  ;;  %v7185_v2 = vld [vmem:[%s8850_s28 + $0xc0] ss:$8 sps:$4 sm:$0xff]  }
 0x28c   : > { %1576 = vmatprep.mubr.bf16.mxu1 %v1189_v20 }
 0x28d   : > { %1577 = vmatmul.mubr.bf16.gmra.mxu1 %v1188_v62 }
 0x2af   : > { %v1428_v54 = vpop.f32.mrf.mxu0 }
 0x2b0   : > { %v1429_v42 = vadd.f32 %v1428_v54, %v8867_v17 }
 0x2b1   : > { %v1430_v40 = vpop.f32.mrf.mxu0 }
 0x2b2   : > { %v1431_v22 = vadd.f32 %v1430_v40, %v8863_v18 }
 0x2b3   : > { %v1432_v48 = vpop.f32.mrf.mxu0 }
 0x2b4   : > { %v1433_v61 = vadd.f32 %v1432_v48, %v8867_v17 }
 0x2b5   : > { %v1434_v26 = vpop.f32.mrf.mxu0 }
 0x2b6   : > { %v8872_v3 = vpack.c.bf16 %v1433_v61, %v1429_v42  ;;  %v1435_v33 = vadd.f32 %v1434_v26, %v8863_v18  ;;  %v7187_v26 = vld [vmem:[%s8850_s28 + $0x40] ss:$8 sps:$4 sm:$0xff]  }
 0x2b7   : > { %v1438_v36 = vpop.f32.mrf.mxu0 }
 0x2b8   : > { %v8875_v30 = vpack.c.bf16 %v1435_v33, %v1431_v22  ;;  %6876 = vmatprep.mubr.bf16.mxu1 %v8872_v3  ;;  %v1439_v15 = vadd.f32 %v1438_v36, %v8867_v17 }
 0x2b9   : > { %v1440_v35 = vpop.f32.mrf.mxu0 }
 0x2ba   : > { %v1441_v19 = vadd.f32 %v1440_v35, %v8863_v18 }
 0x2bb   : > { %v1442_v9 = vpop.f32.mrf.mxu0 }
 0x2bc   : > { %v1443_v5 = vadd.f32 %v1442_v9, %v8867_v17 }
 0x2bd   : > { %v1444_v24 = vpop.f32.mrf.mxu0 }
 0x2be   : > { %v8882_v46 = vpack.c.bf16 %v1443_v5, %v1439_v15  ;;  %v1445_v7 = vadd.f32 %v1444_v24, %v8863_v18 }
 0x2bf   : > { %v1448_v41 = vpop.f32.mrf.mxu0 }
 0x2c0   : > { %v8886_v45 = vpack.c.bf16 %v1445_v7, %v1441_v19  ;;  %6877 = vmatmul.mubr.bf16.vlgmr.msra.gmra.mxu1 %v8882_v46  ;;  %v1449_v60 = vadd.f32 %v1448_v41, %v8867_v17  ;;  %v7189_v19 = vld [vmem:[%s8850_s28 + $0xb0] ss:$8 sps:$4 sm:$0xff]  }
 0x2c1   : > { %v1450_v13 = vpop.f32.mrf.mxu0  ;;  %6469 = vmatpush3.bf16.xpose.msra.mxu1 %v7175_v21 }
 0x2c2   : > { %v1451_v25 = vadd.f32 %v1450_v13, %v8863_v18  ;;  %6470 = vmatprep.subr.bf16.mxu1 %v7177_v16 }
 0x2c3   : > { %v1452_v49 = vpop.f32.mrf.mxu0 }
 0x2c4   : > { %v1453_v52 = vadd.f32 %v1452_v49, %v8867_v17 }
 0x2c5   : > { %v1454_v31 = vpop.f32.mrf.mxu0 }
 0x2c6   : > { %v8893_v56 = vpack.c.bf16 %v1453_v52, %v1449_v60  ;;  %v1455_v50 = vadd.f32 %v1454_v31, %v8863_v18 }
 0x2c7   : > { %v1458_v55 = vpop.f32.mrf.mxu0 }
 0x2c8   : > { %v8897_v8 = vpack.c.bf16 %v1455_v50, %v1451_v25  ;;  %6880 = vmatprep.mubr.bf16.mxu1 %v8893_v56  ;;  %v1459_v29 = vadd.f32 %v1458_v55, %v8867_v17 }
 0x2c9   : > { %v8900_v14 = vpop.f32.mrf.mxu1  ;;  %v1460_v37 = vpop.f32.mrf.mxu0  ;;  %6471 = vmatpush3.bf16.xpose.msra.mxu1 %v7179_v34  ;;  %v7191_v34 = vld [vmem:[%s8850_s28 + $0x30] ss:$8 sps:$4 sm:$0xff]  }
 0x2ca   : > { %v1461_v28 = vadd.f32 %v1460_v37, %v8863_v18  ;;  %6472 = vmatprep.subr.bf16.mxu1 %v7181_v57  ;;  %v7193_v37 = vld [vmem:[%s8850_s28 + $0xa0] ss:$8 sps:$4 sm:$0xff]  }
 0x2cb   : > { %v1510_v11 = vpop.f32.mrf.mxu1  ;;  %v1462_v43 = vpop.f32.mrf.mxu0 }
 0x2cc   : > { %v1511_v0 = vadd.f32 %v1510_v11, %v8863_v18  ;;  %v1463_v44 = vadd.f32 %v1462_v43, %v8867_v17 }
 0x2cd   : > { %v8906_v12 = vpop.f32.mrf.mxu1  ;;  %v1464_v58 = vpop.f32.mrf.mxu0 }
 0x2ce   : > { %v8909_v23 = vpack.c.bf16 %v1463_v44, %v1459_v29  ;;  %v1465_v47 = vadd.f32 %v1464_v58, %v8863_v18 }
 0x2cf   : > { %v1514_v38 = vpop.f32.mrf.mxu1  ;;  %v1468_v59 = vpop.f32.mrf.mxu0 }
 0x2d0   : > { %v1515_v1 = vadd.f32 %v1514_v38, %v8863_v18  ;;  %v8914_v51 = vpack.c.bf16 %v1465_v47, %v1461_v28  ;;  %6881 = vmatmul.mubr.bf16.gmra.mxu1 %v8909_v23  ;;  %v1469_v22 = vadd.f32 %v1468_v59, %v8867_v17  ;;  %v7195_v59 = vld [vmem:[%s8850_s28 + $0x20] ss:$8 sps:$4 sm:$0xff]  }
 0x2d1   : > { %v8917_v32 = vpop.f32.mrf.mxu1  ;;  %v1470_v62 = vpop.f32.mrf.mxu0  ;;  %6473 = vmatpush3.bf16.xpose.msra.mxu1 %v7183_v6 }
 0x2d2   : > { %v8919_v20 = vpack.c.bf16 %v1515_v1, %v1511_v0  ;;  %v1471_v10 = vadd.f32 %v1470_v62, %v8863_v18  ;;  %6474 = vmatprep.subr.bf16.mxu1 %v7185_v2 }
 0x2d3   : > { %v1520_v4 = vpop.f32.mrf.mxu1  ;;  %v1472_v54 = vpop.f32.mrf.mxu0 }
 0x2d4   : > { %v1521_v40 = vadd.f32 %v1520_v4, %v8863_v18  ;;  %v1473_v48 = vadd.f32 %v1472_v54, %v8867_v17  ;;  %v7197_v4 = vld [vmem:[%s8850_s28 + $0x90] ss:$8 sps:$4 sm:$0xff]  }
 0x2d5   : > { %v8925_v42 = vpop.f32.mrf.mxu1  ;;  %v1474_v61 = vpop.f32.mrf.mxu0 }
 0x2d6   : > { %v8928_v33 = vpack.c.bf16 %v1473_v48, %v1469_v22  ;;  %v1475_v36 = vadd.f32 %v1474_v61, %v8863_v18 }
 0x2d7   : > { %v1524_v35 = vpop.f32.mrf.mxu1  ;;  %v1478_v9 = vpop.f32.mrf.mxu0 }
 0x2d8   : > { %v1525_v15 = vadd.f32 %v1524_v35, %v8863_v18  ;;  %v8933_v5 = vpack.c.bf16 %v1475_v36, %v1471_v10  ;;  %6884 = vmatprep.mubr.bf16.mxu1 %v8928_v33  ;;  %v1479_v49 = vadd.f32 %v1478_v9, %v8867_v17  ;;  %v1513_v35 = vadd.f32 %v8906_v12, %v8867_v17 }
 0x2d9   : > { %v8936_v24 = vpop.f32.mrf.mxu1  ;;  %v1480_v7 = vpop.f32.mrf.mxu0  ;;  %6475 = vmatpush3.bf16.xpose.msra.mxu1 %v7187_v26 }
 0x2da   : > { %v8938_v21 = vpack.c.bf16 %v1525_v15, %v1521_v40  ;;  %v1481_v16 = vadd.f32 %v1480_v7, %v8863_v18  ;;  %6476 = vmatprep.subr.bf16.mxu1 %v7189_v19 }
 0x2db   : > { %v1530_v41 = vpop.f32.mrf.mxu1  ;;  %v1482_v13 = vpop.f32.mrf.mxu0 }
 0x2dc   : > { %v1531_v25 = vadd.f32 %v1530_v41, %v8863_v18  ;;  %v1483_v60 = vadd.f32 %v1482_v13, %v8867_v17  ;;  %v1509_v41 = vadd.f32 %v8900_v14, %v8867_v17 }
 0x2dd   : > { %v1532_v52 = vpop.f32.mrf.mxu1  ;;  %v1484_v31 = vpop.f32.mrf.mxu0 }
 0x2de   : > { %v8945_v50 = vpack.c.bf16 %v1483_v60, %v1479_v49  ;;  %v1485_v57 = vadd.f32 %v1484_v31, %v8863_v18  ;;  %v7199_v49 = vld [vmem:[%s8850_s28 + $0x10] ss:$8 sps:$4 sm:$0xff]  }
 0x2df   : > { %v1534_v55 = vpop.f32.mrf.mxu1  ;;  %v1488_v28 = vpop.f32.mrf.mxu0 }
 0x2e0   : > { %v1535_v11 = vadd.f32 %v1534_v55, %v8863_v18  ;;  %v8950_v43 = vpack.c.bf16 %v1485_v57, %v1481_v16  ;;  %6885 = vmatmul.mubr.bf16.gmra.mxu1 %v8945_v50  ;;  %v1489_v6 = vadd.f32 %v1488_v28, %v8867_v17  ;;  %v8982_v57 = vpack.c.bf16 %v1513_v35, %v1509_v41 }
 0x2e1   : > { %v1490_v29 = vpop.f32.mrf.mxu0  ;;  %6477 = vmatpush3.bf16.xpose.msra.mxu1 %v7191_v34  ;;  %v7201_v34 = vld [vmem:[%s8850_s28 + $0x80] ss:$8 sps:$4 sm:$0xff]   ;;  %v1523_v28 = vadd.f32 %v8925_v42, %v8867_v17  ;;  %v7205_v42 = vld [vmem:[%s8782_s24 + $0x74] ss:$8 sps:$4 sm:$0xff]  }
 0x2e2   : > { %v8953_v0 = vpack.c.bf16 %v1535_v11, %v1531_v25  ;;  %v1491_v44 = vadd.f32 %v1490_v29, %v8863_v18  ;;  %6478 = vmatprep.subr.bf16.mxu1 %v7193_v37  ;;  %v1533_v29 = vadd.f32 %v1532_v52, %v8867_v17 }
 0x2e3   : > { %v1492_v58 = vpop.f32.mrf.mxu0 }
 0x2e4   : > { %v1493_v47 = vadd.f32 %v1492_v58, %v8867_v17  ;;  %v1519_v58 = vadd.f32 %v8917_v32, %v8867_v17 }
 0x2e5   : > { %v1538_v38 = vpop.f32.mrf.mxu1  ;;  %v1494_v2 = vpop.f32.mrf.mxu0 }
 0x2e6   : > { %v8959_v1 = vpack.c.bf16 %v1493_v47, %v1489_v6  ;;  %v1495_v62 = vadd.f32 %v1494_v2, %v8863_v18  ;;  %v1529_v47 = vadd.f32 %v8936_v24, %v8867_v17 }
 0x2e7   : > { %v1540_v10 = vpop.f32.mrf.mxu1  ;;  %v1498_v54 = vpop.f32.mrf.mxu0 }
 0x2e8   : > { %v1541_v40 = vadd.f32 %v1540_v10, %v8863_v18  ;;  %v8964_v22 = vpack.c.bf16 %v1495_v62, %v1491_v44  ;;  %6888 = vmatprep.mubr.bf16.mxu1 %v8959_v1  ;;  %v1499_v15 = vadd.f32 %v1498_v54, %v8867_v17  ;;  %v9000_v62 = vpack.c.bf16 %v1523_v28, %v1519_v58 }
 0x2e9   : > { %v1542_v48 = vpop.f32.mrf.mxu1  ;;  %v1500_v61 = vpop.f32.mrf.mxu0  ;;  %6479 = vmatpush3.bf16.xpose.msra.mxu1 %v7195_v59  ;;  %v7203_v59 = vld [vmem:[%s8850_s28] ss:$8 sps:$4 sm:$0xff]  }
 0x2ea   : > { %v1501_v26 = vadd.f32 %v1500_v61, %v8863_v18  ;;  %6480 = vmatprep.subr.bf16.mxu1 %v7197_v4  ;;  %v9003_v4 = vpack.c.bf16 %v1533_v29, %v1529_v47  ;;  %v1543_v32 = vadd.f32 %v1542_v48, %v8867_v17 }
 0x2eb   : > { %v1544_v36 = vpop.f32.mrf.mxu1  ;;  %v1502_v19 = vpop.f32.mrf.mxu0 }
 0x2ec   : > { %v1545_v9 = vadd.f32 %v1544_v36, %v8863_v18  ;;  %v1503_v7 = vadd.f32 %v1502_v19, %v8867_v17 }
 0x2ed   : > { %v1548_v16 = vpop.f32.mrf.mxu1  ;;  %v1504_v25 = vpop.f32.mrf.mxu0 }
 0x2ee   : > { %v8975_v13 = vpack.c.bf16 %v1545_v9, %v1541_v40  ;;  %v8978_v60 = vpack.c.bf16 %v1503_v7, %v1499_v15  ;;  %v1505_v31 = vadd.f32 %v1504_v25, %v8863_v18  ;;  %v1549_v36 = vadd.f32 %v1548_v16, %v8867_v17 }
 0x2ef   : > { %v1550_v12 = vpop.f32.mrf.mxu1 }
 0x2f0   : > { %v1551_v55 = vadd.f32 %v1550_v12, %v8863_v18  ;;  %v8985_v37 = vpack.c.bf16 %v1505_v31, %v1501_v26  ;;  %6889 = vmatmul.mubr.bf16.gmra.mxu1 %v8978_v60  ;;  %v1539_v26 = vadd.f32 %v1538_v38, %v8867_v17 }
 0x2f1   : > { %v1552_v14 = vpop.f32.mrf.mxu1  ;;  %6892 = vmatprep.mubr.bf16.mxu1 %v8982_v57  ;;  %6481 = vmatpush3.bf16.xpose.msra.mxu1 %v7199_v49 }
 0x2f2   : > { %6482 = vmatprep.subr.bf16.mxu1 %v7201_v34  ;;  %v1553_v40 = vadd.f32 %v1552_v14, %v8867_v17  ;;  %v9015_v19 = vpack.c.bf16 %v1543_v32, %v1539_v26 }
 0x2f3   : > { %v1554_v11 = vpop.f32.mrf.mxu1 }
 0x2f4   : > { %v1555_v44 = vadd.f32 %v1554_v11, %v8863_v18  ;;  %v9017_v9 = vpack.c.bf16 %v1553_v40, %v1549_v36  ;;  %v7211_v40 = vld [vmem:[%s8782_s24 + $0x14] ss:$8 sps:$4 sm:$0xff]   ;;  %v7212_v36 = vld [vmem:[%s8782_s24 + $0x4] ss:$8 sps:$4 sm:$0xff]  }
 0x2f5   : > { %v1558_v6 = vpop.f32.mrf.mxu1 }
 0x2f6   : > { %v8997_v2 = vpack.c.bf16 %v1555_v44, %v1551_v55  ;;  %v1559_v15 = vadd.f32 %v1558_v6, %v8867_v17 }
 0x2f7   : > { %v1560_v10 = vpop.f32.mrf.mxu1 }
 0x2f8   : > { %v1561_v52 = vadd.f32 %v1560_v10, %v8863_v18  ;;  %6893 = vmatmul.mubr.bf16.gmra.mxu1 %v9000_v62 }
 0x2f9   : > { %v1562_v54 = vpop.f32.mrf.mxu1  ;;  %6896 = vmatprep.mubr.bf16.mxu1 %v9003_v4  ;;  %6483 = vmatpush3.bf16.xpose.msra.mxu1 %v7203_v59 }
 0x2fa   : > { %6956 = vmatprep.subr.bf16.mxu1 %v7205_v42  ;;  %v1563_v48 = vadd.f32 %v1562_v54, %v8867_v17  ;;  %v7206_v54 = vld [vmem:[%s8782_s24 + $0x64] ss:$8 sps:$4 sm:$0xff]  }
 0x2fb   : > { %v1564_v24 = vpop.f32.mrf.mxu1 }
 0x2fc   : > { %v1565_v61 = vadd.f32 %v1564_v24, %v8863_v18  ;;  %v9023_v7 = vpack.c.bf16 %v1563_v48, %v1559_v15 }
 0x2fe   : > { %v9013_v35 = vpack.c.bf16 %v1565_v61, %v1561_v52 }
 0x300   : > { %6897 = vmatmul.mubr.bf16.gmra.mxu1 %v9015_v19 }
 0x301   : > { %6900 = vmatprep.mubr.bf16.mxu1 %v9017_v9 }
 0x308   : > { %6901 = vmatmul.mubr.bf16.gmra.mxu1 %v9023_v7 }
 0x345   : > { %v1568_v38 = vpop.f32.mrf.mxu1 }
 0x346   : > { %v1569_v49 = vadd.f32 %v1568_v38, %v8867_v17 }
 0x347   : > { %v1570_v16 = vpop.f32.mrf.mxu1 }
 0x348   : > { %v1571_v41 = vadd.f32 %v1570_v16, %v8863_v18 }
 0x349   : > { %v1572_v25 = vpop.f32.mrf.mxu1 }
 0x34a   : > { %v1573_v31 = vadd.f32 %v1572_v25, %v8867_v17 }
 0x34b   : > { %v1574_v12 = vpop.f32.mrf.mxu1 }
 0x34c   : > { %v9029_v34 = vpack.c.bf16 %v1573_v31, %v1569_v49  ;;  %v1575_v55 = vadd.f32 %v1574_v12, %v8863_v18 }
 0x34d   : > { %v1578_v14 = vpop.f32.mrf.mxu1 }
 0x34e   : > { %v9032_v28 = vpack.c.bf16 %v1575_v55, %v1571_v41  ;;  %6904 = vmatprep.mubr.bf16.mxu1 %v9029_v34  ;;  %v1579_v58 = vadd.f32 %v1578_v14, %v8867_v17  ;;  %v7213_v41 = vld [vmem:[%s8850_s28 + $0xf4] ss:$8 sps:$4 sm:$0xff]  }
 0x34f   : > { %v1580_v11 = vpop.f32.mrf.mxu1 }
 0x350   : > { %v1581_v29 = vadd.f32 %v1580_v11, %v8863_v18 }
 0x351   : > { %v1582_v44 = vpop.f32.mrf.mxu1 }
 0x352   : > { %v1583_v6 = vadd.f32 %v1582_v44, %v8867_v17  ;;  %v7207_v17 = vld [vmem:[%s8782_s24 + $0x54] ss:$8 sps:$4 sm:$0xff]  }
 0x353   : > { %v1584_v47 = vpop.f32.mrf.mxu1 }
 0x354   : > { %v9038_v59 = vpack.c.bf16 %v1583_v6, %v1579_v58  ;;  %v1585_v10 = vadd.f32 %v1584_v47, %v8863_v18  ;;  %v7208_v18 = vld [vmem:[%s8782_s24 + $0x44] ss:$8 sps:$4 sm:$0xff]  }
 0x356   : > { %v9041_v52 = vpack.c.bf16 %v1585_v10, %v1581_v29  ;;  %6905 = vmatmul.mubr.bf16.gmra.mxu1 %v9038_v59 }
 0x357   : > { %6484 = vmatprep.mubr.bf16.mxu1 %v8872_v3 }
 0x35e   : > { %6485 = vmatmul.mubr.bf16.vlgmr.msra.gmra.mxu1 %v8872_v3  ;;  %v7209_v3 = vld [vmem:[%s8782_s24 + $0x34] ss:$8 sps:$4 sm:$0xff]  }
 0x35f   : > { %6957 = vmatpush3.bf16.xpose.msra.mxu1 %v7205_v42  ;;  %6486 = vmatprep.mubr.bf16.mxu1 %v8882_v46  ;;  %v7210_v42 = vld [vmem:[%s8782_s24 + $0x24] ss:$8 sps:$4 sm:$0xff]  }
 0x360   : > { %6958 = vmatprep.subr.bf16.mxu1 %v7206_v54 }
 0x366   : > { %6487 = vmatmul.mubr.bf16.gmra.mxu1 %v8882_v46  ;;  %v9058_v46 = vand.u32 127, %v1224_v39 }
 0x367   : > { %6488 = vmatprep.mubr.bf16.mxu1 %v8893_v56  ;;  %6959 = vmatpush3.bf16.xpose.msra.mxu1 %v7206_v54 }
 0x368   : > { %6960 = vmatprep.subr.bf16.mxu1 %v7207_v17  ;;  %vm1926_vm0 = vcmp.lt.s32.totalorder %v9058_v46, 16 }
 0x36e   : > { %6489 = vmatmul.mubr.bf16.gmra.mxu1 %v8893_v56 }
 0x36f   : > { %6490 = vmatprep.mubr.bf16.mxu1 %v8909_v23  ;;  %6961 = vmatpush3.bf16.xpose.msra.mxu1 %v7207_v17 }
 0x370   : > { %6962 = vmatprep.subr.bf16.mxu1 %v7208_v18 }
 0x376   : > { %6491 = vmatmul.mubr.bf16.gmra.mxu1 %v8909_v23 }
 0x377   : > { %6492 = vmatprep.mubr.bf16.mxu1 %v8928_v33  ;;  %6963 = vmatpush3.bf16.xpose.msra.mxu1 %v7208_v18 }
 0x378   : > { %6964 = vmatprep.subr.bf16.mxu1 %v7209_v3 }
 0x37e   : > { %6493 = vmatmul.mubr.bf16.gmra.mxu1 %v8928_v33 }
 0x37f   : > { %6494 = vmatprep.mubr.bf16.mxu1 %v8945_v50  ;;  %6965 = vmatpush3.bf16.xpose.msra.mxu1 %v7209_v3 }
 0x380   : > { %v6878_v56 = vpop.f32.mrf.mxu1  ;;  %6966 = vmatprep.subr.bf16.mxu1 %v7210_v42 }
 0x381   : > { %v9066_v23 = vsel %vm1926_vm0, %v6878_v56, -1e+30 }
 0x382   : > { %2348 = vmax.xlane.f32.xlu0 %v9066_v23  ;;  %v1797_v32 = vpop.f32.mrf.mxu1 }
 0x383   : > { %v9071_v24 = vsel %vm1926_vm0, %v1797_v32, -1e+30 }
 0x384   : > { %v6879_v39 = vpop.f32.mrf.mxu1 }
 0x385   : > { %v9075_v33 = vsel %vm1926_vm0, %v6879_v39, -1e+30 }
 0x386   : > { %2344 = vmax.xlane.f32.xlu0 %v9071_v24  ;;  %2350 = vmax.xlane.f32.xlu1 %v9075_v33  ;;  %v1800_v61 = vpop.f32.mrf.mxu1 }
 0x387   : > { %6495 = vmatmul.mubr.bf16.gmra.mxu1 %v8945_v50  ;;  %v9084_v26 = vsel %vm1926_vm0, %v1800_v61, -1e+30 }
 0x388   : > { %6496 = vmatprep.mubr.bf16.mxu1 %v8959_v1  ;;  %6967 = vmatpush3.bf16.xpose.msra.mxu1 %v7210_v42 }
 0x389   : > { %6968 = vmatprep.subr.bf16.mxu1 %v7211_v40 }
 0x38a   : > { %2346 = vmax.xlane.f32.xlu1 %v9084_v26 }
 0x38f   : > { %6497 = vmatmul.mubr.bf16.gmra.mxu1 %v8959_v1 }
 0x390   : > { %6498 = vmatprep.mubr.bf16.mxu1 %v8978_v60  ;;  %v6882_v48 = vpop.f32.mrf.mxu1  ;;  %6969 = vmatpush3.bf16.xpose.msra.mxu1 %v7211_v40 }
 0x391   : > { %v9092_v50 = vsel %vm1926_vm0, %v6882_v48, -1e+30  ;;  %6970 = vmatprep.subr.bf16.mxu1 %v7212_v36 }
 0x392   : > { %2356 = vmax.xlane.f32.xlu0 %v9092_v50  ;;  %v1813_v15 = vpop.f32.mrf.mxu1 }
 0x393   : > { %v9097_v16 = vsel %vm1926_vm0, %v1813_v15, -1e+30 }
 0x394   : > { %v6883_v38 = vpop.f32.mrf.mxu1 }
 0x395   : > { %v9101_v1 = vsel %vm1926_vm0, %v6883_v38, -1e+30 }
 0x396   : > { %2352 = vmax.xlane.f32.xlu0 %v9097_v16  ;;  %2358 = vmax.xlane.f32.xlu1 %v9101_v1  ;;  %v1816_v25 = vpop.f32.mrf.mxu1 }
 0x397   : > { %6499 = vmatmul.mubr.bf16.gmra.mxu1 %v8978_v60  ;;  %v9110_v49 = vsel %vm1926_vm0, %v1816_v25, -1e+30 }
 0x398   : > { %6500 = vmatprep.mubr.bf16.mxu1 %v8982_v57  ;;  %6971 = vmatpush3.bf16.xpose.msra.mxu1 %v7212_v36 }
 0x399   : > { %6676 = vmatprep.subr.bf16.mxu1 %v7213_v41 }
 0x39a   : > { %2354 = vmax.xlane.f32.xlu1 %v9110_v49 }
 0x39f   : > { %6501 = vmatmul.mubr.bf16.gmra.mxu1 %v8982_v57 }
 0x3a0   : > { %6502 = vmatprep.mubr.bf16.mxu1 %v9000_v62  ;;  %v6886_v31 = vpop.f32.mrf.mxu1 }
 0x3a1   : > { %v9117_v12 = vsel %vm1926_vm0, %v6886_v31, -1e+30 }
 0x3a2   : > { %2364 = vmax.xlane.f32.xlu0 %v9117_v12  ;;  %v1829_v60 = vpop.f32.mrf.mxu1 }
 0x3a3   : > { %v9122_v14 = vsel %vm1926_vm0, %v1829_v60, -1e+30 }
 0x3a4   : > { %v6887_v55 = vpop.f32.mrf.mxu1 }
 0x3a5   : > { %v9126_v11 = vsel %vm1926_vm0, %v6887_v55, -1e+30 }
 0x3a6   : > { %12849 = vst [vmem:[#allocation14_spill] sm:$0xff] %v9126_v11  ;;  %2360 = vmax.xlane.f32.xlu0 %v9122_v14  ;;  %2366 = vmax.xlane.f32.xlu1 %v9126_v11  ;;  %v1832_v57 = vpop.f32.mrf.mxu1 }
 0x3a7   : > { %6503 = vmatmul.mubr.bf16.gmra.mxu1 %v9000_v62  ;;  %v9134_v29 = vsel %vm1926_vm0, %v1832_v57, -1e+30 }
 0x3a8   : > { %6504 = vmatprep.mubr.bf16.mxu1 %v9003_v4 }
 0x3aa   : > { %2362 = vmax.xlane.f32.xlu1 %v9134_v29 }
 0x3af   : > { %6505 = vmatmul.mubr.bf16.gmra.mxu1 %v9003_v4 }
 0x3b0   : > { %6506 = vmatprep.mubr.bf16.mxu1 %v9015_v19  ;;  %v6890_v44 = vpop.f32.mrf.mxu1 }
 0x3b1   : > { %v9141_v58 = vsel %vm1926_vm0, %v6890_v44, -1e+30 }
 0x3b2   : > { %12850 = vst [vmem:[#allocation17_spill] sm:$0xff] %v9141_v58  ;;  %2372 = vmax.xlane.f32.xlu0 %v9141_v58  ;;  %v1845_v62 = vpop.f32.mrf.mxu1 }
 0x3b3   : > { %v9146_v47 = vsel %vm1926_vm0, %v1845_v62, -1e+30 }
 0x3b4   : > { %v6891_v6 = vpop.f32.mrf.mxu1  ;;  %12851 = vst [vmem:[#allocation16_spill] sm:$0xff] %v9146_v47 }
 0x3b5   : > { %v9150_v10 = vsel %vm1926_vm0, %v6891_v6, -1e+30  ;;  %v7214_v6 = vld [vmem:[%s8850_s28 + $0x74] ss:$8 sps:$4 sm:$0xff]  }
 0x3b6   : > { %12852 = vst [vmem:[#allocation19_spill] sm:$0xff] %v9150_v10  ;;  %2368 = vmax.xlane.f32.xlu0 %v9146_v47  ;;  %2374 = vmax.xlane.f32.xlu1 %v9150_v10  ;;  %v1848_v4 = vpop.f32.mrf.mxu1 }
 0x3b7   : > { %6507 = vmatmul.mubr.bf16.gmra.mxu1 %v9015_v19  ;;  %v9162_v18 = vsel %vm1926_vm0, %v1848_v4, -1e+30  ;;  %v7215_v4 = vld [vmem:[%s8850_s28 + $0xe4] ss:$8 sps:$4 sm:$0xff]  }
 0x3b8   : > { %6508 = vmatprep.mubr.bf16.mxu1 %v9017_v9  ;;  %v6894_v54 = vpop.f32.mrf.mxu1  ;;  %12854 = vst [vmem:[#allocation20_spill] sm:$0xff] %v9162_v18 }
 0x3b9   : > { %v9158_v17 = vsel %vm1926_vm0, %v6894_v54, -1e+30  ;;  %v7217_v54 = vld [vmem:[%s8850_s28 + $0xd4] ss:$8 sps:$4 sm:$0xff]  }
 0x3ba   : > { %12853 = vst [vmem:[#allocation18_spill] sm:$0xff] %v9158_v17  ;;  %2370 = vmax.xlane.f32.xlu1 %v9162_v18  ;;  %2380 = vmax.xlane.f32.xlu0 %v9158_v17  ;;  %v1861_v3 = vpop.f32.mrf.mxu1 }
 0x3bb   : > { %v9168_v19 = vsel %vm1926_vm0, %v1861_v3, -1e+30  ;;  %v7219_v3 = vld [vmem:[%s8850_s28 + $0xc4] ss:$8 sps:$4 sm:$0xff]  }
 0x3bc   : > { %v6895_v42 = vpop.f32.mrf.mxu1  ;;  %12855 = vst [vmem:[#allocation22_spill] sm:$0xff] %v9168_v19 }
 0x3bd   : > { %v9172_v56 = vsel %vm1926_vm0, %v6895_v42, -1e+30  ;;  %v7220_v42 = vld [vmem:[%s8850_s28 + $0x44] ss:$8 sps:$4 sm:$0xff]  }
 0x3be   : > { %12856 = vst [vmem:[#allocation21_spill] sm:$0xff] %v9172_v56  ;;  %2376 = vmax.xlane.f32.xlu0 %v9168_v19  ;;  %2382 = vmax.xlane.f32.xlu1 %v9172_v56  ;;  %v1864_v32 = vpop.f32.mrf.mxu1 }
 0x3bf   : > { %6509 = vmatmul.mubr.bf16.gmra.mxu1 %v9017_v9  ;;  %v9184_v61 = vsel %vm1926_vm0, %v1864_v32, -1e+30  ;;  %v7221_v32 = vld [vmem:[%s8850_s28 + $0xb4] ss:$8 sps:$4 sm:$0xff]  }
 0x3c0   : > { %6510 = vmatprep.mubr.bf16.mxu1 %v9023_v7  ;;  %v6898_v39 = vpop.f32.mrf.mxu1  ;;  %12858 = vst [vmem:[#allocation24_spill] sm:$0xff] %v9184_v61 }
 0x3c1   : > { %v9180_v40 = vsel %vm1926_vm0, %v6898_v39, -1e+30  ;;  %v7222_v39 = vld [vmem:[%s8850_s28 + $0x34] ss:$8 sps:$4 sm:$0xff]  }
 0x3c2   : > { %12857 = vst [vmem:[#allocation3_spill] sm:$0xff] %v9180_v40  ;;  %2378 = vmax.xlane.f32.xlu1 %v9184_v61  ;;  %2388 = vmax.xlane.f32.xlu0 %v9180_v40  ;;  %v1877_v36 = vpop.f32.mrf.mxu1  ;;  %v7243_v40 = vld [vmem:[%s9309_s18] ss:$8 sps:$4 sm:$0xff]  }
 0x3c3   : > { %v9190_v9 = vsel %vm1926_vm0, %v1877_v36, -1e+30  ;;  %v7223_v36 = vld [vmem:[%s8850_s28 + $0xa4] ss:$8 sps:$4 sm:$0xff]  }
 0x3c4   : > { %v6899_v48 = vpop.f32.mrf.mxu1  ;;  %12859 = vst [vmem:[#allocation23_spill] sm:$0xff] %v9190_v9 }
 0x3c5   : > { %v9194_v15 = vsel %vm1926_vm0, %v6899_v48, -1e+30  ;;  %v7224_v48 = vld [vmem:[%s8850_s28 + $0x24] ss:$8 sps:$4 sm:$0xff]  }
 0x3c6   : > { %12860 = vst [vmem:[#allocation2_spill] sm:$0xff] %v9194_v15  ;;  %2384 = vmax.xlane.f32.xlu0 %v9190_v9  ;;  %2390 = vmax.xlane.f32.xlu1 %v9194_v15  ;;  %v1880_v38 = vpop.f32.mrf.mxu1 }
 0x3c7   : > { %6511 = vmatmul.mubr.bf16.gmra.mxu1 %v9023_v7  ;;  %v9206_v31 = vsel %vm1926_vm0, %v1880_v38, -1e+30  ;;  %v7225_v38 = vld [vmem:[%s8850_s28 + $0x94] ss:$8 sps:$4 sm:$0xff]  }
 0x3c8   : > { %6512 = vmatprep.mubr.bf16.mxu1 %v9029_v34  ;;  %v6902_v41 = vpop.f32.mrf.mxu1  ;;  %12862 = vst [vmem:[#allocation5_spill] sm:$0xff] %v9206_v31 }
 0x3c9   : > { %v9202_v25 = vsel %vm1926_vm0, %v6902_v41, -1e+30  ;;  %v7226_v41 = vld [vmem:[%s8850_s28 + $0x14] ss:$8 sps:$4 sm:$0xff]  }
 0x3ca   : > { %12861 = vst [vmem:[#allocation4_spill] sm:$0xff] %v9202_v25  ;;  %2386 = vmax.xlane.f32.xlu1 %v9206_v31  ;;  %2396 = vmax.xlane.f32.xlu0 %v9202_v25  ;;  %v1893_v60 = vpop.f32.mrf.mxu1 }
 0x3cb   : > { %v9212_v7 = vsel %vm1926_vm0, %v1893_v60, -1e+30  ;;  %v7227_v60 = vld [vmem:[%s8850_s28 + $0x84] ss:$8 sps:$4 sm:$0xff]  }
 0x3cc   : > { %v6903_v55 = vpop.f32.mrf.mxu1  ;;  %12863 = vst [vmem:[#allocation8_spill] sm:$0xff] %v9212_v7 }
 0x3cd   : > { %v9216_v57 = vsel %vm1926_vm0, %v6903_v55, -1e+30  ;;  %v7228_v55 = vld [vmem:[%s8850_s28 + $0x4] ss:$8 sps:$4 sm:$0xff]  }
 0x3ce   : > { %12864 = vst [vmem:[#allocation6_spill] sm:$0xff] %v9216_v57  ;;  %2392 = vmax.xlane.f32.xlu0 %v9212_v7  ;;  %2398 = vmax.xlane.f32.xlu1 %v9216_v57  ;;  %v1896_v44 = vpop.f32.mrf.mxu1 }
 0x3cf   : > { %6513 = vmatmul.mubr.bf16.gmra.mxu1 %v9029_v34  ;;  %v9224_v62 = vsel %vm1926_vm0, %v1896_v44, -1e+30  ;;  %v7216_v34 = vld [vmem:[%s8850_s28 + $0x64] ss:$8 sps:$4 sm:$0xff]  }
 0x3d0   : > { %6514 = vmatprep.mubr.bf16.mxu1 %v9038_v59  ;;  %12865 = vst [vmem:[#allocation9_spill] sm:$0xff] %v9224_v62 }
 0x3d2   : > { %2394 = vmax.xlane.f32.xlu1 %v9224_v62 }
 0x3d7   : > { %6515 = vmatmul.mubr.bf16.gmra.mxu1 %v9038_v59  ;;  %v7218_v59 = vld [vmem:[%s8850_s28 + $0x54] ss:$8 sps:$4 sm:$0xff]  }
 0x3d8   : > { %6972 = vmatprep.mubr.bf16.mxu1 %v8875_v30 }
 0x3df   : > { %6973 = vmatmul.mubr.bf16.vlgmr.msra.gmra.mxu1 %v8886_v45 }
 0x3e0   : > { %6677 = vmatpush3.bf16.xpose.msra.mxu1 %v7214_v6  ;;  %6976 = vmatprep.mubr.bf16.mxu1 %v8897_v8 }
 0x3e1   : > { %6678 = vmatprep.subr.bf16.mxu1 %v7215_v4 }
 0x3e7   : > { %6977 = vmatmul.mubr.bf16.gmra.mxu1 %v8914_v51 }
 0x3e8   : > { %6679 = vmatpush3.bf16.xpose.msra.mxu1 %v7216_v34  ;;  %6980 = vmatprep.mubr.bf16.mxu1 %v8933_v5 }
 0x3e9   : > { %6680 = vmatprep.subr.bf16.mxu1 %v7217_v54 }
 0x3ef   : > { %6981 = vmatmul.mubr.bf16.gmra.mxu1 %v8950_v43 }
 0x3f0   : > { %6681 = vmatpush3.bf16.xpose.msra.mxu1 %v7218_v59  ;;  %6984 = vmatprep.mubr.bf16.mxu1 %v8964_v22 }
 0x3f1   : > { %6682 = vmatprep.subr.bf16.mxu1 %v7219_v3 }
 0x3f7   : > { %6985 = vmatmul.mubr.bf16.gmra.mxu1 %v8985_v37 }
 0x3f8   : > { %6683 = vmatpush3.bf16.xpose.msra.mxu1 %v7220_v42  ;;  %6988 = vmatprep.mubr.bf16.mxu1 %v8919_v20 }
 0x3f9   : > { %6684 = vmatprep.subr.bf16.mxu1 %v7221_v32 }
 0x3ff   : > { %6989 = vmatmul.mubr.bf16.gmra.mxu1 %v8938_v21 }
 0x400   : > { %6685 = vmatpush3.bf16.xpose.msra.mxu1 %v7222_v39  ;;  %6992 = vmatprep.mubr.bf16.mxu1 %v8953_v0 }
 0x401   : > { %6686 = vmatprep.subr.bf16.mxu1 %v7223_v36 }
 0x407   : > { %6993 = vmatmul.mubr.bf16.gmra.mxu1 %v8975_v13 }
 0x408   : > { %6687 = vmatpush3.bf16.xpose.msra.mxu1 %v7224_v48  ;;  %6996 = vmatprep.mubr.bf16.mxu1 %v8997_v2 }
 0x409   : > { %6688 = vmatprep.subr.bf16.mxu1 %v7225_v38 }
 0x40f   : > { %6997 = vmatmul.mubr.bf16.gmra.mxu1 %v9013_v35 }
 0x410   : > { %6689 = vmatpush3.bf16.xpose.msra.mxu1 %v7226_v41  ;;  %7000 = vmatprep.mubr.bf16.mxu1 %v9032_v28 }
 0x411   : > { %6690 = vmatprep.subr.bf16.mxu1 %v7227_v60 }
 0x416   : > { %v9258_v44 = vpop.f32.mrf.mxu1 }
 0x417   : > { %7001 = vmatmul.mubr.bf16.gmra.mxu1 %v9041_v52 }
 0x418   : > { %6691 = vmatpush3.bf16.xpose.msra.mxu1 %v7228_v55  ;;  %6692 = vmatprep.mubr.bf16.mxu1 %v8875_v30  ;;  %v1909_v6 = vpop.f32.mrf.mxu1 }
 0x419   : > { %v9264_v4 = vsel %vm1926_vm0, %v1909_v6, -1e+30 }
 0x41a   : > { %12866 = vst [vmem:[#allocation7_spill] sm:$0xff] %v9264_v4  ;;  %2400 = vmax.xlane.f32.xlu0 %v9264_v4  ;;  %v9267_v34 = vpop.f32.mrf.mxu1 }
 0x41c   : > { %v1912_v54 = vpop.f32.mrf.mxu1 }
 0x41d   : > { %v9271_v59 = vsel %vm1926_vm0, %v1912_v54, -1e+30 }
 0x41e   : > { %12867 = vst [vmem:[#allocation12_spill] sm:$0xff] %v9271_v59  ;;  %v9273_v3 = vpop.f32.mrf.mxu1  ;;  %2402 = vmax.xlane.f32.xlu1 %v9271_v59 }
 0x41f   : > { %6693 = vmatmul.mubr.bf16.vlgmr.msra.gmra.mxu1 %v8875_v30 }
 0x420   : > { %6694 = vmatprep.mubr.bf16.mxu1 %v8886_v45  ;;  %v9278_v42 = vpop.f32.mrf.mxu1 }
 0x421   : > { %v2248_v32 = vmax.f32 %v9273_v3, %v9278_v42 }
 0x422   : > { %v9282_v39 = vpop.f32.mrf.mxu1 }
 0x423   : > { %2249 = vmax.xlane.f32.xlu0 %v2248_v32 }
 0x424   : > { %v9284_v36 = vpop.f32.mrf.mxu1 }
 0x425   : > { %v2251_v48 = vmax.f32 %v9282_v39, %v9284_v36 }
 0x426   : > { %v9288_v38 = vpop.f32.mrf.mxu1 }
 0x427   : > { %6695 = vmatmul.mubr.bf16.gmra.mxu1 %v8886_v45  ;;  %2252 = vmax.xlane.f32.xlu1 %v2251_v48  ;;  %v7229_v45 = vld [vmem:[%s9309_s18 + $0x70] ss:$8 sps:$4 sm:$0xff]  }
 0x428   : > { %6696 = vmatprep.mubr.bf16.mxu1 %v8897_v8  ;;  %v9292_v30 = vpop.f32.mrf.mxu1  ;;  %6908 = vmatprep.subr.bf16.mxu0 %v7229_v45 }
 0x429   : > { %v2254_v41 = vmax.f32 %v9288_v38, %v9292_v30  ;;  %6909 = vmatpush3.bf16.msra.mxu0 %v7229_v45  ;;  %v7233_v45 = vld [vmem:[%s9309_s18 + $0x50] ss:$8 sps:$4 sm:$0xff]  }
 0x42a   : > { %v9296_v60 = vpop.f32.mrf.mxu1  ;;  %6910 = vmatprep.subr.bf16.mxu0 %v7231_v63 }
 0x42b   : > { %2255 = vmax.xlane.f32.xlu0 %v2254_v41 }
 0x42c   : > { %v9298_v55 = vpop.f32.mrf.mxu1 }
 0x42d   : > { %v2257_v6 = vmax.f32 %v9296_v60, %v9298_v55  ;;  %6911 = vmatpush3.bf16.msra.mxu0 %v7231_v63  ;;  %v7235_v63 = vld [vmem:[%s9309_s18 + $0x40] ss:$8 sps:$4 sm:$0xff]  }
 0x42e   : > { %v9302_v54 = vpop.f32.mrf.mxu1  ;;  %6912 = vmatprep.subr.bf16.mxu0 %v7233_v45 }
 0x42f   : > { %6697 = vmatmul.mubr.bf16.gmra.mxu1 %v8897_v8  ;;  %2258 = vmax.xlane.f32.xlu1 %v2257_v6 }
 0x430   : > { %6698 = vmatprep.mubr.bf16.mxu1 %v8914_v51  ;;  %v9314_v32 = vpop.f32.mrf.mxu1 }
 0x431   : > { %v2260_v48 = vmax.f32 %v9302_v54, %v9314_v32  ;;  %6913 = vmatpush3.bf16.msra.mxu0 %v7233_v45  ;;  %v7237_v45 = vld [vmem:[%s9309_s18 + $0x30] ss:$8 sps:$4 sm:$0xff]  }
 0x432   : > { %v9318_v41 = vpop.f32.mrf.mxu1  ;;  %6914 = vmatprep.subr.bf16.mxu0 %v7235_v63 }
 0x433   : > { %2261 = vmax.xlane.f32.xlu0 %v2260_v48 }
 0x434   : > { %v9321_v53 = vpop.f32.mrf.mxu1 }
 0x435   : > { %v2263_v8 = vmax.f32 %v9318_v41, %v9321_v53  ;;  %6915 = vmatpush3.bf16.msra.mxu0 %v7235_v63  ;;  %v7241_v63 = vld [vmem:[%s9309_s18 + $0x10] ss:$8 sps:$4 sm:$0xff]  }
 0x436   : > { %v9325_v6 = vpop.f32.mrf.mxu1  ;;  %6916 = vmatprep.subr.bf16.mxu0 %v7237_v45 }
 0x437   : > { %6699 = vmatmul.mubr.bf16.gmra.mxu1 %v8914_v51  ;;  %2264 = vmax.xlane.f32.xlu1 %v2263_v8 }
 0x438   : > { %6700 = vmatprep.mubr.bf16.mxu1 %v8933_v5  ;;  %v9329_v27 = vpop.f32.mrf.mxu1 }
 0x439   : > { %v2266_v48 = vmax.f32 %v9325_v6, %v9329_v27  ;;  %6917 = vmatpush3.bf16.msra.mxu0 %v7237_v45 }
 0x43a   : > { %v9334_v59 = vpop.f32.mrf.mxu1 }
 0x43b   : > { %2267 = vmax.xlane.f32.xlu0 %v2266_v48 }
 0x43c   : > { %v9336_v4 = vpop.f32.mrf.mxu1 }
 0x43d   : > { %v2269_v51 = vmax.f32 %v9334_v59, %v9336_v4 }
 0x43e   : > { %v9341_v8 = vpop.f32.mrf.mxu1 }
 0x43f   : > { %6701 = vmatmul.mubr.bf16.gmra.mxu1 %v8933_v5  ;;  %2270 = vmax.xlane.f32.xlu1 %v2269_v51  ;;  %v7239_v5 = vld [vmem:[%s9309_s18 + $0x20] ss:$8 sps:$4 sm:$0xff]  }
 0x440   : > { %6702 = vmatprep.mubr.bf16.mxu1 %v8950_v43  ;;  %v9345_v57 = vpop.f32.mrf.mxu1  ;;  %6918 = vmatprep.subr.bf16.mxu0 %v7239_v5 }
 0x441   : > { %v2272_v48 = vmax.f32 %v9341_v8, %v9345_v57  ;;  %6919 = vmatpush3.bf16.msra.mxu0 %v7239_v5 }
 0x442   : > { %v9350_v25 = vpop.f32.mrf.mxu1  ;;  %6920 = vmatprep.subr.bf16.mxu0 %v7241_v63 }
 0x443   : > { %2273 = vmax.xlane.f32.xlu0 %v2272_v48 }
 0x444   : > { %v9352_v62 = vpop.f32.mrf.mxu1 }
 0x445   : > { %v2275_v51 = vmax.f32 %v9350_v25, %v9352_v62  ;;  %6921 = vmatpush3.bf16.msra.mxu0 %v7241_v63 }
 0x446   : > { %6922 = vmatprep.subr.bf16.mxu0 %v7243_v40 }
 0x447   : > { %v9357_v7 = vpop.f32.mrf.mxu1  ;;  %6703 = vmatmul.mubr.bf16.gmra.mxu1 %v8950_v43  ;;  %2276 = vmax.xlane.f32.xlu1 %v2275_v51 }
 0x448   : > { %6704 = vmatprep.mubr.bf16.mxu1 %v8964_v22 }
 0x449   : > { %v9362_v15 = vpop.f32.mrf.mxu1  ;;  %6923 = vmatpush3.bf16.msra.mxu0 %v7243_v40 }
 0x44a   : > { %v2278_v45 = vmax.f32 %v9357_v7, %v9362_v15 }
 0x44b   : > { %v9366_v48 = vpop.f32.mrf.mxu1 }
 0x44c   : > { %2279 = vmax.xlane.f32.xlu0 %v2278_v45 }
 0x44d   : > { %v9369_v31 = vpop.f32.mrf.mxu1 }
 0x44e   : > { %v2281_v43 = vmax.f32 %v9366_v48, %v9369_v31 }
 0x44f   : > { %v9373_v51 = vpop.f32.mrf.mxu1  ;;  %6705 = vmatmul.mubr.bf16.gmra.mxu1 %v8964_v22 }
 0x450   : > { %12868 = vst [vmem:[#allocation10_spill] sm:$0xff] %v9373_v51  ;;  %6706 = vmatprep.mubr.bf16.mxu1 %v8985_v37  ;;  %2282 = vmax.xlane.f32.xlu1 %v2281_v43 }
 0x451   : > { %v9377_v5 = vpop.f32.mrf.mxu1 }
 0x452   : > { %12869 = vst [vmem:[#allocation13_spill] sm:$0xff] %v9377_v5  ;;  %v2284_v63 = vmax.f32 %v9373_v51, %v9377_v5 }
 0x453   : > { %v9381_v45 = vpop.f32.mrf.mxu1 }
 0x454   : > { %12870 = vst [vmem:[#allocation11_spill] sm:$0xff] %v9381_v45  ;;  %2285 = vmax.xlane.f32.xlu0 %v2284_v63  ;;  %v9397_v63 = vpop.xlane.xlu0 %2348 }
 0x455   : > { %v9383_v9 = vpop.f32.mrf.mxu1 }
 0x456   : > { %12871 = vst [vmem:[#allocation25_spill] sm:$0xff] %v9383_v9  ;;  %v2287_v56 = vmax.f32 %v9381_v45, %v9383_v9 }
 0x457   : > { %v9387_v17 = vpop.f32.mrf.mxu1  ;;  %6707 = vmatmul.mubr.bf16.gmra.mxu1 %v8985_v37  ;;  %v9406_v37 = vpop.xlane.xlu1 %2350 }
 0x458   : > { %12872 = vst [vmem:[#allocation26_spill] sm:$0xff] %v9387_v17  ;;  %6708 = vmatprep.mubr.bf16.mxu1 %v8919_v20  ;;  %2288 = vmax.xlane.f32.xlu1 %v2287_v56  ;;  %v9411_v58 = vpop.xlane.xlu0 %2344 }
 0x459   : > { %v9391_v22 = vpop.f32.mrf.mxu1 }
 0x45a   : > { %12873 = vst [vmem:[#allocation27_spill] sm:$0xff] %v9391_v22  ;;  %v2290_v40 = vmax.f32 %v9387_v17, %v9391_v22 }
 0x45b   : > { %v9395_v43 = vpop.f32.mrf.mxu1 }
 0x45c   : > { %12874 = vst [vmem:[#allocation28_spill] sm:$0xff] %v9395_v43  ;;  %2291 = vmax.xlane.f32.xlu0 %v2290_v40 }
 0x45d   : > { %v9399_v61 = vpop.f32.mrf.mxu1 }
 0x45e   : > { %12875 = vst [vmem:[#allocation29_spill] sm:$0xff] %v9399_v61  ;;  %v2293_v19 = vmax.f32 %v9395_v43, %v9399_v61  ;;  %v9419_v43 = vpop.xlane.xlu1 %2346 }
 0x45f   : > { %v9403_v10 = vpop.f32.mrf.mxu1  ;;  %6709 = vmatmul.mubr.bf16.gmra.mxu1 %v8919_v20  ;;  %v9421_v20 = vpop.xlane.xlu0 %2356 }
 0x460   : > { %12876 = vst [vmem:[#allocation30_spill] sm:$0xff] %v9403_v10  ;;  %6710 = vmatprep.mubr.bf16.mxu1 %v8938_v21  ;;  %2294 = vmax.xlane.f32.xlu1 %v2293_v19 }
 0x461   : > { %v9409_v56 = vpop.f32.mrf.mxu1 }
 0x462   : > { %12877 = vst [vmem:[#allocation31_spill] sm:$0xff] %v9409_v56  ;;  %v2296_v40 = vmax.f32 %v9403_v10, %v9409_v56  ;;  %v9431_v10 = vpop.xlane.xlu1 %2358 }
 0x463   : > { %v9415_v22 = vpop.f32.mrf.mxu1  ;;  %v9437_v9 = vpop.xlane.xlu0 %2352 }
 0x464   : > { %12878 = vst [vmem:[#allocation32_spill] sm:$0xff] %v9415_v22  ;;  %2297 = vmax.xlane.f32.xlu0 %v2296_v40 }
 0x465   : > { %v9417_v61 = vpop.f32.mrf.mxu1 }
 0x466   : > { %12879 = vst [vmem:[#allocation33_spill] sm:$0xff] %v9417_v61  ;;  %v2299_v17 = vmax.f32 %v9415_v22, %v9417_v61 }
 0x467   : > { %v9425_v19 = vpop.f32.mrf.mxu1  ;;  %6711 = vmatmul.mubr.bf16.gmra.mxu1 %v8938_v21  ;;  %v9448_v45 = vpop.xlane.xlu0 %2364 }
 0x468   : > { %12880 = vst [vmem:[#allocation34_spill] sm:$0xff] %v9425_v19  ;;  %6712 = vmatprep.mubr.bf16.mxu1 %v8953_v0  ;;  %2300 = vmax.xlane.f32.xlu1 %v2299_v17  ;;  %v9446_v17 = vpop.xlane.xlu1 %2354 }
 0x469   : > { %v9429_v56 = vpop.f32.mrf.mxu1 }
 0x46a   : > { %12881 = vst [vmem:[#allocation35_spill] sm:$0xff] %v9429_v56  ;;  %v2302_v40 = vmax.f32 %v9425_v19, %v9429_v56 }
 0x46b   : > { %v9435_v18 = vpop.f32.mrf.mxu1 }
 0x46c   : > { %12882 = vst [vmem:[#allocation36_spill] sm:$0xff] %v9435_v18  ;;  %2303 = vmax.xlane.f32.xlu0 %v2302_v40  ;;  %v9457_v47 = vpop.xlane.xlu1 %2366 }
 0x46d   : > { %v9439_v61 = vpop.f32.mrf.mxu1 }
 0x46e   : > { %12883 = vst [vmem:[#allocation37_spill] sm:$0xff] %v9439_v61  ;;  %v2305_v21 = vmax.f32 %v9435_v18, %v9439_v61 }
 0x46f   : > { %v9443_v22 = vpop.f32.mrf.mxu1  ;;  %6713 = vmatmul.mubr.bf16.gmra.mxu1 %v8953_v0  ;;  %v9461_v0 = vpop.xlane.xlu0 %2360 }
 0x470   : > { %12884 = vst [vmem:[#allocation38_spill] sm:$0xff] %v9443_v22  ;;  %6714 = vmatprep.mubr.bf16.mxu1 %v8975_v13  ;;  %2306 = vmax.xlane.f32.xlu1 %v2305_v21 }
 0x471   : > { %v9451_v56 = vpop.f32.mrf.mxu1 }
 0x472   : > { %12885 = vst [vmem:[#allocation39_spill] sm:$0xff] %v9451_v56  ;;  %v2308_v40 = vmax.f32 %v9443_v22, %v9451_v56  ;;  %v9471_v56 = vpop.xlane.xlu1 %2362 }
 0x473   : > { %v9455_v19 = vpop.f32.mrf.mxu1  ;;  %v9473_v22 = vpop.xlane.xlu0 %2372 }
 0x474   : > { %12886 = vst [vmem:[#allocation40_spill] sm:$0xff] %v9455_v19  ;;  %2309 = vmax.xlane.f32.xlu0 %v2308_v40  ;;  %12890 = vst [vmem:[#allocation44_spill] sm:$0xff] %v9473_v22 }
 0x475   : > { %v9459_v61 = vpop.f32.mrf.mxu1 }
 0x476   : > { %12887 = vst [vmem:[#allocation41_spill] sm:$0xff] %v9459_v61  ;;  %v2311_v18 = vmax.f32 %v9455_v19, %v9459_v61  ;;  %v9481_v19 = vpop.xlane.xlu1 %2374 }
 0x477   : > { %v9465_v5 = vpop.f32.mrf.mxu1  ;;  %6715 = vmatmul.mubr.bf16.gmra.mxu1 %v8975_v13  ;;  %12893 = vst [vmem:[#allocation47_spill] sm:$0xff] %v9481_v19  ;;  %v9488_v11 = vpop.xlane.xlu0 %2368 }
 0x478   : > { %12888 = vst [vmem:[#allocation42_spill] sm:$0xff] %v9465_v5  ;;  %6716 = vmatprep.mubr.bf16.mxu1 %v8997_v2  ;;  %2312 = vmax.xlane.f32.xlu1 %v2311_v18 }
 0x479   : > { %v9469_v21 = vpop.f32.mrf.mxu1 }
 0x47a   : > { %12889 = vst [vmem:[#allocation43_spill] sm:$0xff] %v9469_v21  ;;  %v2314_v40 = vmax.f32 %v9465_v5, %v9469_v21  ;;  %v9497_v19 = vpop.xlane.xlu1 %2370 }
 0x47b   : > { %v9477_v51 = vpop.f32.mrf.mxu1 }
 0x47c   : > { %12891 = vst [vmem:[#allocation45_spill] sm:$0xff] %v9477_v51  ;;  %2315 = vmax.xlane.f32.xlu0 %v2314_v40 }
 0x47d   : > { %v9479_v61 = vpop.f32.mrf.mxu1 }
 0x47e   : > { %12892 = vst [vmem:[#allocation46_spill] sm:$0xff] %v9479_v61  ;;  %v2317_v13 = vmax.f32 %v9477_v51, %v9479_v61  ;;  %v9501_v51 = vpop.xlane.xlu0 %2380 }
 0x47f   : > { %v9485_v18 = vpop.f32.mrf.mxu1  ;;  %6717 = vmatmul.mubr.bf16.gmra.mxu1 %v8997_v2  ;;  %12898 = vst [vmem:[#allocation52_spill] sm:$0xff] %v9501_v51 }
 0x480   : > { %12894 = vst [vmem:[#allocation48_spill] sm:$0xff] %v9485_v18  ;;  %6718 = vmatprep.mubr.bf16.mxu1 %v9013_v35  ;;  %2318 = vmax.xlane.f32.xlu1 %v2317_v13 }
 0x481   : > { %v9491_v21 = vpop.f32.mrf.mxu1 }
 0x482   : > { %12895 = vst [vmem:[#allocation49_spill] sm:$0xff] %v9491_v21  ;;  %v2320_v40 = vmax.f32 %v9485_v18, %v9491_v21  ;;  %v9511_v21 = vpop.xlane.xlu1 %2382  ;;  %v9517_v51 = vpop.xlane.xlu0 %2376 }
 0x483   : > { %v9495_v5 = vpop.f32.mrf.mxu1  ;;  %12901 = vst [vmem:[#allocation55_spill] sm:$0xff] %v9511_v21  ;;  %12903 = vst [vmem:[#allocation57_spill] sm:$0xff] %v9517_v51 }
 0x484   : > { %12896 = vst [vmem:[#allocation50_spill] sm:$0xff] %v9495_v5  ;;  %2321 = vmax.xlane.f32.xlu0 %v2320_v40 }
 0x485   : > { %v9499_v61 = vpop.f32.mrf.mxu1 }
 0x486   : > { %12897 = vst [vmem:[#allocation51_spill] sm:$0xff] %v9499_v61  ;;  %v2323_v2 = vmax.f32 %v9495_v5, %v9499_v61 }
 0x487   : > { %v9505_v22 = vpop.f32.mrf.mxu1  ;;  %6719 = vmatmul.mubr.bf16.gmra.mxu1 %v9013_v35 }
 0x488   : > { %12899 = vst [vmem:[#allocation53_spill] sm:$0xff] %v9505_v22  ;;  %6720 = vmatprep.mubr.bf16.mxu1 %v9032_v28  ;;  %2324 = vmax.xlane.f32.xlu1 %v2323_v2  ;;  %v9526_v2 = vpop.xlane.xlu1 %2378 }
 0x489   : > { %v9509_v13 = vpop.f32.mrf.mxu1  ;;  %12906 = vst [vmem:[#allocation60_spill] sm:$0xff] %v9526_v2 }
 0x48a   : > { %12900 = vst [vmem:[#allocation54_spill] sm:$0xff] %v9509_v13  ;;  %v2326_v40 = vmax.f32 %v9505_v22, %v9509_v13  ;;  %v9531_v22 = vpop.xlane.xlu0 %2388 }
 0x48b   : > { %v9515_v18 = vpop.f32.mrf.mxu1  ;;  %12908 = vst [vmem:[#allocation62_spill] sm:$0xff] %v9531_v22 }
 0x48c   : > { %12902 = vst [vmem:[#allocation56_spill] sm:$0xff] %v9515_v18  ;;  %2327 = vmax.xlane.f32.xlu0 %v2326_v40 }
 0x48d   : > { %v9519_v61 = vpop.f32.mrf.mxu1 }
 0x48e   : > { %12904 = vst [vmem:[#allocation58_spill] sm:$0xff] %v9519_v61  ;;  %v2329_v35 = vmax.f32 %v9515_v18, %v9519_v61  ;;  %v7245_v61 = vld [vmem:[%s9540_s21 + $0xf0] ss:$8 sps:$4 sm:$0xff]  }
 0x48f   : > { %v9523_v5 = vpop.f32.mrf.mxu1  ;;  %6721 = vmatmul.mubr.bf16.gmra.mxu1 %v9032_v28  ;;  %6540 = vmatprep.subr.bf16.mxu0 %v7245_v61 }
 0x490   : > { %12905 = vst [vmem:[#allocation59_spill] sm:$0xff] %v9523_v5  ;;  %6722 = vmatprep.mubr.bf16.mxu1 %v9041_v52  ;;  %2330 = vmax.xlane.f32.xlu1 %v2329_v35  ;;  %v9547_v35 = vpop.xlane.xlu1 %2390 }
 0x491   : > { %v9529_v13 = vpop.f32.mrf.mxu1  ;;  %12911 = vst [vmem:[#allocation65_spill] sm:$0xff] %v9547_v35 }
 0x492   : > { %12907 = vst [vmem:[#allocation61_spill] sm:$0xff] %v9529_v13  ;;  %v2332_v40 = vmax.f32 %v9523_v5, %v9529_v13  ;;  %v9554_v5 = vpop.xlane.xlu0 %2384 }
 0x493   : > { %v9542_v28 = vpop.f32.mrf.mxu1  ;;  %12913 = vst [vmem:[#allocation67_spill] sm:$0xff] %v9554_v5 }
 0x494   : > { %12909 = vst [vmem:[#allocation63_spill] sm:$0xff] %v9542_v28  ;;  %2333 = vmax.xlane.f32.xlu0 %v2332_v40  ;;  %v9562_v61 = vpop.xlane.xlu1 %2386 }
 0x495   : > { %v9545_v18 = vpop.f32.mrf.mxu1  ;;  %12916 = vst [vmem:[#allocation70_spill] sm:$0xff] %v9562_v61 }
 0x496   : > { %12910 = vst [vmem:[#allocation64_spill] sm:$0xff] %v9545_v18  ;;  %v2335_v22 = vmax.f32 %v9542_v28, %v9545_v18  ;;  %v9566_v18 = vpop.xlane.xlu0 %2396 }
 0x497   : > { %v9551_v13 = vpop.f32.mrf.mxu1  ;;  %6723 = vmatmul.mubr.bf16.gmra.mxu1 %v9041_v52  ;;  %12918 = vst [vmem:[#allocation72_spill] sm:$0xff] %v9566_v18 }
 0x498   : > { %12912 = vst [vmem:[#allocation66_spill] sm:$0xff] %v9551_v13  ;;  %2336 = vmax.xlane.f32.xlu1 %v2335_v22  ;;  %v9573_v22 = vsel %vm1926_vm0, %v9258_v44, -1e+30 }
 0x499   : > { %v9556_v21 = vpop.f32.mrf.mxu1  ;;  %12919 = vst [vmem:[#allocation73_spill] sm:$0xff] %v9573_v22 }
 0x49a   : > { %12914 = vst [vmem:[#allocation68_spill] sm:$0xff] %v9556_v21  ;;  %v2338_v40 = vmax.f32 %v9551_v13, %v9556_v21  ;;  %v9576_v13 = vpop.xlane.xlu1 %2398  ;;  %v9587_v18 = vpop.xlane.xlu0 %2392 }
 0x49b   : > { %v9560_v2 = vpop.f32.mrf.mxu1  ;;  %12920 = vst [vmem:[#allocation74_spill] sm:$0xff] %v9576_v13  ;;  %12923 = vst [vmem:[#allocation77_spill] sm:$0xff] %v9587_v18 }
 0x49c   : > { %12915 = vst [vmem:[#allocation69_spill] sm:$0xff] %v9560_v2  ;;  %2339 = vmax.xlane.f32.xlu0 %v2338_v40  ;;  %v9581_v40 = vsel %vm1926_vm0, %v9267_v34, -1e+30 }
 0x49d   : > { %v9564_v35 = vpop.f32.mrf.mxu1  ;;  %12921 = vst [vmem:[#allocation75_spill] sm:$0xff] %v9581_v40 }
 0x49e   : > { %12917 = vst [vmem:[#allocation71_spill] sm:$0xff] %v9564_v35  ;;  %v2341_v52 = vmax.f32 %v9560_v2, %v9564_v35  ;;  %v9599_v13 = vpop.xlane.xlu1 %2394 }
 0x49f   : > { %v6974_v28 = vpop.f32.mrf.mxu1  ;;  %12926 = vst [vmem:[#allocation80_spill] sm:$0xff] %v9599_v13 }
 0x4a0   : > { %2404 = vmax.xlane.f32.xlu0 %v9573_v22  ;;  %2342 = vmax.xlane.f32.xlu1 %v2341_v52  ;;  %v9585_v35 = vsel %vm1926_vm0, %v6974_v28, -1e+30 }
 0x4a1   : > { %v3596_v21 = vpop.f32.mrf.mxu1  ;;  %12922 = vst [vmem:[#allocation76_spill] sm:$0xff] %v9585_v35 }
 0x4a2   : > { %v9593_v52 = vsel %vm1926_vm0, %v3596_v21, -1e+30 }
 0x4a3   : > { %v6975_v2 = vpop.f32.mrf.mxu1  ;;  %12924 = vst [vmem:[#allocation78_spill] sm:$0xff] %v9593_v52  ;;  %v9601_v28 = vpop.xlane.xlu0 %2400 }
 0x4a4   : > { %4112 = vmax.xlane.f32.xlu0 %v9585_v35  ;;  %2406 = vmax.xlane.f32.xlu1 %v9581_v40  ;;  %v9597_v34 = vsel %vm1926_vm0, %v6975_v2, -1e+30  ;;  %12927 = vst [vmem:[#allocation81_spill] sm:$0xff] %v9601_v28 }
 0x4a5   : > { %v3599_v44 = vpop.f32.mrf.mxu1  ;;  %12925 = vst [vmem:[#allocation79_spill] sm:$0xff] %v9597_v34 }
 0x4a6   : > { %v9611_v18 = vsel %vm1926_vm0, %v3599_v44, -1e+30 }
 0x4a7   : > { %v6978_v22 = vpop.f32.mrf.mxu1  ;;  %12929 = vst [vmem:[#allocation83_spill] sm:$0xff] %v9611_v18  ;;  %v9613_v2 = vpop.xlane.xlu1 %2402 }
 0x4a8   : > { %4108 = vmax.xlane.f32.xlu0 %v9593_v52  ;;  %4114 = vmax.xlane.f32.xlu1 %v9597_v34  ;;  %v9607_v40 = vsel %vm1926_vm0, %v6978_v22, -1e+30  ;;  %12930 = vst [vmem:[#allocation84_spill] sm:$0xff] %v9613_v2 }
 0x4a9   : > { %v3612_v35 = vpop.f32.mrf.mxu1  ;;  %12928 = vst [vmem:[#allocation82_spill] sm:$0xff] %v9607_v40 }
 0x4aa   : > { %v9620_v13 = vsel %vm1926_vm0, %v3612_v35, -1e+30 }
 0x4ab   : > { %v6979_v21 = vpop.f32.mrf.mxu1  ;;  %12931 = vst [vmem:[#allocation85_spill] sm:$0xff] %v9620_v13 }
 0x4ac   : > { %4120 = vmax.xlane.f32.xlu0 %v9607_v40  ;;  %4110 = vmax.xlane.f32.xlu1 %v9611_v18  ;;  %v2250_v28 = vpop.xlane.xlu0 %2249  ;;  %v9624_v22 = vsel %vm1926_vm0, %v6979_v21, -1e+30 }
 0x4ad   : > { %v2408_v52 = vmax.f32 %v2250_v28, %v9411_v58  ;;  %v3615_v34 = vpop.f32.mrf.mxu1  ;;  %12932 = vst [vmem:[#allocation86_spill] sm:$0xff] %v9624_v22 }
 0x4ae   : > { %v9634_v21 = vsel %vm1926_vm0, %v3615_v34, -1e+30 }
 0x4af   : > { %v2440_v44 = vsub.f32 %v9273_v3, %v2408_v52  ;;  %v2441_v2 = vsub.f32 %v9278_v42, %v2408_v52  ;;  %v2632_v40 = vsub.f32 %v9071_v24, %v2408_v52  ;;  %v6982_v61 = vpop.f32.mrf.mxu1  ;;  %12933 = vst [vmem:[#allocation87_spill] sm:$0xff] %v9634_v21 }
 0x4b0   : > { %4116 = vmax.xlane.f32.xlu0 %v9620_v13  ;;  %4122 = vmax.xlane.f32.xlu1 %v9624_v22  ;;  %v2253_v58 = vpop.xlane.xlu1 %2252  ;;  %v9638_v3 = vsel %vm1926_vm0, %v6982_v61, -1e+30  ;;  %v12982_v22 = vld [vmem:[#allocation19_spill] sm:$0xff] }
 0x4b1   : > { %v2504_v28 = vmul.f32 1.442695, %v2440_v44  ;;  %v2506_v18 = vmul.f32 1.442695, %v2441_v2  ;;  %v3628_v35 = vpop.f32.mrf.mxu1  ;;  %v2409_v5 = vmax.f32 %v2253_v58, %v9419_v43  ;;  %v2664_v51 = vmul.f32 1.442695, %v2632_v40 }
 0x4b2   : > { %12934 = vst [vmem:[#allocation88_spill] sm:$0xff] %v9638_v3 }
 0x4b3   : > { %v2442_v24 = vsub.f32 %v9282_v39, %v2409_v5  ;;  %v2443_v42 = vsub.f32 %v9284_v36, %v2409_v5  ;;  %v2633_v52 = vsub.f32 %v9084_v26, %v2409_v5  ;;  %v6983_v44 = vpop.f32.mrf.mxu1  ;;  %7413 = vpow2.f32 %v2504_v28 }
 0x4b4   : > { %4128 = vmax.xlane.f32.xlu0 %v9638_v3  ;;  %4118 = vmax.xlane.f32.xlu1 %v9634_v21  ;;  %v2256_v43 = vpop.xlane.xlu0 %2255  ;;  %7415 = vpow2.f32 %v2506_v18  ;;  %v9648_v39 = vsel %vm1926_vm0, %v3628_v35, -1e+30  ;;  %v9652_v26 = vsel %vm1926_vm0, %v6983_v44, -1e+30  ;;  %v12980_v3 = vld [vmem:[#allocation28_spill] sm:$0xff] }
 0x4b5   : > { %v2508_v40 = vmul.f32 1.442695, %v2442_v24  ;;  %v2510_v34 = vmul.f32 1.442695, %v2443_v42  ;;  %v2666_v2 = vmul.f32 1.442695, %v2633_v52  ;;  %v3631_v58 = vpop.f32.mrf.mxu1  ;;  %7417 = vpow2.f32 %v2664_v51 }
 0x4b6   : > { %v2410_v61 = vmax.f32 %v2256_v43, %v9397_v63  ;;  %12935 = vst [vmem:[#allocation89_spill] sm:$0xff] %v9648_v39  ;;  %12936 = vst [vmem:[#allocation90_spill] sm:$0xff] %v9652_v26  ;;  %v9662_v24 = vsel %vm1926_vm0, %v3631_v58, -1e+30 }
 0x4b7   : > { %7419 = vpow2.f32 %v2508_v40  ;;  %v6986_v36 = vpop.f32.mrf.mxu1  ;;  %12937 = vst [vmem:[#allocation91_spill] sm:$0xff] %v9662_v24 }
 0x4b8   : > { %7421 = vpow2.f32 %v2510_v34  ;;  %v2444_v5 = vsub.f32 %v9288_v38, %v2410_v61  ;;  %v2445_v18 = vsub.f32 %v9292_v30, %v2410_v61  ;;  %v2634_v28 = vsub.f32 %v9066_v23, %v2410_v61  ;;  %4124 = vmax.xlane.f32.xlu0 %v9648_v39  ;;  %4130 = vmax.xlane.f32.xlu1 %v9652_v26  ;;  %v2259_v51 = vpop.xlane.xlu1 %2258 }
 0x4b9   : > { %7423 = vpow2.f32 %v2666_v2  ;;  %v3644_v63 = vpop.f32.mrf.mxu1  ;;  %v2411_v35 = vmax.f32 %v2259_v51, %v9406_v37  ;;  %v9666_v30 = vsel %vm1926_vm0, %v6986_v36, -1e+30 }
 0x4ba   : > { %v2512_v42 = vmul.f32 1.442695, %v2444_v5  ;;  %v2514_v52 = vmul.f32 1.442695, %v2445_v18  ;;  %v2668_v38 = vmul.f32 1.442695, %v2634_v28 }
 0x4bb   : > { %12938 = vst [vmem:[#allocation92_spill] sm:$0xff] %v9666_v30  ;;  %v2446_v23 = vsub.f32 %v9296_v60, %v2411_v35  ;;  %v2447_v44 = vsub.f32 %v9298_v55, %v2411_v35  ;;  %v2635_v43 = vsub.f32 %v9075_v33, %v2411_v35  ;;  %v6987_v40 = vpop.f32.mrf.mxu1  ;;  %v9676_v60 = vsel %vm1926_vm0, %v3644_v63, -1e+30 }
 0x4bc   : > { %7425 = vpow2.f32 %v2512_v42  ;;  %4136 = vmax.xlane.f32.xlu0 %v9666_v30  ;;  %4126 = vmax.xlane.f32.xlu1 %v9662_v24  ;;  %v2262_v37 = vpop.xlane.xlu0 %2261  ;;  %12939 = vst [vmem:[#allocation93_spill] sm:$0xff] %v9676_v60  ;;  %v9680_v33 = vsel %vm1926_vm0, %v6987_v40, -1e+30 }
 0x4bd   : > { %7427 = vpow2.f32 %v2514_v52  ;;  %v2516_v34 = vmul.f32 1.442695, %v2446_v23  ;;  %v2518_v2 = vmul.f32 1.442695, %v2447_v44  ;;  %v2670_v58 = vmul.f32 1.442695, %v2635_v43  ;;  %v3647_v61 = vpop.f32.mrf.mxu1 }
 0x4be   : > { %7429 = vpow2.f32 %v2668_v38  ;;  %v2412_v36 = vmax.f32 %v2262_v37, %v9437_v9  ;;  %12940 = vst [vmem:[#allocation94_spill] sm:$0xff] %v9680_v33  ;;  %v9692_v42 = vsel %vm1926_vm0, %v3647_v61, -1e+30 }
 0x4bf   : > { %7431 = vpow2.f32 %v2516_v34  ;;  %v6990_v55 = vpop.f32.mrf.mxu1  ;;  %12941 = vst [vmem:[#allocation95_spill] sm:$0xff] %v9692_v42 }
 0x4c0   : > { %7433 = vpow2.f32 %v2518_v2  ;;  %v2448_v5 = vsub.f32 %v9302_v54, %v2412_v36  ;;  %v2449_v18 = vsub.f32 %v9314_v32, %v2412_v36  ;;  %v2636_v28 = vsub.f32 %v9097_v16, %v2412_v36  ;;  %4132 = vmax.xlane.f32.xlu0 %v9676_v60  ;;  %4138 = vmax.xlane.f32.xlu1 %v9680_v33  ;;  %v2265_v9 = vpop.xlane.xlu1 %2264  ;;  %v9687_v51 = vpop.eup %7413 }
 0x4c1   : > { %7435 = vpow2.f32 %v2670_v58  ;;  %v3660_v63 = vpop.f32.mrf.mxu1  ;;  %v2413_v35 = vmax.f32 %v2265_v9, %v9446_v17  ;;  %v9694_v54 = vpop.eup %7415  ;;  %v9700_v23 = vsel %vm1926_vm0, %v6990_v55, -1e+30 }
 0x4c2   : > { %v2520_v32 = vmul.f32 1.442695, %v2448_v5  ;;  %v2522_v52 = vmul.f32 1.442695, %v2449_v18  ;;  %v2672_v16 = vmul.f32 1.442695, %v2636_v28  ;;  %v9696_v38 = vpop.eup %7417 }
 0x4c3   : > { %12942 = vst [vmem:[#allocation96_spill] sm:$0xff] %v9700_v23  ;;  %v2450_v44 = vsub.f32 %v9318_v41, %v2413_v35  ;;  %v2451_v43 = vsub.f32 %v9321_v53, %v2413_v35  ;;  %v2637_v17 = vsub.f32 %v9110_v49, %v2413_v35  ;;  %v6991_v40 = vpop.f32.mrf.mxu1  ;;  %v9715_v53 = vsel %vm1926_vm0, %v3660_v63, -1e+30 }
 0x4c4   : > { %v9705_v37 = vpop.eup %7419  ;;  %7437 = vpow2.f32 %v2520_v32  ;;  %4144 = vmax.xlane.f32.xlu0 %v9700_v23  ;;  %4134 = vmax.xlane.f32.xlu1 %v9692_v42  ;;  %v2268_v34 = vpop.xlane.xlu0 %2267  ;;  %12943 = vst [vmem:[#allocation97_spill] sm:$0xff] %v9715_v53  ;;  %v9722_v18 = vsel %vm1926_vm0, %v6991_v40, -1e+30  ;;  %v12967_v23 = vld [vmem:[#allocation25_spill] sm:$0xff]  ;;  %v12977_v42 = vld [vmem:[#allocation47_spill] sm:$0xff] }
 0x4c5   : > { %v9709_v2 = vpop.eup %7421  ;;  %7439 = vpow2.f32 %v2522_v52  ;;  %v2524_v58 = vmul.f32 1.442695, %v2450_v44  ;;  %v2526_v61 = vmul.f32 1.442695, %v2451_v43  ;;  %v2674_v36 = vmul.f32 1.442695, %v2637_v17  ;;  %v3663_v41 = vpop.f32.mrf.mxu1 }
 0x4c6   : > { %v9711_v55 = vpop.eup %7423  ;;  %7441 = vpow2.f32 %v2672_v16  ;;  %v2414_v49 = vmax.f32 %v2268_v34, %v9421_v20  ;;  %12944 = vst [vmem:[#allocation98_spill] sm:$0xff] %v9722_v18  ;;  %v9738_v17 = vsel %vm1926_vm0, %v3663_v41, -1e+30  ;;  %v2731_v46 = vadd.f32 %v9709_v2, %v9705_v37 }
 0x4c7   : > { %7443 = vpow2.f32 %v2524_v58  ;;  %v6994_v28 = vpop.f32.mrf.mxu1  ;;  %v2952_v9 = vpack.c.bf16 %v9711_v55, %v9696_v38  ;;  %12945 = vst [vmem:[#allocation99_spill] sm:$0xff] %v9738_v17 }
 0x4c8   : > { %7445 = vpow2.f32 %v2526_v61  ;;  %v2452_v63 = vsub.f32 %v9325_v6, %v2414_v49  ;;  %v2453_v20 = vsub.f32 %v9329_v27, %v2414_v49  ;;  %v2638_v32 = vsub.f32 %v9092_v50, %v2414_v49  ;;  %4140 = vmax.xlane.f32.xlu0 %v9715_v53  ;;  %4146 = vmax.xlane.f32.xlu1 %v9722_v18  ;;  %v2271_v52 = vpop.xlane.xlu1 %2270  ;;  %v12968_v53 = vld [vmem:[#allocation20_spill] sm:$0xff] }
 0x4c9   : > { %v9733_v16 = vpop.eup %7425  ;;  %7447 = vpow2.f32 %v2674_v36  ;;  %6924 = vmatprep.mubr.bf16.mxu0 %v2952_v9  ;;  %v3676_v44 = vpop.f32.mrf.mxu1  ;;  %v2415_v43 = vmax.f32 %v2271_v52, %v9431_v10  ;;  %v9746_v58 = vsel %vm1926_vm0, %v6994_v28, -1e+30 }
 0x4ca   : > { %v9740_v6 = vpop.eup %7427  ;;  %v2528_v27 = vmul.f32 1.442695, %v2452_v63  ;;  %v2530_v50 = vmul.f32 1.442695, %v2453_v20  ;;  %v2676_v40 = vmul.f32 1.442695, %v2638_v32 }
 0x4cb   : > { %v9742_v34 = vpop.eup %7429  ;;  %12946 = vst [vmem:[#allocation100_spill] sm:$0xff] %v9746_v58  ;;  %v2454_v61 = vsub.f32 %v9334_v59, %v2415_v43  ;;  %v2455_v36 = vsub.f32 %v9336_v4, %v2415_v43  ;;  %v2639_v10 = vsub.f32 %v9101_v1, %v2415_v43  ;;  %v6995_v49 = vpop.f32.mrf.mxu1  ;;  %v9761_v1 = vsel %vm1926_vm0, %v3676_v44, -1e+30  ;;  %v7247_v43 = vld [vmem:[%s9540_s21 + $0x70] ss:$8 sps:$4 sm:$0xff]  }
 0x4cc   : > { %v9751_v41 = vpop.eup %7431  ;;  %7449 = vpow2.f32 %v2528_v27  ;;  %4152 = vmax.xlane.f32.xlu0 %v9746_v58  ;;  %4142 = vmax.xlane.f32.xlu1 %v9738_v17  ;;  %v2274_v9 = vpop.xlane.xlu0 %2273  ;;  %12947 = vst [vmem:[#allocation101_spill] sm:$0xff] %v9761_v1 }
 0x4cd   : > { %v9755_v63 = vpop.eup %7433  ;;  %7451 = vpow2.f32 %v2530_v50  ;;  %v2532_v28 = vmul.f32 1.442695, %v2454_v61  ;;  %v2534_v59 = vmul.f32 1.442695, %v2455_v36  ;;  %v2678_v20 = vmul.f32 1.442695, %v2639_v10  ;;  %v3679_v4 = vpop.f32.mrf.mxu1 }
 0x4ce   : > { %v9757_v32 = vpop.eup %7435  ;;  %7453 = vpow2.f32 %v2676_v40  ;;  %v2416_v52 = vmax.f32 %v2274_v9, %v9461_v0  ;;  %v9769_v50 = vsel %vm1926_vm0, %v6995_v49, -1e+30  ;;  %v7249_v40 = vld [vmem:[%s9540_s21 + $0xe0] ss:$8 sps:$4 sm:$0xff]  }
 0x4cf   : > { %7455 = vpow2.f32 %v2532_v28  ;;  %12948 = vst [vmem:[#allocation102_spill] sm:$0xff] %v9769_v50  ;;  %v6998_v61 = vpop.f32.mrf.mxu1  ;;  %v2953_v36 = vpack.c.bf16 %v9757_v32, %v9742_v34 }
 0x4d0   : > { %7457 = vpow2.f32 %v2534_v59  ;;  %v2456_v0 = vsub.f32 %v9341_v8, %v2416_v52  ;;  %v2457_v10 = vsub.f32 %v9345_v57, %v2416_v52  ;;  %v2640_v9 = vsub.f32 %v9122_v14, %v2416_v52  ;;  %4148 = vmax.xlane.f32.xlu0 %v9761_v1  ;;  %4154 = vmax.xlane.f32.xlu1 %v9769_v50  ;;  %v2277_v49 = vpop.xlane.xlu1 %2276  ;;  %v7251_v57 = vld [vmem:[%s9540_s21 + $0x60] ss:$8 sps:$4 sm:$0xff]   ;;  %v7253_v50 = vld [vmem:[%s9540_s21 + $0xd0] ss:$8 sps:$4 sm:$0xff]  }
 0x4d1   : > { %v9781_v28 = vpop.eup %7437  ;;  %7459 = vpow2.f32 %v2678_v20  ;;  %6925 = vmatmul.mubr.bf16.vlgmr.msra.gmra.mxu0 %v2953_v36  ;;  %v3692_v27 = vpop.f32.mrf.mxu1  ;;  %v2417_v44 = vmax.f32 %v2277_v49, %v9471_v56  ;;  %v9786_v8 = vsel %vm1926_vm0, %v3679_v4, -1e+30  ;;  %v9795_v20 = vsel %vm1926_vm0, %v6998_v61, -1e+30 }
 0x4d2   : > { %12949 = vst [vmem:[#allocation103_spill] sm:$0xff] %v9786_v8  ;;  %v9789_v59 = vpop.eup %7439  ;;  %v2536_v14 = vmul.f32 1.442695, %v2456_v0  ;;  %v2538_v52 = vmul.f32 1.442695, %v2457_v10  ;;  %6541 = vmatpush3.bf16.msra.mxu0 %v7247_v43  ;;  %12950 = vst [vmem:[#allocation104_spill] sm:$0xff] %v9795_v20 }
 0x4d3   : > { %v2680_v35 = vmul.f32 1.442695, %v2640_v9  ;;  %v9791_v5 = vpop.eup %7441  ;;  %v2458_v36 = vsub.f32 %v9350_v25, %v2417_v44  ;;  %v2459_v56 = vsub.f32 %v9352_v62, %v2417_v44  ;;  %v2641_v4 = vsub.f32 %v9134_v29, %v2417_v44  ;;  %v6999_v49 = vpop.f32.mrf.mxu1  ;;  %6542 = vmatprep.subr.bf16.mxu0 %v7249_v40  ;;  %v7255_v9 = vld [vmem:[%s9540_s21 + $0x50] ss:$8 sps:$4 sm:$0xff]  }
 0x4d4   : > { %v9801_v58 = vpop.eup %7443  ;;  %7461 = vpow2.f32 %v2536_v14  ;;  %4160 = vmax.xlane.f32.xlu0 %v9795_v20  ;;  %4150 = vmax.xlane.f32.xlu1 %v9786_v8  ;;  %v9811_v40 = vsel %vm1926_vm0, %v3692_v27, -1e+30  ;;  %v7257_v27 = vld [vmem:[%s9540_s21 + $0xc0] ss:$8 sps:$4 sm:$0xff]   ;;  %v7263_v20 = vld [vmem:[%s9540_s21 + $0x30] ss:$8 sps:$4 sm:$0xff]  }
 0x4d5   : > { %v9805_v43 = vpop.eup %7445  ;;  %7463 = vpow2.f32 %v2538_v52  ;;  %v2540_v61 = vmul.f32 1.442695, %v2458_v36  ;;  %v2542_v25 = vmul.f32 1.442695, %v2459_v56  ;;  %v2682_v62 = vmul.f32 1.442695, %v2641_v4  ;;  %v2280_v0 = vpop.xlane.xlu0 %2279 }
 0x4d6   : > { %v3695_v29 = vpop.f32.mrf.mxu1  ;;  %v9807_v44 = vpop.eup %7447  ;;  %7465 = vpow2.f32 %v2680_v35  ;;  %12951 = vst [vmem:[#allocation105_spill] sm:$0xff] %v9811_v40  ;;  %v2418_v10 = vmax.f32 %v2280_v0, %v9448_v45  ;;  %6543 = vmatpush3.bf16.msra.mxu0 %v7251_v57  ;;  %v9819_v52 = vsel %vm1926_vm0, %v6999_v49, -1e+30  ;;  %v7259_v0 = vld [vmem:[%s9540_s21 + $0x40] ss:$8 sps:$4 sm:$0xff]  }
 0x4d7   : > { %7467 = vpow2.f32 %v2540_v61  ;;  %12952 = vst [vmem:[#allocation106_spill] sm:$0xff] %v9819_v52  ;;  %v2954_v35 = vpack.c.bf16 %v9807_v44, %v9791_v5  ;;  %6544 = vmatprep.subr.bf16.mxu0 %v7253_v50 }
 0x4d8   : > { %v9821_v36 = vpop.f32.mrf.mxu1  ;;  %7469 = vpow2.f32 %v2542_v25  ;;  %v2460_v57 = vsub.f32 %v9357_v7, %v2418_v10  ;;  %v2461_v56 = vsub.f32 %v9362_v15, %v2418_v10  ;;  %v2642_v4 = vsub.f32 %v9117_v12, %v2418_v10  ;;  %4156 = vmax.xlane.f32.xlu0 %v9811_v40  ;;  %4162 = vmax.xlane.f32.xlu1 %v9819_v52 }
 0x4d9   : > { %v9833_v49 = vpop.eup %7449  ;;  %7471 = vpow2.f32 %v2682_v62  ;;  %6928 = vmatprep.mubr.bf16.mxu0 %v2954_v35  ;;  %v2283_v61 = vpop.xlane.xlu1 %2282  ;;  %v9849_v35 = vsel %vm1926_vm0, %v3695_v29, -1e+30 }
 0x4da   : > { %v3708_v50 = vpop.f32.mrf.mxu1  ;;  %v9836_v45 = vpop.eup %7451  ;;  %v2544_v25 = vmul.f32 1.442695, %v2460_v57  ;;  %v2546_v7 = vmul.f32 1.442695, %v2461_v56  ;;  %v2684_v14 = vmul.f32 1.442695, %v2642_v4  ;;  %v2419_v15 = vmax.f32 %v2283_v61, %v9457_v47  ;;  %6545 = vmatpush3.bf16.msra.mxu0 %v7255_v9 }
 0x4db   : > { %v9839_v12 = vpop.eup %7453  ;;  %v9843_v10 = vsel %vm1926_vm0, %v3708_v50, -1e+30  ;;  %12955 = vst [vmem:[#allocation109_spill] sm:$0xff] %v9849_v35  ;;  %6546 = vmatprep.subr.bf16.mxu0 %v7257_v27  ;;  %v7261_v57 = vld [vmem:[%s9540_s21 + $0xb0] ss:$8 sps:$4 sm:$0xff]   ;;  %v12956_v4 = vld [vmem:[#allocation14_spill] sm:$0xff] }
 0x4dc   : > { %12953 = vst [vmem:[#allocation107_spill] sm:$0xff] %v9839_v12  ;;  %12954 = vst [vmem:[#allocation108_spill] sm:$0xff] %v9843_v10  ;;  %v9845_v62 = vpop.f32.mrf.mxu1  ;;  %v9852_v56 = vpop.eup %7455  ;;  %7473 = vpow2.f32 %v2544_v25  ;;  %v2462_v47 = vsub.f32 %v9366_v48, %v2419_v15  ;;  %v2463_v9 = vsub.f32 %v9369_v31, %v2419_v15  ;;  %v2643_v61 = vsub.f32 %v12956_v4, %v2419_v15  ;;  %v7265_v25 = vld [vmem:[%s9540_s21 + $0xa0] ss:$8 sps:$4 sm:$0xff]  }
 0x4dd   : > { %4164 = vmax.xlane.f32.xlu0 %v9843_v10  ;;  %4158 = vmax.xlane.f32.xlu1 %v9849_v35  ;;  %v9859_v50 = vpop.eup %7457  ;;  %7475 = vpow2.f32 %v2546_v7  ;;  %v2286_v29 = vpop.xlane.xlu0 %2285 }
 0x4de   : > { %v3711_v27 = vpop.f32.mrf.mxu1  ;;  %v9864_v52 = vpop.eup %7459  ;;  %7477 = vpow2.f32 %v2684_v14  ;;  %v2548_v31 = vmul.f32 1.442695, %v2462_v47  ;;  %v2550_v48 = vmul.f32 1.442695, %v2463_v9  ;;  %v2686_v15 = vmul.f32 1.442695, %v2643_v61  ;;  %6547 = vmatpush3.bf16.msra.mxu0 %v7259_v0 }
 0x4df   : > { %12957 = vst [vmem:[#allocation14_spill] sm:$0xff] %v9864_v52  ;;  %v2420_v4 = vmax.f32 %v2286_v29, %v9488_v11  ;;  %v9871_v7 = vsel %vm1926_vm0, %v3711_v27, -1e+30  ;;  %v2955_v35 = vpack.c.bf16 %v9864_v52, %v9839_v12  ;;  %6548 = vmatprep.subr.bf16.mxu0 %v7261_v57  ;;  %v12960_v0 = vld [vmem:[#allocation10_spill] sm:$0xff]  ;;  %v12961_v9 = vld [vmem:[#allocation13_spill] sm:$0xff]  ;;  %v12962_v29 = vld [vmem:[#allocation16_spill] sm:$0xff] }
 0x4e0   : > { %v9867_v10 = vpop.f32.mrf.mxu1  ;;  %12959 = vst [vmem:[#allocation111_spill] sm:$0xff] %v9871_v7  ;;  %7479 = vpow2.f32 %v2548_v31 }
 0x4e1   : > { %12958 = vst [vmem:[#allocation110_spill] sm:$0xff] %v9867_v10  ;;  %4166 = vmax.xlane.f32.xlu1 %v9871_v7  ;;  %v9879_v11 = vpop.eup %7461  ;;  %7481 = vpow2.f32 %v2550_v48  ;;  %v2464_v47 = vsub.f32 %v12960_v0, %v2420_v4  ;;  %v2465_v61 = vsub.f32 %v12961_v9, %v2420_v4  ;;  %v2644_v27 = vsub.f32 %v12962_v29, %v2420_v4  ;;  %v2289_v40 = vpop.xlane.xlu1 %2288  ;;  %v7267_v48 = vld [vmem:[%s9540_s21 + $0x20] ss:$8 sps:$4 sm:$0xff]   ;;  %v7269_v7 = vld [vmem:[%s9540_s21 + $0x90] ss:$8 sps:$4 sm:$0xff]  }
 0x4e2   : > { %6929 = vmatmul.mubr.bf16.gmra.mxu0 %v2955_v35  ;;  %v9884_v57 = vpop.f32.mrf.mxu1  ;;  %v9886_v8 = vpop.eup %7463  ;;  %7483 = vpow2.f32 %v2686_v15  ;;  %v2421_v14 = vmax.f32 %v2289_v40, %v9497_v19  ;;  %v12966_v15 = vld [vmem:[#allocation11_spill] sm:$0xff] }
 0x4e3   : > { %12963 = vst [vmem:[#allocation10_spill] sm:$0xff] %v9884_v57  ;;  %v4012_v31 = vmax.f32 %v9867_v10, %v9884_v57  ;;  %6549 = vmatpush3.bf16.msra.mxu0 %v7263_v20  ;;  %v9893_v0 = vpop.eup %7465  ;;  %v2552_v9 = vmul.f32 1.442695, %v2464_v47  ;;  %v2554_v4 = vmul.f32 1.442695, %v2465_v61 }
 0x4e4   : > { %12964 = vst [vmem:[#allocation13_spill] sm:$0xff] %v9893_v0  ;;  %v2688_v35 = vmul.f32 1.442695, %v2644_v27  ;;  %v9895_v29 = vpop.f32.mrf.mxu1  ;;  %6550 = vmatprep.subr.bf16.mxu0 %v7265_v25  ;;  %v9897_v1 = vpop.eup %7467  ;;  %v2466_v18 = vsub.f32 %v12966_v15, %v2421_v14  ;;  %v2467_v17 = vsub.f32 %v12967_v23, %v2421_v14  ;;  %v2645_v19 = vsub.f32 %v12968_v53, %v2421_v14  ;;  %v7271_v61 = vld [vmem:[%s9540_s21 + $0x10] ss:$8 sps:$4 sm:$0xff]  }
 0x4e5   : > { %12965 = vst [vmem:[#allocation16_spill] sm:$0xff] %v9895_v29  ;;  %4013 = vmax.xlane.f32.xlu0 %v4012_v31  ;;  %v9902_v20 = vpop.eup %7469  ;;  %7485 = vpow2.f32 %v2552_v9  ;;  %v2292_v40 = vpop.xlane.xlu0 %2291  ;;  %v12971_v53 = vld [vmem:[#allocation44_spill] sm:$0xff]  ;;  %v7273_v25 = vld [vmem:[%s9540_s21 + $0x80] ss:$8 sps:$4 sm:$0xff]  }
 0x4e6   : > { %v9904_v47 = vpop.f32.mrf.mxu1  ;;  %v9909_v27 = vpop.eup %7471  ;;  %7487 = vpow2.f32 %v2554_v4  ;;  %v2556_v15 = vmul.f32 1.442695, %v2466_v18  ;;  %v2558_v33 = vmul.f32 1.442695, %v2467_v17  ;;  %v2690_v23 = vmul.f32 1.442695, %v2645_v19 }
 0x4e7   : > { %12969 = vst [vmem:[#allocation11_spill] sm:$0xff] %v9904_v47  ;;  %12970 = vst [vmem:[#allocation25_spill] sm:$0xff] %v9909_v27  ;;  %6551 = vmatpush3.bf16.msra.mxu0 %v7267_v48  ;;  %7489 = vpow2.f32 %v2688_v35  ;;  %v2422_v14 = vmax.f32 %v2292_v40, %v12971_v53  ;;  %v4015_v31 = vmax.f32 %v9895_v29, %v9904_v47  ;;  %v12973_v48 = vld [vmem:[#allocation26_spill] sm:$0xff]  ;;  %v12974_v35 = vld [vmem:[#allocation27_spill] sm:$0xff] }
 0x4e8   : > { %v9914_v9 = vpop.f32.mrf.mxu1  ;;  %v2956_v30 = vpack.c.bf16 %v9909_v27, %v9893_v0  ;;  %6552 = vmatprep.subr.bf16.mxu0 %v7269_v7  ;;  %7491 = vpow2.f32 %v2556_v15  ;;  %v12975_v40 = vld [vmem:[#allocation17_spill] sm:$0xff] }
 0x4e9   : > { %12972 = vst [vmem:[#allocation20_spill] sm:$0xff] %v9914_v9  ;;  %v9921_v17 = vpop.eup %7473  ;;  %7493 = vpow2.f32 %v2558_v33  ;;  %v2468_v4 = vsub.f32 %v12973_v48, %v2422_v14  ;;  %v2469_v19 = vsub.f32 %v12974_v35, %v2422_v14  ;;  %v2646_v53 = vsub.f32 %v12975_v40, %v2422_v14  ;;  %4016 = vmax.xlane.f32.xlu1 %v4015_v31  ;;  %v2295_v7 = vpop.xlane.xlu1 %2294  ;;  %v7275_v33 = vld [vmem:[%s9540_s21] ss:$8 sps:$4 sm:$0xff]   ;;  %v9935_v48 = vld [vmem:[%s9309_s18 + $0x74] ss:$8 sps:$4 sm:$0xff]  }
 0x4ea   : > { %6932 = vmatprep.mubr.bf16.mxu0 %v2956_v30  ;;  %v9926_v60 = vpop.f32.mrf.mxu1  ;;  %v9928_v15 = vpop.eup %7475  ;;  %7495 = vpow2.f32 %v2690_v23  ;;  %v2423_v26 = vmax.f32 %v2295_v7, %v12977_v42  ;;  %v12981_v23 = vld [vmem:[#allocation29_spill] sm:$0xff] }
 0x4eb   : > { %12976 = vst [vmem:[#allocation44_spill] sm:$0xff] %v9926_v60  ;;  %v4018_v18 = vmax.f32 %v9914_v9, %v9926_v60  ;;  %6553 = vmatpush3.bf16.msra.mxu0 %v7271_v61  ;;  %v9937_v35 = vpop.eup %7477  ;;  %v2560_v14 = vmul.f32 1.442695, %v2468_v4  ;;  %v2562_v31 = vmul.f32 1.442695, %v2469_v19  ;;  %v12995_v47 = vld [vmem:[#allocation33_spill] sm:$0xff] }
 0x4ec   : > { %12978 = vst [vmem:[#allocation26_spill] sm:$0xff] %v9937_v35  ;;  %v2692_v30 = vmul.f32 1.442695, %v2646_v53  ;;  %v9939_v40 = vpop.f32.mrf.mxu1  ;;  %6554 = vmatprep.subr.bf16.mxu0 %v7273_v25  ;;  %v2470_v24 = vsub.f32 %v12980_v3, %v2423_v26  ;;  %v2471_v39 = vsub.f32 %v12981_v23, %v2423_v26  ;;  %v2647_v21 = vsub.f32 %v12982_v22, %v2423_v26  ;;  %v12985_v3 = vld [vmem:[#allocation57_spill] sm:$0xff] }
 0x4ed   : > { %12979 = vst [vmem:[#allocation27_spill] sm:$0xff] %v9939_v40  ;;  %4019 = vmax.xlane.f32.xlu0 %v4018_v18  ;;  %v9944_v42 = vpop.eup %7479  ;;  %7497 = vpow2.f32 %v2560_v14  ;;  %v2298_v61 = vpop.xlane.xlu0 %2297  ;;  %v12988_v14 = vld [vmem:[#allocation31_spill] sm:$0xff]  ;;  %v12991_v18 = vld [vmem:[#allocation60_spill] sm:$0xff] }
 0x4ee   : > { %v9946_v7 = vpop.f32.mrf.mxu1  ;;  %v9948_v13 = vpop.eup %7481  ;;  %7499 = vpow2.f32 %v2562_v31  ;;  %v2564_v4 = vmul.f32 1.442695, %v2470_v24  ;;  %v2566_v19 = vmul.f32 1.442695, %v2471_v39  ;;  %v2694_v53 = vmul.f32 1.442695, %v2647_v21 }
 0x4ef   : > { %12983 = vst [vmem:[#allocation17_spill] sm:$0xff] %v9946_v7  ;;  %6555 = vmatpush3.bf16.msra.mxu0 %v7275_v33  ;;  %v9950_v25 = vpop.eup %7483  ;;  %7501 = vpow2.f32 %v2692_v30  ;;  %v2424_v23 = vmax.f32 %v2298_v61, %v12985_v3  ;;  %v4021_v22 = vmax.f32 %v9939_v40, %v9946_v7  ;;  %v12987_v24 = vld [vmem:[#allocation30_spill] sm:$0xff] }
 0x4f0   : > { %12984 = vst [vmem:[#allocation47_spill] sm:$0xff] %v9950_v25  ;;  %v9955_v26 = vpop.f32.mrf.mxu1  ;;  %7004 = vmatprep.subr.bf16.mxu0 %v9935_v48  ;;  %7503 = vpow2.f32 %v2564_v4  ;;  %v2957_v21 = vpack.c.bf16 %v9950_v25, %v9937_v35  ;;  %v12989_v30 = vld [vmem:[#allocation22_spill] sm:$0xff]  ;;  %v13010_v25 = vld [vmem:[#allocation37_spill] sm:$0xff] }
 0x4f1   : > { %12986 = vst [vmem:[#allocation28_spill] sm:$0xff] %v9955_v26  ;;  %7505 = vpow2.f32 %v2566_v19  ;;  %v2472_v33 = vsub.f32 %v12987_v24, %v2424_v23  ;;  %v2473_v31 = vsub.f32 %v12988_v14, %v2424_v23  ;;  %v2648_v61 = vsub.f32 %v12989_v30, %v2424_v23  ;;  %4022 = vmax.xlane.f32.xlu1 %v4021_v22  ;;  %v2301_v7 = vpop.xlane.xlu1 %2300  ;;  %v12994_v22 = vld [vmem:[#allocation32_spill] sm:$0xff] }
 0x4f2   : > { %v9967_v3 = vpop.f32.mrf.mxu1  ;;  %v9969_v40 = vpop.eup %7485  ;;  %7507 = vpow2.f32 %v2694_v53  ;;  %6933 = vmatmul.mubr.bf16.gmra.mxu0 %v2957_v21  ;;  %v2425_v39 = vmax.f32 %v2301_v7, %v12991_v18  ;;  %v12996_v53 = vld [vmem:[#allocation24_spill] sm:$0xff] }
 0x4f3   : > { %12990 = vst [vmem:[#allocation29_spill] sm:$0xff] %v9967_v3  ;;  %v4024_v4 = vmax.f32 %v9955_v26, %v9967_v3  ;;  %v9974_v19 = vpop.eup %7487  ;;  %v2568_v24 = vmul.f32 1.442695, %v2472_v33  ;;  %v2570_v60 = vmul.f32 1.442695, %v2473_v31 }
 0x4f4   : > { %v2696_v14 = vmul.f32 1.442695, %v2648_v61  ;;  %v9976_v9 = vpop.f32.mrf.mxu1  ;;  %v9978_v23 = vpop.eup %7489  ;;  %v2474_v30 = vsub.f32 %v12994_v22, %v2425_v39  ;;  %v2475_v29 = vsub.f32 %v12995_v47, %v2425_v39  ;;  %v2649_v21 = vsub.f32 %v12996_v53, %v2425_v39  ;;  %v12999_v22 = vld [vmem:[#allocation52_spill] sm:$0xff]  ;;  %v13002_v53 = vld [vmem:[#allocation35_spill] sm:$0xff] }
 0x4f5   : > { %12992 = vst [vmem:[#allocation19_spill] sm:$0xff] %v9976_v9  ;;  %12993 = vst [vmem:[#allocation57_spill] sm:$0xff] %v9978_v23  ;;  %4025 = vmax.xlane.f32.xlu0 %v4024_v4  ;;  %v9983_v57 = vpop.eup %7491  ;;  %7509 = vpow2.f32 %v2568_v24  ;;  %v2304_v7 = vpop.xlane.xlu0 %2303  ;;  %v13006_v24 = vld [vmem:[#allocation55_spill] sm:$0xff] }
 0x4f6   : > { %v9985_v18 = vpop.f32.mrf.mxu1  ;;  %v9987_v33 = vpop.eup %7493  ;;  %7511 = vpow2.f32 %v2570_v60  ;;  %v2572_v31 = vmul.f32 1.442695, %v2474_v30  ;;  %v2574_v61 = vmul.f32 1.442695, %v2475_v29  ;;  %v2698_v3 = vmul.f32 1.442695, %v2649_v21 }
 0x4f7   : > { %12997 = vst [vmem:[#allocation30_spill] sm:$0xff] %v9985_v18  ;;  %v9989_v26 = vpop.eup %7495  ;;  %7513 = vpow2.f32 %v2696_v14  ;;  %v2426_v47 = vmax.f32 %v2304_v7, %v12999_v22  ;;  %v4027_v39 = vmax.f32 %v9976_v9, %v9985_v18  ;;  %v13001_v30 = vld [vmem:[#allocation34_spill] sm:$0xff] }
 0x4f8   : > { %12998 = vst [vmem:[#allocation31_spill] sm:$0xff] %v9989_v26  ;;  %v9994_v4 = vpop.f32.mrf.mxu1  ;;  %7515 = vpow2.f32 %v2572_v31  ;;  %v2958_v60 = vpack.c.bf16 %v9989_v26, %v9978_v23  ;;  %v13003_v7 = vld [vmem:[#allocation18_spill] sm:$0xff] }
 0x4f9   : > { %13000 = vst [vmem:[#allocation22_spill] sm:$0xff] %v9994_v4  ;;  %7517 = vpow2.f32 %v2574_v61  ;;  %v2476_v14 = vsub.f32 %v13001_v30, %v2426_v47  ;;  %v2477_v21 = vsub.f32 %v13002_v53, %v2426_v47  ;;  %v2650_v22 = vsub.f32 %v13003_v7, %v2426_v47  ;;  %4028 = vmax.xlane.f32.xlu1 %v4027_v39  ;;  %v2307_v9 = vpop.xlane.xlu1 %2306  ;;  %v13009_v39 = vld [vmem:[#allocation36_spill] sm:$0xff] }
 0x4fa   : > { %v10005_v18 = vpop.f32.mrf.mxu1  ;;  %v10007_v10 = vpop.eup %7497  ;;  %7519 = vpow2.f32 %v2698_v3  ;;  %6936 = vmatprep.mubr.bf16.mxu0 %v2958_v60  ;;  %v2427_v29 = vmax.f32 %v2307_v9, %v13006_v24  ;;  %v13011_v3 = vld [vmem:[#allocation21_spill] sm:$0xff] }
 0x4fb   : > { %13004 = vst [vmem:[#allocation60_spill] sm:$0xff] %v10005_v18  ;;  %13005 = vst [vmem:[#allocation32_spill] sm:$0xff] %v10007_v10  ;;  %v4030_v31 = vmax.f32 %v9994_v4, %v10005_v18  ;;  %v10012_v61 = vpop.eup %7499  ;;  %v2576_v30 = vmul.f32 1.442695, %v2476_v14  ;;  %v2578_v26 = vmul.f32 1.442695, %v2477_v21 }
 0x4fc   : > { %v2700_v53 = vmul.f32 1.442695, %v2650_v22  ;;  %v10014_v23 = vpop.f32.mrf.mxu1  ;;  %v10016_v47 = vpop.eup %7501  ;;  %v2478_v7 = vsub.f32 %v13009_v39, %v2427_v29  ;;  %v2479_v35 = vsub.f32 %v13010_v25, %v2427_v29  ;;  %v2651_v60 = vsub.f32 %v13011_v3, %v2427_v29  ;;  %v13015_v39 = vld [vmem:[#allocation67_spill] sm:$0xff]  ;;  %v13027_v10 = vld [vmem:[#allocation41_spill] sm:$0xff] }
 0x4fd   : > { %13007 = vst [vmem:[#allocation33_spill] sm:$0xff] %v10014_v23  ;;  %13008 = vst [vmem:[#allocation24_spill] sm:$0xff] %v10016_v47  ;;  %4031 = vmax.xlane.f32.xlu0 %v4030_v31  ;;  %v10021_v27 = vpop.eup %7503  ;;  %7521 = vpow2.f32 %v2576_v30  ;;  %v2310_v9 = vpop.xlane.xlu0 %2309  ;;  %v13018_v3 = vld [vmem:[#allocation39_spill] sm:$0xff]  ;;  %v13022_v30 = vld [vmem:[#allocation70_spill] sm:$0xff] }
 0x4fe   : > { %13012 = vst [vmem:[#allocation52_spill] sm:$0xff] %v10021_v27  ;;  %v10023_v24 = vpop.f32.mrf.mxu1  ;;  %v10025_v14 = vpop.eup %7505  ;;  %7523 = vpow2.f32 %v2578_v26  ;;  %v2580_v21 = vmul.f32 1.442695, %v2478_v7  ;;  %v2582_v22 = vmul.f32 1.442695, %v2479_v35  ;;  %v2428_v25 = vmax.f32 %v2310_v9, %v13015_v39  ;;  %v13017_v7 = vld [vmem:[#allocation38_spill] sm:$0xff] }
 0x4ff   : > { %13013 = vst [vmem:[#allocation34_spill] sm:$0xff] %v10023_v24  ;;  %v2702_v18 = vmul.f32 1.442695, %v2651_v60  ;;  %v10027_v4 = vpop.eup %7507  ;;  %7525 = vpow2.f32 %v2700_v53  ;;  %v4033_v29 = vmax.f32 %v10014_v23, %v10023_v24  ;;  %v13019_v9 = vld [vmem:[#allocation23_spill] sm:$0xff] }
 0x500   : > { %13014 = vst [vmem:[#allocation35_spill] sm:$0xff] %v10027_v4  ;;  %v10032_v31 = vpop.f32.mrf.mxu1  ;;  %7527 = vpow2.f32 %v2580_v21  ;;  %v2959_v26 = vpack.c.bf16 %v10027_v4, %v10016_v47  ;;  %v2480_v53 = vsub.f32 %v13017_v7, %v2428_v25  ;;  %v2481_v60 = vsub.f32 %v13018_v3, %v2428_v25 }
 0x501   : > { %13016 = vst [vmem:[#allocation18_spill] sm:$0xff] %v10032_v31  ;;  %7529 = vpow2.f32 %v2582_v22  ;;  %v2652_v39 = vsub.f32 %v13019_v9, %v2428_v25  ;;  %4034 = vmax.xlane.f32.xlu1 %v4033_v29  ;;  %v2313_v23 = vpop.xlane.xlu1 %2312  ;;  %v13026_v29 = vld [vmem:[#allocation40_spill] sm:$0xff] }
 0x502   : > { %v10043_v24 = vpop.f32.mrf.mxu1  ;;  %v10045_v0 = vpop.eup %7509  ;;  %7531 = vpow2.f32 %v2702_v18  ;;  %6937 = vmatmul.mubr.bf16.gmra.mxu0 %v2959_v26  ;;  %v2429_v35 = vmax.f32 %v2313_v23, %v13022_v30  ;;  %v2584_v7 = vmul.f32 1.442695, %v2480_v53  ;;  %v2586_v4 = vmul.f32 1.442695, %v2481_v60  ;;  %v13028_v18 = vld [vmem:[#allocation5_spill] sm:$0xff] }
 0x503   : > { %13020 = vst [vmem:[#allocation55_spill] sm:$0xff] %v10043_v24  ;;  %13021 = vst [vmem:[#allocation36_spill] sm:$0xff] %v10045_v0  ;;  %v4036_v21 = vmax.f32 %v10032_v31, %v10043_v24  ;;  %v10050_v22 = vpop.eup %7511  ;;  %v2704_v3 = vmul.f32 1.442695, %v2652_v39  ;;  %v13045_v0 = vld [vmem:[#allocation46_spill] sm:$0xff] }
 0x504   : > { %13023 = vst [vmem:[#allocation37_spill] sm:$0xff] %v10050_v22  ;;  %v10052_v47 = vpop.f32.mrf.mxu1  ;;  %v10054_v25 = vpop.eup %7513  ;;  %v2482_v9 = vsub.f32 %v13026_v29, %v2429_v35  ;;  %v2483_v27 = vsub.f32 %v13027_v10, %v2429_v35  ;;  %v2653_v26 = vsub.f32 %v13028_v18, %v2429_v35  ;;  %7533 = vpow2.f32 %v2584_v7  ;;  %v13033_v29 = vld [vmem:[#allocation62_spill] sm:$0xff]  ;;  %v13036_v18 = vld [vmem:[#allocation43_spill] sm:$0xff]  ;;  %v13040_v7 = vld [vmem:[#allocation65_spill] sm:$0xff] }
 0x505   : > { %13024 = vst [vmem:[#allocation21_spill] sm:$0xff] %v10052_v47  ;;  %13025 = vst [vmem:[#allocation67_spill] sm:$0xff] %v10054_v25  ;;  %4037 = vmax.xlane.f32.xlu0 %v4036_v21  ;;  %v10059_v52 = vpop.eup %7515  ;;  %v2316_v23 = vpop.xlane.xlu0 %2315  ;;  %7535 = vpow2.f32 %v2586_v4 }
 0x506   : > { %13029 = vst [vmem:[#allocation38_spill] sm:$0xff] %v10059_v52  ;;  %v10061_v30 = vpop.f32.mrf.mxu1  ;;  %v10063_v53 = vpop.eup %7517  ;;  %v2588_v60 = vmul.f32 1.442695, %v2482_v9  ;;  %v2590_v39 = vmul.f32 1.442695, %v2483_v27  ;;  %7537 = vpow2.f32 %v2704_v3  ;;  %v2430_v10 = vmax.f32 %v2316_v23, %v13033_v29  ;;  %v13035_v9 = vld [vmem:[#allocation42_spill] sm:$0xff] }
 0x507   : > { %13030 = vst [vmem:[#allocation39_spill] sm:$0xff] %v10061_v30  ;;  %13031 = vst [vmem:[#allocation23_spill] sm:$0xff] %v10063_v53  ;;  %v2706_v24 = vmul.f32 1.442695, %v2653_v26  ;;  %v10065_v31 = vpop.eup %7519  ;;  %v4039_v35 = vmax.f32 %v10052_v47, %v10061_v30  ;;  %v13037_v23 = vld [vmem:[#allocation3_spill] sm:$0xff] }
 0x508   : > { %13032 = vst [vmem:[#allocation70_spill] sm:$0xff] %v10065_v31  ;;  %v10070_v21 = vpop.f32.mrf.mxu1  ;;  %7539 = vpow2.f32 %v2588_v60  ;;  %v2960_v4 = vpack.c.bf16 %v10065_v31, %v10054_v25  ;;  %v2484_v3 = vsub.f32 %v13035_v9, %v2430_v10  ;;  %v2485_v26 = vsub.f32 %v13036_v18, %v2430_v10 }
 0x509   : > { %13034 = vst [vmem:[#allocation40_spill] sm:$0xff] %v10070_v21  ;;  %7541 = vpow2.f32 %v2590_v39  ;;  %v2654_v29 = vsub.f32 %v13037_v23, %v2430_v10  ;;  %4040 = vmax.xlane.f32.xlu1 %v4039_v35  ;;  %v2319_v47 = vpop.xlane.xlu1 %2318  ;;  %v13044_v35 = vld [vmem:[#allocation45_spill] sm:$0xff] }
 0x50a   : > { %v10081_v30 = vpop.f32.mrf.mxu1  ;;  %v10083_v12 = vpop.eup %7521  ;;  %7543 = vpow2.f32 %v2706_v24  ;;  %6940 = vmatprep.mubr.bf16.mxu0 %v2960_v4  ;;  %v2431_v27 = vmax.f32 %v2319_v47, %v13040_v7  ;;  %v2592_v9 = vmul.f32 1.442695, %v2484_v3  ;;  %v2594_v31 = vmul.f32 1.442695, %v2485_v26  ;;  %v13046_v24 = vld [vmem:[#allocation2_spill] sm:$0xff] }
 0x50b   : > { %13038 = vst [vmem:[#allocation41_spill] sm:$0xff] %v10081_v30  ;;  %13039 = vst [vmem:[#allocation5_spill] sm:$0xff] %v10083_v12  ;;  %v4042_v60 = vmax.f32 %v10070_v21, %v10081_v30  ;;  %v10088_v39 = vpop.eup %7523  ;;  %v2708_v18 = vmul.f32 1.442695, %v2654_v29  ;;  %v13063_v12 = vld [vmem:[#allocation51_spill] sm:$0xff] }
 0x50c   : > { %13041 = vst [vmem:[#allocation62_spill] sm:$0xff] %v10088_v39  ;;  %v10090_v25 = vpop.f32.mrf.mxu1  ;;  %v10092_v10 = vpop.eup %7525  ;;  %v2486_v23 = vsub.f32 %v13044_v35, %v2431_v27  ;;  %v2487_v52 = vsub.f32 %v13045_v0, %v2431_v27  ;;  %v2655_v4 = vsub.f32 %v13046_v24, %v2431_v27  ;;  %7545 = vpow2.f32 %v2592_v9  ;;  %v13051_v35 = vld [vmem:[#allocation77_spill] sm:$0xff]  ;;  %v13058_v9 = vld [vmem:[#allocation80_spill] sm:$0xff] }
 0x50d   : > { %13042 = vst [vmem:[#allocation42_spill] sm:$0xff] %v10090_v25  ;;  %13043 = vst [vmem:[#allocation43_spill] sm:$0xff] %v10092_v10  ;;  %4043 = vmax.xlane.f32.xlu0 %v4042_v60  ;;  %v10097_v22 = vpop.eup %7527  ;;  %v2322_v47 = vpop.xlane.xlu0 %2321  ;;  %7547 = vpow2.f32 %v2594_v31  ;;  %v13054_v24 = vld [vmem:[#allocation49_spill] sm:$0xff] }
 0x50e   : > { %13047 = vst [vmem:[#allocation3_spill] sm:$0xff] %v10097_v22  ;;  %v10099_v7 = vpop.f32.mrf.mxu1  ;;  %v10101_v3 = vpop.eup %7529  ;;  %v2596_v26 = vmul.f32 1.442695, %v2486_v23  ;;  %v2598_v29 = vmul.f32 1.442695, %v2487_v52  ;;  %7549 = vpow2.f32 %v2708_v18  ;;  %v2432_v0 = vmax.f32 %v2322_v47, %v13051_v35  ;;  %v13053_v23 = vld [vmem:[#allocation48_spill] sm:$0xff] }
 0x50f   : > { %13048 = vst [vmem:[#allocation65_spill] sm:$0xff] %v10099_v7  ;;  %13049 = vst [vmem:[#allocation45_spill] sm:$0xff] %v10101_v3  ;;  %v2710_v30 = vmul.f32 1.442695, %v2655_v4  ;;  %v10103_v21 = vpop.eup %7531  ;;  %v4045_v27 = vmax.f32 %v10090_v25, %v10099_v7  ;;  %v13055_v47 = vld [vmem:[#allocation8_spill] sm:$0xff] }
 0x510   : > { %13050 = vst [vmem:[#allocation46_spill] sm:$0xff] %v10103_v21  ;;  %v10108_v60 = vpop.f32.mrf.mxu1  ;;  %7551 = vpow2.f32 %v2596_v26  ;;  %v2961_v31 = vpack.c.bf16 %v10103_v21, %v10092_v10  ;;  %v2488_v18 = vsub.f32 %v13053_v23, %v2432_v0  ;;  %v2489_v4 = vsub.f32 %v13054_v24, %v2432_v0 }
 0x511   : > { %13052 = vst [vmem:[#allocation2_spill] sm:$0xff] %v10108_v60  ;;  %7553 = vpow2.f32 %v2598_v29  ;;  %v2656_v35 = vsub.f32 %v13055_v47, %v2432_v0  ;;  %4046 = vmax.xlane.f32.xlu1 %v4045_v27  ;;  %v2325_v25 = vpop.xlane.xlu1 %2324  ;;  %v10121_v53 = vpop.eup %7533  ;;  %v13062_v27 = vld [vmem:[#allocation50_spill] sm:$0xff] }
 0x512   : > { %v10119_v7 = vpop.f32.mrf.mxu1  ;;  %13057 = vst [vmem:[#allocation48_spill] sm:$0xff] %v10121_v53  ;;  %7555 = vpow2.f32 %v2710_v30  ;;  %6941 = vmatmul.mubr.bf16.gmra.mxu0 %v2961_v31  ;;  %v2433_v52 = vmax.f32 %v2325_v25, %v13058_v9  ;;  %v10126_v29 = vpop.eup %7535  ;;  %v2600_v23 = vmul.f32 1.442695, %v2488_v18  ;;  %v2602_v21 = vmul.f32 1.442695, %v2489_v4  ;;  %v13064_v30 = vld [vmem:[#allocation9_spill] sm:$0xff] }
 0x513   : > { %13056 = vst [vmem:[#allocation77_spill] sm:$0xff] %v10119_v7  ;;  %v4048_v26 = vmax.f32 %v10108_v60, %v10119_v7  ;;  %13059 = vst [vmem:[#allocation49_spill] sm:$0xff] %v10126_v29  ;;  %v2712_v24 = vmul.f32 1.442695, %v2656_v35  ;;  %v10130_v0 = vpop.eup %7537  ;;  %v13081_v53 = vld [vmem:[#allocation58_spill] sm:$0xff] }
 0x514   : > { %v10128_v10 = vpop.f32.mrf.mxu1  ;;  %13061 = vst [vmem:[#allocation80_spill] sm:$0xff] %v10130_v0  ;;  %v2490_v47 = vsub.f32 %v13062_v27, %v2433_v52  ;;  %v2491_v22 = vsub.f32 %v13063_v12, %v2433_v52  ;;  %v2657_v31 = vsub.f32 %v13064_v30, %v2433_v52  ;;  %7557 = vpow2.f32 %v2600_v23  ;;  %v13069_v27 = vld [vmem:[#allocation72_spill] sm:$0xff]  ;;  %v13072_v30 = vld [vmem:[#allocation54_spill] sm:$0xff] }
 0x515   : > { %13060 = vst [vmem:[#allocation8_spill] sm:$0xff] %v10128_v10  ;;  %4049 = vmax.xlane.f32.xlu0 %v4048_v26  ;;  %v10135_v39 = vpop.eup %7539  ;;  %v2328_v25 = vpop.xlane.xlu0 %2327  ;;  %7559 = vpow2.f32 %v2602_v21  ;;  %v13076_v23 = vld [vmem:[#allocation74_spill] sm:$0xff] }
 0x516   : > { %13065 = vst [vmem:[#allocation50_spill] sm:$0xff] %v10135_v39  ;;  %v10137_v9 = vpop.f32.mrf.mxu1  ;;  %v10139_v18 = vpop.eup %7541  ;;  %v2604_v4 = vmul.f32 1.442695, %v2490_v47  ;;  %v2606_v35 = vmul.f32 1.442695, %v2491_v22  ;;  %7561 = vpow2.f32 %v2712_v24  ;;  %v2434_v12 = vmax.f32 %v2328_v25, %v13069_v27  ;;  %v13071_v47 = vld [vmem:[#allocation53_spill] sm:$0xff] }
 0x517   : > { %13066 = vst [vmem:[#allocation51_spill] sm:$0xff] %v10137_v9  ;;  %13067 = vst [vmem:[#allocation9_spill] sm:$0xff] %v10139_v18  ;;  %v2714_v7 = vmul.f32 1.442695, %v2657_v31  ;;  %v10141_v60 = vpop.eup %7543  ;;  %v4051_v52 = vmax.f32 %v10128_v10, %v10137_v9  ;;  %v13073_v25 = vld [vmem:[#allocation4_spill] sm:$0xff] }
 0x518   : > { %13068 = vst [vmem:[#allocation112_spill] sm:$0xff] %v10141_v60  ;;  %v10146_v26 = vpop.f32.mrf.mxu1  ;;  %7563 = vpow2.f32 %v2604_v4  ;;  %v2962_v21 = vpack.c.bf16 %v10141_v60, %v10130_v0  ;;  %v2492_v24 = vsub.f32 %v13071_v47, %v2434_v12  ;;  %v2493_v31 = vsub.f32 %v13072_v30, %v2434_v12 }
 0x519   : > { %13070 = vst [vmem:[#allocation72_spill] sm:$0xff] %v10146_v26  ;;  %7565 = vpow2.f32 %v2606_v35  ;;  %v2658_v27 = vsub.f32 %v13073_v25, %v2434_v12  ;;  %4052 = vmax.xlane.f32.xlu1 %v4051_v52  ;;  %v2331_v10 = vpop.xlane.xlu1 %2330  ;;  %v10159_v3 = vpop.eup %7545  ;;  %v13080_v52 = vld [vmem:[#allocation56_spill] sm:$0xff] }
 0x51a   : > { %v10157_v9 = vpop.f32.mrf.mxu1  ;;  %13075 = vst [vmem:[#allocation54_spill] sm:$0xff] %v10159_v3  ;;  %7567 = vpow2.f32 %v2714_v7  ;;  %6944 = vmatprep.mubr.bf16.mxu0 %v2962_v21  ;;  %v2435_v22 = vmax.f32 %v2331_v10, %v13076_v23  ;;  %v10164_v35 = vpop.eup %7547  ;;  %v2608_v47 = vmul.f32 1.442695, %v2492_v24  ;;  %v2610_v60 = vmul.f32 1.442695, %v2493_v31  ;;  %v13082_v7 = vld [vmem:[#allocation6_spill] sm:$0xff] }
 0x51b   : > { %13074 = vst [vmem:[#allocation53_spill] sm:$0xff] %v10157_v9  ;;  %v4054_v4 = vmax.f32 %v10146_v26, %v10157_v9  ;;  %13077 = vst [vmem:[#allocation4_spill] sm:$0xff] %v10164_v35  ;;  %v2716_v30 = vmul.f32 1.442695, %v2658_v27  ;;  %v10168_v12 = vpop.eup %7549  ;;  %v13099_v3 = vld [vmem:[#allocation64_spill] sm:$0xff] }
 0x51c   : > { %v10166_v0 = vpop.f32.mrf.mxu1  ;;  %13079 = vst [vmem:[#allocation113_spill] sm:$0xff] %v10168_v12  ;;  %v2494_v25 = vsub.f32 %v13080_v52, %v2435_v22  ;;  %v2495_v39 = vsub.f32 %v13081_v53, %v2435_v22  ;;  %v2659_v21 = vsub.f32 %v13082_v7, %v2435_v22  ;;  %7569 = vpow2.f32 %v2608_v47  ;;  %v13087_v52 = vld [vmem:[#allocation81_spill] sm:$0xff]  ;;  %v13094_v47 = vld [vmem:[#allocation84_spill] sm:$0xff] }
 0x51d   : > { %13078 = vst [vmem:[#allocation74_spill] sm:$0xff] %v10166_v0  ;;  %4055 = vmax.xlane.f32.xlu0 %v4054_v4  ;;  %v10173_v29 = vpop.eup %7551  ;;  %v2334_v10 = vpop.xlane.xlu0 %2333  ;;  %7571 = vpow2.f32 %v2610_v60  ;;  %v13090_v7 = vld [vmem:[#allocation61_spill] sm:$0xff] }
 0x51e   : > { %13083 = vst [vmem:[#allocation56_spill] sm:$0xff] %v10173_v29  ;;  %v10175_v23 = vpop.f32.mrf.mxu1  ;;  %v10177_v24 = vpop.eup %7553  ;;  %v2612_v31 = vmul.f32 1.442695, %v2494_v25  ;;  %v2614_v27 = vmul.f32 1.442695, %v2495_v39  ;;  %7573 = vpow2.f32 %v2716_v30  ;;  %v2436_v53 = vmax.f32 %v2334_v10, %v13087_v52  ;;  %v13089_v25 = vld [vmem:[#allocation59_spill] sm:$0xff] }
 0x51f   : > { %13084 = vst [vmem:[#allocation58_spill] sm:$0xff] %v10175_v23  ;;  %13085 = vst [vmem:[#allocation6_spill] sm:$0xff] %v10177_v24  ;;  %v2718_v9 = vmul.f32 1.442695, %v2659_v21  ;;  %v10179_v26 = vpop.eup %7555  ;;  %v4057_v22 = vmax.f32 %v10166_v0, %v10175_v23  ;;  %v13091_v10 = vld [vmem:[#allocation7_spill] sm:$0xff] }
 0x520   : > { %13086 = vst [vmem:[#allocation114_spill] sm:$0xff] %v10179_v26  ;;  %v10184_v4 = vpop.f32.mrf.mxu1  ;;  %7575 = vpow2.f32 %v2612_v31  ;;  %v2963_v60 = vpack.c.bf16 %v10179_v26, %v10168_v12  ;;  %v2496_v30 = vsub.f32 %v13089_v25, %v2436_v53  ;;  %v2497_v21 = vsub.f32 %v13090_v7, %v2436_v53  ;;  %v13117_v24 = vld [vmem:[#allocation75_spill] sm:$0xff] }
 0x521   : > { %13088 = vst [vmem:[#allocation81_spill] sm:$0xff] %v10184_v4  ;;  %7577 = vpow2.f32 %v2614_v27  ;;  %v2660_v52 = vsub.f32 %v13091_v10, %v2436_v53  ;;  %4058 = vmax.xlane.f32.xlu1 %v4057_v22  ;;  %v2337_v0 = vpop.xlane.xlu1 %2336  ;;  %v10197_v18 = vpop.eup %7557  ;;  %v13098_v22 = vld [vmem:[#allocation63_spill] sm:$0xff] }
 0x522   : > { %v10195_v23 = vpop.f32.mrf.mxu1  ;;  %13093 = vst [vmem:[#allocation61_spill] sm:$0xff] %v10197_v18  ;;  %7579 = vpow2.f32 %v2718_v9  ;;  %6945 = vmatmul.mubr.bf16.gmra.mxu0 %v2963_v60  ;;  %v2437_v39 = vmax.f32 %v2337_v0, %v13094_v47  ;;  %v10202_v27 = vpop.eup %7559  ;;  %v2616_v25 = vmul.f32 1.442695, %v2496_v30  ;;  %v2618_v26 = vmul.f32 1.442695, %v2497_v21  ;;  %v13100_v9 = vld [vmem:[#allocation12_spill] sm:$0xff] }
 0x523   : > { %13092 = vst [vmem:[#allocation59_spill] sm:$0xff] %v10195_v23  ;;  %v4060_v31 = vmax.f32 %v10184_v4, %v10195_v23  ;;  %13095 = vst [vmem:[#allocation7_spill] sm:$0xff] %v10202_v27  ;;  %v2720_v7 = vmul.f32 1.442695, %v2660_v52  ;;  %v10206_v53 = vpop.eup %7561 }
 0x524   : > { %v10204_v12 = vpop.f32.mrf.mxu1  ;;  %13097 = vst [vmem:[#allocation115_spill] sm:$0xff] %v10206_v53  ;;  %v2498_v10 = vsub.f32 %v13098_v22, %v2437_v39  ;;  %v2499_v29 = vsub.f32 %v13099_v3, %v2437_v39  ;;  %v2661_v60 = vsub.f32 %v13100_v9, %v2437_v39  ;;  %7581 = vpow2.f32 %v2616_v25 }
 0x525   : > { %13096 = vst [vmem:[#allocation84_spill] sm:$0xff] %v10204_v12  ;;  %4061 = vmax.xlane.f32.xlu0 %v4060_v31  ;;  %v10211_v35 = vpop.eup %7563  ;;  %v2340_v0 = vpop.xlane.xlu0 %2339  ;;  %7583 = vpow2.f32 %v2618_v26 }
 0x526   : > { %13101 = vst [vmem:[#allocation63_spill] sm:$0xff] %v10211_v35  ;;  %v10213_v47 = vpop.f32.mrf.mxu1  ;;  %v10215_v30 = vpop.eup %7565  ;;  %v2620_v21 = vmul.f32 1.442695, %v2498_v10  ;;  %v2622_v52 = vmul.f32 1.442695, %v2499_v29  ;;  %7585 = vpow2.f32 %v2720_v7 }
 0x527   : > { %13102 = vst [vmem:[#allocation64_spill] sm:$0xff] %v10213_v47  ;;  %13103 = vst [vmem:[#allocation12_spill] sm:$0xff] %v10215_v30  ;;  %v2722_v23 = vmul.f32 1.442695, %v2661_v60  ;;  %v10217_v4 = vpop.eup %7567  ;;  %v4063_v3 = vmax.f32 %v10204_v12, %v10213_v47  ;;  %v13111_v47 = vld [vmem:[#allocation73_spill] sm:$0xff] }
 0x528   : > { %13104 = vst [vmem:[#allocation116_spill] sm:$0xff] %v10217_v4  ;;  %v10221_v39 = vpop.f32.mrf.mxu1  ;;  %7587 = vpow2.f32 %v2620_v21  ;;  %v2964_v26 = vpack.c.bf16 %v10217_v4, %v10206_v53  ;;  %v13110_v4 = vld [vmem:[#allocation68_spill] sm:$0xff] }
 0x529   : > { %13105 = vst [vmem:[#allocation117_spill] sm:$0xff] %v10221_v39  ;;  %7589 = vpow2.f32 %v2622_v52  ;;  %4064 = vmax.xlane.f32.xlu1 %v4063_v3  ;;  %v2405_v29 = vpop.xlane.xlu0 %2404  ;;  %v10231_v7 = vpop.eup %7569  ;;  %v13109_v52 = vld [vmem:[#allocation66_spill] sm:$0xff] }
 0x52a   : > { %v10229_v22 = vpop.f32.mrf.mxu1  ;;  %7591 = vpow2.f32 %v2722_v23  ;;  %6948 = vmatprep.mubr.bf16.mxu0 %v2964_v26  ;;  %v2438_v10 = vmax.f32 %v2340_v0, %v2405_v29  ;;  %v2343_v60 = vpop.xlane.xlu1 %2342 }
 0x52b   : > { %13106 = vst [vmem:[#allocation118_spill] sm:$0xff] %v10229_v22  ;;  %v4066_v9 = vmax.f32 %v10221_v39, %v10229_v22  ;;  %v10235_v31 = vpop.eup %7571 }
 0x52c   : > { %v10237_v21 = vpop.f32.mrf.mxu1  ;;  %v10239_v25 = vpop.eup %7573  ;;  %v2500_v3 = vsub.f32 %v13109_v52, %v2438_v10  ;;  %v2501_v53 = vsub.f32 %v13110_v4, %v2438_v10  ;;  %v2662_v12 = vsub.f32 %v13111_v47, %v2438_v10 }
 0x52d   : > { %13107 = vst [vmem:[#allocation119_spill] sm:$0xff] %v10237_v21  ;;  %13108 = vst [vmem:[#allocation120_spill] sm:$0xff] %v10239_v25  ;;  %4067 = vmax.xlane.f32.xlu0 %v4066_v9  ;;  %v10244_v23 = vpop.eup %7575 }
 0x52e   : > { %v10246_v0 = vpop.f32.mrf.mxu1  ;;  %v10248_v26 = vpop.eup %7577  ;;  %v2624_v29 = vmul.f32 1.442695, %v2500_v3  ;;  %v2626_v35 = vmul.f32 1.442695, %v2501_v53  ;;  %v2724_v10 = vmul.f32 1.442695, %v2662_v12 }
 0x52f   : > { %13112 = vst [vmem:[#allocation66_spill] sm:$0xff] %v10246_v0  ;;  %v4069_v22 = vmax.f32 %v10237_v21, %v10246_v0  ;;  %v2407_v39 = vpop.xlane.xlu1 %2406  ;;  %v10252_v18 = vpop.eup %7579  ;;  %v13115_v3 = vld [vmem:[#allocation69_spill] sm:$0xff]  ;;  %v13116_v21 = vld [vmem:[#allocation71_spill] sm:$0xff] }
 0x530   : > { %13113 = vst [vmem:[#allocation68_spill] sm:$0xff] %v10252_v18  ;;  %v2439_v52 = vmax.f32 %v2343_v60, %v2407_v39  ;;  %v10254_v27 = vpop.f32.mrf.mxu1  ;;  %v2965_v9 = vpack.c.bf16 %v10252_v18, %v10239_v25  ;;  %7593 = vpow2.f32 %v2624_v29 }
 0x531   : > { %13114 = vst [vmem:[#allocation73_spill] sm:$0xff] %v10254_v27  ;;  %4070 = vmax.xlane.f32.xlu1 %v4069_v22  ;;  %v10267_v60 = vpop.eup %7581  ;;  %7595 = vpow2.f32 %v2626_v35 }
 0x532   : > { %v2502_v0 = vsub.f32 %v13115_v3, %v2439_v52  ;;  %v2503_v30 = vsub.f32 %v13116_v21, %v2439_v52  ;;  %v2663_v53 = vsub.f32 %v13117_v24, %v2439_v52  ;;  %v10265_v39 = vpop.f32.mrf.mxu1  ;;  %13119 = vst [vmem:[#allocation71_spill] sm:$0xff] %v10267_v60  ;;  %6949 = vmatmul.mubr.bf16.gmra.mxu0 %v2965_v9  ;;  %v10271_v12 = vpop.eup %7583  ;;  %7597 = vpow2.f32 %v2724_v10 }
 0x533   : > { %13118 = vst [vmem:[#allocation69_spill] sm:$0xff] %v10265_v39  ;;  %v4072_v47 = vmax.f32 %v10254_v27, %v10265_v39  ;;  %13120 = vst [vmem:[#allocation75_spill] sm:$0xff] %v10271_v12  ;;  %v10275_v21 = vpop.eup %7585  ;;  %v10279_v52 = vpop.xlane.xlu0 %4112 }
 0x534   : > { %v2628_v22 = vmul.f32 1.442695, %v2502_v0  ;;  %v2630_v4 = vmul.f32 1.442695, %v2503_v30  ;;  %v2726_v18 = vmul.f32 1.442695, %v2663_v53  ;;  %v10273_v3 = vpop.f32.mrf.mxu1 }
 0x535   : > { %13121 = vst [vmem:[#allocation121_spill] sm:$0xff] %v10273_v3  ;;  %13122 = vst [vmem:[#allocation122_spill] sm:$0xff] %v10275_v21  ;;  %4073 = vmax.xlane.f32.xlu0 %v4072_v47  ;;  %v10277_v24 = vpop.eup %7587 }
 0x536   : > { %13123 = vst [vmem:[#allocation123_spill] sm:$0xff] %v10277_v24  ;;  %7599 = vpow2.f32 %v2628_v22  ;;  %v10281_v29 = vpop.f32.mrf.mxu1  ;;  %v10283_v9 = vpop.eup %7589 }
 0x537   : > { %13124 = vst [vmem:[#allocation124_spill] sm:$0xff] %v10281_v29  ;;  %13125 = vst [vmem:[#allocation125_spill] sm:$0xff] %v10283_v9  ;;  %7601 = vpow2.f32 %v2630_v4  ;;  %v4075_v35 = vmax.f32 %v10273_v3, %v10281_v29  ;;  %v10289_v0 = vpop.eup %7591  ;;  %v10299_v4 = vpop.xlane.xlu1 %4114 }
 0x538   : > { %13126 = vst [vmem:[#allocation126_spill] sm:$0xff] %v10289_v0  ;;  %7603 = vpow2.f32 %v2726_v18  ;;  %v10291_v47 = vpop.f32.mrf.mxu1  ;;  %v2966_v53 = vpack.c.bf16 %v10289_v0, %v10275_v21  ;;  %v10303_v25 = vpop.xlane.xlu0 %4108 }
 0x539   : > { %13127 = vst [vmem:[#allocation127_spill] sm:$0xff] %v10291_v47  ;;  %4076 = vmax.xlane.f32.xlu1 %v4075_v35 }
 0x53a   : > { %v10297_v22 = vpop.f32.mrf.mxu1  ;;  %6952 = vmatprep.mubr.bf16.mxu0 %v2966_v53 }
 0x53b   : > { %13128 = vst [vmem:[#allocation128_spill] sm:$0xff] %v10297_v22  ;;  %v4078_v30 = vmax.f32 %v10291_v47, %v10297_v22  ;;  %v10317_v53 = vpop.xlane.xlu1 %4110 }
 0x53c   : > { %v10305_v18 = vpop.f32.mrf.mxu1  ;;  %v10321_v47 = vpop.xlane.xlu0 %4120 }
 0x53d   : > { %13129 = vst [vmem:[#allocation129_spill] sm:$0xff] %v10305_v18  ;;  %4079 = vmax.xlane.f32.xlu0 %v4078_v30  ;;  %v10311_v10 = vpop.eup %7593 }
 0x53e   : > { %v10307_v29 = vpop.f32.mrf.mxu1  ;;  %13131 = vst [vmem:[#allocation131_spill] sm:$0xff] %v10311_v10  ;;  %v10315_v21 = vpop.eup %7595 }
 0x53f   : > { %13130 = vst [vmem:[#allocation130_spill] sm:$0xff] %v10307_v29  ;;  %v4081_v35 = vmax.f32 %v10305_v18, %v10307_v29  ;;  %13133 = vst [vmem:[#allocation133_spill] sm:$0xff] %v10315_v21  ;;  %v10319_v22 = vpop.eup %7597 }
 0x540   : > { %v10313_v0 = vpop.f32.mrf.mxu1  ;;  %13134 = vst [vmem:[#allocation134_spill] sm:$0xff] %v10319_v22  ;;  %v10347_v9 = vpop.xlane.xlu0 %4116 }
 0x541   : > { %13132 = vst [vmem:[#allocation132_spill] sm:$0xff] %v10313_v0  ;;  %4082 = vmax.xlane.f32.xlu1 %v4081_v35 }
 0x542   : > { %v10323_v3 = vpop.f32.mrf.mxu1 }
 0x543   : > { %13135 = vst [vmem:[#allocation135_spill] sm:$0xff] %v10323_v3  ;;  %v10325_v30 = vpop.eup %7599  ;;  %v4084_v29 = vmax.f32 %v10313_v0, %v10323_v3  ;;  %v10343_v3 = vpop.xlane.xlu1 %4122 }
 0x544   : > { %13136 = vst [vmem:[#allocation136_spill] sm:$0xff] %v10325_v30  ;;  %v10329_v18 = vpop.eup %7601  ;;  %v10331_v39 = vpop.f32.mrf.mxu1 }
 0x545   : > { %13137 = vst [vmem:[#allocation137_spill] sm:$0xff] %v10329_v18  ;;  %13138 = vst [vmem:[#allocation138_spill] sm:$0xff] %v10331_v39  ;;  %v10335_v60 = vpop.eup %7603  ;;  %4085 = vmax.xlane.f32.xlu0 %v4084_v29  ;;  %v13142_v29 = vpack.c.bf16 %v9709_v2, %v9694_v54  ;;  %v13154_v18 = vpack.c.bf16 %v9751_v41, %v9733_v16 }
 0x546   : > { %13139 = vst [vmem:[#allocation139_spill] sm:$0xff] %v10335_v60  ;;  %v2967_v24 = vpack.c.bf16 %v10335_v60, %v10319_v22  ;;  %v10341_v12 = vpop.f32.mrf.mxu1 }
 0x547   : > { %13140 = vst [vmem:[#allocation140_spill] sm:$0xff] %v10341_v12  ;;  %v4087_v0 = vmax.f32 %v10331_v39, %v10341_v12  ;;  %v10360_v10 = vpop.xlane.xlu1 %4118  ;;  %v10362_v12 = vpop.xlane.xlu0 %4128  ;;  %v7278_v39 = vld [vmem:[%s9309_s18 + $0x64] ss:$8 sps:$4 sm:$0xff]  }
 0x548   : > { %6953 = vmatmul.mubr.bf16.gmra.mxu0 %v2967_v24  ;;  %v10349_v27 = vpop.f32.mrf.mxu1  ;;  %13145 = vst [vmem:[#allocation144_spill] sm:$0xff] %v10362_v12 }
 0x549   : > { %13141 = vst [vmem:[#allocation141_spill] sm:$0xff] %v10349_v27  ;;  %3305 = vmatprep.mubr.bf16.mxu0 %v13142_v29  ;;  %4088 = vmax.xlane.f32.xlu1 %v4087_v0  ;;  %v13147_v0 = vpack.c.bf16 %v9705_v37, %v9687_v51  ;;  %v13167_v37 = vpack.c.bf16 %v9897_v1, %v9879_v11 }
 0x54a   : > { %v10354_v35 = vpop.f32.mrf.mxu1 }
 0x54b   : > { %13143 = vst [vmem:[#allocation142_spill] sm:$0xff] %v10354_v35  ;;  %v4090_v60 = vmax.f32 %v10349_v27, %v10354_v35  ;;  %v7279_v27 = vld [vmem:[%s9309_s18 + $0x54] ss:$8 sps:$4 sm:$0xff]   ;;  %v10381_v21 = vpop.xlane.xlu1 %4130 }
 0x54c   : > { %v10358_v22 = vpop.f32.mrf.mxu1  ;;  %13151 = vst [vmem:[#allocation148_spill] sm:$0xff] %v10381_v21 }
 0x54d   : > { %13144 = vst [vmem:[#allocation143_spill] sm:$0xff] %v10358_v22  ;;  %4091 = vmax.xlane.f32.xlu0 %v4090_v60  ;;  %v13149_v60 = vpack.c.bf16 %v9755_v63, %v9740_v6 }
 0x54e   : > { %v10364_v24 = vpop.f32.mrf.mxu1 }
 0x54f   : > { %13146 = vst [vmem:[#allocation145_spill] sm:$0xff] %v10364_v24  ;;  %v4093_v29 = vmax.f32 %v10358_v22, %v10364_v24 }
 0x550   : > { %3306 = vmatmul.mubr.bf16.vlgmr.msra.gmra.mxu0 %v13147_v0  ;;  %v10372_v30 = vpop.f32.mrf.mxu1  ;;  %v10385_v0 = vpop.xlane.xlu0 %4124 }
 0x551   : > { %13148 = vst [vmem:[#allocation146_spill] sm:$0xff] %v10372_v30  ;;  %7005 = vmatpush3.bf16.msra.mxu0 %v9935_v48  ;;  %3313 = vmatprep.mubr.bf16.mxu0 %v13149_v60  ;;  %v7280_v60 = vld [vmem:[%s9309_s18 + $0x44] ss:$8 sps:$4 sm:$0xff]  }
 0x552   : > { %4094 = vmax.xlane.f32.xlu1 %v4093_v29  ;;  %v10378_v35 = vpop.f32.mrf.mxu1  ;;  %7006 = vmatprep.subr.bf16.mxu0 %v7278_v39 }
 0x553   : > { %13150 = vst [vmem:[#allocation147_spill] sm:$0xff] %v10378_v35  ;;  %v4096_v24 = vmax.f32 %v10372_v30, %v10378_v35  ;;  %v10399_v35 = vpop.xlane.xlu1 %4126 }
 0x554   : > { %v10387_v22 = vpop.f32.mrf.mxu1  ;;  %13156 = vst [vmem:[#allocation152_spill] sm:$0xff] %v10399_v35 }
 0x555   : > { %13152 = vst [vmem:[#allocation149_spill] sm:$0xff] %v10387_v22  ;;  %4097 = vmax.xlane.f32.xlu0 %v4096_v24  ;;  %7007 = vmatpush3.bf16.msra.mxu0 %v7278_v39  ;;  %v13157_v24 = vpack.c.bf16 %v9805_v43, %v9789_v59  ;;  %v10404_v39 = vpop.xlane.xlu0 %4136 }
 0x556   : > { %v10389_v48 = vpop.f32.mrf.mxu1  ;;  %7008 = vmatprep.subr.bf16.mxu0 %v7279_v27 }
 0x557   : > { %13153 = vst [vmem:[#allocation150_spill] sm:$0xff] %v10389_v48  ;;  %v4099_v29 = vmax.f32 %v10387_v22, %v10389_v48  ;;  %v10415_v35 = vpop.xlane.xlu1 %4138 }
 0x558   : > { %3314 = vmatmul.mubr.bf16.gmra.mxu0 %v13154_v18  ;;  %v10397_v21 = vpop.f32.mrf.mxu1  ;;  %v7281_v18 = vld [vmem:[%s9309_s18 + $0x34] ss:$8 sps:$4 sm:$0xff]  }
 0x559   : > { %13155 = vst [vmem:[#allocation151_spill] sm:$0xff] %v10397_v21  ;;  %3321 = vmatprep.mubr.bf16.mxu0 %v13157_v24  ;;  %4100 = vmax.xlane.f32.xlu1 %v4099_v29  ;;  %v7282_v24 = vld [vmem:[%s9309_s18 + $0x24] ss:$8 sps:$4 sm:$0xff]  }
 0x55a   : > { %v10406_v30 = vpop.f32.mrf.mxu1  ;;  %7009 = vmatpush3.bf16.msra.mxu0 %v7279_v27  ;;  %v10423_v27 = vsel %vm1926_vm0, %v9821_v36, -1e+30  ;;  %v7283_v36 = vld [vmem:[%s9309_s18 + $0x14] ss:$8 sps:$4 sm:$0xff]  }
 0x55b   : > { %13158 = vst [vmem:[#allocation153_spill] sm:$0xff] %v10406_v30  ;;  %v4102_v48 = vmax.f32 %v10397_v21, %v10406_v30  ;;  %7010 = vmatprep.subr.bf16.mxu0 %v7280_v60  ;;  %13161 = vst [vmem:[#allocation156_spill] sm:$0xff] %v10423_v27  ;;  %v10425_v30 = vpop.xlane.xlu0 %4132  ;;  %v10442_v21 = vpop.xlane.xlu1 %4134 }
 0x55c   : > { %v10411_v22 = vpop.f32.mrf.mxu1 }
 0x55d   : > { %13159 = vst [vmem:[#allocation154_spill] sm:$0xff] %v10411_v22  ;;  %4103 = vmax.xlane.f32.xlu0 %v4102_v48  ;;  %v13162_v48 = vpack.c.bf16 %v9801_v58, %v9781_v28 }
 0x55e   : > { %v10413_v12 = vpop.f32.mrf.mxu1  ;;  %7011 = vmatpush3.bf16.msra.mxu0 %v7280_v60  ;;  %v13163_v60 = vpack.c.bf16 %v9859_v50, %v9836_v45 }
 0x55f   : > { %13160 = vst [vmem:[#allocation155_spill] sm:$0xff] %v10413_v12  ;;  %v4105_v29 = vmax.f32 %v10411_v22, %v10413_v12  ;;  %7012 = vmatprep.subr.bf16.mxu0 %v7281_v18  ;;  %v2728_v12 = vadd.f32 %v9694_v54, %v9687_v51  ;;  %v10440_v22 = vsel %vm1926_vm0, %v9845_v62, -1e+30  ;;  %v13165_v51 = vpack.c.bf16 %v9852_v56, %v9833_v49  ;;  %v10457_v62 = vpop.xlane.xlu1 %4146 }
 0x560   : > { %3322 = vmatmul.mubr.bf16.gmra.mxu0 %v13162_v48  ;;  %13164 = vst [vmem:[#allocation157_spill] sm:$0xff] %v10440_v22  ;;  %v10444_v48 = vpop.xlane.xlu0 %4144  ;;  %v13166_v54 = vpack.c.bf16 %v9902_v20, %v9886_v8 }
 0x561   : > { %3329 = vmatprep.mubr.bf16.mxu0 %v13163_v60  ;;  %4168 = vmax.xlane.f32.xlu0 %v10423_v27 }
 0x562   : > { %4106 = vmax.xlane.f32.xlu1 %v4105_v29  ;;  %7013 = vmatpush3.bf16.msra.mxu0 %v7281_v18  ;;  %v7284_v18 = vld [vmem:[%s9309_s18 + $0x4] ss:$8 sps:$4 sm:$0xff]   ;;  %v7285_v29 = vld [vmem:[%s9540_s21 + $0xf4] ss:$8 sps:$4 sm:$0xff]  }
 0x563   : > { %7014 = vmatprep.subr.bf16.mxu0 %v7282_v24  ;;  %v10470_v2 = vpop.xlane.xlu1 %4142 }
 0x565   : > { %2729 = vadd.xlane.f32.xlu0 %v2728_v12  ;;  %v2734_v12 = vadd.f32 %v9740_v6, %v9733_v16  ;;  %v13168_v16 = vpack.c.bf16 %v9948_v13, %v9928_v15 }
 0x566   : > { %4170 = vmax.xlane.f32.xlu1 %v10440_v22  ;;  %7015 = vmatpush3.bf16.msra.mxu0 %v7282_v24  ;;  %v10462_v24 = vpop.xlane.xlu0 %4140  ;;  %v13206_v22 = vld [vmem:[#allocation78_spill] sm:$0xff] }
 0x567   : > { %7016 = vmatprep.subr.bf16.mxu0 %v7283_v36  ;;  %v10481_v60 = vpop.xlane.xlu1 %4154 }
 0x568   : > { %3330 = vmatmul.mubr.bf16.gmra.mxu0 %v13165_v51  ;;  %v13177_v51 = vld [vmem:[#allocation14_spill] sm:$0xff] }
 0x569   : > { %3337 = vmatprep.mubr.bf16.mxu0 %v13166_v54  ;;  %2824 = vadd.xlane.f32.xlu0 %v9696_v38  ;;  %v2737_v38 = vadd.f32 %v9755_v63, %v9751_v41  ;;  %v13169_v63 = vpack.c.bf16 %v9944_v42, %v9921_v17  ;;  %v13179_v54 = vld [vmem:[#allocation32_spill] sm:$0xff] }
 0x56a   : > { %2732 = vadd.xlane.f32.xlu1 %v2731_v46  ;;  %7017 = vmatpush3.bf16.msra.mxu0 %v7283_v36  ;;  %v10476_v6 = vpop.xlane.xlu0 %4152  ;;  %v13170_v36 = vpack.c.bf16 %v9987_v33, %v9974_v19  ;;  %v13178_v46 = vld [vmem:[#allocation52_spill] sm:$0xff] }
 0x56b   : > { %7018 = vmatprep.subr.bf16.mxu0 %v7284_v18 }
 0x56d   : > { %2735 = vadd.xlane.f32.xlu0 %v2734_v12 }
 0x56e   : > { %2826 = vadd.xlane.f32.xlu1 %v9711_v55  ;;  %7019 = vmatpush3.bf16.msra.mxu0 %v7284_v18  ;;  %v2740_v55 = vadd.f32 %v9789_v59, %v9781_v28  ;;  %v10483_v41 = vpop.xlane.xlu0 %4148  ;;  %v10496_v28 = vpop.xlane.xlu1 %4150  ;;  %v13174_v18 = vld [vmem:[#allocation107_spill] sm:$0xff] }
 0x56f   : > { %6748 = vmatprep.subr.bf16.mxu0 %v7285_v29  ;;  %v13182_v29 = vld [vmem:[#allocation23_spill] sm:$0xff] }
 0x570   : > { %3338 = vmatmul.mubr.bf16.gmra.mxu0 %v13167_v37  ;;  %v13183_v37 = vld [vmem:[#allocation37_spill] sm:$0xff] }
 0x571   : > { %3345 = vmatprep.mubr.bf16.mxu0 %v13168_v16  ;;  %2828 = vadd.xlane.f32.xlu0 %v9742_v34  ;;  %v2743_v34 = vadd.f32 %v9805_v43, %v9801_v58  ;;  %v13172_v58 = vpack.c.bf16 %v9983_v57, %v9969_v40  ;;  %v2749_v43 = vadd.f32 %v9859_v50, %v9852_v56  ;;  %v13185_v16 = vld [vmem:[#allocation13_spill] sm:$0xff] }
 0x572   : > { %2738 = vadd.xlane.f32.xlu1 %v2737_v38  ;;  %v10498_v59 = vpop.xlane.xlu0 %4160  ;;  %v13180_v56 = vpack.c.bf16 %v13178_v46, %v13179_v54  ;;  %v2755_v50 = vadd.f32 %v9902_v20, %v9897_v1  ;;  %v13184_v38 = vpack.c.bf16 %v13182_v29, %v13183_v37  ;;  %v13189_v1 = vld [vmem:[#allocation38_spill] sm:$0xff]  ;;  %v13190_v20 = vld [vmem:[#allocation36_spill] sm:$0xff] }
 0x573   : > { %13171 = vst [vmem:[#allocation158_spill] sm:$0xff] %v10498_v59  ;;  %v13218_v59 = vld [vmem:[#allocation24_spill] sm:$0xff] }
 0x575   : > { %2741 = vadd.xlane.f32.xlu0 %v2740_v55 }
 0x576   : > { %2830 = vadd.xlane.f32.xlu1 %v9757_v32  ;;  %v2746_v32 = vadd.f32 %v9836_v45, %v9833_v49  ;;  %v10510_v45 = vpop.xlane.xlu1 %4162  ;;  %v2752_v49 = vadd.f32 %v9886_v8, %v9879_v11  ;;  %v2758_v11 = vadd.f32 %v9928_v15, %v9921_v17 }
 0x577   : > { %13175 = vst [vmem:[#allocation107_spill] sm:$0xff] %v10510_v45  ;;  %v13216_v45 = vld [vmem:[#allocation4_spill] sm:$0xff] }
 0x578   : > { %3346 = vmatmul.mubr.bf16.gmra.mxu0 %v13169_v63  ;;  %v13187_v63 = vld [vmem:[#allocation25_spill] sm:$0xff] }
 0x579   : > { %3353 = vmatprep.mubr.bf16.mxu0 %v13170_v36  ;;  %2832 = vadd.xlane.f32.xlu0 %v9791_v5  ;;  %v13173_v5 = vpack.c.bf16 %v10025_v14, %v10012_v61  ;;  %v13191_v36 = vpack.c.bf16 %v13189_v1, %v13190_v20 }
 0x57a   : > { %2744 = vadd.xlane.f32.xlu1 %v2743_v34  ;;  %v10522_v12 = vpop.xlane.xlu1 %4158 }
 0x57b   : > { %13181 = vst [vmem:[#allocation14_spill] sm:$0xff] %v10522_v12  ;;  %v13222_v12 = vld [vmem:[#allocation17_spill] sm:$0xff] }
 0x57d   : > { %2747 = vadd.xlane.f32.xlu0 %v2746_v32  ;;  %v2761_v32 = vadd.f32 %v9948_v13, %v9944_v42  ;;  %v13197_v13 = vld [vmem:[#allocation3_spill] sm:$0xff]  ;;  %v13198_v42 = vld [vmem:[#allocation5_spill] sm:$0xff] }
 0x57e   : > { %2834 = vadd.xlane.f32.xlu1 %v9807_v44  ;;  %v10514_v44 = vpop.xlane.xlu0 %4156  ;;  %v10533_v34 = vpop.xlane.xlu1 %4166 }
 0x57f   : > { %13176 = vst [vmem:[#allocation159_spill] sm:$0xff] %v10514_v44  ;;  %13188 = vst [vmem:[#allocation32_spill] sm:$0xff] %v10533_v34 }
 0x580   : > { %3354 = vmatmul.mubr.bf16.gmra.mxu0 %v13172_v58  ;;  %v13192_v58 = vld [vmem:[#allocation45_spill] sm:$0xff] }
 0x581   : > { %3361 = vmatprep.mubr.bf16.mxu0 %v13173_v5  ;;  %2836 = vadd.xlane.f32.xlu0 %v13174_v18  ;;  %v13195_v18 = vld [vmem:[#allocation26_spill] sm:$0xff] }
 0x582   : > { %2750 = vadd.xlane.f32.xlu1 %v2749_v43  ;;  %v10528_v8 = vpop.xlane.xlu0 %4164  ;;  %v13193_v43 = vld [vmem:[#allocation62_spill] sm:$0xff]  ;;  %v4017_v15 = vpop.xlane.xlu1 %4016 }
 0x583   : > { %13186 = vst [vmem:[#allocation52_spill] sm:$0xff] %v10528_v8  ;;  %v13194_v5 = vpack.c.bf16 %v13192_v58, %v13193_v43 }
 0x585   : > { %2753 = vadd.xlane.f32.xlu0 %v2752_v49  ;;  %v2764_v49 = vadd.f32 %v9974_v19, %v9969_v40  ;;  %v4173_v40 = vmax.f32 %v4017_v15, %v10317_v53  ;;  %v13208_v53 = vld [vmem:[#allocation31_spill] sm:$0xff] }
 0x586   : > { %2838 = vadd.xlane.f32.xlu1 %v13177_v51  ;;  %v4014_v55 = vpop.xlane.xlu0 %4013 }
 0x588   : > { %3362 = vmatmul.mubr.bf16.gmra.mxu0 %v13180_v56  ;;  %v13196_v56 = vld [vmem:[#allocation47_spill] sm:$0xff] }
 0x589   : > { %3369 = vmatprep.mubr.bf16.mxu0 %v13184_v38  ;;  %2840 = vadd.xlane.f32.xlu0 %v13185_v16  ;;  %v4023_v38 = vpop.xlane.xlu1 %4022  ;;  %v13199_v16 = vpack.c.bf16 %v13197_v13, %v13198_v42 }
 0x58a   : > { %2756 = vadd.xlane.f32.xlu1 %v2755_v50  ;;  %v4020_v17 = vpop.xlane.xlu0 %4019  ;;  %v4172_v50 = vmax.f32 %v4014_v55, %v10303_v25 }
 0x58d   : > { %2759 = vadd.xlane.f32.xlu0 %v2758_v11  ;;  %v2767_v11 = vadd.f32 %v9987_v33, %v9983_v57  ;;  %v4029_v55 = vpop.xlane.xlu1 %4028  ;;  %v4396_v57 = vsub.f32 %v13206_v22, %v4172_v50  ;;  %v4174_v33 = vmax.f32 %v4020_v17, %v10279_v52  ;;  %v13211_v22 = vld [vmem:[#allocation50_spill] sm:$0xff]  ;;  %v2773_v17 = vadd.f32 %v10025_v14, %v13178_v46  ;;  %v13220_v46 = vld [vmem:[#allocation76_spill] sm:$0xff] }
 0x58e   : > { %2842 = vadd.xlane.f32.xlu1 %v13187_v63  ;;  %v4026_v51 = vpop.xlane.xlu0 %4025  ;;  %v13200_v63 = vld [vmem:[#allocation9_spill] sm:$0xff] }
 0x590   : > { %3370 = vmatmul.mubr.bf16.gmra.mxu0 %v13191_v36  ;;  %v13201_v36 = vld [vmem:[#allocation49_spill] sm:$0xff] }
 0x591   : > { %3377 = vmatprep.mubr.bf16.mxu0 %v13194_v5  ;;  %2844 = vadd.xlane.f32.xlu0 %v13195_v18  ;;  %v13203_v5 = vld [vmem:[#allocation57_spill] sm:$0xff]  ;;  %v13204_v18 = vld [vmem:[#allocation110_spill] sm:$0xff]  ;;  %v10569_v34 = vpop.xlane.xlu1 %4034 }
 0x592   : > { %2762 = vadd.xlane.f32.xlu1 %v2761_v32  ;;  %v13202_v32 = vpack.c.bf16 %v13200_v63, %v13201_v36  ;;  %v4032_v19 = vpop.xlane.xlu0 %4031  ;;  %v4204_v25 = vsub.f32 %v13204_v18, %v4172_v50 }
 0x594   : > { %v4268_v15 = vmul.f32 1.442695, %v4204_v25  ;;  %v13215_v25 = vld [vmem:[#allocation6_spill] sm:$0xff] }
 0x595   : > { %2765 = vadd.xlane.f32.xlu0 %v2764_v49  ;;  %v2770_v49 = vadd.f32 %v10012_v61, %v13179_v54  ;;  %v13210_v61 = vld [vmem:[#allocation83_spill] sm:$0xff] }
 0x596   : > { %2846 = vadd.xlane.f32.xlu1 %v13196_v56  ;;  %v13205_v56 = vld [vmem:[#allocation10_spill] sm:$0xff]  ;;  %v4397_v54 = vsub.f32 %v13210_v61, %v4173_v40  ;;  %7605 = vpow2.f32 %v4268_v15  ;;  %v4177_v15 = vmax.f32 %v4029_v55, %v10360_v10  ;;  %v2779_v10 = vadd.f32 %v13182_v29, %v13189_v1 }
 0x597   : > { %v13238_v29 = vld [vmem:[#allocation30_spill] sm:$0xff] }
 0x598   : > { %3378 = vmatmul.mubr.bf16.gmra.mxu0 %v13199_v16  ;;  %v4205_v16 = vsub.f32 %v13205_v56, %v4172_v50  ;;  %v4175_v56 = vmax.f32 %v4023_v38, %v10299_v4  ;;  %v13212_v50 = vld [vmem:[#allocation48_spill] sm:$0xff]  ;;  %v2776_v38 = vadd.f32 %v13183_v37, %v13190_v20  ;;  %v13223_v37 = vld [vmem:[#allocation79_spill] sm:$0xff]  ;;  %v4215_v1 = vsub.f32 %v13238_v29, %v4177_v15 }
 0x599   : > { %3385 = vmatprep.mubr.bf16.mxu0 %v13202_v32  ;;  %2848 = vadd.xlane.f32.xlu0 %v13203_v5  ;;  %v13207_v32 = vld [vmem:[#allocation16_spill] sm:$0xff]  ;;  %v10565_v5 = vpop.xlane.xlu0 %4037  ;;  %v13213_v52 = vpack.c.bf16 %v13211_v22, %v13212_v50 }
 0x59a   : > { %2768 = vadd.xlane.f32.xlu1 %v2767_v11  ;;  %v4206_v27 = vsub.f32 %v13207_v32, %v4173_v40  ;;  %v13209_v11 = vld [vmem:[#allocation11_spill] sm:$0xff]  ;;  %v4270_v8 = vmul.f32 1.442695, %v4205_v16  ;;  %v13214_v32 = vld [vmem:[#allocation20_spill] sm:$0xff]  ;;  %v4211_v44 = vsub.f32 %v13222_v12, %v4175_v56  ;;  %v4399_v20 = vsub.f32 %v13223_v37, %v4175_v56 }
 0x59b   : > { %v4207_v18 = vsub.f32 %v13209_v11, %v4173_v40  ;;  %v13217_v11 = vpack.c.bf16 %v13215_v25, %v13216_v45  ;;  %v13219_v40 = vld [vmem:[#allocation44_spill] sm:$0xff]  ;;  %v13233_v37 = vld [vmem:[#allocation7_spill] sm:$0xff] }
 0x59c   : > { %v4272_v16 = vmul.f32 1.442695, %v4206_v27  ;;  %v4209_v61 = vsub.f32 %v13219_v40, %v4174_v33  ;;  %7607 = vpow2.f32 %v4270_v8  ;;  %v4282_v55 = vmul.f32 1.442695, %v4211_v44 }
 0x59d   : > { %2771 = vadd.xlane.f32.xlu0 %v2770_v49  ;;  %v4428_v49 = vmul.f32 1.442695, %v4396_v57  ;;  %v10584_v4 = vpop.xlane.xlu0 %4043  ;;  %v4274_v14 = vmul.f32 1.442695, %v4207_v18  ;;  %v4398_v57 = vsub.f32 %v13220_v46, %v4174_v33  ;;  %v13226_v18 = vld [vmem:[#allocation28_spill] sm:$0xff]  ;;  %v13231_v46 = vld [vmem:[#allocation85_spill] sm:$0xff] }
 0x59e   : > { %2850 = vadd.xlane.f32.xlu1 %v13208_v53  ;;  %v4208_v53 = vsub.f32 %v13214_v32, %v4174_v33  ;;  %v10590_v32 = vpop.xlane.xlu1 %4040  ;;  %v10596_v33 = vpop.f32.mrf.mxu0 }
 0x59f   : > { %7609 = vpow2.f32 %v4428_v49  ;;  %13224 = vst [vmem:[#allocation23_spill] sm:$0xff] %v10596_v33  ;;  %v4432_v8 = vmul.f32 1.442695, %v4398_v57  ;;  %v4178_v57 = vmax.f32 %v4032_v19, %v10321_v47  ;;  %v2782_v19 = vadd.f32 %v13193_v43, %v13198_v42  ;;  %v13244_v42 = vld [vmem:[#allocation82_spill] sm:$0xff] }
 0x5a0   : > { %3386 = vmatmul.mubr.bf16.gmra.mxu0 %v13213_v52  ;;  %v4176_v52 = vmax.f32 %v4026_v51, %v10347_v9  ;;  %v4276_v40 = vmul.f32 1.442695, %v4208_v53  ;;  %7611 = vpow2.f32 %v4272_v16  ;;  %v13225_v51 = vld [vmem:[#allocation35_spill] sm:$0xff]  ;;  %v13227_v53 = vld [vmem:[#allocation29_spill] sm:$0xff]  ;;  %v4290_v43 = vmul.f32 1.442695, %v4215_v1 }
 0x5a1   : > { %3393 = vmatprep.mubr.bf16.mxu0 %v13217_v11  ;;  %2852 = vadd.xlane.f32.xlu0 %v13218_v59  ;;  %v4430_v11 = vmul.f32 1.442695, %v4397_v54  ;;  %v13221_v59 = vld [vmem:[#allocation27_spill] sm:$0xff]  ;;  %v10598_v9 = vpop.xlane.xlu0 %4049  ;;  %7613 = vpow2.f32 %v4274_v14  ;;  %v4179_v1 = vmax.f32 %v10569_v34, %v10343_v3 }
 0x5a2   : > { %2774 = vadd.xlane.f32.xlu1 %v2773_v17  ;;  %v4210_v27 = vsub.f32 %v13221_v59, %v4175_v56  ;;  %v4278_v17 = vmul.f32 1.442695, %v4209_v61  ;;  %v4212_v54 = vsub.f32 %v13226_v18, %v4176_v52  ;;  %v10602_v49 = vpop.xlane.xlu1 %4046  ;;  %v4213_v16 = vsub.f32 %v13227_v53, %v4176_v52  ;;  %v13228_v61 = vld [vmem:[#allocation56_spill] sm:$0xff]  ;;  %v13229_v56 = vld [vmem:[#allocation54_spill] sm:$0xff]  ;;  %v13236_v18 = vld [vmem:[#allocation19_spill] sm:$0xff] }
 0x5a3   : > { %7615 = vpow2.f32 %v4430_v11  ;;  %v4400_v14 = vsub.f32 %v13231_v46, %v4176_v52  ;;  %v13232_v59 = vld [vmem:[#allocation12_spill] sm:$0xff]  ;;  %v13235_v11 = vld [vmem:[#allocation67_spill] sm:$0xff]  ;;  %v4214_v53 = vsub.f32 %v13236_v18, %v4177_v15  ;;  %v13240_v46 = vld [vmem:[#allocation22_spill] sm:$0xff] }
 0x5a4   : > { %v4280_v12 = vmul.f32 1.442695, %v4210_v27  ;;  %7617 = vpow2.f32 %v4276_v40  ;;  %v4434_v27 = vmul.f32 1.442695, %v4399_v20  ;;  %v4284_v44 = vmul.f32 1.442695, %v4212_v54 }
 0x5a5   : > { %2777 = vadd.xlane.f32.xlu0 %v2776_v38  ;;  %v13230_v38 = vpack.c.bf16 %v13228_v61, %v13229_v56  ;;  %7619 = vpow2.f32 %v4278_v17  ;;  %v4286_v52 = vmul.f32 1.442695, %v4213_v16  ;;  %v13239_v40 = vld [vmem:[#allocation87_spill] sm:$0xff]  ;;  %v4436_v20 = vmul.f32 1.442695, %v4400_v14  ;;  %v13243_v18 = vld [vmem:[#allocation70_spill] sm:$0xff] }
 0x5a6   : > { %2854 = vadd.xlane.f32.xlu1 %v13225_v51  ;;  %v13234_v51 = vpack.c.bf16 %v13232_v59, %v13233_v37  ;;  %v10619_v33 = vpop.xlane.xlu0 %4055  ;;  %7621 = vpow2.f32 %v4432_v8  ;;  %v10622_v47 = vpop.xlane.xlu1 %4052  ;;  %v4401_v17 = vsub.f32 %v13239_v40, %v4177_v15  ;;  %v13241_v8 = vld [vmem:[#allocation60_spill] sm:$0xff]  ;;  %v2785_v40 = vadd.f32 %v13192_v58, %v13197_v13 }
 0x5a7   : > { %7623 = vpow2.f32 %v4280_v12  ;;  %v4217_v54 = vsub.f32 %v13241_v8, %v4178_v57  ;;  %v4402_v12 = vsub.f32 %v13244_v42, %v4178_v57 }
 0x5a8   : > { %3394 = vmatmul.mubr.bf16.gmra.mxu0 %v13230_v38  ;;  %v10617_v38 = vpop.f32.mrf.mxu0  ;;  %7625 = vpow2.f32 %v4282_v55  ;;  %v10638_v55 = vpop.eup %7605  ;;  %v4438_v14 = vmul.f32 1.442695, %v4401_v17  ;;  %v13250_v17 = vld [vmem:[#allocation43_spill] sm:$0xff] }
 0x5a9   : > { %3401 = vmatprep.mubr.bf16.mxu0 %v13234_v51  ;;  %2856 = vadd.xlane.f32.xlu0 %v13235_v11  ;;  %13237 = vst [vmem:[#allocation37_spill] sm:$0xff] %v10617_v38  ;;  %v4216_v51 = vsub.f32 %v13240_v46, %v4178_v57  ;;  %7627 = vpow2.f32 %v4434_v27  ;;  %v13245_v27 = vld [vmem:[#allocation63_spill] sm:$0xff]  ;;  %v4294_v58 = vmul.f32 1.442695, %v4217_v54  ;;  %v4440_v3 = vmul.f32 1.442695, %v4402_v12 }
 0x5aa   : > { %2780 = vadd.xlane.f32.xlu1 %v2779_v10  ;;  %v4288_v10 = vmul.f32 1.442695, %v4214_v53  ;;  %v10629_v11 = vpop.f32.mrf.mxu0  ;;  %7629 = vpow2.f32 %v4284_v44  ;;  %v10633_v16 = vpop.xlane.xlu1 %4058  ;;  %v13246_v53 = vld [vmem:[#allocation61_spill] sm:$0xff]  ;;  %v13253_v54 = vld [vmem:[#allocation59_spill] sm:$0xff] }
 0x5ab   : > { %13242 = vst [vmem:[#allocation13_spill] sm:$0xff] %v10629_v11  ;;  %7631 = vpow2.f32 %v4286_v52  ;;  %v10645_v44 = vpop.eup %7607  ;;  %v4292_v57 = vmul.f32 1.442695, %v4216_v51  ;;  %v13249_v52 = vpack.c.bf16 %v10248_v26, %v10235_v31  ;;  %v2788_v51 = vadd.f32 %v13201_v36, %v13212_v50  ;;  %v13254_v12 = vld [vmem:[#allocation33_spill] sm:$0xff] }
 0x5ac   : > { %7633 = vpow2.f32 %v4436_v20  ;;  %v10655_v8 = vpop.eup %7609  ;;  %v10657_v13 = vpop.f32.mrf.mxu0  ;;  %v4218_v36 = vsub.f32 %v13254_v12, %v4179_v1 }
 0x5ad   : > { %2783 = vadd.xlane.f32.xlu0 %v2782_v19  ;;  %v13247_v19 = vpack.c.bf16 %v13245_v27, %v13246_v53  ;;  %7635 = vpow2.f32 %v4288_v10  ;;  %13251 = vst [vmem:[#allocation25_spill] sm:$0xff] %v10657_v13  ;;  %v10659_v20 = vpop.eup %7611  ;;  %v13270_v13 = vld [vmem:[#allocation144_spill] sm:$0xff] }
 0x5ae   : > { %2858 = vadd.xlane.f32.xlu1 %v13243_v18  ;;  %v4062_v29 = vpop.xlane.xlu0 %4061  ;;  %7637 = vpow2.f32 %v4290_v43  ;;  %v10663_v18 = vpop.eup %7613 }
 0x5af   : > { %v10636_v15 = vmax.f32 %v4062_v29, %v10462_v24  ;;  %v13248_v24 = vld [vmem:[#allocation81_spill] sm:$0xff]  ;;  %7639 = vpow2.f32 %v4438_v14  ;;  %v10667_v29 = vmax.f32 %v10565_v5, %v10385_v0  ;;  %v10669_v10 = vpop.f32.mrf.mxu0  ;;  %v13255_v0 = vld [vmem:[#allocation34_spill] sm:$0xff] }
 0x5b0   : > { %3402 = vmatmul.mubr.bf16.gmra.mxu0 %v13247_v19  ;;  %13252 = vst [vmem:[#allocation38_spill] sm:$0xff] %v10669_v10  ;;  %v10676_v43 = vpop.eup %7615  ;;  %7641 = vpow2.f32 %v4292_v57  ;;  %v4219_v5 = vsub.f32 %v13255_v0, %v4179_v1  ;;  %v13259_v57 = vld [vmem:[#allocation86_spill] sm:$0xff]  ;;  %v13260_v0 = vld [vmem:[#allocation89_spill] sm:$0xff] }
 0x5b1   : > { %v4236_v46 = vsub.f32 %v13248_v24, %v10636_v15  ;;  %3409 = vmatprep.mubr.bf16.mxu0 %v13249_v52  ;;  %2860 = vadd.xlane.f32.xlu0 %v13250_v17  ;;  %v4237_v42 = vsub.f32 %v13253_v54, %v10636_v15  ;;  %v10679_v14 = vpop.eup %7617  ;;  %7643 = vpow2.f32 %v4294_v58  ;;  %v13257_v52 = vld [vmem:[#allocation64_spill] sm:$0xff]  ;;  %v2791_v58 = vadd.f32 %v13200_v63, %v13211_v22  ;;  %v13264_v22 = vld [vmem:[#allocation117_spill] sm:$0xff] }
 0x5b2   : > { %2786 = vadd.xlane.f32.xlu1 %v2785_v40  ;;  %v4065_v34 = vpop.xlane.xlu1 %4064  ;;  %v13256_v40 = vld [vmem:[#allocation84_spill] sm:$0xff]  ;;  %v10687_v54 = vpop.eup %7619  ;;  %7645 = vpow2.f32 %v4440_v3  ;;  %v13262_v3 = vpack.c.bf16 %v10244_v23, %v10231_v7 }
 0x5b3   : > { %v10674_v19 = vmax.f32 %v4065_v34, %v10470_v2  ;;  %v4332_v50 = vmul.f32 1.442695, %v4236_v46  ;;  %v13258_v2 = vld [vmem:[#allocation46_spill] sm:$0xff]  ;;  %v4403_v46 = vsub.f32 %v13259_v57, %v4179_v1  ;;  %v10695_v12 = vpop.eup %7621 }
 0x5b4   : > { %v10704_v1 = vpop.eup %7623 }
 0x5b5   : > { %2789 = vadd.xlane.f32.xlu0 %v2788_v51  ;;  %v4238_v24 = vsub.f32 %v13256_v40, %v10674_v19  ;;  %v4239_v17 = vsub.f32 %v13257_v52, %v10674_v19  ;;  %v4404_v40 = vsub.f32 %v13260_v0, %v10667_v29  ;;  %v10699_v52 = vpop.f32.mrf.mxu0  ;;  %7647 = vpow2.f32 %v4332_v50  ;;  %v13265_v0 = vld [vmem:[#allocation125_spill] sm:$0xff] }
 0x5b6   : > { %2862 = vadd.xlane.f32.xlu1 %v13258_v2  ;;  %v4068_v34 = vpop.xlane.xlu0 %4067  ;;  %13261 = vst [vmem:[#allocation36_spill] sm:$0xff] %v10699_v52  ;;  %v4334_v2 = vmul.f32 1.442695, %v4237_v42  ;;  %v13266_v52 = vld [vmem:[#allocation75_spill] sm:$0xff] }
 0x5b7   : > { %v10691_v51 = vmax.f32 %v4068_v34, %v10444_v48  ;;  %v4336_v10 = vmul.f32 1.442695, %v4238_v24  ;;  %v4338_v11 = vmul.f32 1.442695, %v4239_v17  ;;  %v4296_v48 = vmul.f32 1.442695, %v4218_v36  ;;  %v10716_v17 = vpop.eup %7625 }
 0x5b8   : > { %3410 = vmatmul.mubr.bf16.gmra.mxu0 %v13262_v3  ;;  %v13263_v34 = vld [vmem:[#allocation152_spill] sm:$0xff]  ;;  %v13267_v42 = vpack.c.bf16 %v13265_v0, %v13266_v52  ;;  %13269 = vst [vmem:[#allocation45_spill] sm:$0xff] %v10716_v17  ;;  %v4298_v3 = vmul.f32 1.442695, %v4219_v5  ;;  %v10720_v36 = vmax.f32 %v10584_v4, %v13270_v13  ;;  %v10722_v50 = vpop.eup %7627  ;;  %v4444_v5 = vmul.f32 1.442695, %v4404_v40  ;;  %v10732_v17 = vpop.f32.mrf.mxu0 }
 0x5b9   : > { %v10708_v63 = vmax.f32 %v10590_v32, %v13263_v34  ;;  %v4240_v57 = vsub.f32 %v13264_v22, %v10691_v51  ;;  %v13268_v24 = vld [vmem:[#allocation80_spill] sm:$0xff]  ;;  %7649 = vpow2.f32 %v4336_v10  ;;  %v4442_v34 = vmul.f32 1.442695, %v4403_v46  ;;  %13274 = vst [vmem:[#allocation47_spill] sm:$0xff] %v10732_v17  ;;  %v13275_v4 = vld [vmem:[#allocation118_spill] sm:$0xff] }
 0x5ba   : > { %3417 = vmatprep.mubr.bf16.mxu0 %v13267_v42  ;;  %2864 = vadd.xlane.f32.xlu0 %v13268_v24  ;;  %13271 = vst [vmem:[#allocation62_spill] sm:$0xff] %v10720_v36  ;;  %v4071_v32 = vpop.xlane.xlu1 %4070  ;;  %v13272_v22 = vld [vmem:[#allocation148_spill] sm:$0xff]  ;;  %7651 = vpow2.f32 %v4338_v11  ;;  %v2794_v42 = vadd.f32 %v13216_v45, %v13229_v56  ;;  %v10730_v24 = vpop.eup %7629  ;;  %v4241_v13 = vsub.f32 %v13275_v4, %v10691_v51 }
 0x5bb   : > { %2792 = vadd.xlane.f32.xlu1 %v2791_v58  ;;  %v10726_v38 = vmax.f32 %v10602_v49, %v13272_v22  ;;  %13273 = vst [vmem:[#allocation26_spill] sm:$0xff] %v10730_v24  ;;  %7653 = vpow2.f32 %v4334_v2  ;;  %v10737_v10 = vmax.f32 %v4071_v32, %v10457_v62  ;;  %v10739_v46 = vpop.eup %7631  ;;  %v13277_v49 = vld [vmem:[#allocation91_spill] sm:$0xff]  ;;  %v4340_v58 = vmul.f32 1.442695, %v4240_v57  ;;  %v13278_v56 = vld [vmem:[#allocation88_spill] sm:$0xff]  ;;  %v13280_v62 = vld [vmem:[#allocation66_spill] sm:$0xff] }
 0x5bc   : > { %13276 = vst [vmem:[#allocation3_spill] sm:$0xff] %v10739_v46  ;;  %7655 = vpow2.f32 %v4296_v48  ;;  %v4405_v11 = vsub.f32 %v13277_v49, %v10708_v63  ;;  %v10743_v45 = vpop.eup %7633  ;;  %v4406_v40 = vsub.f32 %v13278_v56, %v10720_v36  ;;  %v13279_v2 = vld [vmem:[#allocation119_spill] sm:$0xff]  ;;  %v13281_v4 = vld [vmem:[#allocation112_spill] sm:$0xff]  ;;  %v13283_v57 = vld [vmem:[#allocation90_spill] sm:$0xff]  ;;  %v2797_v49 = vadd.f32 %v13215_v25, %v13228_v61 }
 0x5bd   : > { %7657 = vpow2.f32 %v4298_v3  ;;  %v4242_v22 = vsub.f32 %v13279_v2, %v10737_v10  ;;  %v4243_v32 = vsub.f32 %v13280_v62, %v10737_v10  ;;  %v10752_v17 = vpop.eup %7635  ;;  %v10763_v2 = vpop.f32.mrf.mxu0  ;;  %v4342_v62 = vmul.f32 1.442695, %v4241_v13  ;;  %v13285_v46 = vld [vmem:[#allocation123_spill] sm:$0xff]  ;;  %v13289_v25 = vld [vmem:[#allocation73_spill] sm:$0xff] }
 0x5be   : > { %2795 = vadd.xlane.f32.xlu0 %v2794_v42  ;;  %v4074_v48 = vpop.xlane.xlu0 %4073  ;;  %13282 = vst [vmem:[#allocation5_spill] sm:$0xff] %v10752_v17  ;;  %7659 = vpow2.f32 %v4442_v34  ;;  %v4407_v42 = vsub.f32 %v13283_v57, %v10726_v38  ;;  %v10761_v56 = vpop.eup %7637  ;;  %13284 = vst [vmem:[#allocation9_spill] sm:$0xff] %v10763_v2  ;;  %v13286_v17 = vld [vmem:[#allocation71_spill] sm:$0xff]  ;;  %v4446_v57 = vmul.f32 1.442695, %v4405_v11  ;;  %v10784_v11 = vmax.f32 %v10598_v9, %v10425_v30  ;;  %v13297_v30 = vld [vmem:[#allocation69_spill] sm:$0xff] }
 0x5bf   : > { %2866 = vadd.xlane.f32.xlu1 %v13281_v4  ;;  %v10757_v3 = vmax.f32 %v4074_v48, %v10483_v41  ;;  %7661 = vpow2.f32 %v4444_v5  ;;  %v4344_v4 = vmul.f32 1.442695, %v4242_v22  ;;  %v4346_v36 = vmul.f32 1.442695, %v4243_v32  ;;  %v10768_v24 = vpop.eup %7639  ;;  %v13290_v5 = vld [vmem:[#allocation137_spill] sm:$0xff]  ;;  %v10786_v2 = vpop.f32.mrf.mxu0 }
 0x5c0   : > { %v13287_v34 = vpack.c.bf16 %v13285_v46, %v13286_v17  ;;  %v10772_v41 = vmax.f32 %v10622_v47, %v10442_v21  ;;  %7663 = vpow2.f32 %v4340_v58  ;;  %v13291_v48 = vld [vmem:[#allocation133_spill] sm:$0xff]  ;;  %v10780_v32 = vpop.eup %7641  ;;  %13294 = vst [vmem:[#allocation57_spill] sm:$0xff] %v10786_v2  ;;  %v4450_v58 = vmul.f32 1.442695, %v4407_v42  ;;  %v13298_v42 = vld [vmem:[#allocation95_spill] sm:$0xff] }
 0x5c1   : > { %v4244_v61 = vsub.f32 %v13289_v25, %v10757_v3  ;;  %v13292_v13 = vpack.c.bf16 %v13290_v5, %v13291_v48  ;;  %v13293_v22 = vld [vmem:[#allocation113_spill] sm:$0xff]  ;;  %7665 = vpow2.f32 %v4344_v4  ;;  %v10788_v47 = vpop.eup %7643  ;;  %v10792_v25 = vmax.f32 %v10619_v33, %v10404_v39 }
 0x5c2   : > { %3418 = vmatmul.mubr.bf16.gmra.mxu0 %v13287_v34  ;;  %13288 = vst [vmem:[#allocation49_spill] sm:$0xff] %v10772_v41  ;;  %2868 = vadd.xlane.f32.xlu0 %v13293_v22  ;;  %v4448_v34 = vmul.f32 1.442695, %v4406_v40  ;;  %v4077_v21 = vpop.xlane.xlu1 %4076  ;;  %13295 = vst [vmem:[#allocation110_spill] sm:$0xff] %v10788_v47  ;;  %7667 = vpow2.f32 %v4346_v36  ;;  %v2800_v40 = vadd.f32 %v13233_v37, %v13246_v53  ;;  %v13300_v37 = vld [vmem:[#allocation93_spill] sm:$0xff]  ;;  %v10811_v36 = vpop.f32.mrf.mxu0 }
 0x5c3   : > { %3425 = vmatprep.mubr.bf16.mxu0 %v13292_v13  ;;  %2798 = vadd.xlane.f32.xlu1 %v2797_v49  ;;  %13296 = vst [vmem:[#allocation10_spill] sm:$0xff] %v10792_v25  ;;  %v10796_v13 = vpop.eup %7645  ;;  %7669 = vpow2.f32 %v4342_v62  ;;  %v4245_v9 = vsub.f32 %v13297_v30, %v10757_v3  ;;  %v10801_v49 = vmax.f32 %v4077_v21, %v10496_v28  ;;  %v4348_v22 = vmul.f32 1.442695, %v4244_v61  ;;  %v13302_v28 = vld [vmem:[#allocation121_spill] sm:$0xff]  ;;  %v13304_v30 = vld [vmem:[#allocation114_spill] sm:$0xff] }
 0x5c4   : > { %7671 = vpow2.f32 %v4446_v57  ;;  %v4409_v4 = vsub.f32 %v13298_v42, %v10772_v41  ;;  %v2803_v39 = vadd.f32 %v13232_v59, %v13245_v27  ;;  %v10807_v33 = vpop.eup %7647  ;;  %v4408_v53 = vsub.f32 %v13300_v37, %v10784_v11  ;;  %13301 = vst [vmem:[#allocation16_spill] sm:$0xff] %v10811_v36  ;;  %v13303_v57 = vld [vmem:[#allocation124_spill] sm:$0xff] }
 0x5c5   : > { %13299 = vst [vmem:[#allocation78_spill] sm:$0xff] %v10807_v33  ;;  %7673 = vpow2.f32 %v4448_v34  ;;  %v4246_v62 = vsub.f32 %v13302_v28, %v10801_v49  ;;  %v4247_v21 = vsub.f32 %v13303_v57, %v10801_v49  ;;  %v13306_v59 = vld [vmem:[#allocation92_spill] sm:$0xff]  ;;  %v4716_v42 = vpack.c.bf16 %v10676_v43, %v10655_v8  ;;  %v13329_v33 = vld [vmem:[#allocation135_spill] sm:$0xff] }
 0x5c6   : > { %2801 = vadd.xlane.f32.xlu0 %v2800_v40  ;;  %v4080_v61 = vpop.xlane.xlu0 %4079  ;;  %v10818_v40 = vpop.eup %7649  ;;  %7675 = vpow2.f32 %v4450_v58  ;;  %v4410_v27 = vsub.f32 %v13306_v59, %v10792_v25  ;;  %v4350_v28 = vmul.f32 1.442695, %v4245_v9  ;;  %v13308_v36 = vld [vmem:[#allocation136_spill] sm:$0xff]  ;;  %v4454_v59 = vmul.f32 1.442695, %v4409_v4 }
 0x5c7   : > { %2870 = vadd.xlane.f32.xlu1 %v13304_v30  ;;  %13305 = vst [vmem:[#allocation31_spill] sm:$0xff] %v10818_v40  ;;  %v10823_v34 = vmax.f32 %v4080_v61, %v10476_v6  ;;  %v10827_v37 = vpop.eup %7651  ;;  %v4352_v2 = vmul.f32 1.442695, %v4246_v62  ;;  %v4354_v57 = vmul.f32 1.442695, %v4247_v21  ;;  %v13309_v30 = vld [vmem:[#allocation131_spill] sm:$0xff]  ;;  %v10838_v6 = vmax.f32 %v10633_v16, %v10415_v35  ;;  %v10845_v25 = vpop.f32.mrf.mxu0 }
 0x5c8   : > { %13307 = vst [vmem:[#allocation11_spill] sm:$0xff] %v10827_v37  ;;  %v13310_v41 = vpack.c.bf16 %v13308_v36, %v13309_v30  ;;  %v10834_v47 = vpop.eup %7653  ;;  %7677 = vpow2.f32 %v4348_v22  ;;  %v13313_v61 = vld [vmem:[#allocation127_spill] sm:$0xff]  ;;  %13315 = vst [vmem:[#allocation48_spill] sm:$0xff] %v10845_v25  ;;  %v4456_v16 = vmul.f32 1.442695, %v4410_v27  ;;  %v2806_v22 = vadd.f32 %v10235_v31, %v10231_v7  ;;  %v13317_v31 = vld [vmem:[#allocation94_spill] sm:$0xff] }
 0x5c9   : > { %13311 = vst [vmem:[#allocation83_spill] sm:$0xff] %v10834_v47  ;;  %13312 = vst [vmem:[#allocation50_spill] sm:$0xff] %v10838_v6  ;;  %v4248_v9 = vsub.f32 %v13313_v61, %v10823_v34  ;;  %v13314_v62 = vld [vmem:[#allocation115_spill] sm:$0xff]  ;;  %v10843_v21 = vpop.eup %7655  ;;  %7679 = vpow2.f32 %v4352_v2  ;;  %v13316_v2 = vld [vmem:[#allocation128_spill] sm:$0xff]  ;;  %v4411_v7 = vsub.f32 %v13317_v31, %v10838_v6 }
 0x5ca   : > { %3426 = vmatmul.mubr.bf16.gmra.mxu0 %v13310_v41  ;;  %2872 = vadd.xlane.f32.xlu0 %v13314_v62  ;;  %v4452_v41 = vmul.f32 1.442695, %v4408_v53  ;;  %v4083_v58 = vpop.xlane.xlu1 %4082  ;;  %v10849_v35 = vpop.eup %7657  ;;  %7681 = vpow2.f32 %v4354_v57  ;;  %v10864_v62 = vadd.f32 %v13266_v52, %v13286_v17  ;;  %v13324_v25 = vld [vmem:[#allocation99_spill] sm:$0xff] }
 0x5cb   : > { %7020 = vmatprep.mubr.bf16.mxu0 %v4716_v42  ;;  %2804 = vadd.xlane.f32.xlu1 %v2803_v39  ;;  %v2809_v42 = vadd.f32 %v10248_v26, %v10244_v23  ;;  %v10855_v53 = vpop.eup %7659  ;;  %7683 = vpow2.f32 %v4350_v28  ;;  %v4249_v39 = vsub.f32 %v13316_v2, %v10823_v34  ;;  %v10860_v61 = vmax.f32 %v4083_v58, %v10481_v60  ;;  %v7286_v28 = vld [vmem:[%s9540_s21 + $0x74] ss:$8 sps:$4 sm:$0xff]   ;;  %v10877_v17 = vpop.f32.mrf.mxu0  ;;  %v13321_v2 = vld [vmem:[#allocation130_spill] sm:$0xff]  ;;  %v13325_v37 = vld [vmem:[#allocation159_spill] sm:$0xff] }
 0x5cc   : > { %v10866_v27 = vpop.eup %7661  ;;  %7685 = vpow2.f32 %v4454_v59  ;;  %v4356_v23 = vmul.f32 1.442695, %v4248_v9  ;;  %v4717_v26 = vpack.c.bf16 %v10722_v50, %v10695_v12  ;;  %v13318_v60 = vld [vmem:[#allocation97_spill] sm:$0xff]  ;;  %13319 = vst [vmem:[#allocation20_spill] sm:$0xff] %v10877_v17 }
 0x5cd   : > { %v10873_v57 = vpop.eup %7663  ;;  %7687 = vpow2.f32 %v4452_v41  ;;  %v4412_v52 = vsub.f32 %v13318_v60, %v10636_v15  ;;  %v13320_v58 = vld [vmem:[#allocation129_spill] sm:$0xff]  ;;  %v4251_v9 = vsub.f32 %v13321_v2, %v10860_v61  ;;  %v4413_v41 = vsub.f32 %v13324_v25, %v10674_v19  ;;  %v7287_v60 = vld [vmem:[%s9540_s21 + $0xe4] ss:$8 sps:$4 sm:$0xff]   ;;  %v10896_v2 = vpop.f32.mrf.mxu0 }
 0x5ce   : > { %2807 = vadd.xlane.f32.xlu0 %v2806_v22  ;;  %v4250_v59 = vsub.f32 %v13320_v58, %v10860_v61  ;;  %v13322_v22 = vld [vmem:[#allocation116_spill] sm:$0xff]  ;;  %v4086_v31 = vpop.xlane.xlu0 %4085  ;;  %v10884_v4 = vpop.eup %7665  ;;  %7689 = vpow2.f32 %v4456_v16  ;;  %v4718_v15 = vpack.c.bf16 %v10768_v24, %v10743_v45  ;;  %13327 = vst [vmem:[#allocation24_spill] sm:$0xff] %v10896_v2  ;;  %v4458_v25 = vmul.f32 1.442695, %v4411_v7 }
 0x5cf   : > { %2874 = vadd.xlane.f32.xlu1 %v13322_v22  ;;  %13323 = vst [vmem:[#allocation6_spill] sm:$0xff] %v10884_v4  ;;  %v10889_v40 = vmax.f32 %v4086_v31, %v13325_v37  ;;  %v10894_v58 = vpop.eup %7667  ;;  %v4358_v22 = vmul.f32 1.442695, %v4249_v39  ;;  %v4362_v47 = vmul.f32 1.442695, %v4251_v9  ;;  %7691 = vpow2.f32 %v4356_v23  ;;  %v13328_v37 = vld [vmem:[#allocation132_spill] sm:$0xff] }
 0x5d0   : > { %13326 = vst [vmem:[#allocation4_spill] sm:$0xff] %v10894_v58  ;;  %v4360_v17 = vmul.f32 1.442695, %v4250_v59  ;;  %v10900_v19 = vpop.eup %7669  ;;  %v7288_v39 = vld [vmem:[%s9540_s21 + $0x64] ss:$8 sps:$4 sm:$0xff]   ;;  %v13330_v9 = vld [vmem:[#allocation120_spill] sm:$0xff]  ;;  %v2815_v7 = vadd.f32 %v13265_v0, %v13285_v46  ;;  %v10925_v0 = vpop.f32.mrf.mxu0 }
 0x5d1   : > { %v4252_v31 = vsub.f32 %v13328_v37, %v10889_v40  ;;  %v4253_v6 = vsub.f32 %v13329_v33, %v10889_v40  ;;  %v10907_v59 = vpop.eup %7671  ;;  %v4462_v33 = vmul.f32 1.442695, %v4413_v41  ;;  %13332 = vst [vmem:[#allocation44_spill] sm:$0xff] %v10925_v0  ;;  %v13342_v58 = vld [vmem:[#allocation158_spill] sm:$0xff]  ;;  %v13380_v4 = vld [vmem:[#allocation111_spill] sm:$0xff] }
 0x5d2   : > { %7021 = vmatmul.mubr.bf16.vlgmr.msra.gmra.mxu0 %v4717_v26  ;;  %v4460_v26 = vmul.f32 1.442695, %v4412_v52  ;;  %7693 = vpow2.f32 %v4360_v17  ;;  %2876 = vadd.xlane.f32.xlu0 %v13330_v9  ;;  %v4089_v16 = vpop.xlane.xlu1 %4088  ;;  %v7289_v52 = vld [vmem:[%s9540_s21 + $0xd4] ss:$8 sps:$4 sm:$0xff]   ;;  %v13333_v9 = vld [vmem:[#allocation14_spill] sm:$0xff] }
 0x5d3   : > { %6749 = vmatpush3.bf16.msra.mxu0 %v7286_v28  ;;  %7024 = vmatprep.mubr.bf16.mxu0 %v4718_v15  ;;  %v10914_v28 = vpop.eup %7673  ;;  %v13331_v15 = vld [vmem:[#allocation96_spill] sm:$0xff]  ;;  %7695 = vpow2.f32 %v4362_v47  ;;  %v4364_v46 = vmul.f32 1.442695, %v4252_v31  ;;  %v10928_v23 = vmax.f32 %v4089_v16, %v13333_v9  ;;  %v13334_v47 = vld [vmem:[#allocation98_spill] sm:$0xff] }
 0x5d4   : > { %2810 = vadd.xlane.f32.xlu1 %v2809_v42  ;;  %v4414_v37 = vsub.f32 %v13331_v15, %v10691_v51  ;;  %6750 = vmatprep.subr.bf16.mxu0 %v7287_v60  ;;  %v10921_v42 = vadd.f32 %v13291_v48, %v13309_v30  ;;  %v10923_v17 = vpop.eup %7675  ;;  %7697 = vpow2.f32 %v4358_v22  ;;  %v4719_v51 = vpack.c.bf16 %v10855_v53, %v10796_v13  ;;  %v7290_v30 = vld [vmem:[%s9540_s21 + $0x54] ss:$8 sps:$4 sm:$0xff]   ;;  %v13337_v31 = vld [vmem:[#allocation138_spill] sm:$0xff] }
 0x5d5   : > { %7699 = vpow2.f32 %v4458_v25  ;;  %v4415_v41 = vsub.f32 %v13334_v47, %v10737_v10  ;;  %v4366_v60 = vmul.f32 1.442695, %v4253_v6  ;;  %v4720_v48 = vpack.c.bf16 %v10907_v59, %v10866_v27  ;;  %v10937_v15 = vpop.eup %7677  ;;  %v13336_v22 = vld [vmem:[#allocation101_spill] sm:$0xff]  ;;  %v13338_v25 = vld [vmem:[#allocation140_spill] sm:$0xff] }
 0x5d6   : > { %13335 = vst [vmem:[#allocation76_spill] sm:$0xff] %v10937_v15  ;;  %7701 = vpow2.f32 %v4460_v26  ;;  %v4416_v16 = vsub.f32 %v13336_v22, %v10757_v3  ;;  %v4254_v9 = vsub.f32 %v13337_v31, %v10928_v23  ;;  %v4255_v2 = vsub.f32 %v13338_v25, %v10928_v23  ;;  %2813 = vadd.xlane.f32.xlu0 %v10864_v62  ;;  %v13339_v10 = vld [vmem:[#allocation68_spill] sm:$0xff]  ;;  %v4092_v6 = vpop.xlane.xlu0 %4091  ;;  %v13341_v26 = vld [vmem:[#allocation103_spill] sm:$0xff]  ;;  %v10957_v25 = vpop.f32.mrf.mxu0 }
 0x5d7   : > { %6751 = vmatpush3.bf16.msra.mxu0 %v7288_v39  ;;  %v10947_v39 = vpop.eup %7679  ;;  %7703 = vpow2.f32 %v4462_v33  ;;  %v4464_v47 = vmul.f32 1.442695, %v4414_v37  ;;  %v4417_v0 = vsub.f32 %v13341_v26, %v10801_v49  ;;  %v10952_v3 = vmax.f32 %v4092_v6, %v13342_v58  ;;  %v7291_v22 = vld [vmem:[%s9540_s21 + $0xc4] ss:$8 sps:$4 sm:$0xff]   ;;  %13344 = vst [vmem:[#allocation79_spill] sm:$0xff] %v10957_v25  ;;  %v13346_v58 = vld [vmem:[#allocation141_spill] sm:$0xff] }
 0x5d8   : > { %2878 = vadd.xlane.f32.xlu1 %v13339_v10  ;;  %13340 = vst [vmem:[#allocation27_spill] sm:$0xff] %v10947_v39  ;;  %6752 = vmatprep.subr.bf16.mxu0 %v7289_v52  ;;  %v10955_v31 = vpop.eup %7681  ;;  %7705 = vpow2.f32 %v4364_v46  ;;  %v4368_v62 = vmul.f32 1.442695, %v4254_v9  ;;  %v4370_v10 = vmul.f32 1.442695, %v4255_v2  ;;  %v13347_v6 = vld [vmem:[#allocation142_spill] sm:$0xff] }
 0x5d9   : > { %13343 = vst [vmem:[#allocation17_spill] sm:$0xff] %v10955_v31  ;;  %v10961_v37 = vpop.eup %7683  ;;  %v4466_v49 = vmul.f32 1.442695, %v4415_v41  ;;  %7707 = vpow2.f32 %v4366_v60  ;;  %v4256_v52 = vsub.f32 %v13346_v58, %v10952_v3  ;;  %v4257_v26 = vsub.f32 %v13347_v6, %v10952_v3  ;;  %v7292_v46 = vld [vmem:[%s9540_s21 + $0x44] ss:$8 sps:$4 sm:$0xff]   ;;  %v13350_v33 = vld [vmem:[#allocation100_spill] sm:$0xff] }
 0x5da   : > { %7025 = vmatmul.mubr.bf16.gmra.mxu0 %v4719_v51  ;;  %13345 = vst [vmem:[#allocation35_spill] sm:$0xff] %v10961_v37  ;;  %v10968_v9 = vpop.eup %7685  ;;  %v4468_v2 = vmul.f32 1.442695, %v4416_v16  ;;  %7709 = vpow2.f32 %v4368_v62  ;;  %v13348_v51 = vld [vmem:[#allocation122_spill] sm:$0xff]  ;;  %v2821_v41 = vadd.f32 %v13290_v5, %v13308_v36  ;;  %v4470_v6 = vmul.f32 1.442695, %v4417_v0  ;;  %v10984_v5 = vpop.f32.mrf.mxu0 }
 0x5db   : > { %7028 = vmatprep.mubr.bf16.mxu0 %v4720_v48  ;;  %6753 = vmatpush3.bf16.msra.mxu0 %v7290_v30  ;;  %v10975_v58 = vpop.eup %7687  ;;  %v13349_v48 = vld [vmem:[#allocation18_spill] sm:$0xff]  ;;  %v4418_v25 = vsub.f32 %v13350_v33, %v10823_v34  ;;  %7711 = vpow2.f32 %v4370_v10  ;;  %v4095_v16 = vpop.xlane.xlu1 %4094  ;;  %13351 = vst [vmem:[#allocation28_spill] sm:$0xff] %v10984_v5  ;;  %v4372_v36 = vmul.f32 1.442695, %v4256_v52  ;;  %v4721_v0 = vpack.c.bf16 %v10923_v17, %v10914_v28  ;;  %v7294_v30 = vld [vmem:[%s9540_s21 + $0x34] ss:$8 sps:$4 sm:$0xff]  }
 0x5dc   : > { %2880 = vadd.xlane.f32.xlu0 %v13348_v51  ;;  %2816 = vadd.xlane.f32.xlu1 %v2815_v7  ;;  %v7293_v7 = vld [vmem:[%s9540_s21 + $0xb4] ss:$8 sps:$4 sm:$0xff]   ;;  %v10982_v62 = vpop.eup %7689  ;;  %7713 = vpow2.f32 %v4464_v47  ;;  %v13352_v51 = vld [vmem:[#allocation107_spill] sm:$0xff]  ;;  %v13353_v34 = vld [vmem:[#allocation102_spill] sm:$0xff]  ;;  %v4374_v10 = vmul.f32 1.442695, %v4257_v26 }
 0x5dd   : > { %6754 = vmatprep.subr.bf16.mxu0 %v7291_v22  ;;  %v10987_v60 = vmax.f32 %v4095_v16, %v13352_v51  ;;  %7715 = vpow2.f32 %v4466_v49  ;;  %v4419_v33 = vsub.f32 %v13353_v34, %v10860_v61  ;;  %v4722_v22 = vpack.c.bf16 %v10968_v9, %v10975_v58  ;;  %v10996_v47 = vpop.eup %7691  ;;  %v13355_v52 = vld [vmem:[#allocation105_spill] sm:$0xff]  ;;  %v11000_v51 = vpop.f32.mrf.mxu0  ;;  %v13357_v49 = vld [vmem:[#allocation143_spill] sm:$0xff]  ;;  %v13359_v34 = vld [vmem:[#allocation126_spill] sm:$0xff] }
 0x5de   : > { %13354 = vst [vmem:[#allocation29_spill] sm:$0xff] %v10996_v47  ;;  %7717 = vpow2.f32 %v4468_v2  ;;  %v4420_v16 = vsub.f32 %v13355_v52, %v10889_v40  ;;  %13356 = vst [vmem:[#allocation56_spill] sm:$0xff] %v11000_v51  ;;  %v13358_v61 = vld [vmem:[#allocation145_spill] sm:$0xff]  ;;  %v4472_v2 = vmul.f32 1.442695, %v4418_v25  ;;  %v13362_v52 = vld [vmem:[#allocation52_spill] sm:$0xff] }
 0x5df   : > { %6755 = vmatpush3.bf16.msra.mxu0 %v7292_v46  ;;  %v4258_v5 = vsub.f32 %v13357_v49, %v10987_v60  ;;  %v4259_v26 = vsub.f32 %v13358_v61, %v10987_v60  ;;  %v4098_v46 = vpop.xlane.xlu0 %4097  ;;  %v11008_v31 = vpop.eup %7693  ;;  %7719 = vpow2.f32 %v4470_v6  ;;  %v13361_v39 = vld [vmem:[#allocation109_spill] sm:$0xff]  ;;  %v7295_v49 = vld [vmem:[%s9540_s21 + $0xa4] ss:$8 sps:$4 sm:$0xff]   ;;  %v4474_v25 = vmul.f32 1.442695, %v4419_v33  ;;  %v13379_v15 = vld [vmem:[#allocation104_spill] sm:$0xff] }
 0x5e0   : > { %2819 = vadd.xlane.f32.xlu0 %v10921_v42  ;;  %2882 = vadd.xlane.f32.xlu1 %v13359_v34  ;;  %13360 = vst [vmem:[#allocation54_spill] sm:$0xff] %v11008_v31  ;;  %v4421_v40 = vsub.f32 %v13361_v39, %v10928_v23  ;;  %v11013_v51 = vmax.f32 %v4098_v46, %v13362_v52  ;;  %v11016_v37 = vpop.eup %7695  ;;  %7721 = vpow2.f32 %v4372_v36  ;;  %v13365_v23 = vld [vmem:[#allocation146_spill] sm:$0xff]  ;;  %v13366_v46 = vld [vmem:[#allocation147_spill] sm:$0xff]  ;;  %v13369_v34 = vld [vmem:[#allocation32_spill] sm:$0xff] }
 0x5e1   : > { %6756 = vmatprep.subr.bf16.mxu0 %v7293_v7  ;;  %13363 = vst [vmem:[#allocation85_spill] sm:$0xff] %v11016_v37  ;;  %v4376_v42 = vmul.f32 1.442695, %v4258_v5  ;;  %v4378_v61 = vmul.f32 1.442695, %v4259_v26  ;;  %v11020_v6 = vpop.eup %7697  ;;  %7723 = vpow2.f32 %v4374_v10  ;;  %v11029_v26 = vpop.f32.mrf.mxu0  ;;  %v13368_v52 = vld [vmem:[#allocation134_spill] sm:$0xff] }
 0x5e2   : > { %7029 = vmatmul.mubr.bf16.gmra.mxu0 %v4721_v0  ;;  %13364 = vst [vmem:[#allocation12_spill] sm:$0xff] %v11020_v6  ;;  %v4260_v39 = vsub.f32 %v13365_v23, %v11013_v51  ;;  %v4261_v7 = vsub.f32 %v13366_v46, %v11013_v51  ;;  %v7296_v36 = vld [vmem:[%s9540_s21 + $0x24] ss:$8 sps:$4 sm:$0xff]   ;;  %v11027_v5 = vpop.eup %7699  ;;  %v4476_v0 = vmul.f32 1.442695, %v4420_v16  ;;  %13367 = vst [vmem:[#allocation7_spill] sm:$0xff] %v11029_v26  ;;  %v4101_v33 = vpop.xlane.xlu1 %4100 }
 0x5e3   : > { %7032 = vmatprep.mubr.bf16.mxu0 %v4722_v22  ;;  %6757 = vmatpush3.bf16.msra.mxu0 %v7294_v30  ;;  %7725 = vpow2.f32 %v4376_v42  ;;  %v11034_v23 = vpop.eup %7701  ;;  %v4478_v46 = vmul.f32 1.442695, %v4421_v40  ;;  %v7297_v30 = vld [vmem:[%s9540_s21 + $0x94] ss:$8 sps:$4 sm:$0xff]   ;;  %v4201_v42 = vmax.f32 %v4101_v33, %v13369_v34  ;;  %v4723_v34 = vpack.c.bf16 %v11027_v5, %v10982_v62  ;;  %v11058_v26 = vpop.f32.mrf.mxu0  ;;  %v13374_v37 = vld [vmem:[#allocation106_spill] sm:$0xff] }
 0x5e4   : > { %2884 = vadd.xlane.f32.xlu0 %v13368_v52  ;;  %2822 = vadd.xlane.f32.xlu1 %v2821_v41  ;;  %7727 = vpow2.f32 %v4378_v61  ;;  %v11037_v22 = vpop.eup %7703  ;;  %v4380_v16 = vmul.f32 1.442695, %v4260_v39  ;;  %v4492_v41 = vadd.f32 %v10645_v44, %v10638_v55  ;;  %v7301_v52 = vld [vmem:[%s12411_s7 + $0xf0] ss:$8 sps:$4 sm:$0xff]   ;;  %v7303_v40 = vld [vmem:[%s12411_s7 + $0xf4] ss:$8 sps:$4 sm:$0xff]   ;;  %v4423_v31 = vsub.f32 %v13374_v37, %v10987_v60 }
 0x5e5   : > { %6758 = vmatprep.subr.bf16.mxu0 %v7295_v49  ;;  %7729 = vpow2.f32 %v4472_v2  ;;  %v11048_v61 = vpop.eup %7705  ;;  %v13371_v49 = vsub.f32 %v13349_v48, %v10667_v29  ;;  %v4382_v39 = vmul.f32 1.442695, %v4261_v7  ;;  %v7298_v33 = vld [vmem:[%s9540_s21 + $0x14] ss:$8 sps:$4 sm:$0xff]   ;;  %13373 = vst [vmem:[#allocation30_spill] sm:$0xff] %v11058_v26  ;;  %v13376_v48 = vld [vmem:[#allocation150_spill] sm:$0xff]  ;;  %v4425_v26 = vsub.f32 %v13380_v4, %v4201_v42  ;;  %5326 = vmatprep.subr.bf16.mxu1 %v7303_v40  ;;  %v11089_v40 = vpop.f32.mrf.mxu0 }
 0x5e6   : > { %13370 = vst [vmem:[#allocation67_spill] sm:$0xff] %v11048_v61  ;;  %7731 = vpow2.f32 %v4474_v25  ;;  %v11056_v10 = vpop.eup %7707  ;;  %v13375_v6 = vld [vmem:[#allocation149_spill] sm:$0xff]  ;;  %v13377_v25 = vld [vmem:[#allocation139_spill] sm:$0xff]  ;;  %v4104_v7 = vpop.xlane.xlu0 %4103  ;;  %v4724_v37 = vpack.c.bf16 %v11037_v22, %v11034_v23  ;;  %5327 = vmatpush1.bf16.msra.mxu1 %v7301_v52  ;;  %v13382_v4 = vld [vmem:[#allocation108_spill] sm:$0xff] }
 0x5e7   : > { %v4300_v2 = vmul.f32 1.442695, %v13371_v49  ;;  %6759 = vmatpush3.bf16.msra.mxu0 %v7296_v36  ;;  %13372 = vst [vmem:[#allocation19_spill] sm:$0xff] %v11056_v10  ;;  %7733 = vpow2.f32 %v4476_v0  ;;  %v4262_v47 = vsub.f32 %v13375_v6, %v4201_v42  ;;  %v4263_v49 = vsub.f32 %v13376_v48, %v4201_v42  ;;  %v11066_v36 = vpop.eup %7709  ;;  %v7299_v60 = vld [vmem:[%s9540_s21 + $0x84] ss:$8 sps:$4 sm:$0xff]   ;;  %13384 = vst [vmem:[#allocation60_spill] sm:$0xff] %v11089_v40 }
 0x5e8   : > { %4588 = vadd.xlane.f32.xlu0 %v10655_v8  ;;  %2886 = vadd.xlane.f32.xlu1 %v13377_v25  ;;  %13378 = vst [vmem:[#allocation87_spill] sm:$0xff] %v11066_v36  ;;  %7735 = vpow2.f32 %v4478_v46  ;;  %v4422_v0 = vsub.f32 %v13379_v15, %v10952_v3  ;;  %v11074_v6 = vpop.eup %7711  ;;  %v4424_v3 = vsub.f32 %v13382_v4, %v11013_v51  ;;  %v13388_v4 = vld [vmem:[#allocation153_spill] sm:$0xff] }
 0x5e9   : > { %6760 = vmatprep.subr.bf16.mxu0 %v7297_v30  ;;  %13381 = vst [vmem:[#allocation22_spill] sm:$0xff] %v11074_v6  ;;  %7737 = vpow2.f32 %v4380_v16  ;;  %v4384_v8 = vmul.f32 1.442695, %v4262_v47  ;;  %v4386_v48 = vmul.f32 1.442695, %v4263_v49  ;;  %v11078_v15 = vpop.eup %7713  ;;  %v13383_v47 = vld [vmem:[#allocation55_spill] sm:$0xff] }
 0x5ea   : > { %7033 = vmatmul.mubr.bf16.gmra.mxu0 %v4723_v34  ;;  %7739 = vpow2.f32 %v4382_v39  ;;  %v7300_v30 = vld [vmem:[%s9540_s21 + $0x4] ss:$8 sps:$4 sm:$0xff]   ;;  %v11085_v16 = vpop.eup %7715  ;;  %v4221_v52 = vsub.f32 %v13383_v47, %v10667_v29  ;;  %v4482_v34 = vmul.f32 1.442695, %v4423_v31  ;;  %v4169_v39 = vpop.xlane.xlu0 %4168  ;;  %v4480_v31 = vmul.f32 1.442695, %v4422_v0 }
 0x5eb   : > { %7036 = vmatprep.mubr.bf16.mxu0 %v4724_v37  ;;  %6761 = vmatpush3.bf16.msra.mxu0 %v7298_v33  ;;  %7741 = vpow2.f32 %v4384_v8  ;;  %v11092_v51 = vpop.eup %7717  ;;  %v4486_v33 = vmul.f32 1.442695, %v4425_v26  ;;  %v4202_v49 = vmax.f32 %v4104_v7, %v4169_v39  ;;  %v4107_v25 = vpop.xlane.xlu1 %4106  ;;  %v7306_v37 = vld [vmem:[%s12411_s7 + $0x74] ss:$8 sps:$4 sm:$0xff]   ;;  %v13387_v26 = vld [vmem:[#allocation151_spill] sm:$0xff] }
 0x5ec   : > { %4493 = vadd.xlane.f32.xlu0 %v4492_v41  ;;  %4590 = vadd.xlane.f32.xlu1 %v10676_v43  ;;  %7743 = vpow2.f32 %v4386_v48  ;;  %v11097_v29 = vpop.eup %7719  ;;  %v11099_v8 = vpop.f32.mrf.mxu0  ;;  %v4495_v43 = vadd.f32 %v10663_v18, %v10659_v20  ;;  %v4484_v48 = vmul.f32 1.442695, %v4424_v3  ;;  %v13389_v47 = vld [vmem:[#allocation156_spill] sm:$0xff]  ;;  %v4302_v42 = vmul.f32 1.442695, %v4221_v52 }
 0x5ed   : > { %6762 = vmatprep.subr.bf16.mxu0 %v7299_v60  ;;  %7745 = vpow2.f32 %v4300_v2  ;;  %13385 = vst [vmem:[#allocation70_spill] sm:$0xff] %v11099_v8  ;;  %v11103_v41 = vpop.eup %7721  ;;  %v4264_v7 = vsub.f32 %v13387_v26, %v4202_v49  ;;  %v4265_v60 = vsub.f32 %v13388_v4, %v4202_v49  ;;  %v4426_v39 = vsub.f32 %v13389_v47, %v4202_v49  ;;  %v13394_v4 = vld [vmem:[#allocation21_spill] sm:$0xff] }
 0x5ee   : > { %13386 = vst [vmem:[#allocation82_spill] sm:$0xff] %v11103_v41  ;;  %v11108_v46 = vpop.eup %7723  ;;  %7747 = vpow2.f32 %v4482_v34  ;;  %v4725_v2 = vpack.c.bf16 %v11085_v16, %v11078_v15  ;;  %v2730_v0 = vpop.xlane.xlu0 %2729  ;;  %v4726_v26 = vpack.c.bf16 %v11097_v29, %v11092_v51  ;;  %v4222_v47 = vsub.f32 %v13394_v4, %v10708_v63  ;;  %v13407_v41 = vld [vmem:[#allocation62_spill] sm:$0xff] }
 0x5ef   : > { %6763 = vmatpush3.bf16.msra.mxu0 %v7300_v30  ;;  %13390 = vst [vmem:[#allocation63_spill] sm:$0xff] %v11108_v46  ;;  %7749 = vpow2.f32 %v4486_v33  ;;  %v4388_v3 = vmul.f32 1.442695, %v4264_v7  ;;  %v4171_v49 = vpop.xlane.xlu1 %4170  ;;  %v4498_v30 = vadd.f32 %v10687_v54, %v10679_v14  ;;  %v4390_v34 = vmul.f32 1.442695, %v4265_v60  ;;  %v13395_v60 = vld [vmem:[#allocation154_spill] sm:$0xff] }
 0x5f0   : > { %4592 = vadd.xlane.f32.xlu0 %v10695_v12  ;;  %4496 = vadd.xlane.f32.xlu1 %v4495_v43  ;;  %v11113_v8 = vpop.eup %7725  ;;  %7751 = vpow2.f32 %v4480_v31  ;;  %v11121_v12 = vpop.f32.mrf.mxu0  ;;  %v4203_v43 = vmax.f32 %v4107_v25, %v4171_v49  ;;  %v4488_v40 = vmul.f32 1.442695, %v4426_v39  ;;  %v13396_v25 = vld [vmem:[#allocation155_spill] sm:$0xff] }
 0x5f1   : > { %13391 = vst [vmem:[#allocation61_spill] sm:$0xff] %v11113_v8  ;;  %5599 = vmatprep.subr.bf16.mxu0 %v7306_v37  ;;  %v11119_v52 = vpop.eup %7727  ;;  %13393 = vst [vmem:[#allocation43_spill] sm:$0xff] %v11121_v12  ;;  %7753 = vpow2.f32 %v4484_v48  ;;  %v13397_v12 = vld [vmem:[#allocation157_spill] sm:$0xff]  ;;  %v13398_v48 = vld [vmem:[#allocation39_spill] sm:$0xff] }
 0x5f2   : > { %13392 = vst [vmem:[#allocation81_spill] sm:$0xff] %v11119_v52  ;;  %7037 = vmatmul.mubr.bf16.gmra.mxu0 %v4725_v2  ;;  %v11125_v7 = vpop.eup %7729  ;;  %7755 = vpow2.f32 %v4302_v42  ;;  %v4266_v2 = vsub.f32 %v13395_v60, %v4203_v43  ;;  %v4267_v49 = vsub.f32 %v13396_v25, %v4203_v43  ;;  %v4427_v33 = vsub.f32 %v13397_v12, %v4203_v43  ;;  %v2825_v8 = vpop.xlane.xlu0 %2824  ;;  %v13399_v42 = vld [vmem:[#allocation45_spill] sm:$0xff]  ;;  %v7307_v12 = vld [vmem:[%s12411_s7 + $0xe0] ss:$8 sps:$4 sm:$0xff]  }
 0x5f3   : > { %7040 = vmatprep.mubr.bf16.mxu0 %v4726_v26  ;;  %v11131_v31 = vpop.eup %7731  ;;  %v4223_v39 = vsub.f32 %v13398_v48, %v10708_v63  ;;  %7757 = vpow2.f32 %v4388_v3  ;;  %v11141_v26 = vadd.f32 %v2825_v8, %v2730_v0  ;;  %v2733_v37 = vpop.xlane.xlu1 %2732  ;;  %v4501_v60 = vadd.f32 %v13399_v42, %v10704_v1 }
 0x5f4   : > { %4499 = vadd.xlane.f32.xlu0 %v4498_v30  ;;  %4594 = vadd.xlane.f32.xlu1 %v10722_v50  ;;  %v11137_v4 = vpop.eup %7733  ;;  %v7309_v50 = vld [vmem:[%s12411_s7 + $0xe4] ss:$8 sps:$4 sm:$0xff]   ;;  %v11153_v43 = vpop.f32.mrf.mxu0  ;;  %7759 = vpow2.f32 %v4390_v34  ;;  %v4392_v63 = vmul.f32 1.442695, %v4266_v2  ;;  %v4394_v8 = vmul.f32 1.442695, %v4267_v49  ;;  %v4727_v52 = vpack.c.bf16 %v11131_v31, %v11125_v7 }
 0x5f5   : > { %v11151_v30 = vpop.eup %7735  ;;  %13401 = vst [vmem:[#allocation33_spill] sm:$0xff] %v11153_v43  ;;  %v4490_v0 = vmul.f32 1.442695, %v4427_v33  ;;  %7761 = vpow2.f32 %v4488_v40  ;;  %5328 = vmatprep.subr.bf16.mxu1 %v7309_v50  ;;  %v4304_v48 = vmul.f32 1.442695, %v4222_v47  ;;  %v13404_v43 = vld [vmem:[#allocation26_spill] sm:$0xff] }
 0x5f6   : > { %13400 = vst [vmem:[#allocation59_spill] sm:$0xff] %v11151_v30  ;;  %v11155_v3 = vpop.eup %7737  ;;  %7763 = vpow2.f32 %v4392_v63  ;;  %v2736_v46 = vpop.xlane.xlu0 %2735  ;;  %v13405_v34 = vld [vmem:[#allocation3_spill] sm:$0xff]  ;;  %v4306_v33 = vmul.f32 1.442695, %v4223_v39  ;;  %v13408_v40 = vld [vmem:[#allocation40_spill] sm:$0xff]  ;;  %v4728_v47 = vpack.c.bf16 %v11151_v30, %v11137_v4  ;;  %5329 = vmatpush1.bf16.msra.mxu1 %v7307_v12  ;;  %v13416_v39 = vld [vmem:[#allocation65_spill] sm:$0xff] }
 0x5f7   : > { %13402 = vst [vmem:[#allocation34_spill] sm:$0xff] %v11155_v3  ;;  %v11157_v25 = vpop.eup %7739  ;;  %v4504_v2 = vadd.f32 %v13405_v34, %v13404_v43  ;;  %v4224_v50 = vsub.f32 %v13408_v40, %v13407_v41  ;;  %7765 = vpow2.f32 %v4394_v8  ;;  %v2827_v63 = vpop.xlane.xlu1 %2826  ;;  %v13412_v40 = vld [vmem:[#allocation42_spill] sm:$0xff]  ;;  %v13417_v12 = vld [vmem:[#allocation5_spill] sm:$0xff] }
 0x5f8   : > { %13403 = vst [vmem:[#allocation84_spill] sm:$0xff] %v11157_v25  ;;  %4596 = vadd.xlane.f32.xlu0 %v10743_v45  ;;  %4502 = vadd.xlane.f32.xlu1 %v4501_v60  ;;  %v11164_v49 = vpop.eup %7741  ;;  %v13410_v60 = vld [vmem:[#allocation41_spill] sm:$0xff]  ;;  %v11174_v36 = vpop.f32.mrf.mxu0  ;;  %7767 = vpow2.f32 %v4490_v0  ;;  %v11176_v10 = vadd.f32 %v2827_v63, %v2733_v37  ;;  %v4226_v30 = vsub.f32 %v13412_v40, %v10726_v38 }
 0x5f9   : > { %13406 = vst [vmem:[#allocation64_spill] sm:$0xff] %v11164_v49  ;;  %v11170_v45 = vpop.eup %7743  ;;  %v4225_v6 = vsub.f32 %v13410_v60, %v13407_v41  ;;  %13411 = vst [vmem:[#allocation86_spill] sm:$0xff] %v11174_v36  ;;  %7769 = vpow2.f32 %v4304_v48  ;;  %v4308_v37 = vmul.f32 1.442695, %v4224_v50  ;;  %v4227_v40 = vsub.f32 %v13416_v39, %v10726_v38  ;;  %v13420_v38 = vld [vmem:[#allocation2_spill] sm:$0xff] }
 0x5fa   : > { %13409 = vst [vmem:[#allocation46_spill] sm:$0xff] %v11170_v45  ;;  %7041 = vmatmul.mubr.bf16.gmra.mxu0 %v4727_v52  ;;  %v11180_v8 = vpop.eup %7745  ;;  %v11186_v61 = vpop.f32.mrf.mxu0  ;;  %7771 = vpow2.f32 %v4306_v33  ;;  %v4312_v36 = vmul.f32 1.442695, %v4226_v30  ;;  %v4228_v50 = vsub.f32 %v13420_v38, %v10784_v11  ;;  %v13421_v30 = vld [vmem:[#allocation110_spill] sm:$0xff] }
 0x5fb   : > { %7044 = vmatprep.mubr.bf16.mxu0 %v4728_v47  ;;  %13413 = vst [vmem:[#allocation89_spill] sm:$0xff] %v11186_v61  ;;  %v2829_v41 = vpop.xlane.xlu0 %2828  ;;  %v11189_v52 = vpop.eup %7747  ;;  %v4310_v60 = vmul.f32 1.442695, %v4225_v6  ;;  %7773 = vpow2.f32 %v4308_v37 }
 0x5fc   : > { %4505 = vadd.xlane.f32.xlu0 %v4504_v2  ;;  %4598 = vadd.xlane.f32.xlu1 %v10768_v24  ;;  %13414 = vst [vmem:[#allocation152_spill] sm:$0xff] %v11189_v52  ;;  %v11191_v0 = vadd.f32 %v2829_v41, %v2736_v46  ;;  %v2739_v63 = vpop.xlane.xlu1 %2738  ;;  %v11193_v47 = vpop.eup %7749  ;;  %v4507_v2 = vadd.f32 %v10761_v56, %v13417_v12 }
 0x5fd   : > { %13415 = vst [vmem:[#allocation117_spill] sm:$0xff] %v11193_v47  ;;  %v11199_v61 = vpop.eup %7751  ;;  %v11203_v48 = vpop.f32.mrf.mxu0  ;;  %7775 = vpow2.f32 %v4310_v60 }
 0x5fe   : > { %v11201_v24 = vpop.eup %7753  ;;  %13419 = vst [vmem:[#allocation75_spill] sm:$0xff] %v11203_v48  ;;  %v4729_v46 = vpack.c.bf16 %v11189_v52, %v11199_v61  ;;  %v4510_v48 = vadd.f32 %v13421_v30, %v10780_v32  ;;  %7777 = vpow2.f32 %v4312_v36  ;;  %v7319_v36 = vld [vmem:[%s12411_s7 + $0xd0] ss:$8 sps:$4 sm:$0xff]  }
 0x5ff   : > { %13418 = vst [vmem:[#allocation125_spill] sm:$0xff] %v11201_v24  ;;  %v2742_v6 = vpop.xlane.xlu0 %2741  ;;  %v11208_v33 = vpop.eup %7755  ;;  %v4730_v39 = vpack.c.bf16 %v11193_v47, %v11201_v24  ;;  %v13427_v24 = vld [vmem:[#allocation49_spill] sm:$0xff] }
 0x600   : > { %4600 = vadd.xlane.f32.xlu0 %v10796_v13  ;;  %4508 = vadd.xlane.f32.xlu1 %v4507_v2  ;;  %v2831_v41 = vpop.xlane.xlu1 %2830  ;;  %v11216_v45 = vpop.eup %7757  ;;  %v4314_v13 = vmul.f32 1.442695, %v4227_v40  ;;  %v13423_v2 = vld [vmem:[#allocation77_spill] sm:$0xff]  ;;  %v4316_v40 = vmul.f32 1.442695, %v4228_v50 }
 0x601   : > { %13422 = vst [vmem:[#allocation80_spill] sm:$0xff] %v11216_v45  ;;  %v4229_v49 = vsub.f32 %v13423_v2, %v10784_v11  ;;  %v11220_v25 = vadd.f32 %v2831_v41, %v2739_v63  ;;  %v11222_v37 = vpop.eup %7759  ;;  %v11226_v47 = vpop.f32.mrf.mxu0  ;;  %v13428_v11 = vld [vmem:[#allocation8_spill] sm:$0xff]  ;;  %v13429_v2 = vld [vmem:[#allocation51_spill] sm:$0xff] }
 0x602   : > { %7045 = vmatmul.mubr.bf16.gmra.mxu0 %v4729_v46  ;;  %v11224_v38 = vpop.eup %7761  ;;  %13425 = vst [vmem:[#allocation148_spill] sm:$0xff] %v11226_v47  ;;  %v4230_v46 = vsub.f32 %v13428_v11, %v13427_v24  ;;  %7779 = vpow2.f32 %v4314_v13  ;;  %v4516_v47 = vadd.f32 %v11208_v33, %v11180_v8 }
 0x603   : > { %7048 = vmatprep.mubr.bf16.mxu0 %v4730_v39  ;;  %13424 = vst [vmem:[#allocation144_spill] sm:$0xff] %v11224_v38  ;;  %v2833_v3 = vpop.xlane.xlu0 %2832  ;;  %v11229_v60 = vpop.eup %7763  ;;  %v4513_v39 = vadd.f32 %v10849_v35, %v10843_v21  ;;  %v4318_v50 = vmul.f32 1.442695, %v4229_v49  ;;  %7781 = vpow2.f32 %v4316_v40 }
 0x604   : > { %4511 = vadd.xlane.f32.xlu0 %v4510_v48  ;;  %4602 = vadd.xlane.f32.xlu1 %v10855_v53  ;;  %13426 = vst [vmem:[#allocation118_spill] sm:$0xff] %v11229_v60  ;;  %v11233_v63 = vadd.f32 %v2833_v3, %v2742_v6  ;;  %v2745_v41 = vpop.xlane.xlu1 %2744  ;;  %v7321_v53 = vld [vmem:[%s12411_s7 + $0xd4] ss:$8 sps:$4 sm:$0xff]   ;;  %v11243_v48 = vpop.eup %7765  ;;  %v4231_v3 = vsub.f32 %v13429_v2, %v13427_v24  ;;  %v4320_v2 = vmul.f32 1.442695, %v4230_v46  ;;  %v13432_v6 = vld [vmem:[#allocation10_spill] sm:$0xff] }
 0x605   : > { %v11249_v11 = vpop.eup %7767  ;;  %5330 = vmatprep.subr.bf16.mxu1 %v7321_v53  ;;  %v11253_v52 = vpop.f32.mrf.mxu0  ;;  %v4685_v24 = vpack.c.bf16 %v10663_v18, %v10645_v44  ;;  %v13433_v60 = vld [vmem:[#allocation72_spill] sm:$0xff]  ;;  %7783 = vpow2.f32 %v4318_v50  ;;  %v13436_v50 = vld [vmem:[#allocation74_spill] sm:$0xff] }
 0x606   : > { %13430 = vst [vmem:[#allocation91_spill] sm:$0xff] %v11249_v11  ;;  %13431 = vst [vmem:[#allocation88_spill] sm:$0xff] %v11253_v52  ;;  %v4731_v49 = vpack.c.bf16 %v11249_v11, %v11224_v38  ;;  %v4232_v53 = vsub.f32 %v13433_v60, %v13432_v6  ;;  %5331 = vmatpush1.bf16.msra.mxu1 %v7319_v36  ;;  %v11264_v52 = vpop.eup %7769  ;;  %7785 = vrcp.f32 %v11141_v26  ;;  %v13435_v36 = vld [vmem:[#allocation50_spill] sm:$0xff] }
 0x607   : > { %v2748_v13 = vpop.xlane.xlu0 %2747  ;;  %v11272_v18 = vpop.eup %7771  ;;  %7787 = vpow2.f32 %v4320_v2  ;;  %v13437_v26 = vld [vmem:[#allocation58_spill] sm:$0xff] }
 0x608   : > { %4604 = vadd.xlane.f32.xlu0 %v10866_v27  ;;  %4514 = vadd.xlane.f32.xlu1 %v4513_v39  ;;  %v2835_v45 = vpop.xlane.xlu1 %2834  ;;  %v4322_v27 = vmul.f32 1.442695, %v4231_v3  ;;  %v13434_v39 = vld [vmem:[#allocation53_spill] sm:$0xff]  ;;  %v11268_v38 = vpop.f32.mrf.mxu0  ;;  %v4324_v46 = vmul.f32 1.442695, %v4232_v53  ;;  %v4234_v3 = vsub.f32 %v13436_v50, %v13435_v36 }
 0x609   : > { %v4233_v11 = vsub.f32 %v13434_v39, %v13432_v6  ;;  %v11270_v44 = vadd.f32 %v2835_v45, %v2745_v41  ;;  %v11282_v41 = vpop.eup %7773  ;;  %v7312_v50 = vld [vmem:[%s12411_s7 + $0x64] ss:$8 sps:$4 sm:$0xff]  }
 0x60a   : > { %7049 = vmatmul.mubr.bf16.gmra.mxu0 %v4731_v49  ;;  %v11275_v60 = vpop.f32.mrf.mxu0  ;;  %7789 = vpow2.f32 %v4322_v27 }
 0x60b   : > { %5021 = vmatprep.mubr.bf16.mxu0 %v4685_v24  ;;  %v2837_v40 = vpop.xlane.xlu0 %2836  ;;  %v4326_v49 = vmul.f32 1.442695, %v4233_v11  ;;  %v4235_v24 = vsub.f32 %v13437_v26, %v13435_v36  ;;  %7791 = vrcp.f32 %v11176_v10  ;;  %v4684_v11 = vpack.c.bf16 %v10659_v20, %v10638_v55 }
 0x60c   : > { %4517 = vadd.xlane.f32.xlu0 %v4516_v47  ;;  %4606 = vadd.xlane.f32.xlu1 %v10907_v59  ;;  %v11280_v6 = vadd.f32 %v2837_v40, %v2748_v13  ;;  %v2751_v45 = vpop.xlane.xlu1 %2750  ;;  %v11286_v39 = vpop.f32.mrf.mxu0  ;;  %v4519_v59 = vadd.f32 %v11272_v18, %v11264_v52  ;;  %v7304_v13 = vld [vmem:[%s12411_s7 + $0x70] ss:$8 sps:$4 sm:$0xff]   ;;  %7793 = vpow2.f32 %v4324_v46  ;;  %v4328_v40 = vmul.f32 1.442695, %v4234_v3 }
 0x60d   : > { %v11290_v47 = vpop.eup %7775  ;;  %v4687_v10 = vpack.c.bf16 %v13399_v42, %v10687_v54  ;;  %7795 = vpow2.f32 %v4326_v49  ;;  %v4330_v26 = vmul.f32 1.442695, %v4235_v24  ;;  %v12772_v20 = vmov 0   ;;  %v7310_v54 = vld [vmem:[%s12411_s7 + $0x60] ss:$8 sps:$4 sm:$0xff]  }
 0x60e   : > { %v11296_v2 = vpop.f32.mrf.mxu0  ;;  %v11301_v27 = vpop.eup %7777  ;;  %v4522_v55 = vadd.f32 %v11290_v47, %v11282_v41  ;;  %5358 = vmatprep.mubr.bf16.mxu1 %v12772_v20  ;;  %7797 = vrcp.f32 %v11191_v0  ;;  %v7315_v0 = vld [vmem:[%s12411_s7 + $0x54] ss:$8 sps:$4 sm:$0xff]  }
 0x60f   : > { %v2754_v53 = vpop.xlane.xlu0 %2753  ;;  %v11313_v46 = vpop.eup %7779  ;;  %7799 = vpow2.f32 %v4328_v40 }
 0x610   : > { %4608 = vadd.xlane.f32.xlu0 %v10914_v28  ;;  %4520 = vadd.xlane.f32.xlu1 %v4519_v59  ;;  %v2839_v36 = vpop.xlane.xlu1 %2838  ;;  %v6556_v28 = vpop.f32.mrf.mxu0  ;;  %7801 = vpow2.f32 %v4330_v26  ;;  %v4686_v26 = vpack.c.bf16 %v10704_v1, %v10679_v14 }
 0x611   : > { %v11308_v59 = vadd.f32 %v2839_v36, %v2751_v45  ;;  %7803 = vrcp.f32 %v11220_v25  ;;  %v13438_v36 = vld [vmem:[#allocation37_spill] sm:$0xff] }
 0x612   : > { %5022 = vmatmul.mubr.bf16.vlgmr.msra.gmra.mxu0 %v4684_v11  ;;  %v6557_v42 = vpop.f32.mrf.mxu0  ;;  %v7336_v11 = vld [vmem:[%s12411_s7 + $0xc4] ss:$8 sps:$4 sm:$0xff]   ;;  %7805 = vrcp.f32 %v11233_v63 }
 0x613   : > { %5029 = vmatprep.mubr.bf16.mxu0 %v4687_v10  ;;  %5600 = vmatpush1.bf16.msra.mxu0 %v7304_v13  ;;  %v2841_v3 = vpop.xlane.xlu0 %2840  ;;  %v6558_v45 = vadd.f32 %v6557_v42, %v6556_v28  ;;  %v7334_v13 = vld [vmem:[%s12411_s7 + $0xc0] ss:$8 sps:$4 sm:$0xff]   ;;  %v7313_v28 = vld [vmem:[%s12411_s7 + $0x50] ss:$8 sps:$4 sm:$0xff]   ;;  %7807 = vrcp.f32 %v11270_v44  ;;  %v7339_v44 = vld [vmem:[%s12411_s7 + $0xb4] ss:$8 sps:$4 sm:$0xff]  }
 0x614   : > { %4523 = vadd.xlane.f32.xlu0 %v4522_v55  ;;  %4610 = vadd.xlane.f32.xlu1 %v10923_v17  ;;  %v11320_v49 = vadd.f32 %v2841_v3, %v2754_v53  ;;  %v2757_v24 = vpop.xlane.xlu1 %2756  ;;  %v11331_v17 = vpop.eup %7781  ;;  %v4525_v53 = vadd.f32 %v11313_v46, %v11301_v27  ;;  %7809 = vrcp.f32 %v11280_v6 }
 0x615   : > { %5601 = vmatprep.subr.bf16.mxu0 %v7312_v50  ;;  %v6559_v40 = vpop.f32.mrf.mxu0  ;;  %v11335_v10 = vpop.eup %7783  ;;  %v3308_v50 = vadd.f32 %v6558_v45, %v13438_v36  ;;  %5332 = vmatprep.subr.bf16.mxu1 %v7336_v11  ;;  %v7318_v11 = vld [vmem:[%s12411_s7 + $0x44] ss:$8 sps:$4 sm:$0xff]   ;;  %7811 = vrcp.f32 %v11308_v59 }
 0x616   : > { %v7786_v55 = vpop.eup %7785  ;;  %5333 = vmatpush1.bf16.msra.mxu1 %v7334_v13  ;;  %v4528_v14 = vadd.f32 %v11335_v10, %v11331_v17  ;;  %7813 = vrcp.f32 %v11320_v49 }
 0x617   : > { %5602 = vmatpush1.bf16.msra.mxu0 %v7310_v54  ;;  %v6560_v42 = vpop.f32.mrf.mxu0  ;;  %v2760_v3 = vpop.xlane.xlu0 %2759  ;;  %v11345_v20 = vmul.f32 %v7786_v55, %v3308_v50  ;;  %v4689_v54 = vpack.c.bf16 %v10761_v56, %v13405_v34  ;;  %v13439_v56 = vld [vmem:[#allocation25_spill] sm:$0xff]  ;;  %5334 = vmatprep.subr.bf16.mxu1 %v7339_v44 }
 0x618   : > { %4612 = vadd.xlane.f32.xlu0 %v10975_v58  ;;  %4526 = vadd.xlane.f32.xlu1 %v4525_v53  ;;  %v6561_v25 = vadd.f32 %v6560_v42, %v6559_v40  ;;  %v2843_v45 = vpop.xlane.xlu1 %2842  ;;  %v11352_v36 = vpop.eup %7787 }
 0x619   : > { %5603 = vmatprep.subr.bf16.mxu0 %v7315_v0  ;;  %v6562_v58 = vpop.f32.mrf.mxu0  ;;  %v11354_v53 = vadd.f32 %v2843_v45, %v2757_v24  ;;  %v11358_v1 = vpop.eup %7789  ;;  %v7316_v0 = vld [vmem:[%s12411_s7 + $0x40] ss:$8 sps:$4 sm:$0xff]  }
 0x61a   : > { %5030 = vmatmul.mubr.bf16.gmra.mxu0 %v4686_v26  ;;  %v3311_v34 = vadd.f32 %v6561_v25, %v13439_v56  ;;  %v7792_v13 = vpop.eup %7791 }
 0x61b   : > { %5037 = vmatprep.mubr.bf16.mxu0 %v4689_v54  ;;  %5604 = vmatpush1.bf16.msra.mxu0 %v7313_v28  ;;  %v6563_v40 = vpop.f32.mrf.mxu0  ;;  %v2845_v24 = vpop.xlane.xlu0 %2844  ;;  %v7324_v28 = vld [vmem:[%s12411_s7 + $0x34] ss:$8 sps:$4 sm:$0xff]   ;;  %v4531_v54 = vadd.f32 %v11358_v1, %v11352_v36  ;;  %7815 = vrcp.f32 %v11354_v53  ;;  %v7340_v53 = vld [vmem:[%s12411_s7 + $0xa0] ss:$8 sps:$4 sm:$0xff]  }
 0x61c   : > { %4529 = vadd.xlane.f32.xlu0 %v4528_v14  ;;  %4614 = vadd.xlane.f32.xlu1 %v10968_v9  ;;  %v11366_v50 = vmul.f32 %v7792_v13, %v3311_v34  ;;  %v6564_v55 = vadd.f32 %v6563_v40, %v6562_v58  ;;  %v11368_v42 = vadd.f32 %v2845_v24, %v2760_v3  ;;  %v2763_v63 = vpop.xlane.xlu1 %2762  ;;  %v11373_v26 = vpop.eup %7793  ;;  %v13440_v3 = vld [vmem:[#allocation23_spill] sm:$0xff] }
 0x61d   : > { %5605 = vmatprep.subr.bf16.mxu0 %v7318_v11  ;;  %v6565_v25 = vpop.f32.mrf.mxu0  ;;  %v11377_v45 = vpop.eup %7795  ;;  %v7322_v11 = vld [vmem:[%s12411_s7 + $0x30] ss:$8 sps:$4 sm:$0xff]   ;;  %v4688_v34 = vpack.c.bf16 %v13417_v12, %v13404_v43  ;;  %v4691_v24 = vpack.c.bf16 %v10849_v35, %v13421_v30 }
 0x61e   : > { %v3316_v58 = vadd.f32 %v13440_v3, %v6564_v55  ;;  %v7798_v14 = vpop.eup %7797  ;;  %v7337_v43 = vld [vmem:[%s12411_s7 + $0xb0] ss:$8 sps:$4 sm:$0xff]   ;;  %7817 = vrcp.f32 %v11368_v42 }
 0x61f   : > { %5606 = vmatpush1.bf16.msra.mxu0 %v7316_v0  ;;  %v6566_v56 = vpop.f32.mrf.mxu0  ;;  %v2766_v13 = vpop.xlane.xlu0 %2765  ;;  %v13441_v30 = vld [vmem:[#allocation13_spill] sm:$0xff]  ;;  %5335 = vmatpush1.bf16.msra.mxu1 %v7337_v43  ;;  %v4690_v43 = vpack.c.bf16 %v10843_v21, %v10780_v32  ;;  %v13444_v32 = vld [vmem:[#allocation83_spill] sm:$0xff] }
 0x620   : > { %4616 = vadd.xlane.f32.xlu0 %v10982_v62  ;;  %4532 = vadd.xlane.f32.xlu1 %v4531_v54  ;;  %v11392_v40 = vmul.f32 %v7798_v14, %v3316_v58  ;;  %v6567_v0 = vadd.f32 %v6566_v56, %v6565_v25  ;;  %v2847_v55 = vpop.xlane.xlu1 %2846  ;;  %v7327_v62 = vld [vmem:[%s12411_s7 + $0x24] ss:$8 sps:$4 sm:$0xff]   ;;  %v11402_v12 = vpop.eup %7799  ;;  %v4534_v25 = vadd.f32 %v11377_v45, %v11373_v26  ;;  %v7325_v58 = vld [vmem:[%s12411_s7 + $0x20] ss:$8 sps:$4 sm:$0xff]  }
 0x621   : > { %5607 = vmatprep.subr.bf16.mxu0 %v7324_v28  ;;  %v6568_v54 = vpop.f32.mrf.mxu0  ;;  %v11404_v3 = vadd.f32 %v2847_v55, %v2763_v63  ;;  %v11408_v35 = vpop.eup %7801 }
 0x622   : > { %5038 = vmatmul.mubr.bf16.gmra.mxu0 %v4688_v34  ;;  %v3319_v28 = vadd.f32 %v13441_v30, %v6567_v0  ;;  %v7804_v14 = vpop.eup %7803 }
 0x623   : > { %5045 = vmatprep.mubr.bf16.mxu0 %v4691_v24  ;;  %5608 = vmatpush1.bf16.msra.mxu0 %v7322_v11  ;;  %v6569_v56 = vpop.f32.mrf.mxu0  ;;  %v2849_v63 = vpop.xlane.xlu0 %2848  ;;  %v7330_v11 = vld [vmem:[%s12411_s7 + $0x14] ss:$8 sps:$4 sm:$0xff]   ;;  %v4537_v24 = vadd.f32 %v11408_v35, %v11402_v12  ;;  %7819 = vrcp.f32 %v11404_v3  ;;  %v4697_v3 = vpack.c.bf16 %v11358_v1, %v11335_v10 }
 0x624   : > { %4535 = vadd.xlane.f32.xlu0 %v4534_v25  ;;  %4618 = vadd.xlane.f32.xlu1 %v11027_v5  ;;  %v11416_v34 = vmul.f32 %v7804_v14, %v3319_v28  ;;  %v6570_v44 = vadd.f32 %v6569_v56, %v6568_v54  ;;  %v11418_v55 = vadd.f32 %v2849_v63, %v2766_v13  ;;  %v2769_v6 = vpop.xlane.xlu1 %2768  ;;  %v13442_v5 = vld [vmem:[#allocation36_spill] sm:$0xff]  ;;  %v7806_v54 = vpop.eup %7805  ;;  %v7333_v63 = vld [vmem:[%s12411_s7 + $0x4] ss:$8 sps:$4 sm:$0xff]  }
 0x625   : > { %5609 = vmatprep.subr.bf16.mxu0 %v7327_v62  ;;  %v6571_v0 = vpop.f32.mrf.mxu0  ;;  %v7328_v13 = vld [vmem:[%s12411_s7 + $0x10] ss:$8 sps:$4 sm:$0xff]   ;;  %v4693_v14 = vpack.c.bf16 %v11272_v18, %v11208_v33  ;;  %v7331_v33 = vld [vmem:[%s12411_s7] ss:$8 sps:$4 sm:$0xff]   ;;  %v7808_v18 = vpop.eup %7807 }
 0x626   : > { %v3324_v25 = vadd.f32 %v6570_v44, %v13442_v5  ;;  %v13445_v5 = vld [vmem:[#allocation9_spill] sm:$0xff]  ;;  %7821 = vrcp.f32 %v11418_v55 }
 0x627   : > { %5610 = vmatpush1.bf16.msra.mxu0 %v7325_v58  ;;  %v6572_v30 = vpop.f32.mrf.mxu0  ;;  %v11435_v28 = vpop.xlane.xlu0 %2771 }
 0x628   : > { %4620 = vadd.xlane.f32.xlu0 %v11034_v23  ;;  %4538 = vadd.xlane.f32.xlu1 %v4537_v24  ;;  %v11437_v59 = vmul.f32 %v7806_v54, %v3324_v25  ;;  %v6573_v58 = vadd.f32 %v6572_v30, %v6571_v0  ;;  %v2851_v56 = vpop.xlane.xlu1 %2850  ;;  %v13443_v24 = vld [vmem:[#allocation78_spill] sm:$0xff] }
 0x629   : > { %5611 = vmatprep.subr.bf16.mxu0 %v7330_v11  ;;  %v6574_v44 = vpop.f32.mrf.mxu0  ;;  %v11444_v23 = vadd.f32 %v2851_v56, %v2769_v6  ;;  %v4540_v21 = vadd.f32 %v13444_v32, %v13443_v24 }
 0x62a   : > { %5046 = vmatmul.mubr.bf16.gmra.mxu0 %v4690_v43  ;;  %v3327_v0 = vadd.f32 %v6573_v58, %v13445_v5  ;;  %v13446_v43 = vld [vmem:[#allocation31_spill] sm:$0xff] }
 0x62b   : > { %5053 = vmatprep.mubr.bf16.mxu0 %v4693_v14  ;;  %5612 = vmatpush1.bf16.msra.mxu0 %v7328_v13  ;;  %v6575_v11 = vpop.f32.mrf.mxu0  ;;  %v11454_v6 = vpop.xlane.xlu0 %2852  ;;  %v13447_v13 = vld [vmem:[#allocation11_spill] sm:$0xff]  ;;  %v13448_v14 = vld [vmem:[#allocation38_spill] sm:$0xff]  ;;  %7823 = vrcp.f32 %v11444_v23  ;;  %v7343_v23 = vld [vmem:[%s12411_s7 + $0x90] ss:$8 sps:$4 sm:$0xff]  }
 0x62c   : > { %4541 = vadd.xlane.f32.xlu0 %v4540_v21  ;;  %4622 = vadd.xlane.f32.xlu1 %v11037_v22  ;;  %v11456_v25 = vmul.f32 %v7808_v18, %v3327_v0  ;;  %v6576_v54 = vadd.f32 %v6575_v11, %v6574_v44  ;;  %v11458_v30 = vpop.xlane.xlu1 %2774  ;;  %v4543_v58 = vadd.f32 %v13447_v13, %v13446_v43  ;;  %v7810_v21 = vpop.eup %7809  ;;  %v7342_v0 = vld [vmem:[%s12411_s7 + $0xa4] ss:$8 sps:$4 sm:$0xff]  }
 0x62d   : > { %5613 = vmatprep.subr.bf16.mxu0 %v7333_v63  ;;  %v6577_v49 = vpop.f32.mrf.mxu0  ;;  %v4692_v44 = vpack.c.bf16 %v11264_v52, %v11180_v8  ;;  %v4546_v52 = vadd.f32 %v10900_v19, %v10873_v57  ;;  %5336 = vmatprep.subr.bf16.mxu1 %v7342_v0  ;;  %v13451_v0 = vld [vmem:[#allocation4_spill] sm:$0xff]  ;;  %v2902_v55 = vadd.f32 %v11454_v6, %v11435_v28 }
 0x62e   : > { %v3332_v56 = vadd.f32 %v13448_v14, %v6576_v54  ;;  %v13449_v54 = vld [vmem:[#allocation47_spill] sm:$0xff]  ;;  %5337 = vmatpush1.bf16.msra.mxu1 %v7340_v53  ;;  %v7812_v14 = vpop.eup %7811  ;;  %v7345_v28 = vld [vmem:[%s12411_s7 + $0x94] ss:$8 sps:$4 sm:$0xff]  }
 0x62f   : > { %5614 = vmatpush1.bf16.msra.mxu0 %v7331_v33  ;;  %v6578_v5 = vpop.f32.mrf.mxu0  ;;  %v11469_v63 = vpop.xlane.xlu0 %2777  ;;  %5338 = vmatprep.subr.bf16.mxu1 %v7345_v28  ;;  %7825 = vrcp.f32 %v2902_v55  ;;  %v13464_v28 = vld [vmem:[#allocation85_spill] sm:$0xff] }
 0x630   : > { %4624 = vadd.xlane.f32.xlu0 %v11078_v15  ;;  %4544 = vadd.xlane.f32.xlu1 %v4543_v58  ;;  %v11477_v33 = vmul.f32 %v7810_v21, %v3332_v56  ;;  %v6579_v18 = vadd.f32 %v6578_v5, %v6577_v49  ;;  %v4695_v15 = vpack.c.bf16 %v11313_v46, %v11290_v47  ;;  %v11481_v11 = vpop.xlane.xlu1 %2854 }
 0x631   : > { %v6580_v8 = vpop.f32.mrf.mxu0 }
 0x632   : > { %5054 = vmatmul.mubr.bf16.gmra.mxu0 %v4692_v44  ;;  %v3335_v58 = vadd.f32 %v13449_v54, %v6579_v18  ;;  %v13450_v44 = vld [vmem:[#allocation6_spill] sm:$0xff]  ;;  %v13452_v18 = vld [vmem:[#allocation16_spill] sm:$0xff]  ;;  %5339 = vmatpush1.bf16.msra.mxu1 %v7343_v23 }
 0x633   : > { %5061 = vmatprep.mubr.bf16.mxu0 %v4695_v15  ;;  %v6581_v56 = vpop.f32.mrf.mxu0  ;;  %v11488_v47 = vpop.xlane.xlu0 %2856  ;;  %v4549_v42 = vadd.f32 %v13451_v0, %v13450_v44  ;;  %v13454_v15 = vld [vmem:[#allocation35_spill] sm:$0xff] }
 0x634   : > { %4547 = vadd.xlane.f32.xlu0 %v4546_v52  ;;  %4626 = vadd.xlane.f32.xlu1 %v11085_v16  ;;  %v11490_v46 = vmul.f32 %v7812_v14, %v3335_v58  ;;  %v6582_v49 = vadd.f32 %v6581_v56, %v6580_v8  ;;  %v11492_v21 = vpop.xlane.xlu1 %2780  ;;  %v7814_v52 = vpop.eup %7813  ;;  %v4694_v8 = vpack.c.bf16 %v11301_v27, %v11282_v41 }
 0x635   : > { %v6583_v5 = vpop.f32.mrf.mxu0  ;;  %v7816_v27 = vpop.eup %7815 }
 0x636   : > { %v3340_v53 = vadd.f32 %v6582_v49, %v13452_v18  ;;  %v13453_v18 = vld [vmem:[#allocation76_spill] sm:$0xff] }
 0x637   : > { %v6584_v16 = vpop.f32.mrf.mxu0  ;;  %v11503_v54 = vpop.xlane.xlu0 %2783  ;;  %v4552_v22 = vadd.f32 %v13454_v15, %v13453_v18 }
 0x638   : > { %4628 = vadd.xlane.f32.xlu0 %v11092_v51  ;;  %4550 = vadd.xlane.f32.xlu1 %v4549_v42  ;;  %v11505_v58 = vmul.f32 %v7814_v52, %v3340_v53  ;;  %v6585_v14 = vadd.f32 %v6584_v16, %v6583_v5  ;;  %v11509_v56 = vpop.xlane.xlu1 %2858  ;;  %v13455_v51 = vld [vmem:[#allocation20_spill] sm:$0xff]  ;;  %v13456_v16 = vld [vmem:[#allocation27_spill] sm:$0xff] }
 0x639   : > { %v6586_v49 = vpop.f32.mrf.mxu0 }
 0x63a   : > { %5062 = vmatmul.mubr.bf16.gmra.mxu0 %v4694_v8  ;;  %v3343_v41 = vadd.f32 %v6585_v14, %v13455_v51  ;;  %v13457_v8 = vld [vmem:[#allocation17_spill] sm:$0xff] }
 0x63b   : > { %5069 = vmatprep.mubr.bf16.mxu0 %v4697_v3  ;;  %v6587_v42 = vpop.f32.mrf.mxu0  ;;  %v11516_v5 = vpop.xlane.xlu0 %2860  ;;  %v4555_v62 = vadd.f32 %v13457_v8, %v13456_v16  ;;  %v13458_v14 = vld [vmem:[#allocation57_spill] sm:$0xff] }
 0x63c   : > { %4553 = vadd.xlane.f32.xlu0 %v4552_v22  ;;  %4630 = vadd.xlane.f32.xlu1 %v11097_v29  ;;  %v11518_v10 = vmul.f32 %v7816_v27, %v3343_v41  ;;  %v6588_v1 = vadd.f32 %v6587_v42, %v6586_v49  ;;  %v11520_v53 = vpop.xlane.xlu1 %2786  ;;  %v7818_v3 = vpop.eup %7817  ;;  %v4696_v49 = vpack.c.bf16 %v11352_v36, %v11331_v17  ;;  %v13460_v36 = vld [vmem:[#allocation29_spill] sm:$0xff]  ;;  %v13462_v29 = vld [vmem:[#allocation48_spill] sm:$0xff] }
 0x63d   : > { %v6589_v52 = vpop.f32.mrf.mxu0 }
 0x63e   : > { %v3348_v22 = vadd.f32 %v13458_v14, %v6588_v1  ;;  %v2903_v14 = vadd.f32 %v11481_v11, %v11458_v30  ;;  %v13465_v11 = vld [vmem:[#allocation44_spill] sm:$0xff] }
 0x63f   : > { %v6590_v51 = vpop.f32.mrf.mxu0  ;;  %v11533_v41 = vpop.xlane.xlu0 %2789 }
 0x640   : > { %4632 = vadd.xlane.f32.xlu0 %v11125_v7  ;;  %4556 = vadd.xlane.f32.xlu1 %v4555_v62  ;;  %v11541_v6 = vmul.f32 %v7818_v3, %v3348_v22  ;;  %v6591_v27 = vadd.f32 %v6590_v51, %v6589_v52  ;;  %v4699_v7 = vpack.c.bf16 %v11408_v35, %v11377_v45  ;;  %v11545_v42 = vpop.xlane.xlu1 %2862  ;;  %v13461_v62 = vld [vmem:[#allocation12_spill] sm:$0xff]  ;;  %v7820_v52 = vpop.eup %7819  ;;  %7827 = vrcp.f32 %v2903_v14 }
 0x641   : > { %v6592_v17 = vpop.f32.mrf.mxu0  ;;  %v4558_v1 = vadd.f32 %v13461_v62, %v13460_v36  ;;  %v2904_v14 = vadd.f32 %v11488_v47, %v11469_v63 }
 0x642   : > { %13459 = vst [vmem:[#allocation119_spill] sm:$0xff] %v11541_v6  ;;  %5070 = vmatmul.mubr.bf16.gmra.mxu0 %v4696_v49  ;;  %v3351_v9 = vadd.f32 %v13462_v29, %v6591_v27  ;;  %v13463_v49 = vld [vmem:[#allocation54_spill] sm:$0xff]  ;;  %v7822_v27 = vpop.eup %7821  ;;  %v13472_v6 = vld [vmem:[#allocation87_spill] sm:$0xff] }
 0x643   : > { %5077 = vmatprep.mubr.bf16.mxu0 %v4699_v7  ;;  %v6593_v22 = vpop.f32.mrf.mxu0  ;;  %v11553_v45 = vpop.xlane.xlu0 %2864  ;;  %v4561_v30 = vadd.f32 %v13464_v28, %v13463_v49  ;;  %7829 = vrcp.f32 %v2904_v14  ;;  %v7346_v14 = vld [vmem:[%s12411_s7 + $0x80] ss:$8 sps:$4 sm:$0xff]  }
 0x644   : > { %4559 = vadd.xlane.f32.xlu0 %v4558_v1  ;;  %4634 = vadd.xlane.f32.xlu1 %v11131_v31  ;;  %v11555_v35 = vmul.f32 %v7820_v52, %v3351_v9  ;;  %v6594_v3 = vadd.f32 %v6593_v22, %v6592_v17  ;;  %v11557_v51 = vpop.xlane.xlu1 %2792  ;;  %v4698_v31 = vpack.c.bf16 %v11402_v12, %v11373_v26  ;;  %v13469_v26 = vld [vmem:[#allocation28_spill] sm:$0xff] }
 0x645   : > { %v6595_v55 = vpop.f32.mrf.mxu0 }
 0x646   : > { %v3356_v29 = vadd.f32 %v6594_v3, %v13465_v11  ;;  %v13467_v3 = vld [vmem:[#allocation67_spill] sm:$0xff] }
 0x647   : > { %v6596_v7 = vpop.f32.mrf.mxu0  ;;  %v11569_v1 = vpop.xlane.xlu0 %2795  ;;  %v13468_v11 = vld [vmem:[#allocation19_spill] sm:$0xff] }
 0x648   : > { %4636 = vadd.xlane.f32.xlu0 %v11137_v4  ;;  %4562 = vadd.xlane.f32.xlu1 %v4561_v30  ;;  %v11567_v9 = vmul.f32 %v7822_v27, %v3356_v29  ;;  %v6597_v17 = vadd.f32 %v6596_v7, %v6595_v55  ;;  %v11571_v52 = vpop.xlane.xlu1 %2866  ;;  %v4564_v23 = vadd.f32 %v13468_v11, %v13467_v3  ;;  %v7824_v30 = vpop.eup %7823  ;;  %v13471_v27 = vld [vmem:[#allocation59_spill] sm:$0xff] }
 0x649   : > { %v6598_v22 = vpop.f32.mrf.mxu0  ;;  %v2905_v4 = vadd.f32 %v11509_v56, %v11492_v21  ;;  %v13470_v55 = vpack.c.bf16 %v13447_v13, %v13444_v32  ;;  %v13473_v21 = vld [vmem:[#allocation22_spill] sm:$0xff]  ;;  %v2907_v13 = vadd.f32 %v11545_v42, %v11520_v53  ;;  %v13482_v42 = vld [vmem:[#allocation61_spill] sm:$0xff] }
 0x64a   : > { %13466 = vst [vmem:[#allocation66_spill] sm:$0xff] %v11567_v9  ;;  %5078 = vmatmul.mubr.bf16.gmra.mxu0 %v4698_v31  ;;  %v3359_v12 = vadd.f32 %v6597_v17, %v13469_v26  ;;  %v4567_v56 = vadd.f32 %v13473_v21, %v13472_v6  ;;  %v13474_v17 = vld [vmem:[#allocation24_spill] sm:$0xff] }
 0x64b   : > { %5085 = vmatprep.mubr.bf16.mxu0 %v13470_v55  ;;  %v6599_v29 = vpop.f32.mrf.mxu0  ;;  %7831 = vrcp.f32 %v2905_v4  ;;  %v11591_v32 = vpop.xlane.xlu0 %2868 }
 0x64c   : > { %4565 = vadd.xlane.f32.xlu0 %v4564_v23  ;;  %4638 = vadd.xlane.f32.xlu1 %v13471_v27  ;;  %v11584_v63 = vmul.f32 %v7824_v30, %v3359_v12  ;;  %v6600_v47 = vadd.f32 %v6599_v29, %v6598_v22  ;;  %v11586_v7 = vpop.xlane.xlu1 %2798  ;;  %v7826_v23 = vpop.eup %7825  ;;  %v7348_v22 = vld [vmem:[%s12411_s7 + $0x84] ss:$8 sps:$4 sm:$0xff]   ;;  %v2906_v29 = vadd.f32 %v11516_v5, %v11503_v54 }
 0x64d   : > { %v6601_v31 = vpop.f32.mrf.mxu0  ;;  %5340 = vmatprep.subr.bf16.mxu1 %v7348_v22  ;;  %v7828_v54 = vpop.eup %7827 }
 0x64e   : > { %v3364_v26 = vadd.f32 %v13474_v17, %v6600_v47  ;;  %v13477_v47 = vld [vmem:[#allocation82_spill] sm:$0xff]  ;;  %5341 = vmatpush1.bf16.msra.mxu1 %v7346_v14  ;;  %7833 = vrcp.f32 %v2906_v29  ;;  %v13484_v14 = vld [vmem:[#allocation125_spill] sm:$0xff]  ;;  %v2908_v29 = vadd.f32 %v11553_v45, %v11533_v41 }
 0x64f   : > { %v6602_v55 = vpop.f32.mrf.mxu0  ;;  %7835 = vrcp.f32 %v2907_v13  ;;  %v13488_v13 = vld [vmem:[#allocation84_spill] sm:$0xff] }
 0x650   : > { %4640 = vadd.xlane.f32.xlu0 %v11199_v61  ;;  %4568 = vadd.xlane.f32.xlu1 %v4567_v56  ;;  %v11602_v4 = vmul.f32 %v7826_v23, %v3364_v26  ;;  %v6603_v12 = vadd.f32 %v6602_v55, %v6601_v31  ;;  %v11604_v30 = vpop.xlane.xlu1 %2870  ;;  %v13476_v61 = vpack.c.bf16 %v13446_v43, %v13443_v24  ;;  %v13478_v56 = vld [vmem:[#allocation63_spill] sm:$0xff]  ;;  %v13481_v55 = vld [vmem:[#allocation152_spill] sm:$0xff]  ;;  %v11622_v43 = vpop.xlane.xlu0 %2801  ;;  %7837 = vrcp.f32 %v2908_v29 }
 0x651   : > { %v6604_v27 = vpop.f32.mrf.mxu0  ;;  %v4570_v17 = vadd.f32 %v13478_v56, %v13477_v47  ;;  %v13479_v26 = vld [vmem:[#allocation79_spill] sm:$0xff]  ;;  %v13480_v31 = vpack.c.bf16 %v13451_v0, %v10900_v19  ;;  %v7830_v9 = vpop.eup %7829  ;;  %v2909_v19 = vadd.f32 %v11571_v52, %v11557_v51  ;;  %v13493_v52 = vld [vmem:[#allocation80_spill] sm:$0xff]  ;;  %v2910_v29 = vadd.f32 %v11591_v32, %v11569_v1 }
 0x652   : > { %13475 = vst [vmem:[#allocation112_spill] sm:$0xff] %v11602_v4  ;;  %5086 = vmatmul.mubr.bf16.gmra.mxu0 %v13476_v61  ;;  %v3367_v23 = vadd.f32 %v13479_v26, %v6603_v12  ;;  %v13483_v12 = vld [vmem:[#allocation81_spill] sm:$0xff] }
 0x653   : > { %5093 = vmatprep.mubr.bf16.mxu0 %v13480_v31  ;;  %v6605_v5 = vpop.f32.mrf.mxu0  ;;  %v4573_v26 = vadd.f32 %v13483_v12, %v13482_v42  ;;  %7839 = vrcp.f32 %v2909_v19  ;;  %v13498_v19 = vld [vmem:[#allocation118_spill] sm:$0xff] }
 0x654   : > { %4571 = vadd.xlane.f32.xlu0 %v4570_v17  ;;  %4642 = vadd.xlane.f32.xlu1 %v13481_v55  ;;  %v11620_v24 = vmul.f32 %v7828_v54, %v3367_v23  ;;  %v6606_v22 = vadd.f32 %v6605_v5, %v6604_v27  ;;  %v11624_v53 = vpop.xlane.xlu1 %2804  ;;  %v13485_v17 = vld [vmem:[#allocation7_spill] sm:$0xff]  ;;  %v13486_v54 = vpack.c.bf16 %v13450_v44, %v10873_v57  ;;  %v13487_v5 = vld [vmem:[#allocation34_spill] sm:$0xff]  ;;  %v13491_v57 = vld [vmem:[#allocation117_spill] sm:$0xff]  ;;  %7841 = vrcp.f32 %v2910_v29 }
 0x655   : > { %v6607_v61 = vpop.f32.mrf.mxu0  ;;  %v4576_v55 = vadd.f32 %v13488_v13, %v13487_v5 }
 0x656   : > { %v3372_v23 = vadd.f32 %v6606_v22, %v13485_v17  ;;  %v13490_v22 = vpack.c.bf16 %v13457_v8, %v13454_v15 }
 0x657   : > { %v6608_v0 = vpop.f32.mrf.mxu0 }
 0x658   : > { %4644 = vadd.xlane.f32.xlu0 %v13484_v14  ;;  %4574 = vadd.xlane.f32.xlu1 %v4573_v26  ;;  %v6609_v31 = vadd.f32 %v6608_v0, %v6607_v61  ;;  %v2873_v14 = vpop.xlane.xlu0 %2872  ;;  %v13489_v26 = vld [vmem:[#allocation60_spill] sm:$0xff]  ;;  %v7832_v41 = vpop.eup %7831  ;;  %v11646_v44 = vmul.f32 %v7830_v9, %v3372_v23 }
 0x659   : > { %v6610_v27 = vpop.f32.mrf.mxu0  ;;  %v2875_v45 = vpop.xlane.xlu1 %2874  ;;  %v13496_v23 = vld [vmem:[#allocation56_spill] sm:$0xff] }
 0x65a   : > { %5094 = vmatmul.mubr.bf16.gmra.mxu0 %v13486_v54  ;;  %v3375_v4 = vadd.f32 %v6609_v31, %v13489_v26  ;;  %13492 = vst [vmem:[#allocation90_spill] sm:$0xff] %v11646_v44  ;;  %v4582_v31 = vadd.f32 %v11222_v37, %v13493_v52  ;;  %v13494_v54 = vld [vmem:[#allocation64_spill] sm:$0xff]  ;;  %v13495_v26 = vld [vmem:[#allocation46_spill] sm:$0xff] }
 0x65b   : > { %5101 = vmatprep.mubr.bf16.mxu0 %v13490_v22  ;;  %v6611_v61 = vpop.f32.mrf.mxu0  ;;  %v4579_v15 = vadd.f32 %v13495_v26, %v13494_v54  ;;  %v7834_v8 = vpop.eup %7833 }
 0x65c   : > { %4577 = vadd.xlane.f32.xlu0 %v4576_v55  ;;  %4646 = vadd.xlane.f32.xlu1 %v13491_v57  ;;  %v11648_v0 = vmul.f32 %v7832_v41, %v3375_v4  ;;  %v6612_v17 = vadd.f32 %v6611_v61, %v6610_v27  ;;  %v2808_v9 = vpop.xlane.xlu0 %2807  ;;  %v13497_v61 = vpack.c.bf16 %v13456_v16, %v13453_v18  ;;  %v7836_v1 = vpop.eup %7835 }
 0x65d   : > { %v6613_v51 = vpop.f32.mrf.mxu0  ;;  %v2811_v27 = vpop.xlane.xlu1 %2810  ;;  %v4585_v57 = vadd.f32 %v11243_v48, %v13498_v19 }
 0x65e   : > { %v3380_v4 = vadd.f32 %v13496_v23, %v6612_v17  ;;  %v13500_v17 = vpack.c.bf16 %v13464_v28, %v13461_v62  ;;  %v13502_v28 = vld [vmem:[#allocation91_spill] sm:$0xff]  ;;  %v7838_v29 = vpop.eup %7837 }
 0x65f   : > { %v6614_v55 = vpop.f32.mrf.mxu0 }
 0x660   : > { %4583 = vadd.xlane.f32.xlu0 %v4582_v31  ;;  %4580 = vadd.xlane.f32.xlu1 %v4579_v15  ;;  %v6615_v22 = vadd.f32 %v6614_v55, %v6613_v51  ;;  %v2911_v31 = vadd.f32 %v11604_v30, %v11586_v7  ;;  %v13499_v15 = vld [vmem:[#allocation30_spill] sm:$0xff]  ;;  %v13501_v51 = vld [vmem:[#allocation144_spill] sm:$0xff]  ;;  %v11671_v18 = vmul.f32 %v7834_v8, %v3380_v4  ;;  %v2877_v7 = vpop.xlane.xlu0 %2876 }
 0x661   : > { %v6616_v41 = vpop.f32.mrf.mxu0  ;;  %v2912_v8 = vadd.f32 %v2873_v14, %v11622_v43 }
 0x662   : > { %5102 = vmatmul.mubr.bf16.gmra.mxu0 %v13497_v61  ;;  %v3383_v44 = vadd.f32 %v13499_v15, %v6615_v22  ;;  %7843 = vrcp.f32 %v2911_v31  ;;  %v2879_v22 = vpop.xlane.xlu1 %2878  ;;  %v13503_v61 = vld [vmem:[#allocation43_spill] sm:$0xff] }
 0x663   : > { %5109 = vmatprep.mubr.bf16.mxu0 %v13500_v17  ;;  %v6617_v32 = vpop.f32.mrf.mxu0  ;;  %7845 = vrcp.f32 %v2912_v8  ;;  %v13509_v8 = vld [vmem:[#allocation33_spill] sm:$0xff] }
 0x664   : > { %4648 = vadd.xlane.f32.xlu0 %v13501_v51  ;;  %4586 = vadd.xlane.f32.xlu1 %v4585_v57  ;;  %v11673_v16 = vmul.f32 %v7836_v1, %v3383_v44  ;;  %v6618_v55 = vadd.f32 %v6617_v32, %v6616_v41  ;;  %v13504_v44 = vpack.c.bf16 %v13463_v49, %v13460_v36  ;;  %v13505_v57 = vld [vmem:[#allocation86_spill] sm:$0xff]  ;;  %v7840_v32 = vpop.eup %7839 }
 0x665   : > { %v6619_v23 = vpop.f32.mrf.mxu0  ;;  %v2913_v41 = vadd.f32 %v2875_v45, %v11624_v53  ;;  %v13506_v1 = vpack.c.bf16 %v13473_v21, %v13468_v11  ;;  %v2914_v21 = vadd.f32 %v2877_v7, %v2808_v9 }
 0x666   : > { %v3388_v15 = vadd.f32 %v6618_v55, %v13503_v61  ;;  %v2814_v55 = vpop.xlane.xlu0 %2813  ;;  %v2817_v36 = vpop.xlane.xlu1 %2816 }
 0x667   : > { %v6620_v62 = vpop.f32.mrf.mxu0  ;;  %7847 = vrcp.f32 %v2913_v41  ;;  %v13510_v41 = vpack.c.bf16 %v13483_v12, %v13478_v56 }
 0x668   : > { %4650 = vadd.xlane.f32.xlu1 %v13502_v28  ;;  %v6621_v17 = vadd.f32 %v6620_v62, %v6619_v23  ;;  %v11688_v23 = vmul.f32 %v7838_v29, %v3388_v15  ;;  %v13507_v62 = vld [vmem:[#allocation70_spill] sm:$0xff]  ;;  %v13508_v15 = vpack.c.bf16 %v13472_v6, %v13467_v3  ;;  %7849 = vrcp.f32 %v2914_v21  ;;  %v13513_v21 = vld [vmem:[#allocation88_spill] sm:$0xff]  ;;  %v13533_v3 = vld [vmem:[#allocation119_spill] sm:$0xff] }
 0x669   : > { %v6622_v4 = vpop.f32.mrf.mxu0  ;;  %v13534_v53 = vpack.c.bf16 %v11555_v35, %v13533_v3  ;;  %v13539_v35 = vld [vmem:[#allocation66_spill] sm:$0xff] }
 0x66a   : > { %5110 = vmatmul.mubr.bf16.gmra.mxu0 %v13504_v44  ;;  %v3391_v31 = vadd.f32 %v6621_v17, %v13505_v57  ;;  %v7842_v17 = vpop.eup %7841  ;;  %v2915_v44 = vadd.f32 %v2879_v22, %v2811_v27 }
 0x66b   : > { %5117 = vmatprep.mubr.bf16.mxu0 %v13506_v1  ;;  %v6623_v51 = vpop.f32.mrf.mxu0 }
 0x66c   : > { %v11690_v43 = vmul.f32 %v7840_v32, %v3391_v31  ;;  %v6624_v14 = vadd.f32 %v6623_v51, %v6622_v4  ;;  %v2881_v4 = vpop.xlane.xlu0 %2880  ;;  %v2883_v31 = vpop.xlane.xlu1 %2882  ;;  %7851 = vrcp.f32 %v2915_v44  ;;  %v13511_v51 = vld [vmem:[#allocation75_spill] sm:$0xff] }
 0x66d   : > { %v6625_v49 = vpop.f32.mrf.mxu0  ;;  %v2916_v12 = vadd.f32 %v2881_v4, %v2814_v55 }
 0x66e   : > { %v3396_v28 = vadd.f32 %v13507_v62, %v6624_v14  ;;  %v13512_v62 = vpack.c.bf16 %v13482_v42, %v13477_v47 }
 0x66f   : > { %v6626_v45 = vpop.f32.mrf.mxu0  ;;  %v7844_v57 = vpop.eup %7843  ;;  %7853 = vrcp.f32 %v2916_v12 }
 0x670   : > { %v6627_v11 = vadd.f32 %v6626_v45, %v6625_v49  ;;  %v11702_v32 = vmul.f32 %v7842_v17, %v3396_v28  ;;  %v2820_v22 = vpop.xlane.xlu0 %2819  ;;  %v2823_v49 = vpop.xlane.xlu1 %2822 }
 0x671   : > { %v6628_v61 = vpop.f32.mrf.mxu0  ;;  %v7846_v28 = vpop.eup %7845 }
 0x672   : > { %5118 = vmatmul.mubr.bf16.gmra.mxu0 %v13508_v15  ;;  %v3399_v29 = vadd.f32 %v13509_v8, %v6627_v11  ;;  %v2917_v11 = vadd.f32 %v2883_v31, %v2817_v36  ;;  %v13514_v15 = vpack.c.bf16 %v13495_v26, %v13488_v13 }
 0x673   : > { %5125 = vmatprep.mubr.bf16.mxu0 %v13510_v41  ;;  %v6629_v1 = vpop.f32.mrf.mxu0 }
 0x674   : > { %v11704_v9 = vmul.f32 %v7844_v57, %v3399_v29  ;;  %v6630_v7 = vadd.f32 %v6629_v1, %v6628_v61  ;;  %v7848_v17 = vpop.eup %7847  ;;  %7855 = vrcp.f32 %v2917_v11  ;;  %v2885_v47 = vpop.xlane.xlu0 %2884  ;;  %v13515_v57 = vld [vmem:[#allocation89_spill] sm:$0xff] }
 0x675   : > { %v6631_v6 = vpop.f32.mrf.mxu0  ;;  %v2887_v36 = vpop.xlane.xlu1 %2886  ;;  %v2918_v26 = vadd.f32 %v2885_v47, %v2820_v22 }
 0x676   : > { %v3404_v14 = vadd.f32 %v6630_v7, %v13511_v51  ;;  %v13516_v7 = vpack.c.bf16 %v13494_v54, %v13487_v5  ;;  %v13517_v51 = vld [vmem:[#allocation148_spill] sm:$0xff] }
 0x677   : > { %v6632_v27 = vpop.f32.mrf.mxu0  ;;  %7857 = vrcp.f32 %v2918_v26 }
 0x678   : > { %v6633_v56 = vadd.f32 %v6632_v27, %v6631_v6  ;;  %v11716_v8 = vmul.f32 %v7846_v28, %v3404_v14  ;;  %v7850_v6 = vpop.eup %7849  ;;  %v2919_v27 = vadd.f32 %v2887_v36, %v2823_v49 }
 0x679   : > { %v6634_v45 = vpop.f32.mrf.mxu0  ;;  %v7852_v12 = vpop.eup %7851 }
 0x67a   : > { %5126 = vmatmul.mubr.bf16.gmra.mxu0 %v13512_v62  ;;  %v3407_v61 = vadd.f32 %v6633_v56, %v13513_v21  ;;  %v13518_v56 = vpack.c.bf16 %v11243_v48, %v11222_v37  ;;  %v11730_v62 = vpop.xlane.xlu0 %4588  ;;  %v11736_v5 = vpop.xlane.xlu1 %4590  ;;  %7859 = vrcp.f32 %v2919_v27  ;;  %v13521_v27 = vpack.c.bf16 %v11366_v50, %v11345_v20 }
 0x67b   : > { %5133 = vmatprep.mubr.bf16.mxu0 %v13514_v15  ;;  %v6635_v44 = vpop.f32.mrf.mxu0  ;;  %v13519_v15 = vpack.c.bf16 %v13498_v19, %v13493_v52  ;;  %v13528_v20 = vpack.c.bf16 %v11518_v10, %v11505_v58 }
 0x67c   : > { %v11718_v29 = vmul.f32 %v7848_v17, %v3407_v61  ;;  %v6636_v55 = vadd.f32 %v6635_v44, %v6634_v45  ;;  %v7854_v17 = vpop.eup %7853 }
 0x67d   : > { %v6637_v4 = vpop.f32.mrf.mxu0 }
 0x67e   : > { %v3412_v31 = vadd.f32 %v13515_v57, %v6636_v55  ;;  %v11744_v44 = vpop.xlane.xlu0 %4493  ;;  %v11748_v36 = vpop.xlane.xlu1 %4496 }
 0x67f   : > { %v6638_v41 = vpop.f32.mrf.mxu0 }
 0x680   : > { %v6639_v13 = vadd.f32 %v6638_v41, %v6637_v4  ;;  %v11732_v28 = vmul.f32 %v7850_v6, %v3412_v31  ;;  %v13520_v4 = vmov 0  }
 0x681   : > { %v7856_v47 = vpop.eup %7855 }
 0x682   : > { %v6640_v1 = vpop.f32.mrf.mxu0  ;;  %5134 = vmatmul.mubr.bf16.gmra.mxu0 %v13516_v7  ;;  %v3415_v14 = vadd.f32 %v13517_v51, %v6639_v13  ;;  %v11756_v26 = vpop.xlane.xlu0 %4592 }
 0x683   : > { %5141 = vmatprep.mubr.bf16.mxu0 %v13518_v56  ;;  %v11759_v7 = vpop.xlane.xlu1 %4594 }
 0x684   : > { %v6641_v45 = vpop.f32.mrf.mxu0  ;;  %v11734_v22 = vmul.f32 %v7852_v12, %v3415_v14  ;;  %v7858_v51 = vpop.eup %7857 }
 0x685   : > { %v6642_v11 = vadd.f32 %v6641_v45, %v6640_v1 }
 0x686   : > { %v6643_v54 = vpop.f32.mrf.mxu0 }
 0x687   : > { %v3420_v37 = vadd.f32 %v6642_v11, %v11275_v60  ;;  %v7860_v56 = vpop.eup %7859  ;;  %v11780_v50 = vpop.xlane.xlu1 %4502 }
 0x688   : > { %v6644_v21 = vpop.f32.mrf.mxu0 }
 0x689   : > { %v6645_v48 = vadd.f32 %v6644_v21, %v6643_v54  ;;  %v11750_v57 = vmul.f32 %v7854_v17, %v3420_v37  ;;  %v11776_v54 = vpop.xlane.xlu0 %4499  ;;  %v13522_v37 = vpack.c.bf16 %v11416_v34, %v11392_v40 }
 0x68a   : > { %v6646_v61 = vpop.f32.mrf.mxu0  ;;  %5142 = vmatmul.mubr.bf16.gmra.mxu0 %v13519_v15 }
 0x68b   : > { %v3423_v55 = vadd.f32 %v6645_v48, %v11296_v2  ;;  %5631 = vmatprep.mubr.bf16.mxu0 %v13520_v4  ;;  %v11794_v15 = vpop.xlane.xlu1 %4598 }
 0x68c   : > { %v6647_v41 = vpop.f32.mrf.mxu0 }
 0x68d   : > { %v11752_v60 = vmul.f32 %v7856_v47, %v3423_v55  ;;  %v6648_v31 = vadd.f32 %v6647_v41, %v6646_v61  ;;  %v11792_v61 = vpop.xlane.xlu0 %4596  ;;  %v13523_v41 = vpack.c.bf16 %v11456_v25, %v11437_v59  ;;  %v13525_v59 = vpack.c.bf16 %v11490_v46, %v11477_v33 }
 0x68e   : > { %v6649_v13 = vpop.f32.mrf.mxu0 }
 0x68f   : > { %v3428_v2 = vadd.f32 %v11268_v38, %v6648_v31  ;;  %v11808_v34 = vpop.xlane.xlu1 %4508 }
 0x690   : > { %v6650_v19 = vpop.f32.mrf.mxu0 }
 0x691   : > { %v6651_v1 = vadd.f32 %v6650_v19, %v6649_v13  ;;  %v11770_v45 = vmul.f32 %v7858_v51, %v3428_v2  ;;  %v11805_v40 = vpop.xlane.xlu0 %4505 }
 0x692   : > { %v11761_v6 = vpop.f32.mrf.mxu0  ;;  %5632 = vmatmul.mubr.bf16.vlgmr.msra.gmra.mxu0 %v13521_v27 }
 0x693   : > { %v3431_v14 = vadd.f32 %v11286_v39, %v6651_v1  ;;  %5641 = vmatprep.mubr.bf16.mxu0 %v13520_v4  ;;  %v11818_v1 = vpop.xlane.xlu1 %4602 }
 0x694   : > { %v11768_v12 = vpop.f32.mrf.mxu0 }
 0x695   : > { %v11772_v38 = vmul.f32 %v7860_v56, %v3431_v14  ;;  %v11816_v2 = vpop.xlane.xlu0 %4600 }
 0x696   : > { %v11774_v11 = vpop.f32.mrf.mxu0 }
 0x697   : > { %v11832_v56 = vpop.xlane.xlu1 %4514 }
 0x698   : > { %v11782_v21 = vpop.f32.mrf.mxu0 }
 0x699   : > { %v11830_v14 = vpop.xlane.xlu0 %4511 }
 0x69a   : > { %v11784_v39 = vpop.f32.mrf.mxu0  ;;  %5642 = vmatmul.mubr.bf16.gmra.mxu0 %v13522_v37 }
 0x69b   : > { %5651 = vmatprep.mubr.bf16.mxu0 %v13520_v4 }
 0x69c   : > { %v11790_v48 = vpop.f32.mrf.mxu0 }
 0x69d   : > { %v11844_v46 = vpop.xlane.xlu0 %4604 }
 0x69e   : > { %v11796_v17 = vpop.f32.mrf.mxu0 }
 0x6a0   : > { %v11798_v55 = vpop.f32.mrf.mxu0 }
 0x6a1   : > { %v11857_v58 = vpop.xlane.xlu0 %4517 }
 0x6a2   : > { %v11800_v47 = vpop.f32.mrf.mxu0  ;;  %5652 = vmatmul.mubr.bf16.gmra.mxu0 %v13523_v41 }
 0x6a3   : > { %5661 = vmatprep.mubr.bf16.mxu0 %v13520_v4 }
 0x6a4   : > { %v11810_v31 = vpop.f32.mrf.mxu0 }
 0x6a6   : > { %v11812_v13 = vpop.f32.mrf.mxu0 }
 0x6a8   : > { %v11814_v19 = vpop.f32.mrf.mxu0 }
 0x6aa   : > { %v11820_v27 = vpop.f32.mrf.mxu0  ;;  %5662 = vmatmul.mubr.bf16.gmra.mxu0 %v13525_v59  ;;  %v11846_v59 = vpop.xlane.xlu1 %4606 }
 0x6ab   : > { %13524 = vst [vmem:[#allocation123_spill] sm:$0xff] %v11820_v27  ;;  %5671 = vmatprep.mubr.bf16.mxu0 %v13520_v4 }
 0x6ac   : > { %v11826_v25 = vpop.f32.mrf.mxu0 }
 0x6ae   : > { %v11828_v51 = vpop.f32.mrf.mxu0  ;;  %v11860_v10 = vpop.xlane.xlu1 %4520 }
 0x6af   : > { %13526 = vst [vmem:[#allocation71_spill] sm:$0xff] %v11828_v51  ;;  %v4652_v51 = vadd.f32 %v11730_v62, %v11744_v44 }
 0x6b0   : > { %v11834_v37 = vpop.f32.mrf.mxu0 }
 0x6b1   : > { %7861 = vrcp.f32 %v4652_v51 }
 0x6b2   : > { %v11836_v41 = vpop.f32.mrf.mxu0  ;;  %5672 = vmatmul.mubr.bf16.gmra.mxu0 %v13528_v20 }
 0x6b3   : > { %13527 = vst [vmem:[#allocation73_spill] sm:$0xff] %v11836_v41  ;;  %5681 = vmatprep.mubr.bf16.mxu0 %v13520_v4 }
 0x6b4   : > { %v11842_v33 = vpop.f32.mrf.mxu0 }
 0x6b5   : > { %13529 = vst [vmem:[#allocation137_spill] sm:$0xff] %v11842_v33 }
 0x6b6   : > { %v11848_v52 = vpop.f32.mrf.mxu0 }
 0x6b7   : > { %13530 = vst [vmem:[#allocation133_spill] sm:$0xff] %v11848_v52  ;;  %v11868_v52 = vpop.xlane.xlu0 %4608 }
 0x6b8   : > { %v11850_v49 = vpop.f32.mrf.mxu0 }
 0x6b9   : > { %13531 = vst [vmem:[#allocation113_spill] sm:$0xff] %v11850_v49  ;;  %v11870_v49 = vpop.xlane.xlu1 %4610 }
 0x6ba   : > { %v11852_v42 = vpop.f32.mrf.mxu0  ;;  %5682 = vmatmul.mubr.bf16.gmra.mxu0 %v13534_v53  ;;  %v13540_v53 = vpack.c.bf16 %v11584_v63, %v13539_v35  ;;  %v13545_v63 = vld [vmem:[#allocation112_spill] sm:$0xff] }
 0x6bb   : > { %13532 = vst [vmem:[#allocation69_spill] sm:$0xff] %v11852_v42  ;;  %5691 = vmatprep.mubr.bf16.mxu0 %v13520_v4  ;;  %v13546_v35 = vpack.c.bf16 %v11620_v24, %v13545_v63  ;;  %v4654_v24 = vadd.f32 %v11756_v26, %v11776_v54  ;;  %v4655_v63 = vadd.f32 %v11759_v7, %v11780_v50 }
 0x6bc   : > { %v11862_v20 = vpop.f32.mrf.mxu0  ;;  %v4656_v7 = vadd.f32 %v11792_v61, %v11805_v40 }
 0x6bd   : > { %13535 = vst [vmem:[#allocation95_spill] sm:$0xff] %v11862_v20  ;;  %v11882_v20 = vpop.xlane.xlu0 %4523 }
 0x6be   : > { %v11864_v30 = vpop.f32.mrf.mxu0 }
 0x6bf   : > { %13536 = vst [vmem:[#allocation93_spill] sm:$0xff] %v11864_v30  ;;  %v11884_v30 = vpop.xlane.xlu1 %4526 }
 0x6c0   : > { %v11866_v41 = vpop.f32.mrf.mxu0 }
 0x6c1   : > { %13537 = vst [vmem:[#allocation121_spill] sm:$0xff] %v11866_v41 }
 0x6c2   : > { %v11872_v42 = vpop.f32.mrf.mxu0  ;;  %5692 = vmatmul.mubr.bf16.gmra.mxu0 %v13540_v53  ;;  %v4653_v53 = vadd.f32 %v11736_v5, %v11748_v36  ;;  %v13549_v5 = vld [vmem:[#allocation90_spill] sm:$0xff] }
 0x6c3   : > { %13538 = vst [vmem:[#allocation124_spill] sm:$0xff] %v11872_v42  ;;  %5701 = vmatprep.mubr.bf16.mxu0 %v13520_v4  ;;  %v13550_v36 = vpack.c.bf16 %v11648_v0, %v13549_v5 }
 0x6c4   : > { %v11878_v3 = vpop.f32.mrf.mxu0  ;;  %7863 = vrcp.f32 %v4653_v53 }
 0x6c5   : > { %13541 = vst [vmem:[#allocation114_spill] sm:$0xff] %v11878_v3  ;;  %v11900_v3 = vpop.xlane.xlu0 %4612  ;;  %7865 = vrcp.f32 %v4654_v24  ;;  %v4657_v24 = vadd.f32 %v11794_v15, %v11808_v34 }
 0x6c6   : > { %v11880_v33 = vpop.f32.mrf.mxu0  ;;  %7867 = vrcp.f32 %v4655_v63 }
 0x6c7   : > { %13542 = vst [vmem:[#allocation92_spill] sm:$0xff] %v11880_v33  ;;  %7869 = vrcp.f32 %v4656_v7 }
 0x6c8   : > { %v11886_v41 = vpop.f32.mrf.mxu0  ;;  %7871 = vrcp.f32 %v4657_v24 }
 0x6c9   : > { %13543 = vst [vmem:[#allocation136_spill] sm:$0xff] %v11886_v41  ;;  %v11902_v41 = vpop.xlane.xlu1 %4614 }
 0x6ca   : > { %v11890_v42 = vpop.f32.mrf.mxu0  ;;  %5702 = vmatmul.mubr.bf16.gmra.mxu0 %v13546_v35  ;;  %v11915_v35 = vpop.xlane.xlu0 %4529 }
 0x6cb   : > { %13544 = vst [vmem:[#allocation131_spill] sm:$0xff] %v11890_v42  ;;  %5711 = vmatprep.mubr.bf16.mxu0 %v13520_v4 }
 0x6cc   : > { %v11898_v33 = vpop.f32.mrf.mxu0 }
 0x6cd   : > { %v11918_v51 = vpop.xlane.xlu1 %4532 }
 0x6ce   : > { %v11904_v27 = vpop.f32.mrf.mxu0  ;;  %v11920_v54 = vpop.xlane.xlu0 %4616 }
 0x6cf   : > { %13547 = vst [vmem:[#allocation127_spill] sm:$0xff] %v11904_v27 }
 0x6d0   : > { %v11906_v62 = vpop.f32.mrf.mxu0 }
 0x6d1   : > { %13548 = vst [vmem:[#allocation115_spill] sm:$0xff] %v11906_v62  ;;  %v11925_v50 = vpop.xlane.xlu1 %4618  ;;  %v13551_v62 = vpack.c.bf16 %v11673_v16, %v11671_v18 }
 0x6d2   : > { %v6764_v44 = vpop.f32.mrf.mxu0  ;;  %5712 = vmatmul.mubr.bf16.gmra.mxu0 %v13550_v36 }
 0x6d3   : > { %5721 = vmatprep.mubr.bf16.mxu0 %v13520_v4 }
 0x6d4   : > { %v6765_v53 = vpop.f32.mrf.mxu0 }
 0x6d5   : > { %v6766_v27 = vadd.f32 %v6765_v53, %v6764_v44  ;;  %v7862_v44 = vpop.eup %7861  ;;  %v11936_v16 = vpop.xlane.xlu1 %4538 }
 0x6d6   : > { %v6767_v42 = vpop.f32.mrf.mxu0 }
 0x6d7   : > { %v5024_v0 = vadd.f32 %v6766_v27, %v11768_v12  ;;  %v7864_v12 = vpop.eup %7863 }
 0x6d8   : > { %v6768_v26 = vpop.f32.mrf.mxu0  ;;  %v7866_v7 = vpop.eup %7865 }
 0x6d9   : > { %v6769_v5 = vadd.f32 %v6768_v26, %v6767_v42  ;;  %v5182_v27 = vmul.f32 %v7862_v44, %v5024_v0  ;;  %v11934_v26 = vpop.xlane.xlu0 %4535  ;;  %v13552_v0 = vpack.c.bf16 %v11690_v43, %v11688_v23  ;;  %v11951_v23 = vpop.xlane.xlu1 %4622 }
 0x6da   : > { %v6770_v36 = vpop.f32.mrf.mxu0  ;;  %5722 = vmatmul.mubr.bf16.gmra.mxu0 %v13551_v62 }
 0x6db   : > { %v5027_v63 = vadd.f32 %v6769_v5, %v11782_v21  ;;  %5731 = vmatprep.mubr.bf16.mxu0 %v13520_v4  ;;  %v4658_v21 = vadd.f32 %v11816_v2, %v11830_v14 }
 0x6dc   : > { %v6771_v42 = vpop.f32.mrf.mxu0 }
 0x6dd   : > { %v5183_v53 = vmul.f32 %v7864_v12, %v5027_v63  ;;  %v6772_v61 = vadd.f32 %v6771_v42, %v6770_v36  ;;  %v4659_v36 = vadd.f32 %v11818_v1, %v11832_v56  ;;  %v11949_v63 = vpop.xlane.xlu0 %4620  ;;  %7873 = vrcp.f32 %v4658_v21 }
 0x6de   : > { %v6773_v40 = vpop.f32.mrf.mxu0 }
 0x6df   : > { %v5214_v18 = vpack.c.bf16 %v5183_v53, %v5182_v27  ;;  %v5032_v15 = vadd.f32 %v11761_v6, %v6772_v61  ;;  %v7868_v6 = vpop.eup %7867  ;;  %7875 = vrcp.f32 %v4659_v36  ;;  %v13553_v61 = vpack.c.bf16 %v11704_v9, %v11702_v32 }
 0x6e0   : > { %v6774_v62 = vpop.f32.mrf.mxu0 }
 0x6e1   : > { %v6775_v34 = vadd.f32 %v6774_v62, %v6773_v40  ;;  %5359 = vmatmul.mubr.bf16.vlgmr.msra.gmra.mxu1 %v5214_v18  ;;  %v5184_v2 = vmul.f32 %v7866_v7, %v5032_v15  ;;  %v7870_v40 = vpop.eup %7869  ;;  %v4661_v18 = vadd.f32 %v11846_v59, %v11860_v10  ;;  %v11962_v62 = vpop.xlane.xlu0 %4541 }
 0x6e2   : > { %v6776_v5 = vpop.f32.mrf.mxu0  ;;  %5732 = vmatmul.mubr.bf16.gmra.mxu0 %v13552_v0  ;;  %5368 = vmatprep.mubr.bf16.mxu1 %v13520_v4  ;;  %v7872_v15 = vpop.eup %7871 }
 0x6e3   : > { %v5035_v44 = vadd.f32 %v11774_v11, %v6775_v34  ;;  %5741 = vmatprep.mubr.bf16.mxu0 %v13520_v4  ;;  %v4660_v11 = vadd.f32 %v11844_v46, %v11857_v58  ;;  %v11966_v34 = vpop.xlane.xlu1 %4544 }
 0x6e4   : > { %v6777_v24 = vpop.f32.mrf.mxu0 }
 0x6e5   : > { %v5185_v14 = vmul.f32 %v7868_v6, %v5035_v44  ;;  %v6778_v12 = vadd.f32 %v6777_v24, %v6776_v5  ;;  %7877 = vrcp.f32 %v4660_v11  ;;  %v11968_v7 = vpop.xlane.xlu0 %4624  ;;  %v13554_v6 = vpack.c.bf16 %v11718_v29, %v11716_v8 }
 0x6e6   : > { %v6779_v43 = vpop.f32.mrf.mxu0  ;;  %7879 = vrcp.f32 %v4661_v18  ;;  %v13555_v11 = vpack.c.bf16 %v11734_v22, %v11732_v28 }
 0x6e7   : > { %v5215_v42 = vpack.c.bf16 %v5185_v14, %v5184_v2  ;;  %v5040_v1 = vadd.f32 %v6778_v12, %v11790_v48  ;;  %v11973_v36 = vpop.xlane.xlu1 %4626  ;;  %v4663_v2 = vadd.f32 %v11870_v49, %v11884_v30 }
 0x6e8   : > { %v6780_v27 = vpop.f32.mrf.mxu0 }
 0x6e9   : > { %v6781_v56 = vadd.f32 %v6780_v27, %v6779_v43  ;;  %5369 = vmatmul.mubr.bf16.gmra.mxu1 %v5215_v42  ;;  %v5186_v58 = vmul.f32 %v7870_v40, %v5040_v1  ;;  %v11983_v8 = vpop.xlane.xlu0 %4547 }
 0x6ea   : > { %v6782_v53 = vpop.f32.mrf.mxu0  ;;  %5742 = vmatmul.mubr.bf16.gmra.mxu0 %v13553_v61  ;;  %5378 = vmatprep.mubr.bf16.mxu1 %v13520_v4  ;;  %v7874_v24 = vpop.eup %7873  ;;  %v4665_v61 = vadd.f32 %v11902_v41, %v11918_v51 }
 0x6eb   : > { %v5043_v48 = vadd.f32 %v6781_v56, %v11798_v55  ;;  %5751 = vmatprep.mubr.bf16.mxu0 %v13520_v4  ;;  %v4662_v55 = vadd.f32 %v11868_v52, %v11882_v20  ;;  %v11985_v27 = vpop.xlane.xlu1 %4550 }
 0x6ec   : > { %v6783_v46 = vpop.f32.mrf.mxu0  ;;  %v7876_v14 = vpop.eup %7875 }
 0x6ed   : > { %v5187_v21 = vmul.f32 %v7872_v15, %v5043_v48  ;;  %v6784_v32 = vadd.f32 %v6783_v46, %v6782_v53  ;;  %7881 = vrcp.f32 %v4662_v55  ;;  %v11998_v48 = vpop.xlane.xlu0 %4628 }
 0x6ee   : > { %v6785_v9 = vpop.f32.mrf.mxu0  ;;  %7883 = vrcp.f32 %v4663_v2 }
 0x6ef   : > { %v5216_v5 = vpack.c.bf16 %v5187_v21, %v5186_v58  ;;  %v5048_v59 = vadd.f32 %v11784_v39, %v6784_v32  ;;  %v12000_v28 = vpop.xlane.xlu1 %4630  ;;  %v13556_v32 = vpack.c.bf16 %v11752_v60, %v11750_v57 }
 0x6f0   : > { %v6786_v0 = vpop.f32.mrf.mxu0 }
 0x6f1   : > { %v6787_v10 = vadd.f32 %v6786_v0, %v6785_v9  ;;  %5379 = vmatmul.mubr.bf16.gmra.mxu1 %v5216_v5  ;;  %v5188_v52 = vmul.f32 %v7874_v24, %v5048_v59  ;;  %v4667_v5 = vadd.f32 %v11925_v50, %v11936_v16  ;;  %v4554_v0 = vpop.xlane.xlu0 %4553 }
 0x6f2   : > { %v6788_v44 = vpop.f32.mrf.mxu0  ;;  %5752 = vmatmul.mubr.bf16.gmra.mxu0 %v13554_v6  ;;  %5388 = vmatprep.mubr.bf16.mxu1 %v13520_v4  ;;  %v7878_v53 = vpop.eup %7877 }
 0x6f3   : > { %v5051_v39 = vadd.f32 %v11796_v17, %v6787_v10  ;;  %5761 = vmatprep.mubr.bf16.mxu0 %v13520_v4  ;;  %v4664_v17 = vadd.f32 %v11900_v3, %v11915_v35  ;;  %v4557_v10 = vpop.xlane.xlu1 %4556 }
 0x6f4   : > { %v6789_v12 = vpop.f32.mrf.mxu0 }
 0x6f5   : > { %v5189_v20 = vmul.f32 %v7876_v14, %v5051_v39  ;;  %v6790_v43 = vadd.f32 %v6789_v12, %v6788_v44  ;;  %7885 = vrcp.f32 %v4664_v17  ;;  %v12013_v24 = vpop.xlane.xlu0 %4632  ;;  %v13557_v14 = vpack.c.bf16 %v11772_v38, %v11770_v45 }
 0x6f6   : > { %v6791_v42 = vpop.f32.mrf.mxu0  ;;  %7887 = vrcp.f32 %v4665_v61 }
 0x6f7   : > { %v5217_v29 = vpack.c.bf16 %v5189_v20, %v5188_v52  ;;  %v5056_v30 = vadd.f32 %v6790_v43, %v11810_v31  ;;  %v7880_v31 = vpop.eup %7879  ;;  %v12018_v2 = vpop.xlane.xlu1 %4634  ;;  %v4669_v52 = vadd.f32 %v11951_v23, %v11966_v34  ;;  %v4670_v23 = vadd.f32 %v11968_v7, %v11983_v8 }
 0x6f8   : > { %v6792_v1 = vpop.f32.mrf.mxu0 }
 0x6f9   : > { %v6793_v49 = vadd.f32 %v6792_v1, %v6791_v42  ;;  %5389 = vmatmul.mubr.bf16.gmra.mxu1 %v5217_v29  ;;  %v5190_v3 = vmul.f32 %v7878_v53, %v5056_v30  ;;  %v4560_v1 = vpop.xlane.xlu0 %4559  ;;  %v13559_v53 = vld [vmem:[#allocation71_spill] sm:$0xff] }
 0x6fa   : > { %v6794_v56 = vpop.f32.mrf.mxu0  ;;  %5762 = vmatmul.mubr.bf16.gmra.mxu0 %v13555_v11  ;;  %5398 = vmatprep.mubr.bf16.mxu1 %v13520_v4  ;;  %v7882_v9 = vpop.eup %7881  ;;  %v4671_v11 = vadd.f32 %v11973_v36, %v11985_v27  ;;  %v4672_v36 = vadd.f32 %v11998_v48, %v4554_v0 }
 0x6fb   : > { %v5059_v40 = vadd.f32 %v6793_v49, %v11814_v19  ;;  %5771 = vmatprep.mubr.bf16.mxu0 %v13520_v4  ;;  %v4666_v19 = vadd.f32 %v11920_v54, %v11934_v26  ;;  %v4563_v45 = vpop.xlane.xlu1 %4562  ;;  %v13558_v49 = vld [vmem:[#allocation123_spill] sm:$0xff] }
 0x6fc   : > { %v6795_v18 = vpop.f32.mrf.mxu0 }
 0x6fd   : > { %v5191_v35 = vmul.f32 %v7880_v31, %v5059_v40  ;;  %v6796_v15 = vadd.f32 %v6795_v18, %v6794_v56  ;;  %7889 = vrcp.f32 %v4666_v19  ;;  %v4637_v18 = vpop.xlane.xlu0 %4636 }
 0x6fe   : > { %v6797_v22 = vpop.f32.mrf.mxu0  ;;  %7891 = vrcp.f32 %v4667_v5 }
 0x6ff   : > { %v5218_v46 = vpack.c.bf16 %v5191_v35, %v5190_v3  ;;  %v5064_v41 = vadd.f32 %v11800_v47, %v6796_v15  ;;  %v7884_v47 = vpop.eup %7883 }
 0x700   : > { %v6798_v58 = vpop.f32.mrf.mxu0 }
 0x701   : > { %v6799_v51 = vadd.f32 %v6798_v58, %v6797_v22  ;;  %5399 = vmatmul.mubr.bf16.gmra.mxu1 %v5218_v46  ;;  %v5192_v54 = vmul.f32 %v7882_v9, %v5064_v41  ;;  %v4639_v22 = vpop.xlane.xlu1 %4638  ;;  %v13560_v58 = vld [vmem:[#allocation137_spill] sm:$0xff] }
 0x702   : > { %v6800_v21 = vpop.f32.mrf.mxu0  ;;  %5772 = vmatmul.mubr.bf16.gmra.mxu0 %v13556_v32  ;;  %5408 = vmatprep.mubr.bf16.mxu1 %v13520_v4  ;;  %v7886_v12 = vpop.eup %7885  ;;  %v13561_v9 = vld [vmem:[#allocation113_spill] sm:$0xff] }
 0x703   : > { %v5067_v59 = vadd.f32 %v11812_v13, %v6799_v51  ;;  %5781 = vmatprep.mubr.bf16.mxu0 %v13520_v4  ;;  %v4668_v13 = vadd.f32 %v11949_v63, %v11962_v62  ;;  %v7888_v20 = vpop.eup %7887  ;;  %v4566_v32 = vpop.xlane.xlu0 %4565 }
 0x704   : > { %v6801_v55 = vpop.f32.mrf.mxu0 }
 0x705   : > { %v5193_v26 = vmul.f32 %v7884_v47, %v5067_v59  ;;  %v6802_v44 = vadd.f32 %v6801_v55, %v6800_v21  ;;  %7893 = vrcp.f32 %v4668_v13  ;;  %v4673_v21 = vadd.f32 %v12000_v28, %v4557_v10  ;;  %v4569_v47 = vpop.xlane.xlu1 %4568 }
 0x706   : > { %v6803_v57 = vpop.f32.mrf.mxu0  ;;  %7895 = vrcp.f32 %v4669_v52  ;;  %v4674_v28 = vadd.f32 %v12013_v24, %v4560_v1 }
 0x707   : > { %v5219_v60 = vpack.c.bf16 %v5193_v26, %v5192_v54  ;;  %v5072_v50 = vadd.f32 %v6802_v44, %v11826_v25  ;;  %7897 = vrcp.f32 %v4670_v23  ;;  %v4641_v0 = vpop.xlane.xlu0 %4640  ;;  %v4677_v23 = vadd.f32 %v4639_v22, %v4569_v47 }
 0x708   : > { %v6804_v6 = vpop.f32.mrf.mxu0  ;;  %7899 = vrcp.f32 %v4671_v11 }
 0x709   : > { %v6805_v16 = vadd.f32 %v6804_v6, %v6803_v57  ;;  %5409 = vmatmul.mubr.bf16.gmra.mxu1 %v5219_v60  ;;  %v5194_v42 = vmul.f32 %v7886_v12, %v5072_v50  ;;  %7901 = vrcp.f32 %v4672_v36  ;;  %v13562_v6 = vld [vmem:[#allocation73_spill] sm:$0xff]  ;;  %v4643_v10 = vpop.xlane.xlu1 %4642 }
 0x70a   : > { %v6806_v39 = vpop.f32.mrf.mxu0  ;;  %5782 = vmatmul.mubr.bf16.gmra.mxu0 %v13557_v14  ;;  %5418 = vmatprep.mubr.bf16.mxu1 %v13520_v4  ;;  %v7890_v34 = vpop.eup %7889  ;;  %7903 = vrcp.f32 %v4673_v21  ;;  %v4675_v14 = vadd.f32 %v12018_v2, %v4563_v45  ;;  %v13563_v12 = vld [vmem:[#allocation133_spill] sm:$0xff] }
 0x70b   : > { %v5075_v25 = vadd.f32 %v6805_v16, %v11834_v37  ;;  %v7892_v40 = vpop.eup %7891  ;;  %7905 = vrcp.f32 %v4674_v28 }
 0x70c   : > { %v6807_v43 = vpop.f32.mrf.mxu0  ;;  %7907 = vrcp.f32 %v4675_v14 }
 0x70d   : > { %v5195_v29 = vmul.f32 %v7888_v20, %v5075_v25  ;;  %v6808_v63 = vadd.f32 %v6807_v43, %v6806_v39  ;;  %v4575_v24 = vpop.xlane.xlu1 %4574 }
 0x70e   : > { %v6809_v62 = vpop.f32.mrf.mxu0  ;;  %v4679_v36 = vadd.f32 %v4643_v10, %v4575_v24 }
 0x70f   : > { %v5220_v30 = vpack.c.bf16 %v5195_v29, %v5194_v42  ;;  %v5080_v17 = vadd.f32 %v13558_v49, %v6808_v63 }
 0x710   : > { %v6810_v38 = vpop.f32.mrf.mxu0 }
 0x711   : > { %v6811_v56 = vadd.f32 %v6810_v38, %v6809_v62  ;;  %5419 = vmatmul.mubr.bf16.gmra.mxu1 %v5220_v30  ;;  %v5196_v3 = vmul.f32 %v7890_v34, %v5080_v17  ;;  %v4572_v62 = vpop.xlane.xlu0 %4571  ;;  %v13564_v38 = vld [vmem:[#allocation95_spill] sm:$0xff] }
 0x712   : > { %v6812_v37 = vpop.f32.mrf.mxu0  ;;  %5428 = vmatprep.mubr.bf16.mxu1 %v13520_v4  ;;  %v7894_v19 = vpop.eup %7893 }
 0x713   : > { %v5083_v61 = vadd.f32 %v13559_v53, %v6811_v56  ;;  %v7896_v59 = vpop.eup %7895  ;;  %v4676_v56 = vadd.f32 %v4637_v18, %v4566_v32  ;;  %v13566_v18 = vld [vmem:[#allocation69_spill] sm:$0xff] }
 0x714   : > { %v6813_v31 = vpop.f32.mrf.mxu0  ;;  %v7898_v39 = vpop.eup %7897 }
 0x715   : > { %v5197_v35 = vmul.f32 %v7892_v40, %v5083_v61  ;;  %v6814_v15 = vadd.f32 %v6813_v31, %v6812_v37  ;;  %v7900_v25 = vpop.eup %7899  ;;  %v13565_v37 = vld [vmem:[#allocation121_spill] sm:$0xff]  ;;  %v4645_v61 = vpop.xlane.xlu0 %4644  ;;  %7909 = vrcp.f32 %v4676_v56 }
 0x716   : > { %v6815_v46 = vpop.f32.mrf.mxu0  ;;  %v7902_v45 = vpop.eup %7901  ;;  %7911 = vrcp.f32 %v4677_v23 }
 0x717   : > { %v5221_v7 = vpack.c.bf16 %v5197_v35, %v5196_v3  ;;  %v5088_v41 = vadd.f32 %v6814_v15, %v13560_v58  ;;  %v7904_v11 = vpop.eup %7903  ;;  %v4647_v35 = vpop.xlane.xlu1 %4646 }
 0x718   : > { %v6816_v8 = vpop.f32.mrf.mxu0 }
 0x719   : > { %v6817_v51 = vadd.f32 %v6816_v8, %v6815_v46  ;;  %5429 = vmatmul.mubr.bf16.gmra.mxu1 %v5221_v7  ;;  %v5198_v54 = vmul.f32 %v7894_v19, %v5088_v41  ;;  %v4678_v41 = vadd.f32 %v4641_v0, %v4572_v62  ;;  %v13567_v19 = vld [vmem:[#allocation93_spill] sm:$0xff] }
 0x71a   : > { %v6818_v27 = vpop.f32.mrf.mxu0  ;;  %5438 = vmatprep.mubr.bf16.mxu1 %v13520_v4 }
 0x71b   : > { %v5091_v5 = vadd.f32 %v6817_v51, %v13561_v9  ;;  %v7906_v51 = vpop.eup %7905  ;;  %v4581_v9 = vpop.xlane.xlu1 %4580  ;;  %7913 = vrcp.f32 %v4678_v41 }
 0x71c   : > { %v6819_v55 = vpop.f32.mrf.mxu0  ;;  %v7908_v32 = vpop.eup %7907  ;;  %7915 = vrcp.f32 %v4679_v36  ;;  %v4681_v10 = vadd.f32 %v4647_v35, %v4581_v9 }
 0x71d   : > { %v5199_v26 = vmul.f32 %v7896_v59, %v5091_v5  ;;  %v6820_v44 = vadd.f32 %v6819_v55, %v6818_v27  ;;  %v4578_v27 = vpop.xlane.xlu0 %4577 }
 0x71e   : > { %v6821_v57 = vpop.f32.mrf.mxu0 }
 0x71f   : > { %v5222_v60 = vpack.c.bf16 %v5199_v26, %v5198_v54  ;;  %v5096_v50 = vadd.f32 %v13562_v6, %v6820_v44  ;;  %v4680_v6 = vadd.f32 %v4645_v61, %v4578_v27 }
 0x720   : > { %v6822_v48 = vpop.f32.mrf.mxu0 }
 0x721   : > { %v6823_v16 = vadd.f32 %v6822_v48, %v6821_v57  ;;  %5439 = vmatmul.mubr.bf16.gmra.mxu1 %v5222_v60  ;;  %v5200_v43 = vmul.f32 %v7898_v39, %v5096_v50  ;;  %v4584_v57 = vpop.xlane.xlu0 %4583  ;;  %v13568_v60 = vld [vmem:[#allocation114_spill] sm:$0xff]  ;;  %v4587_v50 = vpop.xlane.xlu1 %4586  ;;  %7917 = vrcp.f32 %v4680_v6 }
 0x722   : > { %v6824_v13 = vpop.f32.mrf.mxu0  ;;  %5448 = vmatprep.mubr.bf16.mxu1 %v13520_v4  ;;  %v7910_v28 = vpop.eup %7909  ;;  %7919 = vrcp.f32 %v4681_v10 }
 0x723   : > { %v5099_v52 = vadd.f32 %v13563_v12, %v6823_v16  ;;  %v7912_v14 = vpop.eup %7911 }
 0x724   : > { %v6825_v20 = vpop.f32.mrf.mxu0 }
 0x725   : > { %v5201_v42 = vmul.f32 %v7900_v25, %v5099_v52  ;;  %v6826_v29 = vadd.f32 %v6825_v20, %v6824_v13  ;;  %v13569_v13 = vld [vmem:[#allocation136_spill] sm:$0xff] }
 0x726   : > { %v6827_v63 = vpop.f32.mrf.mxu0 }
 0x727   : > { %v5223_v30 = vpack.c.bf16 %v5201_v42, %v5200_v43  ;;  %v5104_v49 = vadd.f32 %v6826_v29, %v13564_v38  ;;  %v4649_v42 = vpop.xlane.xlu0 %4648 }
 0x728   : > { %v6828_v1 = vpop.f32.mrf.mxu0  ;;  %v4682_v38 = vadd.f32 %v4649_v42, %v4584_v57 }
 0x729   : > { %v6829_v17 = vadd.f32 %v6828_v1, %v6827_v63  ;;  %5449 = vmatmul.mubr.bf16.gmra.mxu1 %v5223_v30  ;;  %v5202_v40 = vmul.f32 %v7902_v45, %v5104_v49  ;;  %v4651_v63 = vpop.xlane.xlu1 %4650  ;;  %v13570_v30 = vld [vmem:[#allocation124_spill] sm:$0xff] }
 0x72a   : > { %v6830_v2 = vpop.f32.mrf.mxu0  ;;  %5458 = vmatprep.mubr.bf16.mxu1 %v13520_v4  ;;  %v4683_v56 = vadd.f32 %v4651_v63, %v4587_v50  ;;  %7921 = vrcp.f32 %v4682_v38 }
 0x72b   : > { %v5107_v34 = vadd.f32 %v6829_v17, %v13565_v37  ;;  %v7914_v17 = vpop.eup %7913 }
 0x72c   : > { %v6831_v53 = vpop.f32.mrf.mxu0  ;;  %v7916_v23 = vpop.eup %7915  ;;  %7923 = vrcp.f32 %v4683_v56 }
 0x72d   : > { %v5203_v31 = vmul.f32 %v7904_v11, %v5107_v34  ;;  %v6832_v3 = vadd.f32 %v6831_v53, %v6830_v2  ;;  %v13571_v2 = vld [vmem:[#allocation92_spill] sm:$0xff] }
 0x72e   : > { %v6833_v15 = vpop.f32.mrf.mxu0 }
 0x72f   : > { %v5224_v46 = vpack.c.bf16 %v5203_v31, %v5202_v40  ;;  %v5112_v8 = vadd.f32 %v13566_v18, %v6832_v3 }
 0x730   : > { %v6834_v7 = vpop.f32.mrf.mxu0 }
 0x731   : > { %v6835_v58 = vadd.f32 %v6834_v7, %v6833_v15  ;;  %5459 = vmatmul.mubr.bf16.gmra.mxu1 %v5224_v46  ;;  %v5204_v59 = vmul.f32 %v7906_v51, %v5112_v8  ;;  %v7918_v46 = vpop.eup %7917  ;;  %v13572_v7 = vld [vmem:[#allocation115_spill] sm:$0xff] }
 0x732   : > { %v6836_v22 = vpop.f32.mrf.mxu0  ;;  %5468 = vmatprep.mubr.bf16.mxu1 %v13520_v4  ;;  %v7920_v8 = vpop.eup %7919 }
 0x733   : > { %v5115_v21 = vadd.f32 %v13567_v19, %v6835_v58 }
 0x734   : > { %v6837_v5 = vpop.f32.mrf.mxu0 }
 0x735   : > { %v5205_v47 = vmul.f32 %v7908_v32, %v5115_v21  ;;  %v6838_v55 = vadd.f32 %v6837_v5, %v6836_v22  ;;  %v13573_v21 = vld [vmem:[#allocation131_spill] sm:$0xff] }
 0x736   : > { %v6839_v54 = vpop.f32.mrf.mxu0 }
 0x737   : > { %v5225_v26 = vpack.c.bf16 %v5205_v47, %v5204_v59  ;;  %v5120_v48 = vadd.f32 %v6838_v55, %v13568_v60  ;;  %v7922_v5 = vpop.eup %7921  ;;  %v13574_v59 = vld [vmem:[#allocation127_spill] sm:$0xff] }
 0x738   : > { %v6840_v44 = vpop.f32.mrf.mxu0 }
 0x739   : > { %v6841_v0 = vadd.f32 %v6840_v44, %v6839_v54  ;;  %5469 = vmatmul.mubr.bf16.gmra.mxu1 %v5225_v26  ;;  %v5206_v52 = vmul.f32 %v7910_v28, %v5120_v48  ;;  %v7924_v55 = vpop.eup %7923 }
 0x73a   : > { %v6842_v16 = vpop.f32.mrf.mxu0  ;;  %5478 = vmatprep.mubr.bf16.mxu1 %v13520_v4 }
 0x73b   : > { %v5123_v39 = vadd.f32 %v6841_v0, %v13569_v13 }
 0x73c   : > { %v6843_v12 = vpop.f32.mrf.mxu0 }
 0x73d   : > { %v5207_v25 = vmul.f32 %v7912_v14, %v5123_v39  ;;  %v6844_v20 = vadd.f32 %v6843_v12, %v6842_v16 }
 0x73e   : > { %v6845_v43 = vpop.f32.mrf.mxu0 }
 0x73f   : > { %v5226_v29 = vpack.c.bf16 %v5207_v25, %v5206_v52  ;;  %v5128_v24 = vadd.f32 %v13570_v30, %v6844_v20 }
 0x740   : > { %v6846_v62 = vpop.f32.mrf.mxu0 }
 0x741   : > { %v6847_v1 = vadd.f32 %v6846_v62, %v6845_v43  ;;  %5479 = vmatmul.mubr.bf16.gmra.mxu1 %v5226_v29  ;;  %v5208_v34 = vmul.f32 %v7914_v17, %v5128_v24 }
 0x742   : > { %v6848_v49 = vpop.f32.mrf.mxu0  ;;  %5488 = vmatprep.mubr.bf16.mxu1 %v13520_v4 }
 0x743   : > { %v5131_v45 = vadd.f32 %v13571_v2, %v6847_v1 }
 0x744   : > { %v6849_v37 = vpop.f32.mrf.mxu0 }
 0x745   : > { %v5209_v11 = vmul.f32 %v7916_v23, %v5131_v45  ;;  %v6850_v53 = vadd.f32 %v6849_v37, %v6848_v49  ;;  %v5792_v45 = vld [vmem:[%s12412_s8] sm:$0x3]  ;;  %v13575_v37 = vld [vmem:[#allocation15_spill] sm:$0xff] }
 0x746   : > { %v6851_v61 = vpop.f32.mrf.mxu0 }
 0x747   : > { %v5227_v40 = vpack.c.bf16 %v5209_v11, %v5208_v34  ;;  %v5136_v3 = vadd.f32 %v6850_v53, %v11898_v33  ;;  %v13576_v34 = vsub.s32 0, %v13575_v37 }
 0x748   : > { %v6852_v31 = vpop.f32.mrf.mxu0 }
 0x749   : > { %v6853_v35 = vadd.f32 %v6852_v31, %v6851_v61  ;;  %5489 = vmatmul.mubr.bf16.gmra.mxu1 %v5227_v40  ;;  %v5210_v41 = vmul.f32 %v7918_v46, %v5136_v3  ;;  %v12113_v11 = vrot.slane %v5792_v45, %v13576_v34  ;;  %v13577_v40 = vsub.s32 1, %v13575_v37 }
 0x74a   : > { %v6854_v15 = vpop.f32.mrf.mxu0  ;;  %5498 = vmatprep.mubr.bf16.mxu1 %v13520_v4 }
 0x74b   : > { %v5139_v18 = vadd.f32 %v6853_v35, %v13572_v7  ;;  %v12117_v31 = vrot.slane %v5792_v45, %v13577_v40 }
 0x74c   : > { %v6855_v58 = vpop.f32.mrf.mxu0 }
 0x74d   : > { %v5211_v22 = vmul.f32 %v7920_v8, %v5139_v18  ;;  %v6856_v51 = vadd.f32 %v6855_v58, %v6854_v15 }
 0x74e   : > { %v6857_v36 = vpop.f32.mrf.mxu0 }
 0x74f   : > { %v5228_v27 = vpack.c.bf16 %v5211_v22, %v5210_v41  ;;  %v5144_v32 = vadd.f32 %v13573_v21, %v6856_v51 }
 0x750   : > { %v6858_v19 = vpop.f32.mrf.mxu0 }
 0x751   : > { %v6859_v9 = vadd.f32 %v6858_v19, %v6857_v36  ;;  %5499 = vmatmul.mubr.bf16.gmra.mxu1 %v5228_v27  ;;  %v5212_v26 = vmul.f32 %v7922_v5, %v5144_v32 }
 0x752   : > { %v5633_v33 = vpop.f32.mrf.mxu0  ;;  %5508 = vmatprep.mubr.bf16.mxu1 %v13520_v4 }
 0x753   : > { %v5147_v47 = vadd.f32 %v13574_v59, %v6859_v9 }
 0x754   : > { %v5635_v54 = vpop.f32.mrf.mxu0 }
 0x755   : > { %v5213_v44 = vmul.f32 %v7924_v55, %v5147_v47 }
 0x756   : > { %v5637_v57 = vpop.f32.mrf.mxu0 }
 0x757   : > { %v5229_v60 = vpack.c.bf16 %v5213_v44, %v5212_v26 }
 0x758   : > { %v5639_v48 = vpop.f32.mrf.mxu0 }
 0x759   : > { %5509 = vmatmul.mubr.bf16.gmra.mxu1 %v5229_v60 }
 0x75a   : > { %v5643_v0 = vpop.f32.mrf.mxu0 }
 0x75c   : > { %v5645_v6 = vpop.f32.mrf.mxu0 }
 0x75e   : > { %v5647_v50 = vpop.f32.mrf.mxu0 }
 0x760   : > { %v5649_v16 = vpop.f32.mrf.mxu0 }
 0x762   : > { %v5653_v28 = vpop.f32.mrf.mxu0 }
 0x764   : > { %v12062_v10 = vpop.f32.mrf.mxu0 }
 0x766   : > { %v12064_v13 = vpop.f32.mrf.mxu0 }
 0x768   : > { %v12066_v4 = vpop.f32.mrf.mxu0 }
 0x76a   : > { %v12068_v39 = vpop.f32.mrf.mxu0 }
 0x76c   : > { %v12070_v14 = vpop.f32.mrf.mxu0 }
 0x76e   : > { %v12072_v12 = vpop.f32.mrf.mxu0 }
 0x770   : > { %v12074_v52 = vpop.f32.mrf.mxu0 }
 0x772   : > { %v12076_v25 = vpop.f32.mrf.mxu0 }
 0x774   : > { %v12078_v20 = vpop.f32.mrf.mxu0 }
 0x776   : > { %v12080_v43 = vpop.f32.mrf.mxu0 }
 0x778   : > { %v12082_v42 = vpop.f32.mrf.mxu0 }
 0x77a   : > { %v12084_v29 = vpop.f32.mrf.mxu0 }
 0x77c   : > { %v12086_v63 = vpop.f32.mrf.mxu0 }
 0x77e   : > { %v12088_v62 = vpop.f32.mrf.mxu0 }
 0x780   : > { %v12090_v30 = vpop.f32.mrf.mxu0 }
 0x782   : > { %v12092_v24 = vpop.f32.mrf.mxu0 }
 0x784   : > { %v12094_v1 = vpop.f32.mrf.mxu0 }
 0x786   : > { %v12096_v38 = vpop.f32.mrf.mxu0 }
 0x788   : > { %v12098_v49 = vpop.f32.mrf.mxu0 }
 0x78a   : > { %v12100_v17 = vpop.f32.mrf.mxu0 }
 0x78c   : > { %v12102_v56 = vpop.f32.mrf.mxu0 }
 0x78e   : > { %v12104_v2 = vpop.f32.mrf.mxu0 }
 0x790   : > { %v12109_v23 = vpop.f32.mrf.mxu0 }
 0x792   : > { %v12119_v3 = vpop.f32.mrf.mxu0 }
 0x794   : > { %v12123_v58 = vpop.f32.mrf.mxu0 }
 0x796   : > { %v12127_v21 = vpop.f32.mrf.mxu0 }
 0x798   : > { %v12131_v55 = vpop.f32.mrf.mxu0 }
 0x7a1   : > { %v5360_v53 = vpop.f32.mrf.mxu1 }
 0x7a2   : > { %v5634_v61 = vadd.f32 %v5633_v33, %v5360_v53 }
 0x7a3   : > { %v5362_v35 = vpop.f32.mrf.mxu1 }
 0x7a4   : > { %v5804_v15 = vadd.f32 %v12113_v11, %v5634_v61  ;;  %v5636_v46 = vadd.f32 %v5635_v54, %v5362_v35 }
 0x7a5   : > { %v5364_v7 = vpop.f32.mrf.mxu1 }
 0x7a6   : > { %v5805_v18 = vadd.f32 %v12117_v31, %v5636_v46  ;;  %v5638_v8 = vadd.f32 %v5637_v57, %v5364_v7  ;;  %5868 = vxpose.xlu0.b32.start [1/16] %v5804_v15, 128 }
 0x7a7   : > { %v5366_v41 = vpop.f32.mrf.mxu1 }
 0x7a8   : > { %v5806_v22 = vadd.f32 %v12113_v11, %v5638_v8  ;;  %v5640_v51 = vadd.f32 %v5639_v48, %v5366_v41  ;;  %5900 = vxpose.xlu1.b32.start [1/16] %v5805_v18, 128 }
 0x7a9   : > { %v5370_v36 = vpop.f32.mrf.mxu1 }
 0x7aa   : > { %v5807_v27 = vadd.f32 %v12117_v31, %v5640_v51  ;;  %v5644_v19 = vadd.f32 %v5643_v0, %v5370_v36  ;;  %5869 = vxpose.xlu0.b32.cont [2/16] %v5806_v22, 128  ;;  %v12135_v0 = vpop.f32.mrf.mxu0 }
 0x7ab   : > { %v5372_v32 = vpop.f32.mrf.mxu1 }
 0x7ac   : > { %v5808_v9 = vadd.f32 %v12113_v11, %v5644_v19  ;;  %v5646_v33 = vadd.f32 %v5645_v6, %v5372_v32  ;;  %5901 = vxpose.xlu1.b32.cont [2/16] %v5807_v27, 128 }
 0x7ad   : > { %v5374_v5 = vpop.f32.mrf.mxu1 }
 0x7ae   : > { %v5809_v59 = vadd.f32 %v12117_v31, %v5646_v33  ;;  %v5648_v47 = vadd.f32 %v5647_v50, %v5374_v5  ;;  %5870 = vxpose.xlu0.b32.cont [3/16] %v5808_v9, 128 }
 0x7af   : > { %v5376_v54 = vpop.f32.mrf.mxu1 }
 0x7b0   : > { %v5810_v26 = vadd.f32 %v12113_v11, %v5648_v47  ;;  %v5650_v44 = vadd.f32 %v5649_v16, %v5376_v54  ;;  %5902 = vxpose.xlu1.b32.cont [3/16] %v5809_v59, 128  ;;  %v12141_v16 = vpop.f32.mrf.mxu0 }
 0x7b1   : > { %v5380_v57 = vpop.f32.mrf.mxu1 }
 0x7b2   : > { %v5811_v60 = vadd.f32 %v12117_v31, %v5650_v44  ;;  %v5654_v48 = vadd.f32 %v5653_v28, %v5380_v57  ;;  %5871 = vxpose.xlu0.b32.cont [4/16] %v5810_v26, 128  ;;  %v12147_v46 = vpop.f32.mrf.mxu0 }
 0x7b3   : > { %v5382_v6 = vpop.f32.mrf.mxu1 }
 0x7b4   : > { %v5812_v45 = vadd.f32 %v12113_v11, %v5654_v48  ;;  %v5656_v50 = vadd.f32 %v12062_v10, %v5382_v6  ;;  %5903 = vxpose.xlu1.b32.cont [4/16] %v5811_v60, 128  ;;  %v12153_v22 = vpop.f32.mrf.mxu0 }
 0x7b5   : > { %v5384_v37 = vpop.f32.mrf.mxu1 }
 0x7b6   : > { %v5813_v34 = vadd.f32 %v12117_v31, %v5656_v50  ;;  %v5658_v53 = vadd.f32 %v12064_v13, %v5384_v37  ;;  %5872 = vxpose.xlu0.b32.cont [5/16] %v5812_v45, 128  ;;  %v12159_v32 = vpop.f32.mrf.mxu0 }
 0x7b7   : > { %v5386_v61 = vpop.f32.mrf.mxu1 }
 0x7b8   : > { %v5814_v28 = vadd.f32 %v12113_v11, %v5658_v53  ;;  %v5660_v40 = vadd.f32 %v12066_v4, %v5386_v61  ;;  %5904 = vxpose.xlu1.b32.cont [5/16] %v5813_v34, 128  ;;  %v12165_v47 = vpop.f32.mrf.mxu0 }
 0x7b9   : > { %v5390_v35 = vpop.f32.mrf.mxu1 }
 0x7ba   : > { %v5815_v15 = vadd.f32 %v12117_v31, %v5660_v40  ;;  %v5664_v10 = vadd.f32 %v12068_v39, %v5390_v35  ;;  %5873 = vxpose.xlu0.b32.cont [6/16] %v5814_v28, 128  ;;  %v12171_v60 = vpop.f32.mrf.mxu0 }
 0x7bb   : > { %v5392_v7 = vpop.f32.mrf.mxu1 }
 0x7bc   : > { %v5816_v13 = vadd.f32 %v12113_v11, %v5664_v10  ;;  %v5666_v18 = vadd.f32 %v12070_v14, %v5392_v7  ;;  %5905 = vxpose.xlu1.b32.cont [6/16] %v5815_v15, 128  ;;  %v12177_v37 = vpop.f32.mrf.mxu0 }
 0x7bd   : > { %v5394_v8 = vpop.f32.mrf.mxu1 }
 0x7be   : > { %v5817_v41 = vadd.f32 %v12117_v31, %v5666_v18  ;;  %v5668_v4 = vadd.f32 %v12072_v12, %v5394_v8  ;;  %5874 = vxpose.xlu0.b32.cont [7/16] %v5816_v13, 128  ;;  %v12183_v40 = vpop.f32.mrf.mxu0 }
 0x7bf   : > { %v5396_v51 = vpop.f32.mrf.mxu1 }
 0x7c0   : > { %v5818_v39 = vadd.f32 %v12113_v11, %v5668_v4  ;;  %v5670_v36 = vadd.f32 %v12074_v52, %v5396_v51  ;;  %5906 = vxpose.xlu1.b32.cont [7/16] %v5817_v41, 128  ;;  %v12189_v13 = vpop.f32.mrf.mxu0 }
 0x7c1   : > { %v5400_v27 = vpop.f32.mrf.mxu1 }
 0x7c2   : > { %v5819_v19 = vadd.f32 %v12117_v31, %v5670_v36  ;;  %v5674_v14 = vadd.f32 %v12076_v25, %v5400_v27  ;;  %5875 = vxpose.xlu0.b32.cont [8/16] %v5818_v39, 128  ;;  %v12195_v51 = vpop.f32.mrf.mxu0 }
 0x7c3   : > { %v5402_v9 = vpop.f32.mrf.mxu1 }
 0x7c4   : > { %v5820_v12 = vadd.f32 %v12113_v11, %v5674_v14  ;;  %v5676_v33 = vadd.f32 %v12078_v20, %v5402_v9  ;;  %5907 = vxpose.xlu1.b32.cont [8/16] %v5819_v19, 128  ;;  %v12201_v14 = vpop.f32.mrf.mxu0 }
 0x7c5   : > { %v5404_v5 = vpop.f32.mrf.mxu1 }
 0x7c6   : > { %v5821_v59 = vadd.f32 %v12117_v31, %v5676_v33  ;;  %v5678_v52 = vadd.f32 %v12080_v43, %v5404_v5  ;;  %5876 = vxpose.xlu0.b32.cont [9/16] %v5820_v12, 128 }
 0x7c7   : > { %v5406_v54 = vpop.f32.mrf.mxu1 }
 0x7c8   : > { %v5822_v25 = vadd.f32 %v12113_v11, %v5678_v52  ;;  %v5680_v26 = vadd.f32 %v12082_v42, %v5406_v54  ;;  %5908 = vxpose.xlu1.b32.cont [9/16] %v5821_v59, 128  ;;  %v12207_v59 = vpop.f32.mrf.mxu0 }
 0x7c9   : > { %v5410_v44 = vpop.f32.mrf.mxu1 }
 0x7ca   : > { %v5823_v57 = vadd.f32 %v12117_v31, %v5680_v26  ;;  %v5684_v20 = vadd.f32 %v12084_v29, %v5410_v44  ;;  %5877 = vxpose.xlu0.b32.cont [10/16] %v5822_v25, 128  ;;  %v12213_v44 = vpop.f32.mrf.mxu0 }
 0x7cb   : > { %v5412_v48 = vpop.f32.mrf.mxu1 }
 0x7cc   : > { %v5824_v43 = vadd.f32 %v12113_v11, %v5684_v20  ;;  %v5686_v6 = vadd.f32 %v12086_v63, %v5412_v48  ;;  %5909 = vxpose.xlu1.b32.cont [10/16] %v5823_v57, 128 }
 0x7cd   : > { %v5414_v45 = vpop.f32.mrf.mxu1 }
 0x7ce   : > { %v5825_v50 = vadd.f32 %v12117_v31, %v5686_v6  ;;  %v5688_v42 = vadd.f32 %v12088_v62, %v5414_v45  ;;  %5878 = vxpose.xlu0.b32.cont [11/16] %v5824_v43, 128  ;;  %v5757_v6 = vpop.f32.mrf.mxu0 }
 0x7cf   : > { %v5416_v34 = vpop.f32.mrf.mxu1 }
 0x7d0   : > { %v5826_v29 = vadd.f32 %v12113_v11, %v5688_v42  ;;  %v5690_v53 = vadd.f32 %v12090_v30, %v5416_v34  ;;  %5910 = vxpose.xlu1.b32.cont [11/16] %v5825_v50, 128 }
 0x7d1   : > { %v5420_v61 = vpop.f32.mrf.mxu1 }
 0x7d2   : > { %v5827_v28 = vadd.f32 %v12117_v31, %v5690_v53  ;;  %v5694_v63 = vadd.f32 %v12092_v24, %v5420_v61  ;;  %5879 = vxpose.xlu0.b32.cont [12/16] %v5826_v29, 128 }
 0x7d3   : > { %v5422_v35 = vpop.f32.mrf.mxu1 }
 0x7d4   : > { %v5828_v62 = vadd.f32 %v12113_v11, %v5694_v63  ;;  %v5696_v15 = vadd.f32 %v12094_v1, %v5422_v35  ;;  %5911 = vxpose.xlu1.b32.cont [12/16] %v5827_v28, 128 }
 0x7d5   : > { %v5424_v10 = vpop.f32.mrf.mxu1 }
 0x7d6   : > { %v5829_v7 = vadd.f32 %v12117_v31, %v5696_v15  ;;  %v5698_v30 = vadd.f32 %v12096_v38, %v5424_v10  ;;  %5880 = vxpose.xlu0.b32.cont [13/16] %v5828_v62, 128 }
 0x7d7   : > { %v5426_v18 = vpop.f32.mrf.mxu1 }
 0x7d8   : > { %v5830_v24 = vadd.f32 %v12113_v11, %v5698_v30  ;;  %v5700_v8 = vadd.f32 %v12098_v49, %v5426_v18  ;;  %5912 = vxpose.xlu1.b32.cont [13/16] %v5829_v7, 128 }
 0x7d9   : > { %v5430_v41 = vpop.f32.mrf.mxu1 }
 0x7da   : > { %v5831_v4 = vadd.f32 %v12117_v31, %v5700_v8  ;;  %v5704_v1 = vadd.f32 %v12100_v17, %v5430_v41  ;;  %5881 = vxpose.xlu0.b32.cont [14/16] %v5830_v24, 128 }
 0x7db   : > { %v5432_v39 = vpop.f32.mrf.mxu1 }
 0x7dc   : > { %v5832_v38 = vadd.f32 %v12113_v11, %v5704_v1  ;;  %v5706_v36 = vadd.f32 %v12102_v56, %v5432_v39  ;;  %5913 = vxpose.xlu1.b32.cont [14/16] %v5831_v4, 128 }
 0x7dd   : > { %v5434_v27 = vpop.f32.mrf.mxu1 }
 0x7de   : > { %v5833_v19 = vadd.f32 %v12117_v31, %v5706_v36  ;;  %v5708_v49 = vadd.f32 %v12104_v2, %v5434_v27  ;;  %5882 = vxpose.xlu0.b32.cont [15/16] %v5832_v38, 128 }
 0x7df   : > { %v5436_v9 = vpop.f32.mrf.mxu1 }
 0x7e0   : > { %v5834_v17 = vadd.f32 %v12113_v11, %v5708_v49  ;;  %v5710_v12 = vadd.f32 %v12109_v23, %v5436_v9  ;;  %5914 = vxpose.xlu1.b32.cont [15/16] %v5833_v19, 128 }
 0x7e1   : > { %v5440_v33 = vpop.f32.mrf.mxu1 }
 0x7e2   : > { %v5835_v5 = vadd.f32 %v12117_v31, %v5710_v12  ;;  %v5714_v56 = vadd.f32 %v12119_v3, %v5440_v33  ;;  %5883 = vxpose.xlu0.b32.end [16/16] %v5834_v17, 128 }
 0x7e3   : > { %v5442_v52 = vpop.f32.mrf.mxu1 }
 0x7e4   : > { %v5836_v2 = vadd.f32 %v12113_v11, %v5714_v56  ;;  %v5716_v54 = vadd.f32 %v12123_v58, %v5442_v52  ;;  %5915 = vxpose.xlu1.b32.end [16/16] %v5835_v5, 128 }
 0x7e5   : > { %v5444_v25 = vpop.f32.mrf.mxu1 }
 0x7e6   : > { %v5837_v26 = vadd.f32 %v12117_v31, %v5716_v54  ;;  %v5718_v23 = vadd.f32 %v12127_v21, %v5444_v25  ;;  %5932 = vxpose.xlu0.b32.start [1/16] %v5836_v2, 128 }
 0x7e7   : > { %v5446_v57 = vpop.f32.mrf.mxu1 }
 0x7e8   : > { %v5838_v3 = vadd.f32 %v12113_v11, %v5718_v23  ;;  %v5720_v20 = vadd.f32 %v12131_v55, %v5446_v57  ;;  %5964 = vxpose.xlu1.b32.start [1/16] %v5837_v26, 128  ;;  %v5759_v55 = vpop.f32.mrf.mxu0 }
 0x7e9   : > { %v5450_v48 = vpop.f32.mrf.mxu1 }
 0x7ea   : > { %v5839_v43 = vadd.f32 %v12117_v31, %v5720_v20  ;;  %v5724_v58 = vadd.f32 %v12135_v0, %v5450_v48  ;;  %5933 = vxpose.xlu0.b32.cont [2/16] %v5838_v3, 128 }
 0x7eb   : > { %v5452_v45 = vpop.f32.mrf.mxu1 }
 0x7ec   : > { %v5840_v50 = vadd.f32 %v12113_v11, %v5724_v58  ;;  %v5726_v21 = vadd.f32 %v12141_v16, %v5452_v45  ;;  %5965 = vxpose.xlu1.b32.cont [2/16] %v5839_v43, 128  ;;  %v5763_v16 = vpop.f32.mrf.mxu0 }
 0x7ed   : > { %v5454_v42 = vpop.f32.mrf.mxu1 }
 0x7ee   : > { %v5841_v34 = vadd.f32 %v12117_v31, %v5726_v21  ;;  %v5728_v29 = vadd.f32 %v12147_v46, %v5454_v42  ;;  %5934 = vxpose.xlu0.b32.cont [3/16] %v5840_v50, 128 }
 0x7ef   : > { %v5456_v53 = vpop.f32.mrf.mxu1 }
 0x7f0   : > { %v5842_v61 = vadd.f32 %v12113_v11, %v5728_v29  ;;  %v5730_v0 = vadd.f32 %v12153_v22, %v5456_v53  ;;  %5966 = vxpose.xlu1.b32.cont [3/16] %v5841_v34, 128  ;;  %v5765_v22 = vpop.f32.mrf.mxu0 }
 0x7f1   : > { %v5460_v28 = vpop.f32.mrf.mxu1 }
 0x7f2   : > { %v5843_v63 = vadd.f32 %v12117_v31, %v5730_v0  ;;  %v5734_v35 = vadd.f32 %v12159_v32, %v5460_v28  ;;  %5935 = vxpose.xlu0.b32.cont [4/16] %v5842_v61, 128 }
 0x7f3   : > { %v5462_v62 = vpop.f32.mrf.mxu1 }
 0x7f4   : > { %v5844_v15 = vadd.f32 %v12113_v11, %v5734_v35  ;;  %v5736_v46 = vadd.f32 %v12165_v47, %v5462_v62  ;;  %5967 = vxpose.xlu1.b32.cont [4/16] %v5843_v63, 128  ;;  %v5767_v47 = vpop.f32.mrf.mxu0 }
 0x7f5   : > { %v5464_v10 = vpop.f32.mrf.mxu1 }
 0x7f6   : > { %v5845_v7 = vadd.f32 %v12117_v31, %v5736_v46  ;;  %v5738_v30 = vadd.f32 %v12171_v60, %v5464_v10  ;;  %5936 = vxpose.xlu0.b32.cont [5/16] %v5844_v15, 128 }
 0x7f7   : > { %v5466_v18 = vpop.f32.mrf.mxu1 }
 0x7f8   : > { %v5846_v24 = vadd.f32 %v12113_v11, %v5738_v30  ;;  %v5740_v32 = vadd.f32 %v12177_v37, %v5466_v18  ;;  %5968 = vxpose.xlu1.b32.cont [5/16] %v5845_v7, 128  ;;  %v5769_v37 = vpop.f32.mrf.mxu0 }
 0x7f9   : > { %v5470_v8 = vpop.f32.mrf.mxu1 }
 0x7fa   : > { %v5847_v41 = vadd.f32 %v12117_v31, %v5740_v32  ;;  %v5744_v4 = vadd.f32 %v12183_v40, %v5470_v8  ;;  %5937 = vxpose.xlu0.b32.cont [6/16] %v5846_v24, 128 }
 0x7fb   : > { %v5472_v1 = vpop.f32.mrf.mxu1 }
 0x7fc   : > { %v5848_v39 = vadd.f32 %v12113_v11, %v5744_v4  ;;  %v5746_v60 = vadd.f32 %v12189_v13, %v5472_v1  ;;  %5969 = vxpose.xlu1.b32.cont [6/16] %v5847_v41, 128  ;;  %v5773_v13 = vpop.f32.mrf.mxu0 }
 0x7fd   : > { %v5474_v38 = vpop.f32.mrf.mxu1 }
 0x7fe   : > { %v5849_v36 = vadd.f32 %v12117_v31, %v5746_v60  ;;  %v5748_v27 = vadd.f32 %v12195_v51, %v5474_v38  ;;  %5938 = vxpose.xlu0.b32.cont [7/16] %v5848_v39, 128 }
 0x7ff   : > { %v5476_v19 = vpop.f32.mrf.mxu1 }
 0x800   : > { %v5850_v49 = vadd.f32 %v12113_v11, %v5748_v27  ;;  %v5750_v40 = vadd.f32 %v12201_v14, %v5476_v19  ;;  %5970 = vxpose.xlu1.b32.cont [7/16] %v5849_v36, 128  ;;  %v5775_v14 = vpop.f32.mrf.mxu0 }
 0x801   : > { %v5480_v9 = vpop.f32.mrf.mxu1 }
 0x802   : > { %v5851_v17 = vadd.f32 %v12117_v31, %v5750_v40  ;;  %v5754_v12 = vadd.f32 %v12207_v59, %v5480_v9  ;;  %5939 = vxpose.xlu0.b32.cont [8/16] %v5850_v49, 128  ;;  %v5777_v3 = vpop.f32.mrf.mxu0  ;;  %v7927_v9 = vld [vmem:[%s8090_s16 + $0x10] sm:$0xff] }
 0x803   : > { %v5482_v33 = vpop.f32.mrf.mxu1 }
 0x804   : > { %v5852_v5 = vadd.f32 %v12113_v11, %v5754_v12  ;;  %v5756_v51 = vadd.f32 %v12213_v44, %v5482_v33  ;;  %5971 = vxpose.xlu1.b32.cont [8/16] %v5851_v17, 128  ;;  %v5779_v45 = vpop.f32.mrf.mxu0 }
 0x805   : > { %v5484_v56 = vpop.f32.mrf.mxu1 }
 0x806   : > { %v5853_v52 = vadd.f32 %v12117_v31, %v5756_v51  ;;  %v5758_v2 = vadd.f32 %v5757_v6, %v5484_v56  ;;  %5940 = vxpose.xlu0.b32.cont [9/16] %v5852_v5, 128  ;;  %v5783_v53 = vpop.f32.mrf.mxu0  ;;  %v7929_v51 = vld [vmem:[%s8090_s16 + $0x20] sm:$0xff] }
 0x807   : > { %v5486_v54 = vpop.f32.mrf.mxu1 }
 0x808   : > { %v5854_v25 = vadd.f32 %v12113_v11, %v5758_v2  ;;  %v5760_v26 = vadd.f32 %v5759_v55, %v5486_v54  ;;  %5972 = vxpose.xlu1.b32.cont [9/16] %v5853_v52, 128  ;;  %v5785_v62 = vpop.f32.mrf.mxu0  ;;  %v7930_v2 = vld [vmem:[%s8090_s16 + $0x120] sm:$0xff] }
 0x809   : > { %v5490_v59 = vpop.f32.mrf.mxu1 }
 0x80a   : > { %v5855_v23 = vadd.f32 %v12117_v31, %v5760_v26  ;;  %v5764_v57 = vadd.f32 %v5763_v16, %v5490_v59  ;;  %5941 = vxpose.xlu0.b32.cont [10/16] %v5854_v25, 128  ;;  %v5787_v18 = vpop.f32.mrf.mxu0  ;;  %v7931_v25 = vld [vmem:[%s8090_s16 + $0x30] sm:$0xff] }
 0x80b   : > { %v5492_v20 = vpop.f32.mrf.mxu1 }
 0x80c   : > { %v5856_v44 = vadd.f32 %v12113_v11, %v5764_v57  ;;  %v5766_v48 = vadd.f32 %v5765_v22, %v5492_v20  ;;  %5973 = vxpose.xlu1.b32.cont [10/16] %v5855_v23, 128  ;;  %v5789_v1 = vpop.f32.mrf.mxu0  ;;  %v7932_v23 = vld [vmem:[%s8090_s16 + $0x130] sm:$0xff]  ;;  %v7933_v20 = vld [vmem:[%s8090_s16 + $0x40] sm:$0xff] }
 0x80d   : > { %v5494_v43 = vpop.f32.mrf.mxu1 }
 0x80e   : > { %v5857_v58 = vadd.f32 %v12117_v31, %v5766_v48  ;;  %v5768_v6 = vadd.f32 %v5767_v47, %v5494_v43  ;;  %5942 = vxpose.xlu0.b32.cont [11/16] %v5856_v44, 128  ;;  %v7934_v43 = vld [vmem:[%s8090_s16 + $0x140] sm:$0xff] }
 0x80f   : > { %v5496_v50 = vpop.f32.mrf.mxu1 }
 0x810   : > { %v5858_v21 = vadd.f32 %v12113_v11, %v5768_v6  ;;  %v5770_v42 = vadd.f32 %v5769_v37, %v5496_v50  ;;  %5974 = vxpose.xlu1.b32.cont [11/16] %v5857_v58, 128  ;;  %v7925_v37 = vld [vmem:[%s8090_s16] sm:$0xff] }
 0x811   : > { %v5500_v34 = vpop.f32.mrf.mxu1 }
 0x812   : > { %v5859_v29 = vadd.f32 %v12117_v31, %v5770_v42  ;;  %v5774_v55 = vadd.f32 %v5773_v13, %v5500_v34  ;;  %5943 = vxpose.xlu0.b32.cont [12/16] %v5858_v21, 128  ;;  %v7928_v13 = vld [vmem:[%s8090_s16 + $0x110] sm:$0xff] }
 0x813   : > { %v5502_v61 = vpop.f32.mrf.mxu1  ;;  %v7936_v42 = vld [vmem:[%s8090_s16 + $0x150] sm:$0xff] }
 0x814   : > { %v5860_v0 = vadd.f32 %v12113_v11, %v5774_v55  ;;  %v5776_v28 = vadd.f32 %v5775_v14, %v5502_v61  ;;  %5975 = vxpose.xlu1.b32.cont [12/16] %v5859_v29, 128  ;;  %v7937_v55 = vld [vmem:[%s8090_s16 + $0x60] sm:$0xff] }
 0x815   : > { %v5504_v63 = vpop.f32.mrf.mxu1 }
 0x816   : > { %v5861_v35 = vadd.f32 %v12117_v31, %v5776_v28  ;;  %v5778_v16 = vadd.f32 %v5777_v3, %v5504_v63  ;;  %5944 = vxpose.xlu0.b32.cont [13/16] %v5860_v0, 128  ;;  %v7938_v0 = vld [vmem:[%s8090_s16 + $0x160] sm:$0xff] }
 0x817   : > { %v5506_v15 = vpop.f32.mrf.mxu1 }
 0x818   : > { %v5862_v46 = vadd.f32 %v12113_v11, %v5778_v16  ;;  %v5780_v10 = vadd.f32 %v5779_v45, %v5506_v15  ;;  %5976 = vxpose.xlu1.b32.cont [13/16] %v5861_v35, 128  ;;  %v7935_v45 = vld [vmem:[%s8090_s16 + $0x50] sm:$0xff] }
 0x819   : > { %v5510_v7 = vpop.f32.mrf.mxu1  ;;  %v7939_v35 = vld [vmem:[%s8090_s16 + $0x70] sm:$0xff] }
 0x81a   : > { %v5863_v30 = vadd.f32 %v12117_v31, %v5780_v10  ;;  %v5784_v22 = vadd.f32 %v5783_v53, %v5510_v7  ;;  %5945 = vxpose.xlu0.b32.cont [14/16] %v5862_v46, 128  ;;  %v7940_v15 = vld [vmem:[%s8090_s16 + $0x170] sm:$0xff]  ;;  %v7941_v7 = vld [vmem:[%s8090_s16 + $0x80] sm:$0xff] }
 0x81b   : > { %v5512_v24 = vpop.f32.mrf.mxu1 }
 0x81c   : > { %v5864_v32 = vadd.f32 %v12113_v11, %v5784_v22  ;;  %v5786_v8 = vadd.f32 %v5785_v62, %v5512_v24  ;;  %5977 = vxpose.xlu1.b32.cont [14/16] %v5863_v30, 128 }
 0x81d   : > { %v5514_v41 = vpop.f32.mrf.mxu1 }
 0x81e   : > { %v5865_v4 = vadd.f32 %v12117_v31, %v5786_v8  ;;  %v5788_v47 = vadd.f32 %v5787_v18, %v5514_v41  ;;  %5946 = vxpose.xlu0.b32.cont [15/16] %v5864_v32, 128  ;;  %v7942_v18 = vld [vmem:[%s8090_s16 + $0x180] sm:$0xff]  ;;  %v7943_v8 = vld [vmem:[%s8090_s16 + $0x90] sm:$0xff] }
 0x81f   : > { %v5516_v39 = vpop.f32.mrf.mxu1 }
 0x820   : > { %v5866_v60 = vadd.f32 %v12113_v11, %v5788_v47  ;;  %v5790_v38 = vadd.f32 %v5789_v1, %v5516_v39  ;;  %5978 = vxpose.xlu1.b32.cont [15/16] %v5865_v4, 128  ;;  %v7944_v47 = vld [vmem:[%s8090_s16 + $0x190] sm:$0xff] }
 0x822   : > { %v5867_v36 = vadd.f32 %v12117_v31, %v5790_v38  ;;  %5947 = vxpose.xlu0.b32.end [16/16] %v5866_v60, 128  ;;  %v5884_v27 = vpop.trf.xlu0  ;;  %v7926_v31 = vld [vmem:[%s8090_s16 + $0x100] sm:$0xff] }
 0x823   : > { %v5996_v11 = vadd.f32 %v7925_v37, %v5884_v27  ;;  %v7945_v60 = vld [vmem:[%s8090_s16 + $0xa0] sm:$0xff] }
 0x824   : > { %5979 = vxpose.xlu1.b32.end [16/16] %v5867_v36, 128  ;;  %v5916_v19 = vpop.trf.xlu1  ;;  %v7946_v27 = vld [vmem:[%s8090_s16 + $0x1a0] sm:$0xff] }
 0x825   : > { %6060 = vst [vmem:[%s12265_s14] sm:$0xff] %v5996_v11  ;;  %v6028_v49 = vadd.f32 %v7926_v31, %v5916_v19  ;;  %v7947_v19 = vld [vmem:[%s8090_s16 + $0xb0] sm:$0xff] }
 0x826   : > { %v5885_v40 = vpop.trf.xlu0 }
 0x827   : > { %6092 = vst [vmem:[%s12265_s14 + $0x100] sm:$0xff] %v6028_v49  ;;  %v5998_v17 = vadd.f32 %v7927_v9, %v5885_v40  ;;  %v7948_v40 = vld [vmem:[%s8090_s16 + $0x1b0] sm:$0xff] }
 0x828   : > { %v5917_v12 = vpop.trf.xlu1 }
 0x829   : > { %6062 = vst [vmem:[%s12265_s14 + $0x10] sm:$0xff] %v5998_v17  ;;  %v6030_v33 = vadd.f32 %v7928_v13, %v5917_v12  ;;  %v7949_v12 = vld [vmem:[%s8090_s16 + $0xc0] sm:$0xff] }
 0x82a   : > { %v5886_v5 = vpop.trf.xlu0 }
 0x82b   : > { %6094 = vst [vmem:[%s12265_s14 + $0x110] sm:$0xff] %v6030_v33  ;;  %v6000_v56 = vadd.f32 %v7929_v51, %v5886_v5  ;;  %v7950_v5 = vld [vmem:[%s8090_s16 + $0x1c0] sm:$0xff] }
 0x82c   : > { %v5918_v52 = vpop.trf.xlu1 }
 0x82d   : > { %6064 = vst [vmem:[%s12265_s14 + $0x20] sm:$0xff] %v6000_v56  ;;  %v6032_v14 = vadd.f32 %v7930_v2, %v5918_v52  ;;  %v7951_v52 = vld [vmem:[%s8090_s16 + $0xd0] sm:$0xff] }
 0x82e   : > { %v5887_v54 = vpop.trf.xlu0 }
 0x82f   : > { %6096 = vst [vmem:[%s12265_s14 + $0x120] sm:$0xff] %v6032_v14  ;;  %v6002_v26 = vadd.f32 %v7931_v25, %v5887_v54  ;;  %v7952_v54 = vld [vmem:[%s8090_s16 + $0x1d0] sm:$0xff] }
 0x830   : > { %v5919_v59 = vpop.trf.xlu1 }
 0x831   : > { %6066 = vst [vmem:[%s12265_s14 + $0x30] sm:$0xff] %v6002_v26  ;;  %v6034_v57 = vadd.f32 %v7932_v23, %v5919_v59  ;;  %v7953_v59 = vld [vmem:[%s8090_s16 + $0xe0] sm:$0xff] }
 0x832   : > { %v5888_v3 = vpop.trf.xlu0 }
 0x833   : > { %6098 = vst [vmem:[%s12265_s14 + $0x130] sm:$0xff] %v6034_v57  ;;  %v6004_v44 = vadd.f32 %v7933_v20, %v5888_v3  ;;  %v7954_v3 = vld [vmem:[%s8090_s16 + $0x1e0] sm:$0xff] }
 0x834   : > { %v5920_v48 = vpop.trf.xlu1 }
 0x835   : > { %6068 = vst [vmem:[%s12265_s14 + $0x40] sm:$0xff] %v6004_v44  ;;  %v6036_v58 = vadd.f32 %v7934_v43, %v5920_v48  ;;  %v7955_v48 = vld [vmem:[%s8090_s16 + $0xf0] sm:$0xff] }
 0x836   : > { %v5889_v6 = vpop.trf.xlu0 }
 0x837   : > { %6100 = vst [vmem:[%s12265_s14 + $0x140] sm:$0xff] %v6036_v58  ;;  %v6006_v50 = vadd.f32 %v7935_v45, %v5889_v6  ;;  %v7956_v6 = vld [vmem:[%s8090_s16 + $0x1f0] sm:$0xff] }
 0x838   : > { %v5921_v21 = vpop.trf.xlu1 }
 0x839   : > { %6070 = vst [vmem:[%s12265_s14 + $0x50] sm:$0xff] %v6006_v50  ;;  %v6038_v34 = vadd.f32 %v7936_v42, %v5921_v21  ;;  %v7957_v21 = vld [vmem:[%s8090_s16 + $0x8] sm:$0xff] }
 0x83a   : > { %v5890_v29 = vpop.trf.xlu0 }
 0x83b   : > { %6102 = vst [vmem:[%s12265_s14 + $0x150] sm:$0xff] %v6038_v34  ;;  %v6008_v53 = vadd.f32 %v7937_v55, %v5890_v29  ;;  %v7958_v29 = vld [vmem:[%s8090_s16 + $0x108] sm:$0xff] }
 0x83c   : > { %v5922_v61 = vpop.trf.xlu1 }
 0x83d   : > { %6072 = vst [vmem:[%s12265_s14 + $0x60] sm:$0xff] %v6008_v53  ;;  %v6040_v28 = vadd.f32 %v7938_v0, %v5922_v61  ;;  %v7959_v61 = vld [vmem:[%s8090_s16 + $0x18] sm:$0xff] }
 0x83e   : > { %v5891_v63 = vpop.trf.xlu0 }
 0x83f   : > { %6104 = vst [vmem:[%s12265_s14 + $0x160] sm:$0xff] %v6040_v28  ;;  %v6010_v16 = vadd.f32 %v7939_v35, %v5891_v63  ;;  %v7960_v63 = vld [vmem:[%s8090_s16 + $0x118] sm:$0xff] }
 0x840   : > { %v5923_v62 = vpop.trf.xlu1 }
 0x841   : > { %6074 = vst [vmem:[%s12265_s14 + $0x70] sm:$0xff] %v6010_v16  ;;  %v6042_v46 = vadd.f32 %v7940_v15, %v5923_v62  ;;  %v7961_v62 = vld [vmem:[%s8090_s16 + $0x28] sm:$0xff] }
 0x842   : > { %v5892_v10 = vpop.trf.xlu0 }
 0x843   : > { %6106 = vst [vmem:[%s12265_s14 + $0x170] sm:$0xff] %v6042_v46  ;;  %v6012_v30 = vadd.f32 %v7941_v7, %v5892_v10  ;;  %v7962_v10 = vld [vmem:[%s8090_s16 + $0x128] sm:$0xff] }
 0x844   : > { %v5924_v22 = vpop.trf.xlu1 }
 0x845   : > { %6076 = vst [vmem:[%s12265_s14 + $0x80] sm:$0xff] %v6012_v30  ;;  %v6044_v24 = vadd.f32 %v7942_v18, %v5924_v22  ;;  %v7963_v22 = vld [vmem:[%s8090_s16 + $0x38] sm:$0xff] }
 0x846   : > { %v5893_v32 = vpop.trf.xlu0 }
 0x847   : > { %6108 = vst [vmem:[%s12265_s14 + $0x180] sm:$0xff] %v6044_v24  ;;  %v6014_v41 = vadd.f32 %v7943_v8, %v5893_v32  ;;  %v7964_v32 = vld [vmem:[%s8090_s16 + $0x138] sm:$0xff] }
 0x848   : > { %v5925_v4 = vpop.trf.xlu1 }
 0x849   : > { %6078 = vst [vmem:[%s12265_s14 + $0x90] sm:$0xff] %v6014_v41  ;;  %v6046_v1 = vadd.f32 %v7944_v47, %v5925_v4  ;;  %v7965_v4 = vld [vmem:[%s8090_s16 + $0x48] sm:$0xff] }
 0x84a   : > { %v5894_v39 = vpop.trf.xlu0 }
 0x84b   : > { %6110 = vst [vmem:[%s12265_s14 + $0x190] sm:$0xff] %v6046_v1  ;;  %v6016_v38 = vadd.f32 %v7945_v60, %v5894_v39  ;;  %v7966_v39 = vld [vmem:[%s8090_s16 + $0x148] sm:$0xff] }
 0x84c   : > { %v5926_v36 = vpop.trf.xlu1 }
 0x84d   : > { %6080 = vst [vmem:[%s12265_s14 + $0xa0] sm:$0xff] %v6016_v38  ;;  %v6048_v37 = vadd.f32 %v7946_v27, %v5926_v36  ;;  %v7967_v36 = vld [vmem:[%s8090_s16 + $0x58] sm:$0xff] }
 0x84e   : > { %v5895_v11 = vpop.trf.xlu0 }
 0x84f   : > { %6112 = vst [vmem:[%s12265_s14 + $0x1a0] sm:$0xff] %v6048_v37  ;;  %v6018_v31 = vadd.f32 %v7947_v19, %v5895_v11  ;;  %v7968_v11 = vld [vmem:[%s8090_s16 + $0x158] sm:$0xff] }
 0x850   : > { %v5927_v49 = vpop.trf.xlu1 }
 0x851   : > { %6082 = vst [vmem:[%s12265_s14 + $0xb0] sm:$0xff] %v6018_v31  ;;  %v6050_v9 = vadd.f32 %v7948_v40, %v5927_v49  ;;  %v7969_v49 = vld [vmem:[%s8090_s16 + $0x68] sm:$0xff] }
 0x852   : > { %v5896_v17 = vpop.trf.xlu0 }
 0x853   : > { %6114 = vst [vmem:[%s12265_s14 + $0x1b0] sm:$0xff] %v6050_v9  ;;  %v6020_v13 = vadd.f32 %v7949_v12, %v5896_v17  ;;  %v7970_v17 = vld [vmem:[%s8090_s16 + $0x168] sm:$0xff] }
 0x854   : > { %v5928_v33 = vpop.trf.xlu1 }
 0x855   : > { %6084 = vst [vmem:[%s12265_s14 + $0xc0] sm:$0xff] %v6020_v13  ;;  %v6052_v51 = vadd.f32 %v7950_v5, %v5928_v33  ;;  %v7971_v33 = vld [vmem:[%s8090_s16 + $0x78] sm:$0xff] }
 0x856   : > { %v5897_v56 = vpop.trf.xlu0 }
 0x857   : > { %6116 = vst [vmem:[%s12265_s14 + $0x1c0] sm:$0xff] %v6052_v51  ;;  %v6022_v2 = vadd.f32 %v7951_v52, %v5897_v56  ;;  %v7972_v56 = vld [vmem:[%s8090_s16 + $0x178] sm:$0xff] }
 0x858   : > { %v5929_v14 = vpop.trf.xlu1 }
 0x859   : > { %6086 = vst [vmem:[%s12265_s14 + $0xd0] sm:$0xff] %v6022_v2  ;;  %v6054_v25 = vadd.f32 %v7952_v54, %v5929_v14  ;;  %v7973_v14 = vld [vmem:[%s8090_s16 + $0x88] sm:$0xff] }
 0x85a   : > { %v5898_v26 = vpop.trf.xlu0 }
 0x85b   : > { %6118 = vst [vmem:[%s12265_s14 + $0x1d0] sm:$0xff] %v6054_v25  ;;  %v6024_v23 = vadd.f32 %v7953_v59, %v5898_v26  ;;  %v7974_v26 = vld [vmem:[%s8090_s16 + $0x188] sm:$0xff] }
 0x85c   : > { %v5930_v57 = vpop.trf.xlu1 }
 0x85d   : > { %6088 = vst [vmem:[%s12265_s14 + $0xe0] sm:$0xff] %v6024_v23  ;;  %v6056_v20 = vadd.f32 %v7954_v3, %v5930_v57  ;;  %v7975_v57 = vld [vmem:[%s8090_s16 + $0x98] sm:$0xff] }
 0x85e   : > { %v5899_v44 = vpop.trf.xlu0 }
 0x85f   : > { %6120 = vst [vmem:[%s12265_s14 + $0x1e0] sm:$0xff] %v6056_v20  ;;  %v6026_v43 = vadd.f32 %v7955_v48, %v5899_v44  ;;  %v7976_v44 = vld [vmem:[%s8090_s16 + $0x198] sm:$0xff] }
 0x860   : > { %v5931_v58 = vpop.trf.xlu1 }
 0x861   : > { %6090 = vst [vmem:[%s12265_s14 + $0xf0] sm:$0xff] %v6026_v43  ;;  %v6058_v45 = vadd.f32 %v7956_v6, %v5931_v58  ;;  %v7977_v58 = vld [vmem:[%s8090_s16 + $0xa8] sm:$0xff] }
 0x862   : > { %v5948_v50 = vpop.trf.xlu0 }
 0x863   : > { %6122 = vst [vmem:[%s12265_s14 + $0x1f0] sm:$0xff] %v6058_v45  ;;  %v5997_v42 = vadd.f32 %v7957_v21, %v5948_v50  ;;  %v7978_v50 = vld [vmem:[%s8090_s16 + $0x1a8] sm:$0xff] }
 0x864   : > { %v5980_v34 = vpop.trf.xlu1 }
 0x865   : > { %6061 = vst [vmem:[%s12265_s14 + $0x8] sm:$0xff] %v5997_v42  ;;  %v6029_v55 = vadd.f32 %v7958_v29, %v5980_v34  ;;  %v7979_v34 = vld [vmem:[%s8090_s16 + $0xb8] sm:$0xff] }
 0x866   : > { %v5949_v53 = vpop.trf.xlu0 }
 0x867   : > { %6093 = vst [vmem:[%s12265_s14 + $0x108] sm:$0xff] %v6029_v55  ;;  %v5999_v0 = vadd.f32 %v7959_v61, %v5949_v53  ;;  %v7980_v53 = vld [vmem:[%s8090_s16 + $0x1b8] sm:$0xff] }
 0x868   : > { %v5981_v28 = vpop.trf.xlu1 }
 0x869   : > { %6063 = vst [vmem:[%s12265_s14 + $0x18] sm:$0xff] %v5999_v0  ;;  %v6031_v35 = vadd.f32 %v7960_v63, %v5981_v28  ;;  %v7981_v28 = vld [vmem:[%s8090_s16 + $0xc8] sm:$0xff] }
 0x86a   : > { %v5950_v16 = vpop.trf.xlu0 }
 0x86b   : > { %6095 = vst [vmem:[%s12265_s14 + $0x118] sm:$0xff] %v6031_v35  ;;  %v6001_v15 = vadd.f32 %v7961_v62, %v5950_v16  ;;  %v7982_v16 = vld [vmem:[%s8090_s16 + $0x1c8] sm:$0xff] }
 0x86c   : > { %v5982_v46 = vpop.trf.xlu1 }
 0x86d   : > { %6065 = vst [vmem:[%s12265_s14 + $0x28] sm:$0xff] %v6001_v15  ;;  %v6033_v7 = vadd.f32 %v7962_v10, %v5982_v46  ;;  %v7983_v46 = vld [vmem:[%s8090_s16 + $0xd8] sm:$0xff] }
 0x86e   : > { %v5951_v30 = vpop.trf.xlu0 }
 0x86f   : > { %6097 = vst [vmem:[%s12265_s14 + $0x128] sm:$0xff] %v6033_v7  ;;  %v6003_v18 = vadd.f32 %v7963_v22, %v5951_v30  ;;  %v7984_v30 = vld [vmem:[%s8090_s16 + $0x1d8] sm:$0xff] }
 0x870   : > { %v5983_v24 = vpop.trf.xlu1 }
 0x871   : > { %6067 = vst [vmem:[%s12265_s14 + $0x38] sm:$0xff] %v6003_v18  ;;  %v6035_v8 = vadd.f32 %v7964_v32, %v5983_v24  ;;  %v7985_v24 = vld [vmem:[%s8090_s16 + $0xe8] sm:$0xff] }
 0x872   : > { %v5952_v41 = vpop.trf.xlu0 }
 0x873   : > { %6099 = vst [vmem:[%s12265_s14 + $0x138] sm:$0xff] %v6035_v8  ;;  %v6005_v47 = vadd.f32 %v7965_v4, %v5952_v41  ;;  %v7986_v41 = vld [vmem:[%s8090_s16 + $0x1e8] sm:$0xff] }
 0x874   : > { %v5984_v1 = vpop.trf.xlu1 }
 0x875   : > { %6069 = vst [vmem:[%s12265_s14 + $0x48] sm:$0xff] %v6005_v47  ;;  %v6037_v60 = vadd.f32 %v7966_v39, %v5984_v1  ;;  %v7987_v1 = vld [vmem:[%s8090_s16 + $0xf8] sm:$0xff] }
 0x876   : > { %v5953_v38 = vpop.trf.xlu0 }
 0x877   : > { %6101 = vst [vmem:[%s12265_s14 + $0x148] sm:$0xff] %v6037_v60  ;;  %v6007_v27 = vadd.f32 %v7967_v36, %v5953_v38  ;;  %v7988_v38 = vld [vmem:[%s8090_s16 + $0x1f8] sm:$0xff] }
 0x878   : > { %v5985_v37 = vpop.trf.xlu1 }
 0x879   : > { %6071 = vst [vmem:[%s12265_s14 + $0x58] sm:$0xff] %v6007_v27  ;;  %v6039_v19 = vadd.f32 %v7968_v11, %v5985_v37 }
 0x87a   : > { %v5954_v31 = vpop.trf.xlu0 }
 0x87b   : > { %6103 = vst [vmem:[%s12265_s14 + $0x158] sm:$0xff] %v6039_v19  ;;  %v6009_v40 = vadd.f32 %v7969_v49, %v5954_v31 }
 0x87c   : > { %v5986_v9 = vpop.trf.xlu1 }
 0x87d   : > { %6073 = vst [vmem:[%s12265_s14 + $0x68] sm:$0xff] %v6009_v40  ;;  %v6041_v12 = vadd.f32 %v7970_v17, %v5986_v9 }
 0x87e   : > { %v5955_v13 = vpop.trf.xlu0 }
 0x87f   : > { %6105 = vst [vmem:[%s12265_s14 + $0x168] sm:$0xff] %v6041_v12  ;;  %v6011_v5 = vadd.f32 %v7971_v33, %v5955_v13 }
 0x880   : > { %v5987_v51 = vpop.trf.xlu1 }
 0x881   : > { %6075 = vst [vmem:[%s12265_s14 + $0x78] sm:$0xff] %v6011_v5  ;;  %v6043_v52 = vadd.f32 %v7972_v56, %v5987_v51 }
 0x882   : > { %v5956_v2 = vpop.trf.xlu0 }
 0x883   : > { %6107 = vst [vmem:[%s12265_s14 + $0x178] sm:$0xff] %v6043_v52  ;;  %v6013_v54 = vadd.f32 %v7973_v14, %v5956_v2 }
 0x884   : > { %v5988_v25 = vpop.trf.xlu1 }
 0x885   : > { %6077 = vst [vmem:[%s12265_s14 + $0x88] sm:$0xff] %v6013_v54  ;;  %v6045_v59 = vadd.f32 %v7974_v26, %v5988_v25 }
 0x886   : > { %v5957_v23 = vpop.trf.xlu0 }
 0x887   : > { %6109 = vst [vmem:[%s12265_s14 + $0x188] sm:$0xff] %v6045_v59  ;;  %v6015_v3 = vadd.f32 %v7975_v57, %v5957_v23 }
 0x888   : > { %v5989_v20 = vpop.trf.xlu1 }
 0x889   : > { %6079 = vst [vmem:[%s12265_s14 + $0x98] sm:$0xff] %v6015_v3  ;;  %v6047_v48 = vadd.f32 %v7976_v44, %v5989_v20 }
 0x88a   : > { %v5958_v43 = vpop.trf.xlu0 }
 0x88b   : > { %6111 = vst [vmem:[%s12265_s14 + $0x198] sm:$0xff] %v6047_v48  ;;  %v6017_v6 = vadd.f32 %v7977_v58, %v5958_v43 }
 0x88c   : > { %v5990_v45 = vpop.trf.xlu1 }
 0x88d   : > { %6081 = vst [vmem:[%s12265_s14 + $0xa8] sm:$0xff] %v6017_v6  ;;  %v6049_v21 = vadd.f32 %v7978_v50, %v5990_v45 }
 0x88e   : > { %v5959_v42 = vpop.trf.xlu0 }
 0x88f   : > { %6113 = vst [vmem:[%s12265_s14 + $0x1a8] sm:$0xff] %v6049_v21  ;;  %v6019_v29 = vadd.f32 %v7979_v34, %v5959_v42 }
 0x890   : > { %v5991_v55 = vpop.trf.xlu1 }
 0x891   : > { %6083 = vst [vmem:[%s12265_s14 + $0xb8] sm:$0xff] %v6019_v29  ;;  %v6051_v61 = vadd.f32 %v7980_v53, %v5991_v55 }
 0x892   : > { %v5960_v0 = vpop.trf.xlu0 }
 0x893   : > { %6115 = vst [vmem:[%s12265_s14 + $0x1b8] sm:$0xff] %v6051_v61  ;;  %v6021_v63 = vadd.f32 %v7981_v28, %v5960_v0 }
 0x894   : > { %v5992_v35 = vpop.trf.xlu1 }
 0x895   : > { %6085 = vst [vmem:[%s12265_s14 + $0xc8] sm:$0xff] %v6021_v63  ;;  %v6053_v62 = vadd.f32 %v7982_v16, %v5992_v35 }
 0x896   : > { %v5961_v15 = vpop.trf.xlu0 }
 0x897   : > { %6117 = vst [vmem:[%s12265_s14 + $0x1c8] sm:$0xff] %v6053_v62  ;;  %v6023_v10 = vadd.f32 %v7983_v46, %v5961_v15 }
 0x898   : > { %v5993_v7 = vpop.trf.xlu1 }
 0x899   : > { %6087 = vst [vmem:[%s12265_s14 + $0xd8] sm:$0xff] %v6023_v10  ;;  %v6055_v22 = vadd.f32 %v7984_v30, %v5993_v7 }
 0x89a   : > { %v5962_v18 = vpop.trf.xlu0 }
 0x89b   : > { %6119 = vst [vmem:[%s12265_s14 + $0x1d8] sm:$0xff] %v6055_v22  ;;  %v6025_v32 = vadd.f32 %v7985_v24, %v5962_v18 }
 0x89c   : > { %v5994_v8 = vpop.trf.xlu1 }
 0x89d   : > { %6089 = vst [vmem:[%s12265_s14 + $0xe8] sm:$0xff] %v6025_v32  ;;  %v6057_v4 = vadd.f32 %v7986_v41, %v5994_v8 }
 0x89e   : > { %v5963_v47 = vpop.trf.xlu0 }
 0x89f   : > { %6121 = vst [vmem:[%s12265_s14 + $0x1e8] sm:$0xff] %v6057_v4  ;;  %v6027_v39 = vadd.f32 %v7987_v1, %v5963_v47 }
 0x8a0   : > { %v5995_v60 = vpop.trf.xlu1 }
 0x8a1   : > { %6091 = vst [vmem:[%s12265_s14 + $0xf8] sm:$0xff] %v6027_v39  ;;  %v6059_v36 = vadd.f32 %v7988_v38, %v5995_v60 }
 0x8a3   : > { %6123 = vst [vmem:[%s12265_s14 + $0x1f8] sm:$0xff] %v6059_v36 }
 0x8a4 PF: > { %s19_s11 = sadd.s32 1, %s8011_s11   ;;  %s13578_s30 = smov %s8007_s10 }
 0x8a5   : > { %p16_p5 = scmp.ge.s32.totalorder %s19_s11, 4   ;;  %s13579_s10 = smov %s13581_s12 }
 0x8a7   :  { %18 = sbr.rel (!%p16_p5) target bundleno = 2 (0x2), region = 98 }

</bundles_post_ra>
